<compile_context>
chip_gen: v7x
topology: tpu7x:2x2x1
jax: 0.10.0
libtpu: 0.0.40
codegen_flags: <defaults>
</compile_context>

<pallas_src>
import functools

import jax
import jax.numpy as jnp
from jax.experimental import pallas as pl
from jax.experimental.pallas import tpu as pltpu


def _round_up(x, m):
    return ((x + m - 1) // m) * m


def _pick_tile(total, granule, max_tile, prefer_split):
    """Tile size: multiple of `granule`, <= max_tile; if `prefer_split`, try to get
    at least 2 tiles so a 'parallel' grid axis can feed both v7x TensorCores."""
    padded = _round_up(total, granule)
    tile = min(max_tile, padded)
    if prefer_split and padded // tile < 2 and padded >= 2 * granule:
        tile = _round_up(-(-padded // 2), granule)
    return tile


def _vmem_limit_bytes():
    """Generation-aware VMEM budget: ~48 MiB on v7x (64 MiB phys), ~96 MiB on v5e/v6e."""
    cap = 64 * 1024 * 1024
    try:
        cap = int(getattr(pltpu.get_tpu_info(), "vmem_capacity_bytes", cap))
    except Exception:
        pass
    return int(min(cap * 3 // 4, 96 * 1024 * 1024))


def _is_v5e():
    try:
        kind = jax.devices()[0].device_kind.lower()
    except Exception:
        return False
    return ("v5e" in kind) or ("v5 lite" in kind) or ("v5lite" in kind)


def _spec(shape, index_map, deep_buffer=False):
    """BlockSpec with optional 3-deep pipelining for streamed operands (v5e only)."""
    if deep_buffer:
        return pl.BlockSpec(shape, index_map, pipeline_mode=pl.Buffered(3))
    return pl.BlockSpec(shape, index_map)


def _nnconv_message_kernel(efeat_ref, src_oh_ref, feat_ref, w_enn_ref, b_enn_ref,
                           msg_ref, h_acc_ref, *, in_feats, out_pad):
    """Per-edge messages  m[e, :] = sum_i feat[src(e), i] * edge_nn(efeat_e)[i, :].

    Grid: (edge tiles ["parallel"], node tiles ["arbitrary" reduction]).
    The source gather is a bf16 x bf16 incidence matmul accumulated into a resident
    f32 VMEM scratch across node tiles; the edge-MLP matmul and the in_feats
    contraction only run on the last node tile.
    """
    v = pl.program_id(1)

    @pl.when(v == 0)
    def _init():
        h_acc_ref[...] = jnp.zeros_like(h_acc_ref)

    # bf16 incidence tile x bf16 feat tile -> f32 accumulation (no f32 cast of operands).
    h_acc_ref[...] += jnp.dot(src_oh_ref[...], feat_ref[...],
                              preferred_element_type=jnp.float32)

    @pl.when(v == pl.num_programs(1) - 1)
    def _finalize():
        # Edge MLP: one fused (TE, Fe) @ (Fe, in*out_pad) matmul + bias per edge tile.
        wflat = jnp.dot(efeat_ref[...], w_enn_ref[...],
                        preferred_element_type=jnp.float32) + b_enn_ref[...]
        h = h_acc_ref[...]                                   # (TE, in_feats) f32
        acc = jnp.zeros(msg_ref.shape, jnp.float32)
        # Statically unrolled contraction; out_pad is a multiple of 128 so every slice
        # is a lane-aligned 128-wide block (no masked stores / relayouts).
        for i in range(in_feats):
            acc = acc + h[:, i:i + 1] * wflat[:, i * out_pad:(i + 1) * out_pad]
        # Padded edge rows have h == 0 (zero incidence rows) -> msg == 0 even though
        # wflat there equals the edge-MLP bias; the dst incidence columns of padded
        # edges are zero as well, so padded edges can never leak into the aggregation.
        msg_ref[...] = acc.astype(msg_ref.dtype)


def _nnconv_aggregate_kernel(dst_ohT_ref, msg_ref, scale_ref, feat_ref,
                             w_res_ref, bias_ref, out_ref):
    """Scatter-add bf16 messages into destination-node tiles; f32 resident accumulator.

    Grid: (node tiles ["parallel"], edge tiles ["arbitrary" reduction]).
    Finalize fuses degree scaling ('mean'), the residual projection and the bias add.
    """
    e = pl.program_id(1)

    @pl.when(e == 0)
    def _init():
        out_ref[...] = jnp.zeros_like(out_ref)

    out_ref[...] += jnp.dot(dst_ohT_ref[...], msg_ref[...],
                            preferred_element_type=jnp.float32)

    @pl.when(e == pl.num_programs(1) - 1)
    def _finalize():
        res = jnp.dot(feat_ref[...], w_res_ref[...],
                      preferred_element_type=jnp.float32)
        out_ref[...] = out_ref[...] * scale_ref[...] + res + bias_ref[...]


def nnconv_forward(src, dst, efeat, feat, edge_nn_weight, edge_nn_bias, bias=None,
                   res_weight=None, *, aggregator="sum",
                   te_max=512, tn_max=256, tnk_max=512):
    """NNConv forward.

    src, dst       : (E,) int32 endpoints, edge e goes src[e] -> dst[e]
    efeat          : (E, Fe) f32 edge features
    feat           : (N, in_feats) f32 node features
    edge_nn_weight : (in_feats*out_feats, Fe) torch-layout Linear weight of edge_nn
    edge_nn_bias   : (in_feats*out_feats,)    torch-layout Linear bias of edge_nn
    bias           : (out_feats,) or None
    res_weight     : (out_feats, in_feats) res_fc weight, jnp.eye(...) for Identity,
                     or None for no residual
    aggregator     : 'sum' or 'mean'
    """
    e_num = src.shape[0]
    n, in_feats = feat.shape
    out_feats = edge_nn_weight.shape[0] // in_feats
    fe = efeat.shape[1]

    out_pad = _round_up(out_feats, 128)          # lane-dense outputs (unmasked stores)

    # ---- tile selection (>= 2 tiles on parallel axes when possible, for v7x megacore)
    te = _pick_tile(e_num, 128, te_max, prefer_split=True)      # edge tile, both kernels
    e_pad = _round_up(e_num, te)
    tn = _pick_tile(n, 16, tn_max, prefer_split=True)           # kernel-2 node tile
    n_pad2 = _round_up(n, tn)
    tnk = _pick_tile(n, 128, tnk_max, prefer_split=False)       # kernel-1 node tile
    n_pad1 = _round_up(n, tnk)

    vmem_limit = _vmem_limit_bytes()
    deep = _is_v5e()

    # ---- 0/1 incidence matrices in bf16 (lossless) -- the dominant HBM/VMEM traffic
    edge_ids = jnp.arange(e_num)
    src_oh = jnp.zeros((e_pad, n_pad1), jnp.bfloat16).at[edge_ids, src].set(1)
    dst_ohT = jnp.zeros((n_pad2, e_pad), jnp.bfloat16).at[dst, edge_ids].set(1)

    efeat_p = jnp.zeros((e_pad, fe), jnp.float32).at[:e_num].set(efeat.astype(jnp.float32))
    feat_f32 = feat.astype(jnp.float32)
    feat_k1 = jnp.zeros((n_pad1, in_feats), jnp.bfloat16).at[:n].set(
        feat_f32.astype(jnp.bfloat16))                          # gather operand (bf16)
    feat_k2 = jnp.zeros((n_pad2, in_feats), jnp.float32).at[:n].set(feat_f32)  # residual

    # Degree-based normalisation precomputed in f32 OUTSIDE the kernel.
    if aggregator == "sum":
        scale = jnp.ones((n_pad2, 1), jnp.float32)
    elif aggregator == "mean":
        deg = jnp.zeros((n_pad2,), jnp.float32).at[dst].add(1.0)
        scale = (1.0 / jnp.maximum(deg, 1.0)).reshape(n_pad2, 1)
    else:
        # TODO(synk): 'max' aggregator needs a segmented max (sort-by-dst); not implemented.
        raise NotImplementedError(f"aggregator '{aggregator}' not supported")

    # ---- parameters, zero-padded on the out_feats axis to out_pad lanes
    w_enn_t = jnp.transpose(edge_nn_weight).astype(jnp.float32)          # (Fe, in*out)
    w_enn_t = w_enn_t.reshape(fe, in_feats, out_feats)
    w_enn_t = jnp.pad(w_enn_t, ((0, 0), (0, 0), (0, out_pad - out_feats)))
    w_enn_t = w_enn_t.reshape(fe, in_feats * out_pad)
    b_enn2 = jnp.pad(edge_nn_bias.astype(jnp.float32).reshape(in_feats, out_feats),
                     ((0, 0), (0, out_pad - out_feats))).reshape(1, in_feats * out_pad)
    if res_weight is None:
        w_res_t = jnp.zeros((in_feats, out_pad), jnp.float32)
    else:
        w_res_t = jnp.pad(jnp.transpose(res_weight).astype(jnp.float32),
                          ((0, 0), (0, out_pad - out_feats)))
    if bias is None:
        bias2 = jnp.zeros((1, out_pad), jnp.float32)
    else:
        bias2 = jnp.pad(bias.astype(jnp.float32).reshape(1, out_feats),
                        ((0, 0), (0, out_pad - out_feats)))

    # Kernel 1: per-edge messages. Edge tiles are independent ("parallel"), node tiles
    # are the gather reduction ("arbitrary") accumulated in a resident f32 VMEM scratch.
    msg = pl.pallas_call(
        functools.partial(_nnconv_message_kernel, in_feats=in_feats, out_pad=out_pad),
        out_shape=jax.ShapeDtypeStruct((e_pad, out_pad), jnp.bfloat16),
        grid=(e_pad // te, n_pad1 // tnk),
        in_specs=[
            pl.BlockSpec((te, fe), lambda e, v: (e, 0)),                 # edge features
            _spec((te, tnk), lambda e, v: (e, v), deep),                 # src incidence bf16
            pl.BlockSpec((tnk, in_feats), lambda e, v: (v, 0)),          # node feats bf16
            pl.BlockSpec((fe, in_feats * out_pad), lambda e, v: (0, 0)),  # edge-MLP weight
            pl.BlockSpec((1, in_feats * out_pad), lambda e, v: (0, 0)),   # edge-MLP bias
        ],
        out_specs=pl.BlockSpec((te, out_pad), lambda e, v: (e, 0)),
        scratch_shapes=[pltpu.VMEM((te, in_feats), jnp.float32)],
        compiler_params=pltpu.CompilerParams(
            dimension_semantics=("parallel", "arbitrary"),
            vmem_limit_bytes=vmem_limit),
    )(efeat_p, src_oh, feat_k1, w_enn_t, b_enn2)

    # Kernel 2: scatter-add over edge tiles per destination-node tile. Node tiles are
    # "parallel" (megacore), edge tiles are the reduction ("arbitrary") with the f32
    # output block resident as the accumulator; scale/residual/bias fused in finalize.
    out = pl.pallas_call(
        _nnconv_aggregate_kernel,
        out_shape=jax.ShapeDtypeStruct((n_pad2, out_pad), jnp.float32),
        grid=(n_pad2 // tn, e_pad // te),
        in_specs=[
            _spec((tn, te), lambda i, j: (i, j), deep),                  # dst incidence bf16
            _spec((te, out_pad), lambda i, j: (j, 0), deep),             # messages bf16
            pl.BlockSpec((tn, 1), lambda i, j: (i, 0)),                  # precomputed 1/deg
            pl.BlockSpec((tn, in_feats), lambda i, j: (i, 0)),           # feat (residual) f32
            pl.BlockSpec((in_feats, out_pad), lambda i, j: (0, 0)),      # res_fc weight
            pl.BlockSpec((1, out_pad), lambda i, j: (0, 0)),             # bias
        ],
        out_specs=pl.BlockSpec((tn, out_pad), lambda i, j: (i, 0)),
        compiler_params=pltpu.CompilerParams(
            dimension_semantics=("parallel", "arbitrary"),
            vmem_limit_bytes=vmem_limit),
    )(dst_ohT, msg, scale, feat_k2, w_res_t, bias2)

    return out[:n, :out_feats]


def nnconv_reference(src, dst, efeat, feat, edge_nn_weight, edge_nn_bias, bias=None,
                     res_weight=None, aggregator="sum"):
    """Pure-JAX f32 reference mirroring the PyTorch module."""
    e_num = src.shape[0]
    n, in_feats = feat.shape
    out_feats = edge_nn_weight.shape[0] // in_feats
    w_edge = (efeat @ edge_nn_weight.T + edge_nn_bias).reshape(e_num, in_feats, out_feats)
    msg = feat[src][:, :, None] * w_edge                               # (E, in, out)
    agg = jax.ops.segment_sum(msg, dst, num_segments=n)                # (N, in, out)
    if aggregator == "mean":
        deg = jax.ops.segment_sum(jnp.ones((e_num,), jnp.float32), dst, num_segments=n)
        agg = agg / jnp.maximum(deg, 1.0)[:, None, None]
    rst = agg.sum(axis=1)
    if res_weight is not None:
        rst = rst + feat @ res_weight.T
    if bias is not None:
        rst = rst + bias
    return rst


def _check(name, out, ref, tol=1e-2):
    # bf16 MXU path vs f32 reference: compare max abs error relative to output scale.
    err = float(jnp.max(jnp.abs(out - ref)) / (jnp.max(jnp.abs(ref)) + 1e-8))
    assert err < tol, f"{name} mismatch: max relative error {err:.3e}"


if __name__ == "__main__":
    N, E = 64, 400
    IN_FEATS, OUT_FEATS, EDGE_FEATS = 16, 32, 8

    key = jax.random.PRNGKey(0)
    ks = jax.random.split(key, 8)

    src = jax.random.randint(ks[0], (E,), 0, N)
    dst = jax.random.randint(ks[1], (E,), 0, N)
    efeat = jax.random.normal(ks[2], (E, EDGE_FEATS), dtype=jnp.float32)
    feat = jax.random.normal(ks[3], (N, IN_FEATS), dtype=jnp.float32)

    # edge_nn = nn.Linear(EDGE_FEATS, IN_FEATS * OUT_FEATS) params (torch layout).
    w_enn = (jax.random.normal(ks[4], (IN_FEATS * OUT_FEATS, EDGE_FEATS), dtype=jnp.float32)
             / jnp.sqrt(EDGE_FEATS))
    b_enn = 0.1 * jax.random.normal(ks[5], (IN_FEATS * OUT_FEATS,), dtype=jnp.float32)

    # residual=True with in_feats != out_feats -> res_fc = Linear(IN, OUT, bias=False),
    # xavier_normal_ with gain = calculate_gain('relu') = sqrt(2).
    gain = 2.0 ** 0.5
    xavier_std = gain * (2.0 / (IN_FEATS + OUT_FEATS)) ** 0.5
    w_res = xavier_std * jax.random.normal(ks[6], (OUT_FEATS, IN_FEATS), dtype=jnp.float32)

    # reset_parameters() zero-inits the bias; use a random bias here to exercise the add path.
    bias = 0.1 * jax.random.normal(ks[7], (OUT_FEATS,), dtype=jnp.float32)

    out_sum = nnconv_forward(src, dst, efeat, feat, w_enn, b_enn, bias,
                             res_weight=w_res, aggregator="sum")
    out_sum = jax.block_until_ready(out_sum)
    ref_sum = nnconv_reference(src, dst, efeat, feat, w_enn, b_enn, bias,
                               res_weight=w_res, aggregator="sum")
    assert out_sum.shape == (N, OUT_FEATS)
    _check("sum aggregator", out_sum, ref_sum)

    out_mean = nnconv_forward(src, dst, efeat, feat, w_enn, b_enn, bias,
                              res_weight=w_res, aggregator="mean")
    out_mean = jax.block_until_ready(out_mean)
    ref_mean = nnconv_reference(src, dst, efeat, feat, w_enn, b_enn, bias,
                                res_weight=w_res, aggregator="mean")
    assert out_mean.shape == (N, OUT_FEATS)
    _check("mean aggregator", out_mean, ref_mean)

    print("KERNEL_OK")
</pallas_src>

<mosaic_0001>
module attributes {stable_mosaic.version = 11 : i64} {
  func.func @_nnconv_message_kernel(%arg0: i32, %arg1: i32, %arg2: memref<256x8xf32, #tpu.memory_space<vmem>>, %arg3: memref<256x128xbf16, #tpu.memory_space<vmem>>, %arg4: memref<128x16xbf16, #tpu.memory_space<vmem>>, %arg5: memref<8x2048xf32, #tpu.memory_space<vmem>>, %arg6: memref<1x2048xf32, #tpu.memory_space<vmem>>, %arg7: memref<256x128xbf16, #tpu.memory_space<vmem>>, %arg8: memref<256x16xf32, #tpu.memory_space<vmem>>) attributes {dimension_semantics = [#tpu.dimension_semantics<parallel>, #tpu.dimension_semantics<arbitrary>], iteration_bounds = array<i64: 2, 1>, scalar_prefetch = 0 : i64, scratch_operands = 1 : i64, tpu.core_type = #tpu.core_type<tc>, window_params = [{transform_indices = @transform_0, window_bounds = array<i64: 256, 8>}, {transform_indices = @transform_1, window_bounds = array<i64: 256, 128>}, {transform_indices = @transform_2, window_bounds = array<i64: 128, 16>}, {pipeline_mode = #tpu.pipeline_mode<synchronous>, transform_indices = @transform_3, window_bounds = array<i64: 8, 2048>}, {pipeline_mode = #tpu.pipeline_mode<synchronous>, transform_indices = @transform_4, window_bounds = array<i64: 1, 2048>}, {transform_indices = @transform_5, window_bounds = array<i64: 256, 128>}]} {
    %c0_i32 = arith.constant 0 : i32
    %0 = arith.cmpi eq, %arg1, %c0_i32 : i32
    %1 = arith.extui %0 : i1 to i32
    %c0_i32_0 = arith.constant 0 : i32
    %2 = arith.cmpi ne, %1, %c0_i32_0 : i32
    scf.if %2 {
      %cst_10 = arith.constant 0.000000e+00 : f32
      %12 = vector.broadcast %cst_10 : f32 to vector<256x16xf32>
      %c0_11 = arith.constant 0 : index
      %c0_12 = arith.constant 0 : index
      %13 = vector.load %arg8[%c0_11, %c0_12] : memref<256x16xf32, #tpu.memory_space<vmem>>, vector<256x16xf32>
      tpu.vector_store %arg8[%c0_11, %c0_12], %12 {strides = array<i32>} : memref<256x16xf32, #tpu.memory_space<vmem>>, vector<256x16xf32>,
    } else {
    }
    %c0 = arith.constant 0 : index
    %c0_1 = arith.constant 0 : index
    %3 = vector.load %arg8[%c0, %c0_1] : memref<256x16xf32, #tpu.memory_space<vmem>>, vector<256x16xf32>
    %c0_2 = arith.constant 0 : index
    %c0_3 = arith.constant 0 : index
    %4 = vector.load %arg3[%c0_2, %c0_3] : memref<256x128xbf16, #tpu.memory_space<vmem>>, vector<256x128xbf16>
    %c0_4 = arith.constant 0 : index
    %c0_5 = arith.constant 0 : index
    %5 = vector.load %arg4[%c0_4, %c0_5] : memref<128x16xbf16, #tpu.memory_space<vmem>>, vector<128x16xbf16>
    %cst = arith.constant dense<0.000000e+00> : vector<256x16xf32>
    %6 = tpu.matmul %4, %5, %cst {dimension_numbers = #tpu.dot_dimension_numbers<[1], [0], [0], [1], [0, 0, 1, 1], [], []>} : vector<256x128xbf16>, vector<128x16xbf16>, vector<256x16xf32> -> vector<256x16xf32>
    %7 = arith.addf %3, %6 : vector<256x16xf32>
    %c0_6 = arith.constant 0 : index
    %c0_7 = arith.constant 0 : index
    %8 = vector.load %arg8[%c0_6, %c0_7] : memref<256x16xf32, #tpu.memory_space<vmem>>, vector<256x16xf32>
    tpu.vector_store %arg8[%c0_6, %c0_7], %7 {strides = array<i32>} : memref<256x16xf32, #tpu.memory_space<vmem>>, vector<256x16xf32>,
    %c0_i32_8 = arith.constant 0 : i32
    %9 = arith.cmpi eq, %arg1, %c0_i32_8 : i32
    %10 = arith.extui %9 : i1 to i32
    %c0_i32_9 = arith.constant 0 : i32
    %11 = arith.cmpi ne, %10, %c0_i32_9 : i32
    scf.if %11 {
      %c0_10 = arith.constant 0 : index
      %c0_11 = arith.constant 0 : index
      %12 = vector.load %arg2[%c0_10, %c0_11] : memref<256x8xf32, #tpu.memory_space<vmem>>, vector<256x8xf32>
      %c0_12 = arith.constant 0 : index
      %c0_13 = arith.constant 0 : index
      %13 = vector.load %arg5[%c0_12, %c0_13] : memref<8x2048xf32, #tpu.memory_space<vmem>>, vector<8x2048xf32>
      %cst_14 = arith.constant dense<0.000000e+00> : vector<256x2048xf32>
      %14 = tpu.matmul %12, %13, %cst_14 {dimension_numbers = #tpu.dot_dimension_numbers<[1], [0], [0], [1], [0, 0, 1, 1], [], []>} : vector<256x8xf32>, vector<8x2048xf32>, vector<256x2048xf32> -> vector<256x2048xf32>
      %c0_15 = arith.constant 0 : index
      %c0_16 = arith.constant 0 : index
      %15 = vector.load %arg6[%c0_15, %c0_16] : memref<1x2048xf32, #tpu.memory_space<vmem>>, vector<1x2048xf32>
      %16 = vector.broadcast %15 : vector<1x2048xf32> to vector<256x2048xf32>
      %17 = arith.addf %14, %16 : vector<256x2048xf32>
      %c0_17 = arith.constant 0 : index
      %c0_18 = arith.constant 0 : index
      %18 = vector.load %arg8[%c0_17, %c0_18] : memref<256x16xf32, #tpu.memory_space<vmem>>, vector<256x16xf32>
      %cst_19 = arith.constant 0.000000e+00 : f32
      %19 = vector.broadcast %cst_19 : f32 to vector<256x128xf32>
      %20 = vector.extract_strided_slice %18 {offsets = [0, 0], sizes = [256, 1], strides = [1, 1]} : vector<256x16xf32> to vector<256x1xf32>
      %21 = vector.extract_strided_slice %17 {offsets = [0, 0], sizes = [256, 128], strides = [1, 1]} : vector<256x2048xf32> to vector<256x128xf32>
      %22 = vector.broadcast %20 : vector<256x1xf32> to vector<256x128xf32>
      %23 = arith.mulf %22, %21 : vector<256x128xf32>
      %24 = arith.addf %19, %23 : vector<256x128xf32>
      %25 = vector.extract_strided_slice %18 {offsets = [0, 1], sizes = [256, 1], strides = [1, 1]} : vector<256x16xf32> to vector<256x1xf32>
      %26 = vector.extract_strided_slice %17 {offsets = [0, 128], sizes = [256, 128], strides = [1, 1]} : vector<256x2048xf32> to vector<256x128xf32>
      %27 = vector.broadcast %25 : vector<256x1xf32> to vector<256x128xf32>
      %28 = arith.mulf %27, %26 : vector<256x128xf32>
      %29 = arith.addf %24, %28 : vector<256x128xf32>
      %30 = vector.extract_strided_slice %18 {offsets = [0, 2], sizes = [256, 1], strides = [1, 1]} : vector<256x16xf32> to vector<256x1xf32>
      %31 = vector.extract_strided_slice %17 {offsets = [0, 256], sizes = [256, 128], strides = [1, 1]} : vector<256x2048xf32> to vector<256x128xf32>
      %32 = vector.broadcast %30 : vector<256x1xf32> to vector<256x128xf32>
      %33 = arith.mulf %32, %31 : vector<256x128xf32>
      %34 = arith.addf %29, %33 : vector<256x128xf32>
      %35 = vector.extract_strided_slice %18 {offsets = [0, 3], sizes = [256, 1], strides = [1, 1]} : vector<256x16xf32> to vector<256x1xf32>
      %36 = vector.extract_strided_slice %17 {offsets = [0, 384], sizes = [256, 128], strides = [1, 1]} : vector<256x2048xf32> to vector<256x128xf32>
      %37 = vector.broadcast %35 : vector<256x1xf32> to vector<256x128xf32>
      %38 = arith.mulf %37, %36 : vector<256x128xf32>
      %39 = arith.addf %34, %38 : vector<256x128xf32>
      %40 = vector.extract_strided_slice %18 {offsets = [0, 4], sizes = [256, 1], strides = [1, 1]} : vector<256x16xf32> to vector<256x1xf32>
      %41 = vector.extract_strided_slice %17 {offsets = [0, 512], sizes = [256, 128], strides = [1, 1]} : vector<256x2048xf32> to vector<256x128xf32>
      %42 = vector.broadcast %40 : vector<256x1xf32> to vector<256x128xf32>
      %43 = arith.mulf %42, %41 : vector<256x128xf32>
      %44 = arith.addf %39, %43 : vector<256x128xf32>
      %45 = vector.extract_strided_slice %18 {offsets = [0, 5], sizes = [256, 1], strides = [1, 1]} : vector<256x16xf32> to vector<256x1xf32>
      %46 = vector.extract_strided_slice %17 {offsets = [0, 640], sizes = [256, 128], strides = [1, 1]} : vector<256x2048xf32> to vector<256x128xf32>
      %47 = vector.broadcast %45 : vector<256x1xf32> to vector<256x128xf32>
      %48 = arith.mulf %47, %46 : vector<256x128xf32>
      %49 = arith.addf %44, %48 : vector<256x128xf32>
      %50 = vector.extract_strided_slice %18 {offsets = [0, 6], sizes = [256, 1], strides = [1, 1]} : vector<256x16xf32> to vector<256x1xf32>
      %51 = vector.extract_strided_slice %17 {offsets = [0, 768], sizes = [256, 128], strides = [1, 1]} : vector<256x2048xf32> to vector<256x128xf32>
      %52 = vector.broadcast %50 : vector<256x1xf32> to vector<256x128xf32>
      %53 = arith.mulf %52, %51 : vector<256x128xf32>
      %54 = arith.addf %49, %53 : vector<256x128xf32>
      %55 = vector.extract_strided_slice %18 {offsets = [0, 7], sizes = [256, 1], strides = [1, 1]} : vector<256x16xf32> to vector<256x1xf32>
      %56 = vector.extract_strided_slice %17 {offsets = [0, 896], sizes = [256, 128], strides = [1, 1]} : vector<256x2048xf32> to vector<256x128xf32>
      %57 = vector.broadcast %55 : vector<256x1xf32> to vector<256x128xf32>
      %58 = arith.mulf %57, %56 : vector<256x128xf32>
      %59 = arith.addf %54, %58 : vector<256x128xf32>
      %60 = vector.extract_strided_slice %18 {offsets = [0, 8], sizes = [256, 1], strides = [1, 1]} : vector<256x16xf32> to vector<256x1xf32>
      %61 = vector.extract_strided_slice %17 {offsets = [0, 1024], sizes = [256, 128], strides = [1, 1]} : vector<256x2048xf32> to vector<256x128xf32>
      %62 = vector.broadcast %60 : vector<256x1xf32> to vector<256x128xf32>
      %63 = arith.mulf %62, %61 : vector<256x128xf32>
      %64 = arith.addf %59, %63 : vector<256x128xf32>
      %65 = vector.extract_strided_slice %18 {offsets = [0, 9], sizes = [256, 1], strides = [1, 1]} : vector<256x16xf32> to vector<256x1xf32>
      %66 = vector.extract_strided_slice %17 {offsets = [0, 1152], sizes = [256, 128], strides = [1, 1]} : vector<256x2048xf32> to vector<256x128xf32>
      %67 = vector.broadcast %65 : vector<256x1xf32> to vector<256x128xf32>
      %68 = arith.mulf %67, %66 : vector<256x128xf32>
      %69 = arith.addf %64, %68 : vector<256x128xf32>
      %70 = vector.extract_strided_slice %18 {offsets = [0, 10], sizes = [256, 1], strides = [1, 1]} : vector<256x16xf32> to vector<256x1xf32>
      %71 = vector.extract_strided_slice %17 {offsets = [0, 1280], sizes = [256, 128], strides = [1, 1]} : vector<256x2048xf32> to vector<256x128xf32>
      %72 = vector.broadcast %70 : vector<256x1xf32> to vector<256x128xf32>
      %73 = arith.mulf %72, %71 : vector<256x128xf32>
      %74 = arith.addf %69, %73 : vector<256x128xf32>
      %75 = vector.extract_strided_slice %18 {offsets = [0, 11], sizes = [256, 1], strides = [1, 1]} : vector<256x16xf32> to vector<256x1xf32>
      %76 = vector.extract_strided_slice %17 {offsets = [0, 1408], sizes = [256, 128], strides = [1, 1]} : vector<256x2048xf32> to vector<256x128xf32>
      %77 = vector.broadcast %75 : vector<256x1xf32> to vector<256x128xf32>
      %78 = arith.mulf %77, %76 : vector<256x128xf32>
      %79 = arith.addf %74, %78 : vector<256x128xf32>
      %80 = vector.extract_strided_slice %18 {offsets = [0, 12], sizes = [256, 1], strides = [1, 1]} : vector<256x16xf32> to vector<256x1xf32>
      %81 = vector.extract_strided_slice %17 {offsets = [0, 1536], sizes = [256, 128], strides = [1, 1]} : vector<256x2048xf32> to vector<256x128xf32>
      %82 = vector.broadcast %80 : vector<256x1xf32> to vector<256x128xf32>
      %83 = arith.mulf %82, %81 : vector<256x128xf32>
      %84 = arith.addf %79, %83 : vector<256x128xf32>
      %85 = vector.extract_strided_slice %18 {offsets = [0, 13], sizes = [256, 1], strides = [1, 1]} : vector<256x16xf32> to vector<256x1xf32>
      %86 = vector.extract_strided_slice %17 {offsets = [0, 1664], sizes = [256, 128], strides = [1, 1]} : vector<256x2048xf32> to vector<256x128xf32>
      %87 = vector.broadcast %85 : vector<256x1xf32> to vector<256x128xf32>
      %88 = arith.mulf %87, %86 : vector<256x128xf32>
      %89 = arith.addf %84, %88 : vector<256x128xf32>
      %90 = vector.extract_strided_slice %18 {offsets = [0, 14], sizes = [256, 1], strides = [1, 1]} : vector<256x16xf32> to vector<256x1xf32>
      %91 = vector.extract_strided_slice %17 {offsets = [0, 1792], sizes = [256, 128], strides = [1, 1]} : vector<256x2048xf32> to vector<256x128xf32>
      %92 = vector.broadcast %90 : vector<256x1xf32> to vector<256x128xf32>
      %93 = arith.mulf %92, %91 : vector<256x128xf32>
      %94 = arith.addf %89, %93 : vector<256x128xf32>
      %95 = vector.extract_strided_slice %18 {offsets = [0, 15], sizes = [256, 1], strides = [1, 1]} : vector<256x16xf32> to vector<256x1xf32>
      %96 = vector.extract_strided_slice %17 {offsets = [0, 1920], sizes = [256, 128], strides = [1, 1]} : vector<256x2048xf32> to vector<256x128xf32>
      %97 = vector.broadcast %95 : vector<256x1xf32> to vector<256x128xf32>
      %98 = arith.mulf %97, %96 : vector<256x128xf32>
      %99 = arith.addf %94, %98 : vector<256x128xf32>
      %100 = arith.truncf %99 : vector<256x128xf32> to vector<256x128xbf16>
      %c0_20 = arith.constant 0 : index
      %c0_21 = arith.constant 0 : index
      %101 = vector.load %arg7[%c0_20, %c0_21] : memref<256x128xbf16, #tpu.memory_space<vmem>>, vector<256x128xbf16>
      tpu.vector_store %arg7[%c0_20, %c0_21], %100 {strides = array<i32>} : memref<256x128xbf16, #tpu.memory_space<vmem>>, vector<256x128xbf16>,
    } else {
    }
    return
  }
  func.func @transform_0(%arg0: i32, %arg1: i32) -> (i32, i32) {
    %c0_i32 = arith.constant 0 : i32
    %c0_i32_0 = arith.constant 0 : i32
    return %arg0, %c0_i32 : i32, i32
  }
  func.func @transform_1(%arg0: i32, %arg1: i32) -> (i32, i32) {
    %c0_i32 = arith.constant 0 : i32
    return %arg0, %arg1 : i32, i32
  }
  func.func @transform_2(%arg0: i32, %arg1: i32) -> (i32, i32) {
    %c0_i32 = arith.constant 0 : i32
    %c0_i32_0 = arith.constant 0 : i32
    return %arg1, %c0_i32 : i32, i32
  }
  func.func @transform_3(%arg0: i32, %arg1: i32) -> (i32, i32) {
    %c0_i32 = arith.constant 0 : i32
    %c0_i32_0 = arith.constant 0 : i32
    %c0_i32_1 = arith.constant 0 : i32
    return %c0_i32, %c0_i32_0 : i32, i32
  }
  func.func @transform_4(%arg0: i32, %arg1: i32) -> (i32, i32) {
    %c0_i32 = arith.constant 0 : i32
    %c0_i32_0 = arith.constant 0 : i32
    %c0_i32_1 = arith.constant 0 : i32
    return %c0_i32, %c0_i32_0 : i32, i32
  }
  func.func @transform_5(%arg0: i32, %arg1: i32) -> (i32, i32) {
    %c0_i32 = arith.constant 0 : i32
    %c0_i32_0 = arith.constant 0 : i32
    return %arg0, %c0_i32 : i32, i32
  }
}

</mosaic_0001>

<bundles_post_ra>
// kernel: tpu_custom_call.1
= control target key start
LH: loop header
LB: loop body
LE: loop exit
PB: predicated region body
PF: predicated region fallthrough
CT: control target
= control target key end

     0   :  { %10 = vsyncpa [#allocation4], 0  ;;  %s13006_s0 = inlined_call_operand.vmem [shape: f32[512,8], index: 0, kind: input, shape index: {}]   ;;  %s13007_s1 = inlined_call_operand.vmem [shape: bf16[512,128], index: 1, kind: input, shape index: {}]   ;;  %s13008_s2 = inlined_call_operand.vmem [shape: bf16[128,16], index: 2, kind: input, shape index: {}]   ;;  %s13009_s3 = inlined_call_operand.vmem [shape: f32[8,2048], index: 3, kind: input, shape index: {}]   ;;  %s13010_s4 = inlined_call_operand.vmem [shape: f32[1,2048], index: 4, kind: input, shape index: {}]   ;;  %s13011_s5 = inlined_call_operand.hbm [shape: bf16[512,128], index: 5, kind: output, shape index: {}]  }
   0x1   :  { %12 = vsyncpa [#allocation4 + $0x1], 0  ;;  %s7635_s18 = smov 0   ;;  %s7637_s19 = smov 0  }
   0x2   :  { %s7639_s20 = smov 0   ;;  %s7641_s21 = smov 0  }
   0x3   :  { %s7643_s22 = smov 0   ;;  %s7645_s23 = smov 0  }
   0x4 LB: > { %s6479_s24 = sadd.s32 4294967295, %s7583_s23   ;;  %s6480_s25 = sadd.s32 4294967294, %s7583_s23   ;;  %s7583_s23 = sphi %s7645_s23, %s18_s23   ;;  %s7579_s22 = sphi %s7643_s22, %s14256_s22   ;;  %s7575_s21 = sphi %s7641_s21, %s14255_s21   ;;  %s7571_s20 = sphi %s7639_s20, %s14254_s20   ;;  %s7567_s19 = sphi %s7637_s19, %s14253_s19   ;;  %s7563_s18 = sphi %s7635_s18, %s14252_s18  }
   0x5   : > { %s30_s26 = sadd.s32 1, %s7579_s22  ;;  %s159_s27 = sadd.s32 1, %s7571_s20 }
   0x6   : > { %p32_p0 = scmp.ge.s32.totalorder %s30_s26, 2  ;;  %p169_p1 = scmp.ne.s32.totalorder %s7571_s20, %s7567_s19 }
   0x7   : > { %p170_p2 = scmp.eq.s32.totalorder %s6479_s24, 1  ;;  %p175_p3 = scmp.ne.s32.totalorder %s7567_s19, %s7563_s18 }
   0x8   : > { %s14258_s26 = smov (%p32_p0, %s30_s26), 0  ;;  %p176_p5 = scmp.eq.s32.totalorder %s6480_s25, 1 }
   0x9   : > { %p7675_p4 = por %p170_p2, %p169_p1  ;;  %s156_s29 = ssub.s32 %s7579_s22, %s14258_s26 }
   0xa   : > { %p6484_p6 = scmp.ge.s32.totalorder %s7583_s23, 1  ;;  %p157_p7 = scmp.eq.s32.totalorder %s156_s29, 0 }
   0xb   : > { %p7682_p8 = por %p176_p5, %p175_p3  ;;  %p230_p9 = scmp.lt.s32.totalorder %s7583_s23, 3 }
   0xc   : > { %s7688_s6 = scalar_select %p157_p7, %s7571_s20, %s159_s27  }
   0xd   : > { %p231_p10 = pnand %p6484_p6, %p230_p9 }
   0xf   : > { %234 = sbr.rel (%p231_p10) target bundleno = 1565 (0x61d), region = 40 }
  0x16   : > { %v7263_v0 = vld [vmem:[%s13008_s2] sm:$0xff]   ;;  %v7264_v1 = vld [vmem:[%s13008_s2 + $0x8] sm:$0xff]   ;;  %v13022_v2 = vmov 0.0   ;;  %s6486_s11 = sshll.u32 %s7575_s21, 5  ;;  %v7265_v5 = vld [vmem:[%s13008_s2 + $0x10] sm:$0xff]   ;;  %vm916_vm0 = vcmask 64512  }
  0x17   : > { %1077 = vmatprep.mubr.f32.mxu1 %v13022_v2  ;;  %6959 = vmatprep.subr.bf16.mxu0 %v7263_v0  ;;  %v817_v3 = vld [vmem:[%s13009_s3 + $0x8] sm:$0xff]  ;;  %v816_v4 = vld [vmem:[%s13009_s3] sm:$0xff]  ;;  %p272_p11 = scmp.lt.s32.totalorder %s6486_s11, 63  ;;  %v7266_v7 = vld [vmem:[%s13008_s2 + $0x18] sm:$0xff]   ;;  %vm298_vm1 = vcmask 130048   ;;  %v13016_v61 = vmov 0  }
  0x18   : > { %6960 = vmatpush3.bf16.msra.mxu0 %v7263_v0  ;;  %1013 = vmatprep.subr.mxu1 %v817_v3  ;;  %v7267_v10 = vld [vmem:[%s13008_s2 + $0x20] sm:$0xff]   ;;  %v7268_v12 = vld [vmem:[%s13008_s2 + $0x28] sm:$0xff]   ;;  %v7269_v14 = vld [vmem:[%s13008_s2 + $0x30] sm:$0xff]   ;;  %301 = vst.msk [vmem:[#allocation2 + $0x10] sm:$0xff] %vm298_vm1, %v13022_v2  ;;  %s268_s16 = sand.u32 1, %s7567_s19   ;;  %s6839_s25 = sshll.u32 %s7575_s21, 11 }
  0x19   : > { %6961 = vmatprep.subr.bf16.mxu0 %v7264_v1  ;;  %1014 = vmatpush1.msra.mxu1 %v816_v4  ;;  %s14260_s11 = smov (!%p272_p11, %s6486_s11), 63  ;;  %v7270_v16 = vld [vmem:[%s13008_s2 + $0x38] sm:$0xff]   ;;  %v818_v19 = vld [vmem:[%s13009_s3 + $0x10] sm:$0xff]  ;;  %v821_v31 = vld [vmem:[%s13009_s3 + $0x28] sm:$0xff]  ;;  %299 = vst.msk [vmem:[#allocation2] sm:$0xff] %vm298_vm1, %v13022_v2  ;;  %s6485_s17 = sshll.u32 %s268_s16, 7 }
  0x1a   : > { %s6487_s24 = sshll.u32 %s14260_s11, 3  ;;  %s6489_s7 = sshll.u32 %s14260_s11, 2  ;;  %v819_v18 = vld [vmem:[%s13009_s3 + $0x18] sm:$0xff]  ;;  %300 = vst.msk [vmem:[#allocation2 + $0x8] sm:$0xff] %vm298_vm1, %v13022_v2  ;;  %302 = vst.msk [vmem:[#allocation2 + $0x18] sm:$0xff] %vm298_vm1, %v13022_v2  ;;  %7083 = vset.pattern.permute.xlu1 %v13016_v61  ;;  %7088 = vset.pattern.permute.xlu0 %v13016_v61  ;;  %v820_v63 = vld [vmem:[%s13009_s3 + $0x20] sm:$0xff] }
  0x1b   : > { %s7710_s29 = scalar_lea.vmem %s13006_s0, %s6487_s24  ;;  %s7721_s13 = scalar_lea.vmem %s13007_s1, %s6489_s7  ;;  %7007 = vmatprep.subr.mxu1 %v819_v18  ;;  %303 = vst.msk [vmem:[#allocation2 + $0x20] sm:$0xff] %vm298_vm1, %v13022_v2  ;;  %304 = vst.msk [vmem:[#allocation2 + $0x28] sm:$0xff] %vm298_vm1, %v13022_v2 }
  0x1c   : > { %6962 = vmatpush3.bf16.msra.mxu0 %v7264_v1  ;;  %v7713_v6 = vld [vmem:[%s7710_s29] sm:$0xff]  ;;  %v7727_v8 = vld [vmem:[%s7710_s29 + $0x8] sm:$0xff]  ;;  %v7737_v11 = vld [vmem:[%s7710_s29 + $0x10] sm:$0xff]  ;;  %305 = vst.msk [vmem:[#allocation2 + $0x30] sm:$0xff] %vm298_vm1, %v13022_v2  ;;  %s12875_s24 = scalar_lea.vmem [#allocation3], %s6485_s17  ;;  %s12952_s9 = scalar_lea.hbm %s13011_s5, %s6839_s25 }
  0x1d   : > { %6963 = vmatprep.subr.bf16.mxu0 %v7265_v5  ;;  %6514 = vmatmul.mubr.msk.f32.vlgmr.msra.gmra.mrb[0].mxu1 %vm916_vm0, %v7713_v6  ;;  %v7271_v9 = vld [vmem:[%s7721_s13] sm:$0xff]   ;;  %v7746_v13 = vld [vmem:[%s7710_s29 + $0x18] sm:$0xff]  ;;  %v7764_v17 = vld [vmem:[%s7710_s29 + $0x28] sm:$0xff]  ;;  %306 = vst.msk [vmem:[#allocation2 + $0x38] sm:$0xff] %vm298_vm1, %v13022_v2  ;;  %s6379_s27 = sshll.u32 %s12875_s24, 4  ;;  %s12960_s10 = scalar_lea.sflag [#allocation4], %s268_s16  ;;  %s12954_s27 = int_to_ptr.vmem [resolvable:$true] %s6379_s27 }
  0x1e   : > { %1083 = vmatprep.mubr.f32.mxu1 %v13022_v2  ;;  %6975 = vmatprep.mubr.bf16.mxu0 %v7271_v9  ;;  %v7755_v15 = vld [vmem:[%s7710_s29 + $0x20] sm:$0xff]  ;;  %v7272_v20 = vld [vmem:[%s7721_s13 + $0x8] sm:$0xff]   ;;  %v7777_v21 = vld [vmem:[%s7710_s29 + $0x30] sm:$0xff]  ;;  %307 = vst.msk [vmem:[#allocation2 + $0x40] sm:$0xff] %vm298_vm1, %v13022_v2  ;;  %s7505_s21 = scalar_lea.vmem %s12954_s27, 2048  ;;  %s7602_s12 = smov [#allocation3]  }
  0x1f   : > { %7008 = vmatpush1.msra.mxu1 %v818_v19  ;;  %v7273_v22 = vld [vmem:[%s7721_s13 + $0x10] sm:$0xff]   ;;  %v7784_v23 = vld [vmem:[%s7710_s29 + $0x38] sm:$0xff]  ;;  %v7790_v24 = vld [vmem:[%s7710_s29 + $0x40] sm:$0xff]  ;;  %308 = vst.msk [vmem:[#allocation2 + $0x48] sm:$0xff] %vm298_vm1, %v13022_v2  ;;  %p7506_p12 = scmp.ne.s32.totalorder %s12954_s27, %s7505_s21  ;;  %s7509_s11 = sshll.u32 %s7602_s12, 4  ;;  %s7510_s11 = int_to_ptr.vmem [resolvable:$false] %s7509_s11 }
  0x20   : > { %6964 = vmatpush3.bf16.msra.mxu0 %v7265_v5  ;;  %v7274_v25 = vld [vmem:[%s7721_s13 + $0x18] sm:$0xff]   ;;  %v7275_v26 = vld [vmem:[%s7721_s13 + $0x20] sm:$0xff]   ;;  %v7798_v27 = vld [vmem:[%s7710_s29 + $0x48] sm:$0xff]  ;;  %1527 = vmatprep.subr.mxu1 %v821_v31  ;;  %309 = vst.msk [vmem:[#allocation2 + $0x50] sm:$0xff] %vm298_vm1, %v13022_v2  ;;  %p7512_p1 = scmp.lt.s32.totalorder %s12954_s27, %s7510_s11 }
  0x21   : > { %6965 = vmatprep.subr.bf16.mxu0 %v7266_v7  ;;  %6515 = vmatmul.mubr.msk.f32.gmra.mrb[2].mxu1 %vm916_vm0, %v7727_v8  ;;  %v7804_v28 = vld [vmem:[%s7710_s29 + $0x50] sm:$0xff]  ;;  %v7276_v29 = vld [vmem:[%s7721_s13 + $0x28] sm:$0xff]   ;;  %v7815_v32 = vld [vmem:[%s7710_s29 + $0x58] sm:$0xff]  ;;  %310 = vst.msk [vmem:[#allocation2 + $0x58] sm:$0xff] %vm298_vm1, %v13022_v2  ;;  %p7507_p13 = pnand %p7506_p12, %p7675_p4 }
  0x22   : > { %1089 = vmatprep.mubr.f32.mxu1 %v13022_v2  ;;  %v7277_v30 = vld [vmem:[%s7721_s13 + $0x30] sm:$0xff]   ;;  %v7821_v33 = vld [vmem:[%s7710_s29 + $0x60] sm:$0xff]  ;;  %v7278_v34 = vld [vmem:[%s7721_s13 + $0x38] sm:$0xff]   ;;  %311 = vst.msk [vmem:[#allocation2 + $0x60] sm:$0xff] %vm298_vm1, %v13022_v2 }
  0x23   : > { %v7279_v35 = vld [vmem:[%s7721_s13 + $0x40] sm:$0xff]   ;;  %v7829_v36 = vld [vmem:[%s7710_s29 + $0x68] sm:$0xff]  ;;  %v7835_v37 = vld [vmem:[%s7710_s29 + $0x70] sm:$0xff]  ;;  %312 = vst.msk [vmem:[#allocation2 + $0x68] sm:$0xff] %vm298_vm1, %v13022_v2  ;;  %p7508_p0 = pneg %p7507_p13 }
  0x24   : > { %6966 = vmatpush3.bf16.msra.mxu0 %v7266_v7  ;;  %v7280_v38 = vld [vmem:[%s7721_s13 + $0x48] sm:$0xff]   ;;  %v7281_v39 = vld [vmem:[%s7721_s13 + $0x50] sm:$0xff]   ;;  %v7843_v40 = vld [vmem:[%s7710_s29 + $0x78] sm:$0xff]  ;;  %313 = vst.msk [vmem:[#allocation2 + $0x70] sm:$0xff] %vm298_vm1, %v13022_v2 }
  0x25   : > { %6967 = vmatprep.subr.bf16.mxu0 %v7267_v10  ;;  %6516 = vmatmul.mubr.msk.f32.gmra.mrb[4].mxu1 %vm916_vm0, %v7737_v11  ;;  %v7849_v41 = vld [vmem:[%s7710_s29 + $0x80] sm:$0xff]  ;;  %v7282_v42 = vld [vmem:[%s7721_s13 + $0x58] sm:$0xff]   ;;  %v7857_v44 = vld [vmem:[%s7710_s29 + $0x88] sm:$0xff]  ;;  %314 = vst.msk [vmem:[#allocation2 + $0x78] sm:$0xff] %vm298_vm1, %v13022_v2 }
  0x26   : > { %1095 = vmatprep.mubr.f32.mxu1 %v13022_v2  ;;  %v7283_v43 = vld [vmem:[%s7721_s13 + $0x60] sm:$0xff]   ;;  %v7863_v45 = vld [vmem:[%s7710_s29 + $0x90] sm:$0xff]  ;;  %v7284_v46 = vld [vmem:[%s7721_s13 + $0x68] sm:$0xff]   ;;  %315 = vst.msk [vmem:[#allocation2 + $0x80] sm:$0xff] %vm298_vm1, %v13022_v2 }
  0x27   : > { %316 = vst.msk [vmem:[#allocation2 + $0x88] sm:$0xff] %vm298_vm1, %v13022_v2  ;;  %317 = vst.msk [vmem:[#allocation2 + $0x90] sm:$0xff] %vm298_vm1, %v13022_v2  ;;  %v7285_v47 = vld [vmem:[%s7721_s13 + $0x70] sm:$0xff]   ;;  %v7935_v48 = vld [vmem:[%s7710_s29 + $0x98] sm:$0xff] }
  0x28   : > { %6968 = vmatpush3.bf16.msra.mxu0 %v7267_v10  ;;  %318 = vst.msk [vmem:[#allocation2 + $0x98] sm:$0xff] %vm298_vm1, %v13022_v2  ;;  %319 = vst.msk [vmem:[#allocation2 + $0xa0] sm:$0xff] %vm298_vm1, %v13022_v2  ;;  %v7941_v49 = vld [vmem:[%s7710_s29 + $0xa0] sm:$0xff]  ;;  %v7286_v50 = vld [vmem:[%s7721_s13 + $0x78] sm:$0xff]  }
  0x29   : > { %6969 = vmatprep.subr.bf16.mxu0 %v7268_v12  ;;  %6517 = vmatmul.mubr.msk.f32.gmra.mrb[6].mxu1 %vm916_vm0, %v7746_v13  ;;  %320 = vst.msk [vmem:[#allocation2 + $0xa8] sm:$0xff] %vm298_vm1, %v13022_v2  ;;  %321 = vst.msk [vmem:[#allocation2 + $0xb0] sm:$0xff] %vm298_vm1, %v13022_v2  ;;  %v7948_v51 = vld [vmem:[%s7710_s29 + $0xa8] sm:$0xff]  ;;  %v7955_v52 = vld [vmem:[%s7710_s29 + $0xb0] sm:$0xff] }
  0x2a   : > { %1101 = vmatprep.mubr.f32.mxu1 %v13022_v2  ;;  %322 = vst.msk [vmem:[#allocation2 + $0xb8] sm:$0xff] %vm298_vm1, %v13022_v2  ;;  %323 = vst.msk [vmem:[#allocation2 + $0xc0] sm:$0xff] %vm298_vm1, %v13022_v2  ;;  %v7961_v53 = vld [vmem:[%s7710_s29 + $0xb8] sm:$0xff]  ;;  %v7970_v54 = vld [vmem:[%s7710_s29 + $0xc0] sm:$0xff] }
  0x2b   : > { %324 = vst.msk [vmem:[#allocation2 + $0xc8] sm:$0xff] %vm298_vm1, %v13022_v2  ;;  %325 = vst.msk [vmem:[#allocation2 + $0xd0] sm:$0xff] %vm298_vm1, %v13022_v2  ;;  %v7979_v55 = vld [vmem:[%s7710_s29 + $0xc8] sm:$0xff]  ;;  %v7988_v56 = vld [vmem:[%s7710_s29 + $0xd0] sm:$0xff] }
  0x2c   : > { %6970 = vmatpush3.bf16.msra.mxu0 %v7268_v12  ;;  %326 = vst.msk [vmem:[#allocation2 + $0xd8] sm:$0xff] %vm298_vm1, %v13022_v2  ;;  %327 = vst.msk [vmem:[#allocation2 + $0xe0] sm:$0xff] %vm298_vm1, %v13022_v2  ;;  %v7997_v57 = vld [vmem:[%s7710_s29 + $0xd8] sm:$0xff]  ;;  %v8006_v58 = vld [vmem:[%s7710_s29 + $0xe0] sm:$0xff] }
  0x2d   : > { %6971 = vmatprep.subr.bf16.mxu0 %v7269_v14  ;;  %6518 = vmatmul.mubr.msk.f32.gmra.mrb[8].mxu1 %vm916_vm0, %v7755_v15  ;;  %328 = vst.msk [vmem:[#allocation2 + $0xe8] sm:$0xff] %vm298_vm1, %v13022_v2  ;;  %329 = vst.msk [vmem:[#allocation2 + $0xf0] sm:$0xff] %vm298_vm1, %v13022_v2  ;;  %v8015_v59 = vld [vmem:[%s7710_s29 + $0xe8] sm:$0xff]  ;;  %v8024_v60 = vld [vmem:[%s7710_s29 + $0xf0] sm:$0xff] }
  0x2e   : > { %1107 = vmatprep.mubr.f32.mxu1 %v13022_v2  ;;  %330 = vst.msk [vmem:[#allocation2 + $0xf8] sm:$0xff] %vm298_vm1, %v13022_v2  ;;  %v8035_v62 = vld [vmem:[%s7710_s29 + $0xf8] sm:$0xff] }
  0x30   : > { %6972 = vmatpush3.bf16.msra.mxu0 %v7269_v14  ;;  %v331_v14 = vld [vmem:[#allocation2] sm:$0xff] }
  0x31   : > { %6973 = vmatprep.subr.bf16.mxu0 %v7270_v16  ;;  %6519 = vmatmul.mubr.msk.f32.gmra.mrb[10].mxu1 %vm916_vm0, %v7764_v17 }
  0x32   : > { %1113 = vmatprep.mubr.f32.mxu1 %v13022_v2 }
  0x34   : > { %6974 = vmatpush3.bf16.msra.mxu0 %v7270_v16 }
  0x35   : > { %1270 = vmatprep.subr.mxu0 %v819_v18  ;;  %6520 = vmatmul.mubr.msk.f32.gmra.mrb[12].mxu1 %vm916_vm0, %v7777_v21 }
  0x36   : > { %1119 = vmatprep.mubr.f32.mxu1 %v13022_v2 }
  0x37   : > { %6976 = vmatmul.mubr.bf16.vlgmr.msra.gmra.mrb[0].mxu0 %v7272_v20 }
  0x38   : > { %6979 = vmatprep.mubr.bf16.mxu0 %v7273_v22  ;;  %1271 = vmatpush1.msra.mxu0 %v818_v19 }
  0x39   : > { %6521 = vmatmul.mubr.msk.f32.gmra.mrb[14].mxu1 %vm916_vm0, %v7784_v23 }
  0x3a   : > { %1125 = vmatprep.mubr.f32.mxu1 %v13022_v2 }
  0x3d   : > { %6522 = vmatmul.mubr.msk.f32.gmra.mrb[16].mxu1 %vm916_vm0, %v7790_v24 }
  0x3e   : > { %1131 = vmatprep.mubr.f32.mxu1 %v13022_v2 }
  0x3f   : > { %6980 = vmatmul.mubr.bf16.gmra.mrb[4].mxu0 %v7274_v25 }
  0x40   : > { %6983 = vmatprep.mubr.bf16.mxu0 %v7275_v26 }
  0x41   : > { %6523 = vmatmul.mubr.msk.f32.gmra.mrb[18].mxu1 %vm916_vm0, %v7798_v27 }
  0x42   : > { %1137 = vmatprep.mubr.f32.mxu1 %v13022_v2 }
  0x45   : > { %6524 = vmatmul.mubr.msk.f32.gmra.mrb[20].mxu1 %vm916_vm0, %v7804_v28 }
  0x46   : > { %1143 = vmatprep.mubr.f32.mxu1 %v13022_v2 }
  0x47   : > { %6984 = vmatmul.mubr.bf16.gmra.mrb[8].mxu0 %v7276_v29  ;;  %v337_v29 = vld [vmem:[#allocation2 + $0x30] sm:$0xff] }
  0x48   : > { %6987 = vmatprep.mubr.bf16.mxu0 %v7277_v30  ;;  %v335_v30 = vld [vmem:[#allocation2 + $0x20] sm:$0xff] }
  0x49   : > { %6525 = vmatmul.mubr.msk.f32.gmra.mrb[22].mxu1 %vm916_vm0, %v7815_v32 }
  0x4a   : > { %1149 = vmatprep.mubr.f32.mxu1 %v13022_v2 }
  0x4d   : > { %6526 = vmatmul.mubr.msk.f32.gmra.mrb[24].mxu1 %vm916_vm0, %v7821_v33 }
  0x4e   : > { %1155 = vmatprep.mubr.f32.mxu1 %v13022_v2 }
  0x4f   : > { %6988 = vmatmul.mubr.bf16.gmra.mrb[12].mxu0 %v7278_v34 }
  0x50   : > { %6991 = vmatprep.mubr.bf16.mxu0 %v7279_v35 }
  0x51   : > { %6527 = vmatmul.mubr.msk.f32.gmra.mrb[26].mxu1 %vm916_vm0, %v7829_v36 }
  0x52   : > { %1161 = vmatprep.mubr.f32.mxu1 %v13022_v2 }
  0x55   : > { %6528 = vmatmul.mubr.msk.f32.gmra.mrb[28].mxu1 %vm916_vm0, %v7835_v37 }
  0x56   : > { %1167 = vmatprep.mubr.f32.mxu1 %v13022_v2 }
  0x57   : > { %6992 = vmatmul.mubr.bf16.gmra.mrb[16].mxu0 %v7280_v38 }
  0x58   : > { %6995 = vmatprep.mubr.bf16.mxu0 %v7281_v39 }
  0x59   : > { %6529 = vmatmul.mubr.msk.f32.gmra.mrb[30].mxu1 %vm916_vm0, %v7843_v40 }
  0x5a   : > { %1173 = vmatprep.mubr.f32.mxu1 %v13022_v2 }
  0x5d   : > { %6530 = vmatmul.mubr.msk.f32.gmra.mrb[32].mxu1 %vm916_vm0, %v7849_v41 }
  0x5e   : > { %1179 = vmatprep.mubr.f32.mxu1 %v13022_v2 }
  0x5f   : > { %6996 = vmatmul.mubr.bf16.gmra.mrb[20].mxu0 %v7282_v42 }
  0x60   : > { %6999 = vmatprep.mubr.bf16.mxu0 %v7283_v43 }
  0x61   : > { %6531 = vmatmul.mubr.msk.f32.gmra.mrb[34].mxu1 %vm916_vm0, %v7857_v44 }
  0x62   : > { %1185 = vmatprep.mubr.f32.mxu1 %v13022_v2 }
  0x65   : > { %6532 = vmatmul.mubr.msk.f32.gmra.mrb[36].mxu1 %vm916_vm0, %v7863_v45 }
  0x66   : > { %1191 = vmatprep.mubr.f32.mxu1 %v13022_v2 }
  0x67   : > { %7000 = vmatmul.mubr.bf16.gmra.mrb[24].mxu0 %v7284_v46 }
  0x68   : > { %7003 = vmatprep.mubr.bf16.mxu0 %v7285_v47  ;;  %v341_v47 = vld [vmem:[#allocation2 + $0x50] sm:$0xff] }
  0x69   : > { %6533 = vmatmul.mubr.msk.f32.gmra.mrb[38].mxu1 %vm916_vm0, %v7935_v48 }
  0x6a   : > { %1197 = vmatprep.mubr.f32.mxu1 %v13022_v2 }
  0x6d   : > { %6534 = vmatmul.mubr.msk.f32.gmra.mrb[40].mxu1 %vm916_vm0, %v7941_v49 }
  0x6e   : > { %1203 = vmatprep.mubr.f32.mxu1 %v13022_v2 }
  0x6f   : > { %7004 = vmatmul.mubr.bf16.gmra.mrb[28].mxu0 %v7286_v50  ;;  %v13020_v50 = vmov 1  }
  0x70   : > { %1334 = vmatprep.mubr.f32.mxu0 %v13022_v2 }
  0x71   : > { %6535 = vmatmul.mubr.msk.f32.gmra.mrb[42].mxu1 %vm916_vm0, %v7948_v51 }
  0x72   : > { %1209 = vmatprep.mubr.f32.mxu1 %v13022_v2 }
  0x75   : > { %6536 = vmatmul.mubr.msk.f32.gmra.mrb[44].mxu1 %vm916_vm0, %v7955_v52 }
  0x76   : > { %1215 = vmatprep.mubr.f32.mxu1 %v13022_v2 }
  0x77   : > { %6546 = vmatmul.mubr.msk.f32.vlgmr.msra.gmra.mrb[32].mxu0 %vm916_vm0, %v7713_v6 }
  0x78   : > { %1340 = vmatprep.mubr.f32.mxu0 %v13022_v2 }
  0x79   : > { %6537 = vmatmul.mubr.msk.f32.gmra.mrb[46].mxu1 %vm916_vm0, %v7961_v53 }
  0x7a   : > { %1221 = vmatprep.mubr.f32.mxu1 %v13022_v2 }
  0x7b   : > { %6547 = vmatmul.mubr.msk.f32.gmra.mrb[34].mxu0 %vm916_vm0, %v7727_v8 }
  0x7c   : > { %1346 = vmatprep.mubr.f32.mxu0 %v13022_v2 }
  0x7d   : > { %6538 = vmatmul.mubr.msk.f32.gmra.mrb[48].mxu1 %vm916_vm0, %v7970_v54 }
  0x7e   : > { %1227 = vmatprep.mubr.f32.mxu1 %v13022_v2 }
  0x7f   : > { %6548 = vmatmul.mubr.msk.f32.gmra.mrb[36].mxu0 %vm916_vm0, %v7737_v11 }
  0x80   : > { %1352 = vmatprep.mubr.f32.mxu0 %v13022_v2 }
  0x81   : > { %6539 = vmatmul.mubr.msk.f32.gmra.mrb[50].mxu1 %vm916_vm0, %v7979_v55 }
  0x82   : > { %1233 = vmatprep.mubr.f32.mxu1 %v13022_v2 }
  0x83   : > { %6549 = vmatmul.mubr.msk.f32.gmra.mrb[38].mxu0 %vm916_vm0, %v7746_v13 }
  0x84   : > { %1358 = vmatprep.mubr.f32.mxu0 %v13022_v2 }
  0x85   : > { %6540 = vmatmul.mubr.msk.f32.gmra.mrb[52].mxu1 %vm916_vm0, %v7988_v56 }
  0x86   : > { %1239 = vmatprep.mubr.f32.mxu1 %v13022_v2 }
  0x87   : > { %6550 = vmatmul.mubr.msk.f32.gmra.mrb[40].mxu0 %vm916_vm0, %v7755_v15 }
  0x88   : > { %1364 = vmatprep.mubr.f32.mxu0 %v13022_v2 }
  0x89   : > { %6541 = vmatmul.mubr.msk.f32.gmra.mrb[54].mxu1 %vm916_vm0, %v7997_v57 }
  0x8a   : > { %1245 = vmatprep.mubr.f32.mxu1 %v13022_v2 }
  0x8b   : > { %6551 = vmatmul.mubr.msk.f32.gmra.mrb[42].mxu0 %vm916_vm0, %v7764_v17 }
  0x8c   : > { %1370 = vmatprep.mubr.f32.mxu0 %v13022_v2 }
  0x8d   : > { %6542 = vmatmul.mubr.msk.f32.gmra.mrb[56].mxu1 %vm916_vm0, %v8006_v58 }
  0x8e   : > { %1251 = vmatprep.mubr.f32.mxu1 %v13022_v2 }
  0x8f   : > { %6552 = vmatmul.mubr.msk.f32.gmra.mrb[44].mxu0 %vm916_vm0, %v7777_v21 }
  0x90   : > { %1376 = vmatprep.mubr.f32.mxu0 %v13022_v2 }
  0x91   : > { %6543 = vmatmul.mubr.msk.f32.gmra.mrb[58].mxu1 %vm916_vm0, %v8015_v59 }
  0x92   : > { %1257 = vmatprep.mubr.f32.mxu1 %v13022_v2 }
  0x93   : > { %6553 = vmatmul.mubr.msk.f32.gmra.mrb[46].mxu0 %vm916_vm0, %v7784_v23 }
  0x94   : > { %1382 = vmatprep.mubr.f32.mxu0 %v13022_v2 }
  0x95   : > { %6544 = vmatmul.mubr.msk.f32.gmra.mrb[60].mxu1 %vm916_vm0, %v8024_v60 }
  0x96   : > { %1263 = vmatprep.mubr.f32.mxu1 %v13022_v2 }
  0x97   : > { %6554 = vmatmul.mubr.msk.f32.gmra.mrb[48].mxu0 %vm916_vm0, %v7790_v24 }
  0x98   : > { %1388 = vmatprep.mubr.f32.mxu0 %v13022_v2 }
  0x99   : > { %6545 = vmatmul.mubr.msk.f32.gmra.mrb[62].mxu1 %vm916_vm0, %v8035_v62 }
  0x9a   : > { %1460 = vmatprep.mubr.f32.mxu1 %v13022_v2 }
  0x9b   : > { %6555 = vmatmul.mubr.msk.f32.gmra.mrb[50].mxu0 %vm916_vm0, %v7798_v27 }
  0x9c   : > { %1394 = vmatprep.mubr.f32.mxu0 %v13022_v2 }
  0x9d   : > { %6567 = vmatmul.mubr.msk.f32.vlgmr.msra.gmra.mrb[64].mxu1 %vm916_vm0, %v7948_v51 }
  0x9e   : > { %1466 = vmatprep.mubr.f32.mxu1 %v13022_v2  ;;  %1528 = vmatpush1.msra.mxu1 %v820_v63 }
  0x9f   : > { %6556 = vmatmul.mubr.msk.f32.gmra.mrb[52].mxu0 %vm916_vm0, %v7804_v28 }
  0xa0   : > { %1400 = vmatprep.mubr.f32.mxu0 %v13022_v2 }
  0xa1   : > { %6568 = vmatmul.mubr.msk.f32.gmra.mrb[66].mxu1 %vm916_vm0, %v7955_v52 }
  0xa2   : > { %1472 = vmatprep.mubr.f32.mxu1 %v13022_v2 }
  0xa3   : > { %6557 = vmatmul.mubr.msk.f32.gmra.mrb[54].mxu0 %vm916_vm0, %v7815_v32 }
  0xa4   : > { %1406 = vmatprep.mubr.f32.mxu0 %v13022_v2 }
  0xa5   : > { %6569 = vmatmul.mubr.msk.f32.gmra.mrb[68].mxu1 %vm916_vm0, %v7961_v53 }
  0xa6   : > { %1478 = vmatprep.mubr.f32.mxu1 %v13022_v2 }
  0xa7   : > { %6558 = vmatmul.mubr.msk.f32.gmra.mrb[56].mxu0 %vm916_vm0, %v7821_v33 }
  0xa8   : > { %1412 = vmatprep.mubr.f32.mxu0 %v13022_v2 }
  0xa9   : > { %6570 = vmatmul.mubr.msk.f32.gmra.mrb[70].mxu1 %vm916_vm0, %v7970_v54 }
  0xaa   : > { %1484 = vmatprep.mubr.f32.mxu1 %v13022_v2 }
  0xab   : > { %6559 = vmatmul.mubr.msk.f32.gmra.mrb[58].mxu0 %vm916_vm0, %v7829_v36 }
  0xac   : > { %1418 = vmatprep.mubr.f32.mxu0 %v13022_v2 }
  0xad   : > { %6571 = vmatmul.mubr.msk.f32.gmra.mrb[72].mxu1 %vm916_vm0, %v7979_v55 }
  0xae   : > { %1490 = vmatprep.mubr.f32.mxu1 %v13022_v2 }
  0xaf   : > { %6560 = vmatmul.mubr.msk.f32.gmra.mrb[60].mxu0 %vm916_vm0, %v7835_v37 }
  0xb0   : > { %1424 = vmatprep.mubr.f32.mxu0 %v13022_v2 }
  0xb1   : > { %6572 = vmatmul.mubr.msk.f32.gmra.mrb[74].mxu1 %vm916_vm0, %v7988_v56 }
  0xb2   : > { %1496 = vmatprep.mubr.f32.mxu1 %v13022_v2 }
  0xb3   : > { %6561 = vmatmul.mubr.msk.f32.gmra.mrb[62].mxu0 %vm916_vm0, %v7843_v40 }
  0xb4   : > { %1430 = vmatprep.mubr.f32.mxu0 %v13022_v2 }
  0xb5   : > { %6573 = vmatmul.mubr.msk.f32.gmra.mrb[76].mxu1 %vm916_vm0, %v7997_v57 }
  0xb6   : > { %1502 = vmatprep.mubr.f32.mxu1 %v13022_v2 }
  0xb7   : > { %6562 = vmatmul.mubr.msk.f32.gmra.mrb[64].mxu0 %vm916_vm0, %v7849_v41 }
  0xb8   : > { %1436 = vmatprep.mubr.f32.mxu0 %v13022_v2 }
  0xb9   : > { %6574 = vmatmul.mubr.msk.f32.gmra.mrb[78].mxu1 %vm916_vm0, %v8006_v58 }
  0xba   : > { %1508 = vmatprep.mubr.f32.mxu1 %v13022_v2 }
  0xbb   : > { %6563 = vmatmul.mubr.msk.f32.gmra.mrb[66].mxu0 %vm916_vm0, %v7857_v44 }
  0xbc   : > { %1442 = vmatprep.mubr.f32.mxu0 %v13022_v2 }
  0xbd   : > { %6575 = vmatmul.mubr.msk.f32.gmra.mrb[80].mxu1 %vm916_vm0, %v8015_v59 }
  0xbe   : > { %1514 = vmatprep.mubr.f32.mxu1 %v13022_v2 }
  0xbf   : > { %6564 = vmatmul.mubr.msk.f32.gmra.mrb[68].mxu0 %vm916_vm0, %v7863_v45 }
  0xc0   : > { %1448 = vmatprep.mubr.f32.mxu0 %v13022_v2 }
  0xc1   : > { %6576 = vmatmul.mubr.msk.f32.gmra.mrb[82].mxu1 %vm916_vm0, %v8024_v60 }
  0xc2   : > { %1520 = vmatprep.mubr.f32.mxu1 %v13022_v2 }
  0xc3   : > { %6565 = vmatmul.mubr.msk.f32.gmra.mrb[70].mxu0 %vm916_vm0, %v7935_v48 }
  0xc4   : > { %1454 = vmatprep.mubr.f32.mxu0 %v13022_v2 }
  0xc5   : > { %6577 = vmatmul.mubr.msk.f32.gmra.mrb[84].mxu1 %vm916_vm0, %v8035_v62 }
  0xc6   : > { %1591 = vmatprep.mubr.f32.mxu1 %v13022_v2 }
  0xc7   : > { %6566 = vmatmul.mubr.msk.f32.gmra.mrb[72].mxu0 %vm916_vm0, %v7941_v49 }
  0xc8   : > { %1848 = vmatprep.mubr.f32.mxu0 %v13022_v2 }
  0xc9   : > { %6578 = vmatmul.mubr.msk.f32.vlgmr.msra.gmra.mrb[86].mxu1 %vm916_vm0, %v7713_v6 }
  0xca   : > { %1597 = vmatprep.mubr.f32.mxu1 %v13022_v2 }
  0xcd   : > { %6579 = vmatmul.mubr.msk.f32.gmra.mrb[88].mxu1 %vm916_vm0, %v7727_v8 }
  0xce   : > { %1603 = vmatprep.mubr.f32.mxu1 %v13022_v2 }
  0xd1   : > { %6580 = vmatmul.mubr.msk.f32.gmra.mrb[90].mxu1 %vm916_vm0, %v7737_v11 }
  0xd2   : > { %1609 = vmatprep.mubr.f32.mxu1 %v13022_v2 }
  0xd5   : > { %6581 = vmatmul.mubr.msk.f32.gmra.mrb[92].mxu1 %vm916_vm0, %v7746_v13  ;;  %v333_v13 = vld [vmem:[#allocation2 + $0x10] sm:$0xff] }
  0xd6   : > { %1615 = vmatprep.mubr.f32.mxu1 %v13022_v2 }
  0xd9   : > { %6582 = vmatmul.mubr.msk.f32.gmra.mrb[94].mxu1 %vm916_vm0, %v7755_v15 }
  0xda   : > { %1621 = vmatprep.mubr.f32.mxu1 %v13022_v2 }
  0xdd   : > { %6583 = vmatmul.mubr.msk.f32.gmra.mrb[96].mxu1 %vm916_vm0, %v7764_v17  ;;  %v334_v17 = vld [vmem:[#allocation2 + $0x18] sm:$0xff] }
  0xde   : > { %1627 = vmatprep.mubr.f32.mxu1 %v13022_v2 }
  0xe1   : > { %6584 = vmatmul.mubr.msk.f32.gmra.mrb[98].mxu1 %vm916_vm0, %v7777_v21  ;;  %v332_v21 = vld [vmem:[#allocation2 + $0x8] sm:$0xff] }
  0xe2   : > { %1633 = vmatprep.mubr.f32.mxu1 %v13022_v2 }
  0xe5   : > { %6585 = vmatmul.mubr.msk.f32.gmra.mrb[100].mxu1 %vm916_vm0, %v7784_v23 }
  0xe6   : > { %1639 = vmatprep.mubr.f32.mxu1 %v13022_v2 }
  0xe9   : > { %6586 = vmatmul.mubr.msk.f32.gmra.mrb[102].mxu1 %vm916_vm0, %v7790_v24 }
  0xea   : > { %1645 = vmatprep.mubr.f32.mxu1 %v13022_v2 }
  0xed   : > { %6587 = vmatmul.mubr.msk.f32.gmra.mrb[104].mxu1 %vm916_vm0, %v7798_v27 }
  0xee   : > { %1651 = vmatprep.mubr.f32.mxu1 %v13022_v2 }
  0xf0   : > { %v8145_v0 = vpop.f32.mrb[0].mxu1 }
  0xf1   : > { %6588 = vmatmul.mubr.msk.f32.gmra.mrb[106].mxu1 %vm916_vm0, %v7804_v28  ;;  %v8149_v1 = vpop.f32.mrb[1].mxu1 }
  0xf2   : > { %1657 = vmatprep.mubr.f32.mxu1 %v13022_v2 }
  0xf4   : > { %v8152_v3 = vpop.f32.mrb[2].mxu1 }
  0xf5   : > { %6589 = vmatmul.mubr.msk.f32.gmra.mrb[108].mxu1 %vm916_vm0, %v7815_v32  ;;  %v8156_v4 = vpop.f32.mrb[3].mxu1 }
  0xf6   : > { %1663 = vmatprep.mubr.f32.mxu1 %v13022_v2 }
  0xf8   : > { %v8159_v5 = vpop.f32.mrb[4].mxu1 }
  0xf9   : > { %v8161_v6 = vpop.f32.mrb[5].mxu1  ;;  %6590 = vmatmul.mubr.msk.f32.gmra.mrb[110].mxu1 %vm916_vm0, %v7821_v33  ;;  %v338_v33 = vld [vmem:[#allocation2 + $0x38] sm:$0xff] }
  0xfa   : > { %1669 = vmatprep.mubr.f32.mxu1 %v13022_v2 }
  0xfc   : > { %v8166_v7 = vpop.f32.mrb[6].mxu1 }
  0xfd   : > { %v8168_v8 = vpop.f32.mrb[7].mxu1  ;;  %6591 = vmatmul.mubr.msk.f32.gmra.mrb[112].mxu1 %vm916_vm0, %v7829_v36 }
  0xfe   : > { %1675 = vmatprep.mubr.f32.mxu1 %v13022_v2 }
 0x100   : > { %v8173_v9 = vpop.f32.mrb[8].mxu1 }
 0x101   : > { %v8175_v10 = vpop.f32.mrb[9].mxu1  ;;  %6592 = vmatmul.mubr.msk.f32.gmra.mrb[114].mxu1 %vm916_vm0, %v7835_v37  ;;  %v336_v37 = vld [vmem:[#allocation2 + $0x28] sm:$0xff] }
 0x102   : > { %1681 = vmatprep.mubr.f32.mxu1 %v13022_v2 }
 0x104   : > { %v8180_v11 = vpop.f32.mrb[10].mxu1 }
 0x105   : > { %v8182_v12 = vpop.f32.mrb[11].mxu1  ;;  %6593 = vmatmul.mubr.msk.f32.gmra.mrb[116].mxu1 %vm916_vm0, %v7843_v40 }
 0x106   : > { %1687 = vmatprep.mubr.f32.mxu1 %v13022_v2 }
 0x108   : > { %v8187_v15 = vpop.f32.mrb[12].mxu1 }
 0x109   : > { %v8189_v18 = vpop.f32.mrb[13].mxu1  ;;  %6594 = vmatmul.mubr.msk.f32.gmra.mrb[118].mxu1 %vm916_vm0, %v7849_v41 }
 0x10a   : > { %v6977_v16 = vpop.f32.mrb[0].mxu0  ;;  %1693 = vmatprep.mubr.f32.mxu1 %v13022_v2 }
 0x10b   : > { %v718_v19 = vadd.f32 %v6977_v16, %v333_v13  ;;  %v589_v20 = vpop.f32.mrb[1].mxu0  ;;  %v339_v13 = vld [vmem:[#allocation2 + $0x40] sm:$0xff]  ;;  %v342_v16 = vld [vmem:[#allocation2 + $0x58] sm:$0xff] }
 0x10c   : > { %v716_v22 = vadd.f32 %v589_v20, %v331_v14  ;;  %v6978_v23 = vpop.f32.mrb[2].mxu0  ;;  %v8195_v26 = vpop.f32.mrb[14].mxu1  ;;  %v340_v20 = vld [vmem:[#allocation2 + $0x48] sm:$0xff] }
 0x10d   : > { %751 = vst.msk [vmem:[#allocation2 + $0x10] sm:$0xff] %vm298_vm1, %v718_v19  ;;  %v719_v24 = vadd.f32 %v6978_v23, %v334_v17  ;;  %v592_v25 = vpop.f32.mrb[3].mxu0  ;;  %v8198_v28 = vpop.f32.mrb[15].mxu1  ;;  %6595 = vmatmul.mubr.msk.f32.gmra.mrb[120].mxu1 %vm916_vm0, %v7857_v44 }
 0x10e   : > { %749 = vst.msk [vmem:[#allocation2] sm:$0xff] %vm298_vm1, %v716_v22  ;;  %v717_v27 = vadd.f32 %v592_v25, %v332_v21  ;;  %1699 = vmatprep.mubr.f32.mxu1 %v13022_v2 }
 0x10f   : > { %752 = vst.msk [vmem:[#allocation2 + $0x18] sm:$0xff] %vm298_vm1, %v719_v24 }
 0x110   : > { %750 = vst.msk [vmem:[#allocation2 + $0x8] sm:$0xff] %vm298_vm1, %v717_v27  ;;  %v8205_v31 = vpop.f32.mrb[16].mxu1  ;;  %v13014_v27 = vmov 2  }
 0x111   : > { %v8207_v34 = vpop.f32.mrb[17].mxu1  ;;  %6596 = vmatmul.mubr.msk.f32.gmra.mrb[122].mxu1 %vm916_vm0, %v7863_v45 }
 0x112   : > { %v6981_v32 = vpop.f32.mrb[4].mxu0  ;;  %1705 = vmatprep.mubr.f32.mxu1 %v13022_v2 }
 0x113   : > { %v722_v35 = vadd.f32 %v6981_v32, %v337_v29  ;;  %v605_v36 = vpop.f32.mrb[5].mxu0  ;;  %v345_v32 = vld [vmem:[#allocation2 + $0x70] sm:$0xff] }
 0x114   : > { %v8212_v38 = vld [vmem:[#allocation2 + $0x10] sm:$0xff]  ;;  %v720_v39 = vadd.f32 %v605_v36, %v335_v30  ;;  %v6982_v40 = vpop.f32.mrb[6].mxu0  ;;  %v8218_v44 = vpop.f32.mrb[18].mxu1 }
 0x115   : > { %v8214_v41 = vld [vmem:[#allocation2] sm:$0xff]  ;;  %3113 = vperm.xlu1 %7083, %v8212_v38   ;;  %755 = vst.msk [vmem:[#allocation2 + $0x30] sm:$0xff] %vm298_vm1, %v722_v35  ;;  %v723_v42 = vadd.f32 %v6982_v40, %v338_v33  ;;  %v608_v43 = vpop.f32.mrb[7].mxu0  ;;  %13154 = vst [vmem:[#allocation6_spill] sm:$0xff] %v8218_v44  ;;  %v8222_v46 = vpop.f32.mrb[19].mxu1  ;;  %6597 = vmatmul.mubr.msk.f32.gmra.mrb[124].mxu1 %vm916_vm0, %v7935_v48 }
 0x116   : > { %3103 = vperm.xlu0 %7088, %v8214_v41   ;;  %753 = vst.msk [vmem:[#allocation2 + $0x20] sm:$0xff] %vm298_vm1, %v720_v39  ;;  %v721_v45 = vadd.f32 %v608_v43, %v336_v37  ;;  %13155 = vst [vmem:[#allocation7_spill] sm:$0xff] %v8222_v46  ;;  %1711 = vmatprep.mubr.f32.mxu1 %v13022_v2  ;;  %v343_v35 = vld [vmem:[#allocation2 + $0x60] sm:$0xff]  ;;  %v346_v39 = vld [vmem:[#allocation2 + $0x78] sm:$0xff] }
 0x117   : > { %756 = vst.msk [vmem:[#allocation2 + $0x38] sm:$0xff] %vm298_vm1, %v723_v42  ;;  %v344_v43 = vld [vmem:[#allocation2 + $0x68] sm:$0xff] }
 0x118   : > { %754 = vst.msk [vmem:[#allocation2 + $0x28] sm:$0xff] %vm298_vm1, %v721_v45  ;;  %v8230_v63 = vpop.f32.mrb[20].mxu1  ;;  %v8260_v45 = vld [vmem:[#allocation2 + $0x18] sm:$0xff] }
 0x119   : > { %7084 = vset.pattern.permute.xlu1 %v13020_v50  ;;  %v8234_v14 = vpop.f32.mrb[21].mxu1  ;;  %6598 = vmatmul.mubr.msk.f32.gmra.mrb[126].mxu1 %vm916_vm0, %v7941_v49  ;;  %v13012_v49 = vmov 3  }
 0x11a   : > { %3334 = vperm.xlu1 %7084, %v8212_v38   ;;  %7089 = vset.pattern.permute.xlu0 %v13020_v50  ;;  %v6985_v48 = vpop.f32.mrb[8].mxu0 }
 0x11b   : > { %3326 = vperm.xlu0 %7089, %v8214_v41   ;;  %v726_v17 = vadd.f32 %v6985_v48, %v341_v47  ;;  %v621_v19 = vpop.f32.mrb[9].mxu0  ;;  %1717 = vmatprep.mubr.f32.mxu1 %v13022_v2 }
 0x11c   : > { %v724_v21 = vadd.f32 %v621_v19, %v339_v13  ;;  %v6986_v22 = vpop.f32.mrb[10].mxu0  ;;  %v8240_v23 = vpop.f32.mrb[22].mxu1 }
 0x11d   : > { %13156 = vst [vmem:[#allocation8_spill] sm:$0xff] %v8240_v23  ;;  %759 = vst.msk [vmem:[#allocation2 + $0x50] sm:$0xff] %vm298_vm1, %v726_v17  ;;  %v727_v24 = vadd.f32 %v6986_v22, %v342_v16  ;;  %v624_v25 = vpop.f32.mrb[11].mxu0  ;;  %v8244_v29 = vpop.f32.mrb[23].mxu1  ;;  %6599 = vmatmul.mubr.msk.f32.gmra.mrb[128].mxu1 %vm916_vm0, %v7948_v51  ;;  %v347_v22 = vld [vmem:[#allocation2 + $0x80] sm:$0xff] }
 0x11e   : > { %7085 = vset.pattern.permute.xlu1 %v13014_v27  ;;  %13157 = vst [vmem:[#allocation9_spill] sm:$0xff] %v8244_v29  ;;  %757 = vst.msk [vmem:[#allocation2 + $0x40] sm:$0xff] %vm298_vm1, %v724_v21  ;;  %v725_v30 = vadd.f32 %v624_v25, %v340_v20  ;;  %1723 = vmatprep.mubr.f32.mxu1 %v13022_v2  ;;  %v13018_v20 = vmov 4   ;;  %v349_v21 = vld [vmem:[#allocation2 + $0x90] sm:$0xff] }
 0x11f   : > { %3526 = vperm.xlu1 %7085, %v8212_v38   ;;  %7091 = vset.pattern.permute.xlu0 %v13012_v49  ;;  %760 = vst.msk [vmem:[#allocation2 + $0x58] sm:$0xff] %vm298_vm1, %v727_v24 }
 0x120   : > { %3710 = vperm.xlu0 %7091, %v8214_v41   ;;  %758 = vst.msk [vmem:[#allocation2 + $0x48] sm:$0xff] %vm298_vm1, %v725_v30  ;;  %v8254_v33 = vpop.f32.mrb[24].mxu1  ;;  %v350_v30 = vld [vmem:[#allocation2 + $0x98] sm:$0xff] }
 0x121   : > { %13158 = vst [vmem:[#allocation10_spill] sm:$0xff] %v8254_v33  ;;  %v8257_v36 = vpop.f32.mrb[25].mxu1  ;;  %6600 = vmatmul.mubr.msk.f32.gmra.mrb[130].mxu1 %vm916_vm0, %v7955_v52 }
 0x122   : > { %13159 = vst [vmem:[#allocation11_spill] sm:$0xff] %v8257_v36  ;;  %v6989_v37 = vpop.f32.mrb[12].mxu0  ;;  %1729 = vmatprep.mubr.f32.mxu1 %v13022_v2 }
 0x123   : > { %7086 = vset.pattern.permute.xlu1 %v13012_v49  ;;  %v730_v40 = vadd.f32 %v6989_v37, %v345_v32  ;;  %v637_v42 = vpop.f32.mrb[13].mxu0  ;;  %v348_v37 = vld [vmem:[#allocation2 + $0x88] sm:$0xff] }
 0x124   : > { %3718 = vperm.xlu1 %7086, %v8212_v38   ;;  %7094 = vset.pattern.permute.xlu0 %v13020_v50  ;;  %v728_v51 = vadd.f32 %v637_v42, %v343_v35  ;;  %v6990_v47 = vpop.f32.mrb[14].mxu0  ;;  %v8265_v13 = vpop.f32.mrb[26].mxu1 }
 0x125   : > { %3338 = vperm.xlu0 %7094, %v8260_v45   ;;  %13160 = vst [vmem:[#allocation12_spill] sm:$0xff] %v8265_v13  ;;  %763 = vst.msk [vmem:[#allocation2 + $0x70] sm:$0xff] %vm298_vm1, %v730_v40  ;;  %v731_v48 = vadd.f32 %v6990_v47, %v346_v39  ;;  %v640_v16 = vpop.f32.mrb[15].mxu0  ;;  %v8270_v17 = vpop.f32.mrb[27].mxu1  ;;  %6601 = vmatmul.mubr.msk.f32.gmra.mrb[132].mxu1 %vm916_vm0, %v7961_v53 }
 0x126   : > { %13161 = vst [vmem:[#allocation13_spill] sm:$0xff] %v8270_v17  ;;  %761 = vst.msk [vmem:[#allocation2 + $0x60] sm:$0xff] %vm298_vm1, %v728_v51  ;;  %v729_v19 = vadd.f32 %v640_v16, %v344_v43  ;;  %1735 = vmatprep.mubr.f32.mxu1 %v13022_v2  ;;  %v8291_v51 = vld [vmem:[#allocation2 + $0x8] sm:$0xff] }
 0x127   : > { %764 = vst.msk [vmem:[#allocation2 + $0x78] sm:$0xff] %vm298_vm1, %v731_v48  ;;  %v353_v48 = vld [vmem:[#allocation2 + $0xb0] sm:$0xff] }
 0x128   : > { %7087 = vset.pattern.permute.xlu1 %v13018_v20  ;;  %762 = vst.msk [vmem:[#allocation2 + $0x68] sm:$0xff] %vm298_vm1, %v729_v19  ;;  %v8279_v52 = vpop.f32.mrb[28].mxu1  ;;  %v351_v19 = vld [vmem:[#allocation2 + $0xa0] sm:$0xff] }
 0x129   : > { %3910 = vperm.xlu1 %7087, %v8212_v38   ;;  %7096 = vset.pattern.permute.xlu0 %v13012_v49  ;;  %13162 = vst [vmem:[#allocation14_spill] sm:$0xff] %v8279_v52  ;;  %v8282_v24 = vpop.f32.mrb[29].mxu1 }
 0x12a   : > { %3722 = vperm.xlu0 %7096, %v8260_v45   ;;  %13163 = vst [vmem:[#allocation15_spill] sm:$0xff] %v8282_v24  ;;  %v6993_v25 = vpop.f32.mrb[16].mxu0  ;;  %6602 = vmatmul.mubr.msk.f32.gmra.mrb[134].mxu1 %vm916_vm0, %v7970_v54 }
 0x12b   : > { %v734_v32 = vadd.f32 %v6993_v25, %v349_v21  ;;  %v653_v35 = vpop.f32.mrb[17].mxu0  ;;  %1741 = vmatprep.mubr.f32.mxu1 %v13022_v2  ;;  %v354_v25 = vld [vmem:[#allocation2 + $0xb8] sm:$0xff] }
 0x12c   : > { %v732_v38 = vadd.f32 %v653_v35, %v347_v22  ;;  %v6994_v39 = vpop.f32.mrb[18].mxu0  ;;  %v8288_v40 = vpop.f32.mrb[30].mxu1 }
 0x12d   : > { %7090 = vset.pattern.permute.xlu1 %v13014_v27  ;;  %13164 = vst [vmem:[#allocation16_spill] sm:$0xff] %v8288_v40  ;;  %767 = vst.msk [vmem:[#allocation2 + $0x90] sm:$0xff] %vm298_vm1, %v734_v32  ;;  %v735_v42 = vadd.f32 %v6994_v39, %v350_v30  ;;  %v656_v43 = vpop.f32.mrb[19].mxu0  ;;  %v8295_v53 = vpop.f32.mrb[31].mxu1  ;;  %v352_v32 = vld [vmem:[#allocation2 + $0xa8] sm:$0xff] }
 0x12e   : > { %3518 = vperm.xlu1 %7090, %v8214_v41   ;;  %7098 = vset.pattern.permute.xlu0 %v13016_v61  ;;  %13165 = vst [vmem:[#allocation17_spill] sm:$0xff] %v8295_v53  ;;  %765 = vst.msk [vmem:[#allocation2 + $0x80] sm:$0xff] %vm298_vm1, %v732_v38  ;;  %v733_v47 = vadd.f32 %v656_v43, %v348_v37 }
 0x12f   : > { %3108 = vperm.xlu0 %7098, %v8291_v51   ;;  %768 = vst.msk [vmem:[#allocation2 + $0x98] sm:$0xff] %vm298_vm1, %v735_v42  ;;  %6603 = vmatmul.mubr.msk.f32.gmra.mrb[136].mxu1 %vm916_vm0, %v7979_v55  ;;  %v357_v55 = vld [vmem:[#allocation2 + $0xd0] sm:$0xff] }
 0x130   : > { %766 = vst.msk [vmem:[#allocation2 + $0x88] sm:$0xff] %vm298_vm1, %v733_v47  ;;  %v8304_v16 = vpop.f32.mrb[32].mxu1  ;;  %1747 = vmatprep.mubr.f32.mxu1 %v13022_v2 }
 0x131   : > { %13166 = vst [vmem:[#allocation18_spill] sm:$0xff] %v8304_v16  ;;  %v8307_v21 = vpop.f32.mrb[33].mxu1 }
 0x132   : > { %7092 = vset.pattern.permute.xlu1 %v13018_v20  ;;  %13167 = vst [vmem:[#allocation19_spill] sm:$0xff] %v8307_v21  ;;  %v6997_v22 = vpop.f32.mrb[20].mxu0 }
 0x133   : > { %3902 = vperm.xlu1 %7092, %v8214_v41   ;;  %7100 = vset.pattern.permute.xlu0 %v13014_v27  ;;  %v738_v30 = vadd.f32 %v6997_v22, %v353_v48  ;;  %v669_v54 = vpop.f32.mrb[21].mxu0  ;;  %v355_v48 = vld [vmem:[#allocation2 + $0xc0] sm:$0xff] }
 0x134   : > { %3522 = vperm.xlu0 %7100, %v8291_v51   ;;  %v736_v35 = vadd.f32 %v669_v54, %v351_v19  ;;  %v6998_v37 = vpop.f32.mrb[22].mxu0  ;;  %v8314_v38 = vpop.f32.mrb[34].mxu1  ;;  %6604 = vmatmul.mubr.msk.f32.gmra.mrb[138].mxu1 %vm916_vm0, %v7988_v56 }
 0x135   : > { %13168 = vst [vmem:[#allocation20_spill] sm:$0xff] %v8314_v38  ;;  %771 = vst.msk [vmem:[#allocation2 + $0xb0] sm:$0xff] %vm298_vm1, %v738_v30  ;;  %v739_v39 = vadd.f32 %v6998_v37, %v354_v25  ;;  %v672_v42 = vpop.f32.mrb[23].mxu0  ;;  %v8318_v41 = vpop.f32.mrb[35].mxu1  ;;  %v358_v25 = vld [vmem:[#allocation2 + $0xd8] sm:$0xff]  ;;  %1753 = vmatprep.mubr.f32.mxu1 %v13022_v2  ;;  %v8334_v30 = vld [vmem:[#allocation2 + $0x30] sm:$0xff] }
 0x136   : > { %13169 = vst [vmem:[#allocation21_spill] sm:$0xff] %v8318_v41  ;;  %769 = vst.msk [vmem:[#allocation2 + $0xa0] sm:$0xff] %vm298_vm1, %v736_v35  ;;  %v737_v43 = vadd.f32 %v672_v42, %v352_v32  ;;  %v356_v35 = vld [vmem:[#allocation2 + $0xc8] sm:$0xff] }
 0x137   : > { %7093 = vset.pattern.permute.xlu1 %v13016_v61  ;;  %772 = vst.msk [vmem:[#allocation2 + $0xb8] sm:$0xff] %vm298_vm1, %v739_v39 }
 0x138   : > { %3118 = vperm.xlu1 %7093, %v8260_v45   ;;  %7102 = vset.pattern.permute.xlu0 %v13018_v20  ;;  %770 = vst.msk [vmem:[#allocation2 + $0xa8] sm:$0xff] %vm298_vm1, %v737_v43  ;;  %v8327_v47 = vpop.f32.mrb[36].mxu1 }
 0x139   : > { %3906 = vperm.xlu0 %7102, %v8291_v51   ;;  %13170 = vst [vmem:[#allocation22_spill] sm:$0xff] %v8327_v47  ;;  %v8331_v19 = vpop.f32.mrb[37].mxu1  ;;  %6605 = vmatmul.mubr.msk.f32.gmra.mrb[140].mxu1 %vm916_vm0, %v7997_v57  ;;  %v362_v57 = vld [vmem:[#allocation2 + $0xf8] sm:$0xff] }
 0x13a   : > { %13171 = vst [vmem:[#allocation23_spill] sm:$0xff] %v8331_v19  ;;  %v7001_v22 = vpop.f32.mrb[24].mxu0  ;;  %1759 = vmatprep.mubr.f32.mxu1 %v13022_v2 }
 0x13b   : > { %v742_v54 = vadd.f32 %v7001_v22, %v357_v55  ;;  %v685_v32 = vpop.f32.mrb[25].mxu0 }
 0x13c   : > { %7095 = vset.pattern.permute.xlu1 %v13014_v27  ;;  %v740_v37 = vadd.f32 %v685_v32, %v355_v48  ;;  %v7002_v39 = vpop.f32.mrb[26].mxu0  ;;  %v8339_v56 = vpop.f32.mrb[38].mxu1  ;;  %v361_v48 = vld [vmem:[#allocation2 + $0xf0] sm:$0xff] }
 0x13d   : > { %3530 = vperm.xlu1 %7095, %v8260_v45   ;;  %7103 = vset.pattern.permute.xlu0 %v13016_v61  ;;  %13172 = vst [vmem:[#allocation24_spill] sm:$0xff] %v8339_v56  ;;  %775 = vst.msk [vmem:[#allocation2 + $0xd0] sm:$0xff] %vm298_vm1, %v742_v54  ;;  %v743_v42 = vadd.f32 %v7002_v39, %v358_v25  ;;  %v688_v43 = vpop.f32.mrb[27].mxu0  ;;  %v8343_v49 = vpop.f32.mrb[39].mxu1  ;;  %v359_v25 = vld [vmem:[#allocation2 + $0xe0] sm:$0xff]  ;;  %v360_v39 = vld [vmem:[#allocation2 + $0xe8] sm:$0xff] }
 0x13e   : > { %3133 = vperm.xlu0 %7103, %v8334_v30   ;;  %13173 = vst [vmem:[#allocation25_spill] sm:$0xff] %v8343_v49  ;;  %773 = vst.msk [vmem:[#allocation2 + $0xc0] sm:$0xff] %vm298_vm1, %v740_v37  ;;  %v741_v55 = vadd.f32 %v688_v43, %v356_v35  ;;  %6606 = vmatmul.mubr.msk.f32.gmra.mrb[142].mxu1 %vm916_vm0, %v8006_v58  ;;  %v3079_v56 = vld [vmem:[#allocation2 + $0x50] sm:$0xff] }
 0x13f   : > { %776 = vst.msk [vmem:[#allocation2 + $0xd8] sm:$0xff] %vm298_vm1, %v743_v42  ;;  %1765 = vmatprep.mubr.f32.mxu1 %v13022_v2 }
 0x140   : > { %774 = vst.msk [vmem:[#allocation2 + $0xc8] sm:$0xff] %vm298_vm1, %v741_v55  ;;  %v8352_v22 = vpop.f32.mrb[40].mxu1 }
 0x141   : > { %7097 = vset.pattern.permute.xlu1 %v13018_v20  ;;  %13174 = vst [vmem:[#allocation26_spill] sm:$0xff] %v8352_v22  ;;  %v8356_v54 = vpop.f32.mrb[41].mxu1 }
 0x142   : > { %3914 = vperm.xlu1 %7097, %v8260_v45   ;;  %7105 = vset.pattern.permute.xlu0 %v13014_v27  ;;  %13175 = vst [vmem:[#allocation27_spill] sm:$0xff] %v8356_v54  ;;  %v7005_v32 = vpop.f32.mrb[28].mxu0 }
 0x143   : > { %3542 = vperm.xlu0 %7105, %v8334_v30   ;;  %v746_v35 = vadd.f32 %v7005_v32, %v361_v48  ;;  %v701_v37 = vpop.f32.mrb[29].mxu0  ;;  %6607 = vmatmul.mubr.msk.f32.gmra.mrb[144].mxu1 %vm916_vm0, %v8015_v59 }
 0x144   : > { %v744_v42 = vadd.f32 %v701_v37, %v359_v25  ;;  %v7006_v43 = vpop.f32.mrb[30].mxu0  ;;  %v8362_v55 = vpop.f32.mrb[42].mxu1  ;;  %1771 = vmatprep.mubr.f32.mxu1 %v13022_v2  ;;  %v3073_v25 = vld [vmem:[#allocation2 + $0x20] sm:$0xff]  ;;  %v13181_v37 = vmov 0  }
 0x145   : > { %13176 = vst [vmem:[#allocation28_spill] sm:$0xff] %v8362_v55  ;;  %779 = vst.msk [vmem:[#allocation2 + $0xf0] sm:$0xff] %vm298_vm1, %v746_v35  ;;  %v747_v45 = vadd.f32 %v7006_v43, %v362_v57  ;;  %v704_v27 = vpop.f32.mrb[31].mxu0  ;;  %v8366_v61 = vpop.f32.mrb[43].mxu1  ;;  %v13180_v57 = vmov 3  }
 0x146   : > { %7099 = vset.pattern.permute.xlu1 %v13020_v50  ;;  %13177 = vst [vmem:[#allocation29_spill] sm:$0xff] %v8366_v61  ;;  %777 = vst.msk [vmem:[#allocation2 + $0xe0] sm:$0xff] %vm298_vm1, %v744_v42  ;;  %v745_v48 = vadd.f32 %v704_v27, %v360_v39  ;;  %v13188_v61 = vmov 4  }
 0x147   : > { %3330 = vperm.xlu1 %7099, %v8291_v51   ;;  %7107 = vset.pattern.permute.xlu0 %v13018_v20  ;;  %780 = vst.msk [vmem:[#allocation2 + $0xf8] sm:$0xff] %vm298_vm1, %v747_v45 }
 0x148   : > { %3926 = vperm.xlu0 %7107, %v8334_v30   ;;  %778 = vst.msk [vmem:[#allocation2 + $0xe8] sm:$0xff] %vm298_vm1, %v745_v48  ;;  %v8376_v58 = vpop.f32.mrb[44].mxu1  ;;  %6608 = vmatmul.mubr.msk.f32.gmra.mrb[146].mxu1 %vm916_vm0, %v8024_v60 }
 0x149   : > { %13178 = vst [vmem:[#allocation30_spill] sm:$0xff] %v8376_v58  ;;  %v8379_v32 = vpop.f32.mrb[45].mxu1  ;;  %1777 = vmatprep.mubr.f32.mxu1 %v13022_v2 }
 0x14a   : > { %13179 = vst [vmem:[#allocation31_spill] sm:$0xff] %v8379_v32  ;;  %v8381_v27 = vpop.f32.mrb[32].mxu0 }
 0x14b   : > { %7101 = vset.pattern.permute.xlu1 %v13180_v57  ;;  %v8384_v35 = vpop.f32.mrb[33].mxu0 }
 0x14c   : > { %3714 = vperm.xlu1 %7101, %v8291_v51   ;;  %7108 = vset.pattern.permute.xlu0 %v13181_v37  ;;  %v8388_v39 = vpop.f32.mrb[46].mxu1  ;;  %v13184_v51 = vmov 2  }
 0x14d   : > { %3123 = vperm.xlu0 %7108, %v3073_v25   ;;  %13182 = vst [vmem:[#allocation32_spill] sm:$0xff] %v8388_v39  ;;  %v8392_v59 = vpop.f32.mrb[47].mxu1  ;;  %6609 = vmatmul.mubr.msk.f32.gmra.mrb[148].mxu1 %vm916_vm0, %v8035_v62 }
 0x14e   : > { %13183 = vst [vmem:[#allocation33_spill] sm:$0xff] %v8392_v59  ;;  %v8394_v42 = vpop.f32.mrb[34].mxu0  ;;  %2105 = vmatprep.mubr.f32.mxu1 %v13022_v2  ;;  %v13191_v59 = vmov 1  }
 0x14f   : > { %v8397_v43 = vpop.f32.mrb[35].mxu0 }
 0x150   : > { %7104 = vset.pattern.permute.xlu1 %v13020_v50  ;;  %v8402_v45 = vpop.f32.mrb[48].mxu1 }
 0x151   : > { %3350 = vperm.xlu1 %7104, %v8334_v30   ;;  %7110 = vset.pattern.permute.xlu0 %v13184_v51  ;;  %13185 = vst [vmem:[#allocation34_spill] sm:$0xff] %v8402_v45  ;;  %v8404_v48 = vpop.f32.mrb[49].mxu1 }
 0x152   : > { %3534 = vperm.xlu0 %7110, %v3073_v25   ;;  %13186 = vst [vmem:[#allocation35_spill] sm:$0xff] %v8404_v48  ;;  %v8406_v60 = vpop.f32.mrb[36].mxu0 }
 0x153   : > { %v8410_v20 = vpop.f32.mrb[37].mxu0 }
 0x154   : > { %v8414_v50 = vpop.f32.mrb[50].mxu1 }
 0x155   : > { %7106 = vset.pattern.permute.xlu1 %v13180_v57  ;;  %13187 = vst [vmem:[#allocation36_spill] sm:$0xff] %v8414_v50  ;;  %v8418_v45 = vpop.f32.mrb[51].mxu1  ;;  %v3076_v50 = vld [vmem:[#allocation2 + $0x38] sm:$0xff] }
 0x156   : > { %3734 = vperm.xlu1 %7106, %v8334_v30   ;;  %7112 = vset.pattern.permute.xlu0 %v13188_v61  ;;  %13189 = vst [vmem:[#allocation37_spill] sm:$0xff] %v8418_v45  ;;  %v8420_v48 = vpop.f32.mrb[38].mxu0 }
 0x157   : > { %3918 = vperm.xlu0 %7112, %v3073_v25   ;;  %v8422_v55 = vpop.f32.mrb[39].mxu0 }
 0x158   : > { %v8424_v62 = vpop.f32.mrb[52].mxu1 }
 0x159   : > { %13190 = vst [vmem:[#allocation38_spill] sm:$0xff] %v8424_v62  ;;  %v8427_v2 = vpop.f32.mrb[53].mxu1 }
 0x15a   : > { %7109 = vset.pattern.permute.xlu1 %v13191_v59  ;;  %13192 = vst [vmem:[#allocation39_spill] sm:$0xff] %v8427_v2  ;;  %v8429_v39 = vpop.f32.mrb[40].mxu0 }
 0x15b   : > { %3342 = vperm.xlu1 %7109, %v3073_v25   ;;  %7114 = vset.pattern.permute.xlu0 %v13191_v59  ;;  %v8432_v30 = vpop.f32.mrb[41].mxu0 }
 0x15c   : > { %3354 = vperm.xlu0 %7114, %v3076_v50   ;;  %v8434_v45 = vpop.f32.mrb[54].mxu1 }
 0x15d   : > { %13193 = vst [vmem:[#allocation40_spill] sm:$0xff] %v8434_v45  ;;  %v8436_v54 = vpop.f32.mrb[55].mxu1 }
 0x15e   : > { %13194 = vst [vmem:[#allocation41_spill] sm:$0xff] %v8436_v54  ;;  %v8438_v22 = vpop.f32.mrb[42].mxu0  ;;  %v3074_v54 = vld [vmem:[#allocation2 + $0x28] sm:$0xff] }
 0x15f   : > { %7111 = vset.pattern.permute.xlu1 %v13180_v57  ;;  %v8441_v62 = vpop.f32.mrb[43].mxu0 }
 0x160   : > { %3726 = vperm.xlu1 %7111, %v3073_v25   ;;  %7116 = vset.pattern.permute.xlu0 %v13180_v57  ;;  %v8444_v2 = vpop.f32.mrb[56].mxu1 }
 0x161   : > { %3738 = vperm.xlu0 %7116, %v3076_v50   ;;  %13195 = vst [vmem:[#allocation42_spill] sm:$0xff] %v8444_v2  ;;  %v8446_v32 = vpop.f32.mrb[57].mxu1 }
 0x162   : > { %13196 = vst [vmem:[#allocation43_spill] sm:$0xff] %v8446_v32  ;;  %v8448_v58 = vpop.f32.mrb[44].mxu0 }
 0x163   : > { %v8450_v41 = vpop.f32.mrb[45].mxu0 }
 0x164   : > { %7113 = vset.pattern.permute.xlu1 %v13181_v37  ;;  %v8454_v45 = vpop.f32.mrb[58].mxu1 }
 0x165   : > { %7119 = vset.pattern.permute.xlu0 %v13191_v59  ;;  %3138 = vperm.xlu1 %7113, %v3076_v50   ;;  %13197 = vst [vmem:[#allocation44_spill] sm:$0xff] %v8454_v45  ;;  %v8456_v25 = vpop.f32.mrb[59].mxu1 }
 0x166   : > { %3346 = vperm.xlu0 %7119, %v3074_v54   ;;  %13198 = vst [vmem:[#allocation45_spill] sm:$0xff] %v8456_v25  ;;  %v8458_v38 = vpop.f32.mrb[46].mxu0 }
 0x167   : > { %v8460_v2 = vpop.f32.mrb[47].mxu0 }
 0x168   : > { %v8463_v32 = vpop.f32.mrb[60].mxu1 }
 0x169   : > { %7115 = vset.pattern.permute.xlu1 %v13184_v51  ;;  %13199 = vst [vmem:[#allocation46_spill] sm:$0xff] %v8463_v32  ;;  %v8466_v49 = vpop.f32.mrb[61].mxu1 }
 0x16a   : > { %3546 = vperm.xlu1 %7115, %v3076_v50   ;;  %7121 = vset.pattern.permute.xlu0 %v13180_v57  ;;  %13200 = vst [vmem:[#allocation47_spill] sm:$0xff] %v8466_v49 }
 0x16b   : > { %3730 = vperm.xlu0 %7121, %v3074_v54  }
 0x16c   : > { %v8468_v21 = vpop.f32.mrb[62].mxu1 }
 0x16d   : > { %13201 = vst [vmem:[#allocation48_spill] sm:$0xff] %v8468_v21  ;;  %v8471_v25 = vpop.f32.mrb[63].mxu1 }
 0x16e   : > { %7117 = vset.pattern.permute.xlu1 %v13188_v61  ;;  %13202 = vst [vmem:[#allocation49_spill] sm:$0xff] %v8471_v25 }
 0x16f   : > { %3930 = vperm.xlu1 %7117, %v3076_v50   ;;  %7123 = vset.pattern.permute.xlu0 %v13181_v37 }
 0x170   : > { %3153 = vperm.xlu0 %7123, %v3079_v56   ;;  %v8474_v45 = vpop.f32.mrb[64].mxu1 }
 0x171   : > { %13203 = vst [vmem:[#allocation50_spill] sm:$0xff] %v8474_v45  ;;  %v8476_v32 = vpop.f32.mrb[65].mxu1  ;;  %v8490_v45 = vpop.f32.mrb[48].mxu0 }
 0x172   : > { %13204 = vst [vmem:[#allocation51_spill] sm:$0xff] %v8476_v32  ;;  %v3077_v32 = vld [vmem:[#allocation2 + $0x40] sm:$0xff]  ;;  %13209 = vst [vmem:[#allocation56_spill] sm:$0xff] %v8490_v45 }
 0x173   : > { %7118 = vset.pattern.permute.xlu1 %v13181_v37 }
 0x174   : > { %3128 = vperm.xlu1 %7118, %v3074_v54   ;;  %7125 = vset.pattern.permute.xlu0 %v13184_v51  ;;  %v8480_v49 = vpop.f32.mrb[66].mxu1 }
 0x175   : > { %3558 = vperm.xlu0 %7125, %v3079_v56   ;;  %13205 = vst [vmem:[#allocation52_spill] sm:$0xff] %v8480_v49  ;;  %v8482_v21 = vpop.f32.mrb[67].mxu1  ;;  %v8495_v49 = vpop.f32.mrb[49].mxu0 }
 0x176   : > { %13206 = vst [vmem:[#allocation53_spill] sm:$0xff] %v8482_v21  ;;  %13211 = vst [vmem:[#allocation58_spill] sm:$0xff] %v8495_v49  ;;  %v8500_v19 = vpop.f32.mrb[50].mxu0 }
 0x177   : > { %13213 = vst [vmem:[#allocation60_spill] sm:$0xff] %v8500_v19 }
 0x178   : > { %7120 = vset.pattern.permute.xlu1 %v13184_v51  ;;  %v8486_v50 = vpop.f32.mrb[68].mxu1 }
 0x179   : > { %3538 = vperm.xlu1 %7120, %v3074_v54   ;;  %7127 = vset.pattern.permute.xlu0 %v13188_v61  ;;  %13207 = vst [vmem:[#allocation54_spill] sm:$0xff] %v8486_v50  ;;  %v8488_v25 = vpop.f32.mrb[69].mxu1  ;;  %v8502_v50 = vpop.f32.mrb[51].mxu0 }
 0x17a   : > { %3942 = vperm.xlu0 %7127, %v3079_v56   ;;  %13208 = vst [vmem:[#allocation55_spill] sm:$0xff] %v8488_v25  ;;  %13214 = vst [vmem:[#allocation61_spill] sm:$0xff] %v8502_v50  ;;  %v8504_v25 = vpop.f32.mrb[52].mxu0 }
 0x17c   : > { %v8493_v16 = vpop.f32.mrb[70].mxu1 }
 0x17d   : > { %7122 = vset.pattern.permute.xlu1 %v13188_v61  ;;  %13210 = vst [vmem:[#allocation57_spill] sm:$0xff] %v8493_v16  ;;  %v8498_v21 = vpop.f32.mrb[71].mxu1  ;;  %v836_v16 = vlaneseq }
 0x17e   : > { %3922 = vperm.xlu1 %7122, %v3074_v54   ;;  %7128 = vset.pattern.permute.xlu0 %v13181_v37  ;;  %13212 = vst [vmem:[#allocation59_spill] sm:$0xff] %v8498_v21  ;;  %v8514_v21 = vpop.f32.mrb[53].mxu0 }
 0x17f   : > { %3143 = vperm.xlu0 %7128, %v3077_v32  }
 0x180   : > { %v8506_v47 = vpop.f32.mrb[72].mxu1 }
 0x181   : > { %13215 = vst [vmem:[#allocation62_spill] sm:$0xff] %v8506_v47  ;;  %v8509_v17 = vpop.f32.mrb[73].mxu1 }
 0x182   : > { %7124 = vset.pattern.permute.xlu1 %v13191_v59  ;;  %13216 = vst [vmem:[#allocation63_spill] sm:$0xff] %v8509_v17  ;;  %v8522_v17 = vshrl.u32 %v836_v16, 7  ;;  %v832_v16 = vld [vmem:[%s13010_s4] sm:$0xff] }
 0x183   : > { %3366 = vperm.xlu1 %7124, %v3079_v56   ;;  %7130 = vset.pattern.permute.xlu0 %v13184_v51 }
 0x184   : > { %3550 = vperm.xlu0 %7130, %v3077_v32   ;;  %v8512_v54 = vpop.f32.mrb[74].mxu1  ;;  %13220 = vst [vmem:[#allocation67_spill] sm:$0xff] %v8522_v17 }
 0x185   : > { %13217 = vst [vmem:[#allocation64_spill] sm:$0xff] %v8512_v54  ;;  %v8516_v13 = vpop.f32.mrb[75].mxu1  ;;  %v3080_v54 = vld [vmem:[#allocation2 + $0x58] sm:$0xff] }
 0x186   : > { %13218 = vst [vmem:[#allocation65_spill] sm:$0xff] %v8516_v13  ;;  %v13024_v13 = vsub.s32 0, %v8522_v17 }
 0x187   : > { %7126 = vset.pattern.permute.xlu1 %v13180_v57 }
 0x188   : > { %3750 = vperm.xlu1 %7126, %v3079_v56   ;;  %7132 = vset.pattern.permute.xlu0 %v13188_v61  ;;  %v8520_v47 = vpop.f32.mrb[76].mxu1  ;;  %v13025_v56 = vsub.s32 1, %v8522_v17 }
 0x189   : > { %3934 = vperm.xlu0 %7132, %v3077_v32   ;;  %13219 = vst [vmem:[#allocation66_spill] sm:$0xff] %v8520_v47  ;;  %v8524_v53 = vpop.f32.mrb[77].mxu1 }
 0x18a   : > { %13221 = vst [vmem:[#allocation68_spill] sm:$0xff] %v8524_v53  ;;  %v8537_v53 = vpop.f32.mrb[54].mxu0  ;;  %v8550_v24 = vrot.slane %v832_v16, %v13025_v56 }
 0x18b   : > { %13224 = vst [vmem:[#allocation71_spill] sm:$0xff] %v8537_v53  ;;  %v8539_v47 = vpop.f32.mrb[55].mxu0 }
 0x18c   : > { %7129 = vset.pattern.permute.xlu1 %v13191_v59  ;;  %v8528_v40 = vpop.f32.mrb[78].mxu1  ;;  %13225 = vst [vmem:[#allocation72_spill] sm:$0xff] %v8539_v47  ;;  %v1082_v52 = vadd.f32 %v8149_v1, %v8550_v24 }
 0x18d   : > { %3358 = vperm.xlu1 %7129, %v3077_v32   ;;  %7134 = vset.pattern.permute.xlu0 %v13191_v59  ;;  %13222 = vst [vmem:[#allocation69_spill] sm:$0xff] %v8528_v40  ;;  %v8532_v36 = vpop.f32.mrb[79].mxu1  ;;  %v8546_v40 = vrot.slane %v832_v16, %v13024_v13 }
 0x18e   : > { %3370 = vperm.xlu0 %7134, %v3080_v54   ;;  %13223 = vst [vmem:[#allocation70_spill] sm:$0xff] %v8532_v36 }
 0x18f   : > { %v1092_v13 = vadd.f32 %v8159_v5, %v8546_v40  ;;  %v1080_v56 = vadd.f32 %v8145_v0, %v8546_v40 }
 0x190   : > { %v8542_v33 = vpop.f32.mrb[80].mxu1 }
 0x191   : > { %7131 = vset.pattern.permute.xlu1 %v13180_v57  ;;  %13226 = vst [vmem:[#allocation73_spill] sm:$0xff] %v8542_v33  ;;  %v8553_v36 = vpop.f32.mrb[81].mxu1  ;;  %v1094_v33 = vadd.f32 %v8161_v6, %v8550_v24 }
 0x192   : > { %3742 = vperm.xlu1 %7131, %v3077_v32   ;;  %7136 = vset.pattern.permute.xlu0 %v13180_v57  ;;  %13227 = vst [vmem:[#allocation74_spill] sm:$0xff] %v8553_v36  ;;  %v8569_v36 = vld [vmem:[#allocation2 + $0x48] sm:$0xff] }
 0x193   : > { %3754 = vperm.xlu0 %7136, %v3080_v54  }
 0x194   : > { %v3114_v50 = vpop.permute.xlu1 %3113  ;;  %v8556_v46 = vpop.f32.mrb[82].mxu1 }
 0x195   : > { %v3104_v19 = vpop.permute.xlu0 %3103  ;;  %13228 = vst [vmem:[#allocation75_spill] sm:$0xff] %v8556_v46  ;;  %v8563_v32 = vpop.f32.mrb[83].mxu1  ;;  %v13230_v46 = vsub.s32 2, %v8522_v17  ;;  %v3263_v0 = vmul.f32 %v3114_v50, %v1092_v13 }
 0x196   : > { %7133 = vset.pattern.permute.xlu1 %v13181_v37  ;;  %13229 = vst [vmem:[#allocation76_spill] sm:$0xff] %v8563_v32  ;;  %v3261_v29 = vmul.f32 %v3104_v19, %v1080_v56  ;;  %v8594_v19 = vld [vmem:[#allocation2 + $0x70] sm:$0xff] }
 0x197   : > { %v8573_v44 = vrot.slane %v832_v16, %v13230_v46  ;;  %7139 = vset.pattern.permute.xlu0 %v13191_v59  ;;  %3158 = vperm.xlu1 %7133, %v3080_v54  }
 0x198   : > { %3362 = vperm.xlu0 %7139, %v8569_v36   ;;  %v8577_v6 = vpop.f32.mrb[84].mxu1 }
 0x199   : > { %v3335_v5 = vpop.permute.xlu1 %3334  ;;  %13231 = vst [vmem:[#allocation77_spill] sm:$0xff] %v8577_v6  ;;  %v8580_v1 = vpop.f32.mrb[85].mxu1  ;;  %v1349_v46 = vadd.f32 %v8406_v60, %v8573_v44 }
 0x19a   : > { %v3455_v47 = vmul.f32 %v3335_v5, %v1094_v33  ;;  %v3327_v53 = vpop.permute.xlu0 %3326  ;;  %13232 = vst [vmem:[#allocation78_spill] sm:$0xff] %v8580_v1  ;;  %v13233_v33 = vsub.s32 3, %v8522_v17 }
 0x19b   : > { %v3453_v23 = vmul.f32 %v3327_v53, %v1082_v52  ;;  %7135 = vset.pattern.permute.xlu1 %v13184_v51  ;;  %v13026_v52 = vsub.s32 4, %v8522_v17 }
 0x19c   : > { %v3487_v49 = vadd.f32 %v3455_v47, %v3263_v0  ;;  %3562 = vperm.xlu1 %7135, %v3080_v54   ;;  %7141 = vset.pattern.permute.xlu0 %v13180_v57  ;;  %v1593_v32 = vpop.f32.mrb[86].mxu1  ;;  %v8589_v13 = vrot.slane %v832_v16, %v13233_v33 }
 0x19d   : > { %v3485_v45 = vadd.f32 %v3453_v23, %v3261_v29  ;;  %3746 = vperm.xlu0 %7141, %v8569_v36   ;;  %v8592_v53 = vpop.f32.mrb[87].mxu1  ;;  %v8605_v5 = vrot.slane %v832_v16, %v13026_v52 }
 0x19e   : > { %v3527_v50 = vpop.permute.xlu1 %3526  ;;  %13234 = vst [vmem:[#allocation79_spill] sm:$0xff] %v8592_v53  ;;  %v1351_v23 = vadd.f32 %v8410_v20, %v8589_v13 }
 0x19f   : > { %v3647_v60 = vmul.f32 %v3527_v50, %v1349_v46  ;;  %v3711_v47 = vpop.permute.xlu0 %3710 }
 0x1a0   : > { %7137 = vset.pattern.permute.xlu1 %v13188_v61  ;;  %v8600_v56 = vpop.f32.mrb[88].mxu1 }
 0x1a1   : > { %v3679_v29 = vadd.f32 %v3647_v60, %v3487_v49  ;;  %3946 = vperm.xlu1 %7137, %v3080_v54   ;;  %7143 = vset.pattern.permute.xlu0 %v13181_v37  ;;  %v8607_v0 = vpop.f32.mrb[89].mxu1 }
 0x1a2   : > { %3173 = vperm.xlu0 %7143, %v8594_v19   ;;  %13235 = vst [vmem:[#allocation80_spill] sm:$0xff] %v8607_v0 }
 0x1a3   : > { %v3719_v46 = vpop.permute.xlu1 %3718 }
 0x1a4   : > { %v3839_v33 = vmul.f32 %v3719_v46, %v1351_v23  ;;  %v3339_v50 = vpop.permute.xlu0 %3338  ;;  %v1605_v20 = vpop.f32.mrb[90].mxu1  ;;  %v1337_v46 = vadd.f32 %v8381_v27, %v8573_v44 }
 0x1a5   : > { %7138 = vset.pattern.permute.xlu1 %v13181_v37  ;;  %v1606_v54 = vadd.f32 %v1605_v20, %v8605_v5  ;;  %v8613_v60 = vpop.f32.mrb[91].mxu1  ;;  %v1339_v20 = vadd.f32 %v8384_v35, %v8589_v13 }
 0x1a6   : > { %v3871_v49 = vadd.f32 %v3839_v33, %v3679_v29  ;;  %3148 = vperm.xlu1 %7138, %v8569_v36   ;;  %7145 = vset.pattern.permute.xlu0 %v13184_v51  ;;  %13236 = vst [vmem:[#allocation81_spill] sm:$0xff] %v8613_v60  ;;  %v8632_v60 = vld [vmem:[#allocation2 + $0x60] sm:$0xff] }
 0x1a7   : > { %3574 = vperm.xlu0 %7145, %v8594_v19  }
 0x1a8   : > { %v3911_v16 = vpop.permute.xlu1 %3910  ;;  %v1611_v23 = vpop.f32.mrb[92].mxu1 }
 0x1a9   : > { %v4031_v52 = vmul.f32 %v3911_v16, %v1606_v54  ;;  %v8616_v0 = vpop.permute.xlu0 %3722  ;;  %v8621_v29 = vpop.f32.mrb[93].mxu1 }
 0x1aa   : > { %7140 = vset.pattern.permute.xlu1 %v13184_v51  ;;  %13237 = vst [vmem:[#allocation82_spill] sm:$0xff] %v8621_v29 }
 0x1ab   : > { %v8623_v33 = vadd.f32 %v4031_v52, %v3871_v49  ;;  %3554 = vperm.xlu1 %7140, %v8569_v36   ;;  %7147 = vset.pattern.permute.xlu0 %v13188_v61  ;;  %v1594_v52 = vadd.f32 %v1593_v32, %v8605_v5  ;;  %v8640_v49 = vpop.f32.mrb[56].mxu0 }
 0x1ac   : > { %3958 = vperm.xlu0 %7147, %v8594_v19   ;;  %v8630_v16 = vpop.f32.mrb[94].mxu1  ;;  %13240 = vst [vmem:[#allocation85_spill] sm:$0xff] %v8640_v49  ;;  %v8644_v1 = vpop.f32.mrb[57].mxu0 }
 0x1ad   : > { %13238 = vst [vmem:[#allocation83_spill] sm:$0xff] %v8623_v33  ;;  %v3519_v54 = vpop.permute.xlu1 %3518  ;;  %v8636_v29 = vpop.f32.mrb[95].mxu1  ;;  %v3837_v33 = vmul.f32 %v3711_v47, %v1339_v20  ;;  %13241 = vst [vmem:[#allocation86_spill] sm:$0xff] %v8644_v1  ;;  %v1100_v47 = vadd.f32 %v8168_v8, %v8550_v24 }
 0x1ae   : > { %v3645_v27 = vmul.f32 %v3519_v54, %v1337_v46  ;;  %v8634_v53 = vpop.permute.xlu0 %3108  ;;  %13239 = vst [vmem:[#allocation84_spill] sm:$0xff] %v8636_v29  ;;  %v8649_v54 = vpop.f32.mrb[58].mxu0 }
 0x1af   : > { %7142 = vset.pattern.permute.xlu1 %v13188_v61  ;;  %13242 = vst [vmem:[#allocation87_spill] sm:$0xff] %v8649_v54  ;;  %v3456_v8 = vmul.f32 %v3339_v50, %v1100_v47  ;;  %v1357_v50 = vadd.f32 %v8422_v55, %v8589_v13 }
 0x1b0   : > { %v3677_v35 = vadd.f32 %v3645_v27, %v3485_v45  ;;  %3938 = vperm.xlu1 %7142, %v8569_v36   ;;  %7148 = vset.pattern.permute.xlu0 %v13181_v37  ;;  %v8647_v46 = vpop.f32.mrb[96].mxu1  ;;  %v8655_v45 = vpop.f32.mrb[59].mxu0  ;;  %v1098_v36 = vadd.f32 %v8166_v7, %v8546_v40 }
 0x1b1   : > { %3163 = vperm.xlu0 %7148, %v8632_v60   ;;  %v8651_v6 = vpop.f32.mrb[97].mxu1  ;;  %13244 = vst [vmem:[#allocation89_spill] sm:$0xff] %v8655_v45  ;;  %v8662_v20 = vpop.f32.mrb[60].mxu0 }
 0x1b2   : > { %v3903_v29 = vpop.permute.xlu1 %3902  ;;  %v3869_v32 = vadd.f32 %v3837_v33, %v3677_v35  ;;  %13243 = vst [vmem:[#allocation88_spill] sm:$0xff] %v8651_v6  ;;  %v1355_v6 = vadd.f32 %v8420_v48, %v8573_v44 }
 0x1b3   : > { %v4029_v17 = vmul.f32 %v3903_v29, %v1594_v52  ;;  %v8653_v49 = vpop.permute.xlu0 %3522  ;;  %v8673_v52 = vpop.f32.mrb[61].mxu0 }
 0x1b4   : > { %7144 = vset.pattern.permute.xlu1 %v13191_v59  ;;  %v8668_v29 = vpop.f32.mrb[98].mxu1 }
 0x1b5   : > { %v8664_v27 = vadd.f32 %v4029_v17, %v3869_v32  ;;  %3382 = vperm.xlu1 %7144, %v8594_v19   ;;  %7150 = vset.pattern.permute.xlu0 %v13184_v51  ;;  %v8671_v33 = vpop.f32.mrb[99].mxu1 }
 0x1b6   : > { %3566 = vperm.xlu0 %7150, %v8632_v60   ;;  %13246 = vst [vmem:[#allocation91_spill] sm:$0xff] %v8671_v33 }
 0x1b7   : > { %13245 = vst [vmem:[#allocation90_spill] sm:$0xff] %v8664_v27  ;;  %v3119_v7 = vpop.permute.xlu1 %3118 }
 0x1b8   : > { %v3264_v35 = vmul.f32 %v3119_v7, %v1098_v36  ;;  %v8677_v17 = vpop.permute.xlu0 %3906  ;;  %v8680_v32 = vpop.f32.mrb[100].mxu1 }
 0x1b9   : > { %7146 = vset.pattern.permute.xlu1 %v13180_v57  ;;  %v8684_v33 = vpop.f32.mrb[101].mxu1 }
 0x1ba   : > { %v3488_v27 = vadd.f32 %v3456_v8, %v3264_v35  ;;  %3766 = vperm.xlu1 %7146, %v8594_v19   ;;  %7152 = vset.pattern.permute.xlu0 %v13188_v61  ;;  %13247 = vst [vmem:[#allocation92_spill] sm:$0xff] %v8684_v33  ;;  %v1612_v8 = vadd.f32 %v1611_v23, %v8605_v5  ;;  %v8697_v35 = vld [vmem:[#allocation2 + $0x78] sm:$0xff] }
 0x1bb   : > { %3950 = vperm.xlu0 %7152, %v8632_v60   ;;  %v3840_v33 = vmul.f32 %v8616_v0, %v1357_v50  ;;  %v1088_v0 = vadd.f32 %v8156_v4, %v8550_v24  ;;  %v1343_v4 = vadd.f32 %v8394_v42, %v8573_v44  ;;  %v1345_v42 = vadd.f32 %v8397_v43, %v8589_v13 }
 0x1bc   : > { %v3531_v36 = vpop.permute.xlu1 %3530  ;;  %v8691_v7 = vpop.f32.mrb[102].mxu1 }
 0x1bd   : > { %v3648_v48 = vmul.f32 %v3531_v36, %v1355_v6  ;;  %v8689_v47 = vpop.permute.xlu0 %3133  ;;  %v8695_v19 = vpop.f32.mrb[103].mxu1 }
 0x1be   : > { %7149 = vset.pattern.permute.xlu1 %v13191_v59  ;;  %13248 = vst [vmem:[#allocation93_spill] sm:$0xff] %v8695_v19  ;;  %v1086_v19 = vadd.f32 %v8152_v3, %v8546_v40  ;;  %v822_v3 = vld [vmem:[%s13009_s3 + $0x30] sm:$0xff] }
 0x1bf   : > { %v3680_v45 = vadd.f32 %v3648_v48, %v3488_v27  ;;  %3374 = vperm.xlu1 %7149, %v8632_v60   ;;  %7154 = vset.pattern.permute.xlu0 %v13191_v59  ;;  %v8714_v27 = vpop.f32.mrb[62].mxu0 }
 0x1c0   : > { %3386 = vperm.xlu0 %7154, %v8697_v35   ;;  %v8703_v36 = vpop.f32.mrb[104].mxu1  ;;  %v8723_v50 = vpop.f32.mrb[63].mxu0 }
 0x1c1   : > { %v3915_v55 = vpop.permute.xlu1 %3914  ;;  %v3872_v6 = vadd.f32 %v3840_v33, %v3680_v45  ;;  %v8707_v23 = vpop.f32.mrb[105].mxu1  ;;  %v823_v45 = vld [vmem:[%s13009_s3 + $0x38] sm:$0xff]  ;;  %13251 = vst [vmem:[#allocation96_spill] sm:$0xff] %v8723_v50 }
 0x1c2   : > { %v4032_v54 = vmul.f32 %v3915_v55, %v1612_v8  ;;  %v8705_v1 = vpop.permute.xlu0 %3542  ;;  %13249 = vst [vmem:[#allocation94_spill] sm:$0xff] %v8707_v23  ;;  %1784 = vmatprep.subr.mxu0 %v823_v45  ;;  %v8739_v23 = vld [vmem:[%s7710_s29] sm:$0xff]  ;;  %v13253_v45 = vmov 0.0  }
 0x1c3   : > { %7151 = vset.pattern.permute.xlu1 %v13180_v57  ;;  %1785 = vmatpush1.msra.mxu0 %v822_v3  ;;  %v1600_v3 = vadd.f32 %v8600_v56, %v8605_v5  ;;  %v1118_v56 = vadd.f32 %v8189_v18, %v8550_v24  ;;  %v8782_v18 = vld [vmem:[%s7710_s29 + $0x10] sm:$0xff] }
 0x1c4   : > { %v8719_v33 = vadd.f32 %v4032_v54, %v3872_v6  ;;  %3758 = vperm.xlu1 %7151, %v8632_v60   ;;  %7156 = vset.pattern.permute.xlu0 %v13180_v57  ;;  %v8731_v48 = vpop.f32.mrb[106].mxu1  ;;  %v3262_v60 = vmul.f32 %v8634_v53, %v1086_v19  ;;  %v3646_v53 = vmul.f32 %v8653_v49, %v1343_v4  ;;  %v8762_v49 = vld [vmem:[%s7710_s29 + $0x8] sm:$0xff] }
 0x1c5   : > { %3770 = vperm.xlu0 %7156, %v8697_v35   ;;  %v8733_v8 = vpop.f32.mrb[107].mxu1  ;;  %6610 = vmatmul.mubr.msk.f32.vlgmr.msra.gmra.mrb[74].mxu0 %vm916_vm0, %v8739_v23  ;;  %13256 = vst [vmem:[#allocation100_spill] sm:$0xff] %v8782_v18 }
 0x1c6   : > { %13250 = vst [vmem:[#allocation95_spill] sm:$0xff] %v8719_v33  ;;  %v3331_v54 = vpop.permute.xlu1 %3330  ;;  %13252 = vst [vmem:[#allocation97_spill] sm:$0xff] %v8733_v8  ;;  %1854 = vmatprep.mubr.f32.mxu0 %v13253_v45  ;;  %v8747_v8 = vld [vmem:[#allocation2 + $0x68] sm:$0xff] }
 0x1c7   : > { %v3454_v55 = vmul.f32 %v3331_v54, %v1088_v0  ;;  %v8736_v6 = vpop.permute.xlu0 %3926  ;;  %v1116_v54 = vadd.f32 %v8187_v15, %v8546_v40  ;;  %v4030_v15 = vmul.f32 %v8677_v17, %v1600_v3  ;;  %v8789_v3 = vld [vmem:[#allocation2 + $0x90] sm:$0xff] }
 0x1c8   : > { %7153 = vset.pattern.permute.xlu1 %v13181_v37  ;;  %v8752_v0 = vpop.f32.mrb[108].mxu1 }
 0x1c9   : > { %v3486_v19 = vadd.f32 %v3454_v55, %v3262_v60  ;;  %7159 = vset.pattern.permute.xlu0 %v13191_v59  ;;  %3178 = vperm.xlu1 %7153, %v8697_v35   ;;  %v8757_v43 = vpop.f32.mrb[109].mxu1 }
 0x1ca   : > { %3378 = vperm.xlu0 %7159, %v8747_v8   ;;  %13254 = vst [vmem:[#allocation98_spill] sm:$0xff] %v8757_v43  ;;  %6611 = vmatmul.mubr.msk.f32.gmra.mrb[76].mxu0 %vm916_vm0, %v8762_v49 }
 0x1cb   : > { %v3715_v33 = vpop.permute.xlu1 %3714  ;;  %v3678_v50 = vadd.f32 %v3646_v53, %v3486_v19  ;;  %1860 = vmatprep.mubr.f32.mxu0 %v13253_v45 }
 0x1cc   : > { %v3838_v4 = vmul.f32 %v3715_v33, %v1345_v42  ;;  %v3124_v60 = vpop.permute.xlu0 %3123  ;;  %v8770_v55 = vpop.f32.mrb[110].mxu1  ;;  %v3267_v33 = vmul.f32 %v8689_v47, %v1116_v54  ;;  %v1373_v42 = vadd.f32 %v8448_v58, %v8573_v44  ;;  %v1375_v58 = vadd.f32 %v8450_v41, %v8589_v13 }
 0x1cd   : > { %7155 = vset.pattern.permute.xlu1 %v13184_v51  ;;  %v8775_v19 = vpop.f32.mrb[111].mxu1 }
 0x1ce   : > { %v3870_v53 = vadd.f32 %v3838_v4, %v3678_v50  ;;  %3578 = vperm.xlu1 %7155, %v8697_v35   ;;  %7161 = vset.pattern.permute.xlu0 %v13180_v57  ;;  %13255 = vst [vmem:[#allocation99_spill] sm:$0xff] %v8775_v19  ;;  %v3651_v43 = vmul.f32 %v8705_v1, %v1373_v42 }
 0x1cf   : > { %3762 = vperm.xlu0 %7161, %v8747_v8   ;;  %6612 = vmatmul.mubr.msk.f32.gmra.mrb[78].mxu0 %vm916_vm0, %v8782_v18  ;;  %v1106_v42 = vadd.f32 %v8175_v10, %v8550_v24 }
 0x1d0   : > { %v3351_v17 = vpop.permute.xlu1 %3350  ;;  %1866 = vmatprep.mubr.f32.mxu0 %v13253_v45  ;;  %v8787_v50 = vadd.f32 %v4030_v15, %v3870_v53  ;;  %v8791_v54 = vpop.f32.mrb[112].mxu1  ;;  %v8805_v15 = vld [vmem:[%s7710_s29 + $0x18] sm:$0xff] }
 0x1d1   : > { %v3459_v4 = vmul.f32 %v3351_v17, %v1118_v56  ;;  %v3535_v47 = vpop.permute.xlu0 %3534  ;;  %v8796_v19 = vpop.f32.mrb[113].mxu1  ;;  %v1630_v56 = vadd.f32 %v8668_v29, %v8605_v5  ;;  %v1104_v29 = vadd.f32 %v8173_v9, %v8546_v40  ;;  %v8828_v9 = vld [vmem:[%s7710_s29 + $0x20] sm:$0xff] }
 0x1d2   : > { %13257 = vst [vmem:[#allocation101_spill] sm:$0xff] %v8787_v50  ;;  %7157 = vset.pattern.permute.xlu1 %v13188_v61  ;;  %13258 = vst [vmem:[#allocation102_spill] sm:$0xff] %v8796_v19  ;;  %v8842_v50 = vld [vmem:[%s7710_s29 + $0x28] sm:$0xff]  ;;  %v1379_v19 = vadd.f32 %v8458_v38, %v8573_v44 }
 0x1d3   : > { %v3491_v18 = vadd.f32 %v3459_v4, %v3267_v33  ;;  %3962 = vperm.xlu1 %7157, %v8697_v35   ;;  %7163 = vset.pattern.permute.xlu0 %v13181_v37  ;;  %v4035_v4 = vmul.f32 %v8736_v6, %v1630_v56  ;;  %v3265_v56 = vmul.f32 %v3124_v60, %v1104_v29 }
 0x1d4   : > { %3193 = vperm.xlu0 %7163, %v8789_v3   ;;  %6613 = vmatmul.mubr.msk.f32.gmra.mrb[80].mxu0 %vm916_vm0, %v8805_v15  ;;  %v8809_v17 = vpop.f32.mrb[114].mxu1  ;;  %v1618_v60 = vadd.f32 %v8630_v16, %v8605_v5 }
 0x1d5   : > { %v3735_v41 = vpop.permute.xlu1 %3734  ;;  %v3683_v53 = vadd.f32 %v3651_v43, %v3491_v18  ;;  %1872 = vmatprep.mubr.f32.mxu0 %v13253_v45  ;;  %v8812_v33 = vpop.f32.mrb[115].mxu1  ;;  %v1361_v18 = vadd.f32 %v8429_v39, %v8573_v44  ;;  %v1363_v39 = vadd.f32 %v8432_v30, %v8589_v13 }
 0x1d6   : > { %v3843_v1 = vmul.f32 %v3735_v41, %v1375_v58  ;;  %v3919_v35 = vpop.permute.xlu0 %3918  ;;  %13259 = vst [vmem:[#allocation103_spill] sm:$0xff] %v8812_v33 }
 0x1d7   : > { %7158 = vset.pattern.permute.xlu1 %v13181_v37 }
 0x1d8   : > { %v3875_v43 = vadd.f32 %v3843_v1, %v3683_v53  ;;  %3168 = vperm.xlu1 %7158, %v8747_v8   ;;  %7165 = vset.pattern.permute.xlu0 %v13184_v51  ;;  %v8825_v58 = vpop.f32.mrb[116].mxu1  ;;  %v3649_v1 = vmul.f32 %v3535_v47, %v1361_v18  ;;  %v8853_v18 = vpop.f32.mrb[64].mxu0 }
 0x1d9   : > { %3590 = vperm.xlu0 %7165, %v8789_v3   ;;  %6614 = vmatmul.mubr.msk.f32.gmra.mrb[82].mxu0 %vm916_vm0, %v8828_v9  ;;  %v8849_v47 = vpop.f32.mrb[117].mxu1 }
 0x1da   : > { %v3343_v10 = vpop.permute.xlu1 %3342  ;;  %1878 = vmatprep.mubr.f32.mxu0 %v13253_v45  ;;  %v8833_v6 = vadd.f32 %v4035_v4, %v3875_v43  ;;  %13261 = vst [vmem:[#allocation105_spill] sm:$0xff] %v8849_v47 }
 0x1db   : > { %v3457_v41 = vmul.f32 %v3343_v10, %v1106_v42  ;;  %v3355_v53 = vpop.permute.xlu0 %3354  ;;  %v8851_v42 = vld [vmem:[#allocation2 + $0x80] sm:$0xff]  ;;  %v1122_v10 = vadd.f32 %v8195_v26, %v8546_v40  ;;  %v8872_v26 = vld [vmem:[%s7710_s29 + $0x30] sm:$0xff] }
 0x1dc   : > { %13260 = vst [vmem:[#allocation104_spill] sm:$0xff] %v8833_v6  ;;  %7160 = vset.pattern.permute.xlu1 %v13184_v51  ;;  %v8860_v16 = vpop.f32.mrb[118].mxu1 }
 0x1dd   : > { %v3489_v33 = vadd.f32 %v3457_v41, %v3265_v56  ;;  %3570 = vperm.xlu1 %7160, %v8747_v8   ;;  %7167 = vset.pattern.permute.xlu0 %v13188_v61  ;;  %v1124_v56 = vadd.f32 %v8198_v28, %v8550_v24 }
 0x1de   : > { %3974 = vperm.xlu0 %7167, %v8789_v3   ;;  %6615 = vmatmul.mubr.msk.f32.gmra.mrb[84].mxu0 %vm916_vm0, %v8842_v50 }
 0x1df   : > { %v3727_v29 = vpop.permute.xlu1 %3726  ;;  %v3681_v30 = vadd.f32 %v3649_v1, %v3489_v33  ;;  %1884 = vmatprep.mubr.f32.mxu0 %v13253_v45  ;;  %v8862_v33 = vpop.f32.mrb[65].mxu0 }
 0x1e0   : > { %v3841_v4 = vmul.f32 %v3727_v29, %v1363_v39  ;;  %v3739_v43 = vpop.permute.xlu0 %3738  ;;  %v8866_v39 = vpop.f32.mrb[119].mxu1  ;;  %v4033_v29 = vmul.f32 %v3919_v35, %v1618_v60 }
 0x1e1   : > { %7162 = vset.pattern.permute.xlu1 %v13188_v61  ;;  %13262 = vst [vmem:[#allocation106_spill] sm:$0xff] %v8866_v39  ;;  %v8868_v1 = vpop.f32.mrb[66].mxu0  ;;  %v8876_v28 = vpop.f32.mrb[120].mxu1 }
 0x1e2   : > { %v3873_v41 = vadd.f32 %v3841_v4, %v3681_v30  ;;  %3954 = vperm.xlu1 %7162, %v8747_v8   ;;  %7168 = vset.pattern.permute.xlu0 %v13181_v37  ;;  %13263 = vst [vmem:[#allocation107_spill] sm:$0xff] %v8868_v1  ;;  %13264 = vst [vmem:[#allocation108_spill] sm:$0xff] %v8876_v28  ;;  %v8878_v6 = vpop.f32.mrb[67].mxu0  ;;  %v8881_v8 = vpop.f32.mrb[121].mxu1  ;;  %v3460_v4 = vmul.f32 %v3355_v53, %v1124_v56 }
 0x1e3   : > { %3183 = vperm.xlu0 %7168, %v8851_v42   ;;  %6616 = vmatmul.mubr.msk.f32.gmra.mrb[86].mxu0 %vm916_vm0, %v8872_v26  ;;  %13265 = vst [vmem:[#allocation109_spill] sm:$0xff] %v8878_v6  ;;  %13266 = vst [vmem:[#allocation110_spill] sm:$0xff] %v8881_v8  ;;  %v8883_v60 = vpop.f32.mrb[68].mxu0  ;;  %v1381_v53 = vadd.f32 %v8460_v2, %v8589_v13  ;;  %v1636_v2 = vadd.f32 %v8680_v32, %v8605_v5 }
 0x1e4   : > { %v3139_v30 = vpop.permute.xlu1 %3138  ;;  %1890 = vmatprep.mubr.f32.mxu0 %v13253_v45  ;;  %v8885_v47 = vadd.f32 %v4033_v29, %v3873_v41  ;;  %v8890_v28 = vpop.f32.mrb[122].mxu1  ;;  %v1369_v8 = vadd.f32 %v8441_v62, %v8589_v13  ;;  %v1642_v1 = vadd.f32 %v8691_v7, %v8605_v5  ;;  %v13276_v7 = vld [vmem:[#allocation8_spill] sm:$0xff] }
 0x1e5   : > { %v3268_v39 = vmul.f32 %v3139_v30, %v1122_v10  ;;  %v3347_v35 = vpop.permute.xlu0 %3346  ;;  %v8898_v10 = vld [vmem:[%s7710_s29 + $0x38] sm:$0xff]  ;;  %v8903_v56 = vpop.f32.mrb[69].mxu0  ;;  %v3844_v29 = vmul.f32 %v3739_v43, %v1381_v53 }
 0x1e6   : > { %13267 = vst [vmem:[#allocation111_spill] sm:$0xff] %v8885_v47  ;;  %7164 = vset.pattern.permute.xlu1 %v13191_v59  ;;  %v8922_v43 = vld [vmem:[#allocation2 + $0x98] sm:$0xff] }
 0x1e7   : > { %v3492_v6 = vadd.f32 %v3460_v4, %v3268_v39  ;;  %3398 = vperm.xlu1 %7164, %v8789_v3   ;;  %7170 = vset.pattern.permute.xlu0 %v13184_v51  ;;  %v8912_v4 = vld [vmem:[%s7710_s29 + $0x40] sm:$0xff] }
 0x1e8   : > { %3582 = vperm.xlu0 %7170, %v8851_v42   ;;  %6617 = vmatmul.mubr.msk.f32.gmra.mrb[88].mxu0 %vm916_vm0, %v8898_v10 }
 0x1e9   : > { %v3547_v38 = vpop.permute.xlu1 %3546  ;;  %1896 = vmatprep.mubr.f32.mxu0 %v13253_v45 }
 0x1ea   : > { %v3652_v41 = vmul.f32 %v3547_v38, %v1379_v19  ;;  %v3731_v39 = vpop.permute.xlu0 %3730 }
 0x1eb   : > { %7166 = vset.pattern.permute.xlu1 %v13180_v57  ;;  %v3842_v62 = vmul.f32 %v3731_v39, %v1369_v8 }
 0x1ec   : > { %v3684_v30 = vadd.f32 %v3652_v41, %v3492_v6  ;;  %3782 = vperm.xlu1 %7166, %v8789_v3   ;;  %7172 = vset.pattern.permute.xlu0 %v13188_v61  ;;  %v1110_v6 = vadd.f32 %v8180_v11, %v8546_v40  ;;  %v1112_v3 = vadd.f32 %v8182_v12, %v8550_v24  ;;  %v8930_v41 = vld [vmem:[%s7710_s29 + $0x48] sm:$0xff]  ;;  %v8935_v12 = vpop.f32.mrb[70].mxu0 }
 0x1ed   : > { %3966 = vperm.xlu0 %7172, %v8851_v42   ;;  %6618 = vmatmul.mubr.msk.f32.gmra.mrb[90].mxu0 %vm916_vm0, %v8912_v4 }
 0x1ee   : > { %v3931_v19 = vpop.permute.xlu1 %3930  ;;  %v3876_v38 = vadd.f32 %v3844_v29, %v3684_v30  ;;  %1902 = vmatprep.mubr.f32.mxu0 %v13253_v45  ;;  %v8937_v30 = vpop.f32.mrb[71].mxu0 }
 0x1ef   : > { %v4036_v47 = vmul.f32 %v3931_v19, %v1636_v2  ;;  %v3154_v32 = vpop.permute.xlu0 %3153  ;;  %v3458_v2 = vmul.f32 %v3347_v35, %v1112_v3  ;;  %v1367_v19 = vadd.f32 %v8438_v22, %v8573_v44  ;;  %v8948_v35 = vld [vmem:[%s7710_s29 + $0x50] sm:$0xff] }
 0x1f0   : > { %7169 = vset.pattern.permute.xlu1 %v13191_v59 }
 0x1f1   : > { %v8924_v53 = vadd.f32 %v4036_v47, %v3876_v38  ;;  %3390 = vperm.xlu1 %7169, %v8851_v42   ;;  %7174 = vset.pattern.permute.xlu0 %v13191_v59 }
 0x1f2   : > { %3402 = vperm.xlu0 %7174, %v8922_v43   ;;  %6619 = vmatmul.mubr.msk.f32.gmra.mrb[92].mxu0 %vm916_vm0, %v8930_v41 }
 0x1f3   : > { %13268 = vst [vmem:[#allocation112_spill] sm:$0xff] %v8924_v53  ;;  %v3129_v11 = vpop.permute.xlu1 %3128  ;;  %1908 = vmatprep.mubr.f32.mxu0 %v13253_v45 }
 0x1f4   : > { %v3266_v47 = vmul.f32 %v3129_v11, %v1110_v6  ;;  %v3559_v29 = vpop.permute.xlu0 %3558  ;;  %v8956_v11 = vld [vmem:[#allocation2 + $0x88] sm:$0xff] }
 0x1f5   : > { %7171 = vset.pattern.permute.xlu1 %v13180_v57 }
 0x1f6   : > { %v3490_v38 = vadd.f32 %v3458_v2, %v3266_v47  ;;  %3774 = vperm.xlu1 %7171, %v8851_v42   ;;  %7176 = vset.pattern.permute.xlu0 %v13180_v57  ;;  %v1624_v42 = vadd.f32 %v8647_v46, %v8605_v5  ;;  %v8962_v47 = vld [vmem:[%s7710_s29 + $0x58] sm:$0xff]  ;;  %v1140_v46 = vadd.f32 %v8230_v63, %v8546_v40 }
 0x1f7   : > { %3786 = vperm.xlu0 %7176, %v8922_v43   ;;  %6620 = vmatmul.mubr.msk.f32.gmra.mrb[94].mxu0 %vm916_vm0, %v8948_v35  ;;  %v1397_v63 = vadd.f32 %v8504_v25, %v8573_v44  ;;  %v1399_v25 = vadd.f32 %v8514_v21, %v8589_v13 }
 0x1f8   : > { %v3539_v6 = vpop.permute.xlu1 %3538  ;;  %1914 = vmatprep.mubr.f32.mxu0 %v13253_v45  ;;  %v3271_v53 = vmul.f32 %v3154_v32, %v1140_v46 }
 0x1f9   : > { %v3650_v22 = vmul.f32 %v3539_v6, %v1367_v19  ;;  %v3943_v3 = vpop.permute.xlu0 %3942 }
 0x1fa   : > { %7173 = vset.pattern.permute.xlu1 %v13181_v37 }
 0x1fb   : > { %v3682_v2 = vadd.f32 %v3650_v22, %v3490_v38  ;;  %7179 = vset.pattern.permute.xlu0 %v13191_v59  ;;  %3198 = vperm.xlu1 %7173, %v8922_v43   ;;  %v1142_v38 = vadd.f32 %v8234_v14, %v8550_v24  ;;  %v8984_v14 = vpop.f32.mrb[123].mxu1 }
 0x1fc   : > { %3394 = vperm.xlu0 %7179, %v8956_v11   ;;  %6621 = vmatmul.mubr.msk.f32.gmra.mrb[96].mxu0 %vm916_vm0, %v8962_v47  ;;  %13270 = vst [vmem:[#allocation114_spill] sm:$0xff] %v8984_v14  ;;  %v1654_v14 = vadd.f32 %v8731_v48, %v8605_v5  ;;  %v1130_v48 = vadd.f32 %v8207_v34, %v8550_v24 }
 0x1fd   : > { %v3923_v19 = vpop.permute.xlu1 %3922  ;;  %v3874_v6 = vadd.f32 %v3842_v62, %v3682_v2  ;;  %1920 = vmatprep.mubr.f32.mxu0 %v13253_v45  ;;  %v8980_v62 = vld [vmem:[%s7710_s29 + $0x60] sm:$0xff]  ;;  %v8987_v2 = vpop.f32.mrb[124].mxu1 }
 0x1fe   : > { %v4034_v8 = vmul.f32 %v3923_v19, %v1624_v42  ;;  %v3144_v39 = vpop.permute.xlu0 %3143  ;;  %v8989_v19 = vld [vmem:[#allocation2 + $0xb0] sm:$0xff] }
 0x1ff   : > { %7175 = vset.pattern.permute.xlu1 %v13184_v51 }
 0x200   : > { %v8972_v22 = vadd.f32 %v4034_v8, %v3874_v6  ;;  %3594 = vperm.xlu1 %7175, %v8922_v43   ;;  %7181 = vset.pattern.permute.xlu0 %v13180_v57  ;;  %v3655_v6 = vmul.f32 %v3559_v29, %v1397_v63  ;;  %v4039_v29 = vmul.f32 %v3943_v3, %v1654_v14 }
 0x201   : > { %3778 = vperm.xlu0 %7181, %v8956_v11   ;;  %6622 = vmatmul.mubr.msk.f32.gmra.mrb[98].mxu0 %vm916_vm0, %v8980_v62 }
 0x202   : > { %13269 = vst [vmem:[#allocation113_spill] sm:$0xff] %v8972_v22  ;;  %v3367_v42 = vpop.permute.xlu1 %3366  ;;  %1926 = vmatprep.mubr.f32.mxu0 %v13253_v45  ;;  %v9000_v22 = vld [vmem:[%s7710_s29 + $0x68] sm:$0xff] }
 0x203   : > { %v3463_v32 = vmul.f32 %v3367_v42, %v1142_v38  ;;  %v3551_v46 = vpop.permute.xlu0 %3550 }
 0x204   : > { %7177 = vset.pattern.permute.xlu1 %v13188_v61 }
 0x205   : > { %v3495_v8 = vadd.f32 %v3463_v32, %v3271_v53  ;;  %3978 = vperm.xlu1 %7177, %v8922_v43   ;;  %7183 = vset.pattern.permute.xlu0 %v13181_v37  ;;  %v1128_v43 = vadd.f32 %v8205_v31, %v8546_v40  ;;  %v13271_v32 = vld [vmem:[#allocation56_spill] sm:$0xff] }
 0x206   : > { %3213 = vperm.xlu0 %7183, %v8989_v19   ;;  %6623 = vmatmul.mubr.msk.f32.gmra.mrb[100].mxu0 %vm916_vm0, %v9000_v22 }
 0x207   : > { %v3751_v38 = vpop.permute.xlu1 %3750  ;;  %v3687_v42 = vadd.f32 %v3655_v6, %v3495_v8  ;;  %1932 = vmatprep.mubr.f32.mxu0 %v13253_v45  ;;  %v1385_v6 = vadd.f32 %v13271_v32, %v8573_v44  ;;  %v3269_v3 = vmul.f32 %v3144_v39, %v1128_v43 }
 0x208   : > { %v3847_v21 = vmul.f32 %v3751_v38, %v1399_v25  ;;  %v3935_v53 = vpop.permute.xlu0 %3934  ;;  %v9016_v25 = vld [vmem:[%s7710_s29 + $0x70] sm:$0xff]  ;;  %v13273_v38 = vld [vmem:[#allocation58_spill] sm:$0xff] }
 0x209   : > { %7178 = vset.pattern.permute.xlu1 %v13181_v37 }
 0x20a   : > { %v3879_v63 = vadd.f32 %v3847_v21, %v3687_v42  ;;  %3188 = vperm.xlu1 %7178, %v8956_v11   ;;  %7185 = vset.pattern.permute.xlu0 %v13184_v51  ;;  %v1387_v42 = vadd.f32 %v13273_v38, %v8589_v13  ;;  %v3653_v21 = vmul.f32 %v3551_v46, %v1385_v6  ;;  %v9037_v46 = vpop.f32.mrb[125].mxu1 }
 0x20b   : > { %3606 = vperm.xlu0 %7185, %v8989_v19   ;;  %6624 = vmatmul.mubr.msk.f32.gmra.mrb[102].mxu0 %vm916_vm0, %v9016_v25  ;;  %13274 = vst [vmem:[#allocation58_spill] sm:$0xff] %v9037_v46  ;;  %v13283_v46 = vld [vmem:[#allocation71_spill] sm:$0xff] }
 0x20c   : > { %v3359_v31 = vpop.permute.xlu1 %3358  ;;  %1938 = vmatprep.mubr.f32.mxu0 %v13253_v45  ;;  %v9021_v34 = vadd.f32 %v4039_v29, %v3879_v63  ;;  %v9032_v29 = vld [vmem:[%s7710_s29 + $0x78] sm:$0xff] }
 0x20d   : > { %v3461_v14 = vmul.f32 %v3359_v31, %v1130_v48  ;;  %v3371_v8 = vpop.permute.xlu0 %3370  ;;  %v9039_v48 = vld [vmem:[#allocation2 + $0xa0] sm:$0xff]  ;;  %v9041_v31 = vpop.f32.mrb[126].mxu1 }
 0x20e   : > { %13272 = vst [vmem:[#allocation56_spill] sm:$0xff] %v9021_v34  ;;  %7180 = vset.pattern.permute.xlu1 %v13184_v51  ;;  %13275 = vst [vmem:[#allocation115_spill] sm:$0xff] %v9041_v31 }
 0x20f   : > { %v3493_v32 = vadd.f32 %v3461_v14, %v3269_v3  ;;  %3586 = vperm.xlu1 %7180, %v8956_v11   ;;  %7187 = vset.pattern.permute.xlu0 %v13188_v61  ;;  %v1146_v3 = vadd.f32 %v13276_v7, %v8546_v40  ;;  %v13277_v14 = vld [vmem:[#allocation9_spill] sm:$0xff] }
 0x210   : > { %3990 = vperm.xlu0 %7187, %v8989_v19   ;;  %6625 = vmatmul.mubr.msk.f32.gmra.mrb[104].mxu0 %vm916_vm0, %v9032_v29  ;;  %v1148_v38 = vadd.f32 %v13277_v14, %v8550_v24 }
 0x211   : > { %v3743_v39 = vpop.permute.xlu1 %3742  ;;  %v3685_v43 = vadd.f32 %v3653_v21, %v3493_v32  ;;  %1944 = vmatprep.mubr.f32.mxu0 %v13253_v45  ;;  %v9048_v21 = vpop.f32.mrb[127].mxu1  ;;  %v4037_v32 = vmul.f32 %v3935_v53, %v1642_v1 }
 0x212   : > { %v3845_v63 = vmul.f32 %v3743_v39, %v1387_v42  ;;  %v3755_v6 = vpop.permute.xlu0 %3754  ;;  %13278 = vst [vmem:[#allocation8_spill] sm:$0xff] %v9048_v21  ;;  %v9052_v42 = vpop.f32.mrb[128].mxu1  ;;  %v9056_v39 = vld [vmem:[%s7710_s29 + $0x80] sm:$0xff]  ;;  %v3464_v53 = vmul.f32 %v3371_v8, %v1148_v38  ;;  %v9078_v8 = vld [vmem:[%s7710_s29 + $0x88] sm:$0xff] }
 0x213   : > { %7182 = vset.pattern.permute.xlu1 %v13188_v61  ;;  %13279 = vst [vmem:[#allocation9_spill] sm:$0xff] %v9052_v42  ;;  %v9060_v7 = vpop.f32.mrb[129].mxu1  ;;  %v9067_v21 = vpop.f32.mrb[72].mxu0  ;;  %v1403_v42 = vadd.f32 %v13283_v46, %v8573_v44 }
 0x214   : > { %v3877_v34 = vadd.f32 %v3845_v63, %v3685_v43  ;;  %3970 = vperm.xlu1 %7182, %v8956_v11   ;;  %7188 = vset.pattern.permute.xlu0 %v13181_v37  ;;  %13280 = vst [vmem:[#allocation116_spill] sm:$0xff] %v9060_v7  ;;  %v9063_v1 = vpop.f32.mrb[130].mxu1  ;;  %13282 = vst [vmem:[#allocation118_spill] sm:$0xff] %v9067_v21  ;;  %v13284_v7 = vld [vmem:[#allocation72_spill] sm:$0xff]  ;;  %v13292_v21 = vld [vmem:[#allocation61_spill] sm:$0xff] }
 0x215   : > { %3203 = vperm.xlu0 %7188, %v9039_v48   ;;  %6626 = vmatmul.mubr.msk.f32.gmra.mrb[106].mxu0 %vm916_vm0, %v9056_v39 }
 0x216   : > { %v3159_v14 = vpop.permute.xlu1 %3158  ;;  %1950 = vmatprep.mubr.f32.mxu0 %v13253_v45  ;;  %v9065_v11 = vadd.f32 %v4037_v32, %v3877_v34  ;;  %v1405_v34 = vadd.f32 %v13284_v7, %v8589_v13  ;;  %v1660_v32 = vadd.f32 %v8752_v0, %v8605_v5  ;;  %v9090_v7 = vld [vmem:[%s7710_s29 + $0x90] sm:$0xff] }
 0x217   : > { %v3272_v43 = vmul.f32 %v3159_v14, %v1146_v3  ;;  %v3363_v63 = vpop.permute.xlu0 %3362 }
 0x218   : > { %13281 = vst [vmem:[#allocation117_spill] sm:$0xff] %v9065_v11  ;;  %7184 = vset.pattern.permute.xlu1 %v13191_v59  ;;  %v3848_v14 = vmul.f32 %v3755_v6, %v1405_v34  ;;  %v13285_v6 = vld [vmem:[#allocation6_spill] sm:$0xff] }
 0x219   : > { %v3496_v31 = vadd.f32 %v3464_v53, %v3272_v43  ;;  %3414 = vperm.xlu1 %7184, %v8989_v19   ;;  %7190 = vset.pattern.permute.xlu0 %v13184_v51 }
 0x21a   : > { %3598 = vperm.xlu0 %7190, %v9039_v48   ;;  %6627 = vmatmul.mubr.msk.f32.gmra.mrb[108].mxu0 %vm916_vm0, %v9078_v8 }
 0x21b   : > { %v3563_v3 = vpop.permute.xlu1 %3562  ;;  %1956 = vmatprep.mubr.f32.mxu0 %v13253_v45 }
 0x21c   : > { %v3656_v46 = vmul.f32 %v3563_v3, %v1403_v42  ;;  %v3747_v38 = vpop.permute.xlu0 %3746 }
 0x21d   : > { %7186 = vset.pattern.permute.xlu1 %v13180_v57 }
 0x21e   : > { %v3688_v53 = vadd.f32 %v3656_v46, %v3496_v31  ;;  %3798 = vperm.xlu1 %7186, %v8989_v19   ;;  %7192 = vset.pattern.permute.xlu0 %v13188_v61  ;;  %v1134_v31 = vadd.f32 %v13285_v6, %v8546_v40  ;;  %v13286_v19 = vld [vmem:[#allocation7_spill] sm:$0xff]  ;;  %v9100_v46 = vld [vmem:[#allocation2 + $0xb8] sm:$0xff]  ;;  %v13291_v6 = vld [vmem:[#allocation60_spill] sm:$0xff] }
 0x21f   : > { %3982 = vperm.xlu0 %7192, %v9039_v48   ;;  %6628 = vmatmul.mubr.msk.f32.gmra.mrb[110].mxu0 %vm916_vm0, %v9090_v7  ;;  %v1136_v34 = vadd.f32 %v13286_v19, %v8550_v24  ;;  %13287 = vst [vmem:[#allocation71_spill] sm:$0xff] %v9100_v46  ;;  %v1391_v19 = vadd.f32 %v13291_v6, %v8573_v44 }
 0x220   : > { %v3947_v42 = vpop.permute.xlu1 %3946  ;;  %v3880_v43 = vadd.f32 %v3848_v14, %v3688_v53  ;;  %1962 = vmatprep.mubr.f32.mxu0 %v13253_v45  ;;  %v9113_v53 = vpop.f32.mrb[73].mxu0 }
 0x221   : > { %v4040_v3 = vmul.f32 %v3947_v42, %v1660_v32  ;;  %v3174_v0 = vpop.permute.xlu0 %3173  ;;  %v9108_v32 = vld [vmem:[%s7710_s29 + $0x98] sm:$0xff]  ;;  %13290 = vst [vmem:[#allocation7_spill] sm:$0xff] %v9113_v53  ;;  %v3462_v42 = vmul.f32 %v3363_v63, %v1136_v34  ;;  %v9124_v53 = vld [vmem:[%s7710_s29 + $0xa0] sm:$0xff] }
 0x222   : > { %7189 = vset.pattern.permute.xlu1 %v13191_v59  ;;  %13289 = vst [vmem:[#allocation6_spill] sm:$0xff] %v9108_v32  ;;  %13293 = vst [vmem:[#allocation60_spill] sm:$0xff] %v9124_v53 }
 0x223   : > { %v9102_v11 = vadd.f32 %v4040_v3, %v3880_v43  ;;  %3406 = vperm.xlu1 %7189, %v9039_v48   ;;  %7194 = vset.pattern.permute.xlu0 %v13191_v59 }
 0x224   : > { %3418 = vperm.xlu0 %7194, %v9100_v46   ;;  %6629 = vmatmul.mubr.msk.f32.gmra.mrb[112].mxu0 %vm916_vm0, %v9108_v32  ;;  %v1393_v32 = vadd.f32 %v13292_v21, %v8589_v13 }
 0x225   : > { %13288 = vst [vmem:[#allocation72_spill] sm:$0xff] %v9102_v11  ;;  %v3149_v14 = vpop.permute.xlu1 %3148  ;;  %1968 = vmatprep.mubr.f32.mxu0 %v13253_v45 }
 0x226   : > { %v3270_v43 = vmul.f32 %v3149_v14, %v1134_v31  ;;  %v3575_v3 = vpop.permute.xlu0 %3574  ;;  %v9132_v14 = vld [vmem:[#allocation2 + $0xa8] sm:$0xff]  ;;  %v3846_v21 = vmul.f32 %v3747_v38, %v1393_v32 }
 0x227   : > { %7191 = vset.pattern.permute.xlu1 %v13180_v57  ;;  %v13296_v32 = vld [vmem:[#allocation15_spill] sm:$0xff] }
 0x228   : > { %v3494_v11 = vadd.f32 %v3462_v42, %v3270_v43  ;;  %3790 = vperm.xlu1 %7191, %v9039_v48   ;;  %7196 = vset.pattern.permute.xlu0 %v13180_v57  ;;  %v1648_v48 = vadd.f32 %v8703_v36, %v8605_v5  ;;  %v9138_v43 = vld [vmem:[%s7710_s29 + $0xa8] sm:$0xff]  ;;  %v13295_v36 = vld [vmem:[#allocation14_spill] sm:$0xff] }
 0x229   : > { %3802 = vperm.xlu0 %7196, %v9100_v46   ;;  %6630 = vmatmul.mubr.msk.f32.gmra.mrb[114].mxu0 %vm916_vm0, %v9124_v53  ;;  %13294 = vst [vmem:[#allocation61_spill] sm:$0xff] %v9138_v43  ;;  %v1164_v6 = vadd.f32 %v13295_v36, %v8546_v40  ;;  %v1421_v36 = vadd.f32 %v8662_v20, %v8573_v44 }
 0x22a   : > { %v3555_v63 = vpop.permute.xlu1 %3554  ;;  %1974 = vmatprep.mubr.f32.mxu0 %v13253_v45  ;;  %v1423_v20 = vadd.f32 %v8673_v52, %v8589_v13 }
 0x22b   : > { %v3654_v31 = vmul.f32 %v3555_v63, %v1391_v19  ;;  %v3959_v34 = vpop.permute.xlu0 %3958 }
 0x22c   : > { %7193 = vset.pattern.permute.xlu1 %v13181_v37 }
 0x22d   : > { %v3686_v42 = vadd.f32 %v3654_v31, %v3494_v11  ;;  %7199 = vset.pattern.permute.xlu0 %v13191_v59  ;;  %3218 = vperm.xlu1 %7193, %v9100_v46   ;;  %v1166_v31 = vadd.f32 %v13296_v32, %v8550_v24 }
 0x22e   : > { %3410 = vperm.xlu0 %7199, %v9132_v14   ;;  %6631 = vmatmul.mubr.msk.f32.gmra.mrb[116].mxu0 %vm916_vm0, %v9138_v43  ;;  %v3275_v43 = vmul.f32 %v3174_v0, %v1164_v6 }
 0x22f   : > { %v3939_v19 = vpop.permute.xlu1 %3938  ;;  %v3878_v63 = vadd.f32 %v3846_v21, %v3686_v42  ;;  %1980 = vmatprep.mubr.f32.mxu0 %v13253_v45  ;;  %v9156_v21 = vld [vmem:[%s7710_s29 + $0xb0] sm:$0xff] }
 0x230   : > { %v4038_v11 = vmul.f32 %v3939_v19, %v1648_v48  ;;  %v3164_v38 = vpop.permute.xlu0 %3163  ;;  %v9160_v48 = vpop.f32.mrb[131].mxu1 }
 0x231   : > { %7195 = vset.pattern.permute.xlu1 %v13184_v51  ;;  %13298 = vst [vmem:[#allocation15_spill] sm:$0xff] %v9160_v48  ;;  %v9163_v19 = vpop.f32.mrb[132].mxu1  ;;  %v1678_v48 = vadd.f32 %v8809_v17, %v8605_v5 }
 0x232   : > { %v9148_v53 = vadd.f32 %v4038_v11, %v3878_v63  ;;  %3610 = vperm.xlu1 %7195, %v9100_v46   ;;  %7201 = vset.pattern.permute.xlu0 %v13180_v57  ;;  %13299 = vst [vmem:[#allocation119_spill] sm:$0xff] %v9163_v19  ;;  %v9165_v63 = vld [vmem:[#allocation2 + $0xd0] sm:$0xff]  ;;  %v3659_v11 = vmul.f32 %v3575_v3, %v1421_v36 }
 0x233   : > { %3794 = vperm.xlu0 %7201, %v9132_v14   ;;  %6632 = vmatmul.mubr.msk.f32.gmra.mrb[118].mxu0 %vm916_vm0, %v9156_v21 }
 0x234   : > { %13297 = vst [vmem:[#allocation14_spill] sm:$0xff] %v9148_v53  ;;  %v3383_v42 = vpop.permute.xlu1 %3382  ;;  %1986 = vmatprep.mubr.f32.mxu0 %v13253_v45  ;;  %v9176_v53 = vld [vmem:[%s7710_s29 + $0xb8] sm:$0xff] }
 0x235   : > { %v3467_v0 = vmul.f32 %v3383_v42, %v1166_v31  ;;  %v3567_v6 = vpop.permute.xlu0 %3566  ;;  %13300 = vst [vmem:[#allocation120_spill] sm:$0xff] %v9176_v53 }
 0x236   : > { %7197 = vset.pattern.permute.xlu1 %v13188_v61 }
 0x237   : > { %v3499_v32 = vadd.f32 %v3467_v0, %v3275_v43  ;;  %3994 = vperm.xlu1 %7197, %v9100_v46   ;;  %7203 = vset.pattern.permute.xlu0 %v13181_v37  ;;  %v13301_v43 = vld [vmem:[#allocation10_spill] sm:$0xff]  ;;  %v13302_v0 = vld [vmem:[#allocation11_spill] sm:$0xff]  ;;  %v4043_v46 = vmul.f32 %v3959_v34, %v1678_v48 }
 0x238   : > { %3233 = vperm.xlu0 %7203, %v9165_v63   ;;  %6633 = vmatmul.mubr.msk.f32.gmra.mrb[120].mxu0 %vm916_vm0, %v9176_v53  ;;  %v1152_v36 = vadd.f32 %v13301_v43, %v8546_v40  ;;  %v1154_v17 = vadd.f32 %v13302_v0, %v8550_v24  ;;  %v13306_v43 = vld [vmem:[#allocation86_spill] sm:$0xff] }
 0x239   : > { %v3767_v31 = vpop.permute.xlu1 %3766  ;;  %v3691_v42 = vadd.f32 %v3659_v11, %v3499_v32  ;;  %1992 = vmatprep.mubr.f32.mxu0 %v13253_v45  ;;  %v13303_v11 = vld [vmem:[#allocation85_spill] sm:$0xff]  ;;  %v1411_v0 = vadd.f32 %v13306_v43, %v8589_v13  ;;  %v13309_v43 = vld [vmem:[#allocation16_spill] sm:$0xff] }
 0x23a   : > { %v3851_v52 = vmul.f32 %v3767_v31, %v1423_v20  ;;  %v3951_v3 = vpop.permute.xlu0 %3950  ;;  %v1409_v32 = vadd.f32 %v13303_v11, %v8573_v44  ;;  %v9192_v20 = vld [vmem:[%s7710_s29 + $0xc0] sm:$0xff]  ;;  %v3273_v48 = vmul.f32 %v3164_v38, %v1152_v36 }
 0x23b   : > { %7198 = vset.pattern.permute.xlu1 %v13181_v37  ;;  %13304 = vst [vmem:[#allocation10_spill] sm:$0xff] %v9192_v20  ;;  %v824_v38 = vld [vmem:[%s13009_s3 + $0x40] sm:$0xff] }
 0x23c   : > { %v3883_v19 = vadd.f32 %v3851_v52, %v3691_v42  ;;  %3208 = vperm.xlu1 %7198, %v9132_v14   ;;  %7205 = vset.pattern.permute.xlu0 %v13184_v51  ;;  %v3657_v11 = vmul.f32 %v3567_v6, %v1409_v32  ;;  %v9221_v32 = vld [vmem:[#allocation2 + $0xc0] sm:$0xff] }
 0x23d   : > { %3622 = vperm.xlu0 %7205, %v9165_v63   ;;  %6634 = vmatmul.mubr.msk.f32.gmra.mrb[122].mxu0 %vm916_vm0, %v9192_v20  ;;  %v825_v20 = vld [vmem:[%s13009_s3 + $0x48] sm:$0xff] }
 0x23e   : > { %v3375_v31 = vpop.permute.xlu1 %3374  ;;  %1998 = vmatprep.mubr.f32.mxu0 %v13253_v45  ;;  %v9197_v34 = vadd.f32 %v4043_v46, %v3883_v19  ;;  %v9209_v46 = vld [vmem:[%s7710_s29 + $0xc8] sm:$0xff]  ;;  %v1666_v19 = vadd.f32 %v8770_v55, %v8605_v5  ;;  %2041 = vmatprep.subr.mxu1 %v825_v20  ;;  %v13310_v55 = vld [vmem:[#allocation17_spill] sm:$0xff] }
 0x23f   : > { %v3465_v42 = vmul.f32 %v3375_v31, %v1154_v17  ;;  %v3387_v52 = vpop.permute.xlu0 %3386  ;;  %13307 = vst [vmem:[#allocation85_spill] sm:$0xff] %v9209_v46  ;;  %v9219_v17 = vpop.f32.mrb[133].mxu1  ;;  %2042 = vmatpush1.msra.mxu1 %v824_v38  ;;  %v9240_v38 = vld [vmem:[%s7710_s29 + $0xd0] sm:$0xff] }
 0x240   : > { %13305 = vst [vmem:[#allocation11_spill] sm:$0xff] %v9197_v34  ;;  %7200 = vset.pattern.permute.xlu1 %v13184_v51  ;;  %13308 = vst [vmem:[#allocation86_spill] sm:$0xff] %v9219_v17  ;;  %v1170_v34 = vadd.f32 %v13309_v43, %v8546_v40  ;;  %6642 = vmatmul.mubr.msk.f32.vlgmr.msra.gmra.mrb[150].mxu1 %vm916_vm0, %v8739_v23 }
 0x241   : > { %v3497_v53 = vadd.f32 %v3465_v42, %v3273_v48  ;;  %3602 = vperm.xlu1 %7200, %v9132_v14   ;;  %7207 = vset.pattern.permute.xlu0 %v13188_v61  ;;  %v9223_v42 = vpop.f32.mrb[134].mxu1 }
 0x242   : > { %4006 = vperm.xlu0 %7207, %v9165_v63   ;;  %6635 = vmatmul.mubr.msk.f32.gmra.mrb[124].mxu0 %vm916_vm0, %v9209_v46  ;;  %v1172_v46 = vadd.f32 %v13310_v55, %v8550_v24  ;;  %v1427_v55 = vadd.f32 %v8714_v27, %v8573_v44 }
 0x243   : > { %v3759_v6 = vpop.permute.xlu1 %3758  ;;  %v3689_v36 = vadd.f32 %v3657_v11, %v3497_v53  ;;  %2004 = vmatprep.mubr.f32.mxu0 %v13253_v45  ;;  %v9232_v53 = vpop.f32.mrb[135].mxu1  ;;  %v4041_v11 = vmul.f32 %v3951_v3, %v1666_v19  ;;  %2111 = vmatprep.mubr.f32.mxu1 %v13253_v45 }
 0x244   : > { %v3849_v31 = vmul.f32 %v3759_v6, %v1411_v0  ;;  %v3771_v48 = vpop.permute.xlu0 %3770  ;;  %13311 = vst [vmem:[#allocation16_spill] sm:$0xff] %v9232_v53  ;;  %v9236_v0 = vpop.f32.mrb[136].mxu1  ;;  %6643 = vmatmul.mubr.msk.f32.gmra.mrb[152].mxu1 %vm916_vm0, %v8762_v49  ;;  %v9264_v49 = vld [vmem:[%s7710_s29 + $0xd8] sm:$0xff] }
 0x245   : > { %7202 = vset.pattern.permute.xlu1 %v13188_v61  ;;  %v9244_v6 = vpop.f32.mrb[137].mxu1  ;;  %2117 = vmatprep.mubr.f32.mxu1 %v13253_v45 }
 0x246   : > { %v3881_v20 = vadd.f32 %v3849_v31, %v3689_v36  ;;  %3986 = vperm.xlu1 %7202, %v9132_v14   ;;  %7208 = vset.pattern.permute.xlu0 %v13181_v37  ;;  %13312 = vst [vmem:[#allocation17_spill] sm:$0xff] %v9244_v6  ;;  %v9248_v36 = vpop.f32.mrb[138].mxu1  ;;  %v3468_v31 = vmul.f32 %v3387_v52, %v1172_v46  ;;  %v13315_v46 = vld [vmem:[#allocation100_spill] sm:$0xff] }
 0x247   : > { %3223 = vperm.xlu0 %7208, %v9221_v32   ;;  %6636 = vmatmul.mubr.msk.f32.gmra.mrb[126].mxu0 %vm916_vm0, %v9240_v38 }
 0x248   : > { %v3179_v23 = vpop.permute.xlu1 %3178  ;;  %2010 = vmatprep.mubr.f32.mxu0 %v13253_v45  ;;  %v9252_v19 = vadd.f32 %v4041_v11, %v3881_v20  ;;  %6644 = vmatmul.mubr.msk.f32.gmra.mrb[154].mxu1 %vm916_vm0, %v13315_v46 }
 0x249   : > { %v3276_v43 = vmul.f32 %v3179_v23, %v1170_v34  ;;  %v3379_v3 = vpop.permute.xlu0 %3378  ;;  %v13314_v34 = vld [vmem:[#allocation96_spill] sm:$0xff]  ;;  %2123 = vmatprep.mubr.f32.mxu1 %v13253_v45  ;;  %v1684_v23 = vadd.f32 %v8825_v58, %v8605_v5 }
 0x24a   : > { %13313 = vst [vmem:[#allocation121_spill] sm:$0xff] %v9252_v19  ;;  %7204 = vset.pattern.permute.xlu1 %v13191_v59  ;;  %v1429_v52 = vadd.f32 %v13314_v34, %v8589_v13  ;;  %v9279_v34 = vld [vmem:[%s7710_s29 + $0xe0] sm:$0xff]  ;;  %v13319_v19 = vld [vmem:[#allocation89_spill] sm:$0xff] }
 0x24b   : > { %v3500_v53 = vadd.f32 %v3468_v31, %v3276_v43  ;;  %3430 = vperm.xlu1 %7204, %v9165_v63   ;;  %7210 = vset.pattern.permute.xlu0 %v13184_v51  ;;  %v1417_v6 = vadd.f32 %v13319_v19, %v8589_v13  ;;  %v1672_v19 = vadd.f32 %v8791_v54, %v8605_v5 }
 0x24c   : > { %3614 = vperm.xlu0 %7210, %v9221_v32   ;;  %6637 = vmatmul.mubr.msk.f32.gmra.mrb[128].mxu0 %vm916_vm0, %v9264_v49  ;;  %v3852_v31 = vmul.f32 %v3771_v48, %v1429_v52  ;;  %v13317_v52 = vld [vmem:[#allocation13_spill] sm:$0xff] }
 0x24d   : > { %v3579_v27 = vpop.permute.xlu1 %3578  ;;  %2016 = vmatprep.mubr.f32.mxu0 %v13253_v45  ;;  %6645 = vmatmul.mubr.msk.f32.gmra.mrb[156].mxu1 %vm916_vm0, %v8805_v15  ;;  %v1160_v46 = vadd.f32 %v13317_v52, %v8550_v24  ;;  %v9300_v15 = vld [vmem:[%s7710_s29 + $0xe8] sm:$0xff] }
 0x24e   : > { %v3660_v20 = vmul.f32 %v3579_v27, %v1427_v55  ;;  %v3763_v11 = vpop.permute.xlu0 %3762  ;;  %2129 = vmatprep.mubr.f32.mxu1 %v13253_v45 }
 0x24f   : > { %7206 = vset.pattern.permute.xlu1 %v13180_v57 }
 0x250   : > { %v3692_v43 = vadd.f32 %v3660_v20, %v3500_v53  ;;  %3814 = vperm.xlu1 %7206, %v9165_v63   ;;  %7212 = vset.pattern.permute.xlu0 %v13188_v61  ;;  %v13316_v63 = vld [vmem:[#allocation12_spill] sm:$0xff]  ;;  %v9292_v20 = vld [vmem:[#allocation2 + $0xd8] sm:$0xff] }
 0x251   : > { %3998 = vperm.xlu0 %7212, %v9221_v32   ;;  %6638 = vmatmul.mubr.msk.f32.gmra.mrb[130].mxu0 %vm916_vm0, %v9279_v34  ;;  %v1158_v53 = vadd.f32 %v13316_v63, %v8546_v40 }
 0x252   : > { %v3963_v55 = vpop.permute.xlu1 %3962  ;;  %v3884_v27 = vadd.f32 %v3852_v31, %v3692_v43  ;;  %2022 = vmatprep.mubr.f32.mxu0 %v13253_v45  ;;  %6646 = vmatmul.mubr.msk.f32.gmra.mrb[158].mxu1 %vm916_vm0, %v8828_v9  ;;  %v3466_v43 = vmul.f32 %v3379_v3, %v1160_v46  ;;  %v9317_v9 = vld [vmem:[%s7710_s29 + $0xf0] sm:$0xff] }
 0x253   : > { %v4044_v58 = vmul.f32 %v3963_v55, %v1684_v23  ;;  %v3194_v48 = vpop.permute.xlu0 %3193  ;;  %2135 = vmatprep.mubr.f32.mxu1 %v13253_v45 }
 0x254   : > { %7209 = vset.pattern.permute.xlu1 %v13191_v59 }
 0x255   : > { %v9294_v31 = vadd.f32 %v4044_v58, %v3884_v27  ;;  %3422 = vperm.xlu1 %7209, %v9221_v32   ;;  %7214 = vset.pattern.permute.xlu0 %v13191_v59  ;;  %v13318_v58 = vld [vmem:[#allocation87_spill] sm:$0xff] }
 0x256   : > { %3434 = vperm.xlu0 %7214, %v9292_v20   ;;  %6639 = vmatmul.mubr.msk.f32.gmra.mrb[132].mxu0 %vm916_vm0, %v9300_v15  ;;  %v1415_v63 = vadd.f32 %v13318_v58, %v8573_v44  ;;  %v13320_v58 = vld [vmem:[#allocation22_spill] sm:$0xff] }
 0x257   : > { %v3169_v23 = vpop.permute.xlu1 %3168  ;;  %2028 = vmatprep.mubr.f32.mxu0 %v13253_v45  ;;  %6647 = vmatmul.mubr.msk.f32.gmra.mrb[160].mxu1 %vm916_vm0, %v8842_v50  ;;  %v9334_v50 = vld [vmem:[%s7710_s29 + $0xf8] sm:$0xff]  ;;  %v1188_v54 = vadd.f32 %v13320_v58, %v8546_v40 }
 0x258   : > { %v3274_v55 = vmul.f32 %v3169_v23, %v1158_v53  ;;  %v3591_v27 = vpop.permute.xlu0 %3590  ;;  %2141 = vmatprep.mubr.f32.mxu1 %v13253_v45  ;;  %v9328_v23 = vld [vmem:[#allocation2 + $0xc8] sm:$0xff] }
 0x259   : > { %7211 = vset.pattern.permute.xlu1 %v13180_v57 }
 0x25a   : > { %v3498_v52 = vadd.f32 %v3466_v43, %v3274_v55  ;;  %3806 = vperm.xlu1 %7211, %v9221_v32   ;;  %7216 = vset.pattern.permute.xlu0 %v13180_v57  ;;  %v3850_v43 = vmul.f32 %v3763_v11, %v1417_v6 }
 0x25b   : > { %3818 = vperm.xlu0 %7216, %v9292_v20   ;;  %6640 = vmatmul.mubr.msk.f32.gmra.mrb[134].mxu0 %vm916_vm0, %v9317_v9 }
 0x25c   : > { %v3571_v3 = vpop.permute.xlu1 %3570  ;;  %2034 = vmatprep.mubr.f32.mxu0 %v13253_v45  ;;  %6648 = vmatmul.mubr.msk.f32.gmra.mrb[162].mxu1 %vm916_vm0, %v8872_v26  ;;  %v1445_v26 = vadd.f32 %v8883_v60, %v8573_v44  ;;  %v1447_v60 = vadd.f32 %v8903_v56, %v8589_v13 }
 0x25d   : > { %v3658_v53 = vmul.f32 %v3571_v3, %v1415_v63  ;;  %v3975_v46 = vpop.permute.xlu0 %3974  ;;  %2147 = vmatprep.mubr.f32.mxu1 %v13253_v45 }
 0x25e   : > { %7213 = vset.pattern.permute.xlu1 %v13181_v37 }
 0x25f   : > { %v3690_v55 = vadd.f32 %v3658_v53, %v3498_v52  ;;  %7219 = vset.pattern.permute.xlu0 %v13191_v59  ;;  %3238 = vperm.xlu1 %7213, %v9292_v20   ;;  %v13321_v52 = vld [vmem:[#allocation23_spill] sm:$0xff] }
 0x260   : > { %3426 = vperm.xlu0 %7219, %v9328_v23   ;;  %6641 = vmatmul.mubr.msk.f32.gmra.mrb[136].mxu0 %vm916_vm0, %v9334_v50  ;;  %v1190_v53 = vadd.f32 %v13321_v52, %v8550_v24 }
 0x261   : > { %v3955_v63 = vpop.permute.xlu1 %3954  ;;  %v3882_v3 = vadd.f32 %v3850_v43, %v3690_v55  ;;  %2362 = vmatprep.mubr.f32.mxu0 %v13253_v45  ;;  %v3279_v43 = vmul.f32 %v3194_v48, %v1188_v54  ;;  %6649 = vmatmul.mubr.msk.f32.gmra.mrb[164].mxu1 %vm916_vm0, %v8898_v10  ;;  %v3663_v48 = vmul.f32 %v3591_v27, %v1445_v26  ;;  %v13323_v27 = vld [vmem:[#allocation18_spill] sm:$0xff]  ;;  %v13324_v26 = vld [vmem:[#allocation19_spill] sm:$0xff] }
 0x262   : > { %v4042_v6 = vmul.f32 %v3955_v63, %v1672_v19  ;;  %v3184_v11 = vpop.permute.xlu0 %3183  ;;  %v9356_v19 = vpop.f32.mrb[139].mxu1  ;;  %2153 = vmatprep.mubr.f32.mxu1 %v13253_v45  ;;  %v9361_v63 = vld [vmem:[#allocation2 + $0xf0] sm:$0xff]  ;;  %v1702_v10 = vadd.f32 %v8890_v28, %v8605_v5 }
 0x263   : > { %7215 = vset.pattern.permute.xlu1 %v13184_v51  ;;  %13322 = vst [vmem:[#allocation96_spill] sm:$0xff] %v9356_v19  ;;  %v9359_v58 = vpop.f32.mrb[140].mxu1 }
 0x264   : > { %v9347_v17 = vadd.f32 %v4042_v6, %v3882_v3  ;;  %3626 = vperm.xlu1 %7215, %v9292_v20   ;;  %7221 = vset.pattern.permute.xlu0 %v13180_v57  ;;  %v4047_v28 = vmul.f32 %v3975_v46, %v1702_v10 }
 0x265   : > { %3810 = vperm.xlu0 %7221, %v9328_v23   ;;  %6650 = vmatmul.mubr.msk.f32.gmra.mrb[166].mxu1 %vm916_vm0, %v8912_v4  ;;  %v1433_v4 = vadd.f32 %v8853_v18, %v8573_v44 }
 0x266   : > { %v3399_v55 = vpop.permute.xlu1 %3398  ;;  %2159 = vmatprep.mubr.f32.mxu1 %v13253_v45 }
 0x267   : > { %v3471_v3 = vmul.f32 %v3399_v55, %v1190_v53  ;;  %v3583_v6 = vpop.permute.xlu0 %3582 }
 0x268   : > { %7217 = vset.pattern.permute.xlu1 %v13188_v61  ;;  %v3661_v18 = vmul.f32 %v3583_v6, %v1433_v4  ;;  %v13326_v6 = vld [vmem:[#allocation24_spill] sm:$0xff] }
 0x269   : > { %v3503_v54 = vadd.f32 %v3471_v3, %v3279_v43  ;;  %4010 = vperm.xlu1 %7217, %v9292_v20   ;;  %7223 = vset.pattern.permute.xlu0 %v13181_v37  ;;  %v1176_v43 = vadd.f32 %v13323_v27, %v8546_v40  ;;  %v1178_v3 = vadd.f32 %v13324_v26, %v8550_v24  ;;  %v13327_v26 = vld [vmem:[#allocation25_spill] sm:$0xff] }
 0x26a   : > { %3253 = vperm.xlu0 %7223, %v9361_v63   ;;  %6651 = vmatmul.mubr.msk.f32.gmra.mrb[168].mxu1 %vm916_vm0, %v8930_v41  ;;  %v1690_v41 = vadd.f32 %v8860_v16, %v8605_v5 }
 0x26b   : > { %v3783_v52 = vpop.permute.xlu1 %3782  ;;  %v3695_v53 = vadd.f32 %v3663_v48, %v3503_v54  ;;  %2165 = vmatprep.mubr.f32.mxu1 %v13253_v45  ;;  %v9389_v54 = vld [vmem:[#allocation2 + $0xe0] sm:$0xff]  ;;  %v3277_v46 = vmul.f32 %v3184_v11, %v1176_v43  ;;  %v1194_v43 = vadd.f32 %v13326_v6, %v8546_v40 }
 0x26c   : > { %v3855_v55 = vmul.f32 %v3783_v52, %v1447_v60  ;;  %v3967_v56 = vpop.permute.xlu0 %3966 }
 0x26d   : > { %7218 = vset.pattern.permute.xlu1 %v13181_v37  ;;  %v4045_v16 = vmul.f32 %v3967_v56, %v1690_v41  ;;  %v1708_v41 = vadd.f32 %v8987_v2, %v8605_v5 }
 0x26e   : > { %v3887_v19 = vadd.f32 %v3855_v55, %v3695_v53  ;;  %3228 = vperm.xlu1 %7218, %v9328_v23   ;;  %7225 = vset.pattern.permute.xlu0 %v13184_v51  ;;  %v1435_v53 = vadd.f32 %v8862_v33, %v8589_v13 }
 0x26f   : > { %3638 = vperm.xlu0 %7225, %v9361_v63   ;;  %6652 = vmatmul.mubr.msk.f32.gmra.mrb[170].mxu1 %vm916_vm0, %v8948_v35 }
 0x270   : > { %v3391_v60 = vpop.permute.xlu1 %3390  ;;  %v9387_v48 = vadd.f32 %v4047_v28, %v3887_v19  ;;  %2171 = vmatprep.mubr.f32.mxu1 %v13253_v45 }
 0x271   : > { %v3469_v10 = vmul.f32 %v3391_v60, %v1178_v3  ;;  %v3403_v52 = vpop.permute.xlu0 %3402  ;;  %v1196_v3 = vadd.f32 %v13327_v26, %v8550_v24  ;;  %v9415_v60 = vld [vmem:[#allocation2 + $0xf8] sm:$0xff] }
 0x272   : > { %13325 = vst [vmem:[#allocation100_spill] sm:$0xff] %v9387_v48  ;;  %7220 = vset.pattern.permute.xlu1 %v13184_v51 }
 0x273   : > { %v3501_v55 = vadd.f32 %v3469_v10, %v3277_v46  ;;  %3618 = vperm.xlu1 %7220, %v9328_v23   ;;  %7227 = vset.pattern.permute.xlu0 %v13181_v37  ;;  %v3472_v46 = vmul.f32 %v3403_v52, %v1196_v3  ;;  %v9442_v3 = vld [vmem:[#allocation2 + $0xe8] sm:$0xff] }
 0x274   : > { %3243 = vperm.xlu0 %7227, %v9389_v54   ;;  %6653 = vmatmul.mubr.msk.f32.gmra.mrb[172].mxu1 %vm916_vm0, %v8962_v47  ;;  %v1453_v47 = vadd.f32 %v8937_v30, %v8589_v13 }
 0x275   : > { %v3775_v11 = vpop.permute.xlu1 %3774  ;;  %v3693_v19 = vadd.f32 %v3661_v18, %v3501_v55  ;;  %2177 = vmatprep.mubr.f32.mxu1 %v13253_v45 }
 0x276   : > { %v3853_v33 = vmul.f32 %v3775_v11, %v1435_v53  ;;  %v3787_v27 = vpop.permute.xlu0 %3786  ;;  %v1451_v53 = vadd.f32 %v8935_v12, %v8573_v44 }
 0x277   : > { %7222 = vset.pattern.permute.xlu1 %v13188_v61  ;;  %v3856_v11 = vmul.f32 %v3787_v27, %v1453_v47  ;;  %v13330_v27 = vld [vmem:[#allocation21_spill] sm:$0xff] }
 0x278   : > { %v3885_v28 = vadd.f32 %v3853_v33, %v3693_v19  ;;  %4002 = vperm.xlu1 %7222, %v9328_v23   ;;  %7229 = vset.pattern.permute.xlu0 %v13184_v51  ;;  %v1184_v26 = vadd.f32 %v13330_v27, %v8550_v24 }
 0x279   : > { %3630 = vperm.xlu0 %7229, %v9389_v54   ;;  %6654 = vmatmul.mubr.msk.f32.gmra.mrb[174].mxu1 %vm916_vm0, %v8980_v62 }
 0x27a   : > { %v3199_v35 = vpop.permute.xlu1 %3198  ;;  %v9413_v4 = vadd.f32 %v4045_v16, %v3885_v28  ;;  %2183 = vmatprep.mubr.f32.mxu1 %v13253_v45 }
 0x27b   : > { %v3280_v10 = vmul.f32 %v3199_v35, %v1194_v43  ;;  %v3395_v56 = vpop.permute.xlu0 %3394  ;;  %v13329_v43 = vld [vmem:[#allocation20_spill] sm:$0xff] }
 0x27c   : > { %13328 = vst [vmem:[#allocation12_spill] sm:$0xff] %v9413_v4  ;;  %7224 = vset.pattern.permute.xlu1 %v13191_v59  ;;  %v1182_v2 = vadd.f32 %v13329_v43, %v8546_v40  ;;  %v3470_v28 = vmul.f32 %v3395_v56, %v1184_v26  ;;  %v9463_v56 = vpop.f32.mrb[141].mxu1  ;;  %v13337_v43 = vld [vmem:[#allocation30_spill] sm:$0xff]  ;;  %v9616_v4 = vld [vmem:[#allocation2 + $0x98] sm:$0xff] }
 0x27d   : > { %v3504_v18 = vadd.f32 %v3472_v46, %v3280_v10  ;;  %3446 = vperm.xlu1 %7224, %v9361_v63   ;;  %7232 = vset.pattern.permute.xlu0 %v13191_v59  ;;  %v13331_v10 = vld [vmem:[#allocation107_spill] sm:$0xff]  ;;  %13333 = vst [vmem:[#allocation13_spill] sm:$0xff] %v9463_v56 }
 0x27e   : > { %3450 = vperm.xlu0 %7232, %v9415_v60   ;;  %6655 = vmatmul.mubr.msk.f32.gmra.mrb[176].mxu1 %vm916_vm0, %v9000_v22 }
 0x27f   : > { %v3595_v52 = vpop.permute.xlu1 %3594  ;;  %2189 = vmatprep.mubr.f32.mxu1 %v13253_v45 }
 0x280   : > { %v3664_v55 = vmul.f32 %v3595_v52, %v1451_v53  ;;  %v3779_v12 = vpop.permute.xlu0 %3778  ;;  %v1439_v53 = vadd.f32 %v13331_v10, %v8573_v44 }
 0x281   : > { %7226 = vset.pattern.permute.xlu1 %v13180_v57 }
 0x282   : > { %v3696_v19 = vadd.f32 %v3664_v55, %v3504_v18  ;;  %3830 = vperm.xlu1 %7226, %v9361_v63   ;;  %7234 = vset.pattern.permute.xlu0 %v13180_v57 }
 0x283   : > { %3834 = vperm.xlu0 %7234, %v9415_v60   ;;  %6656 = vmatmul.mubr.msk.f32.gmra.mrb[178].mxu1 %vm916_vm0, %v9016_v25 }
 0x284   : > { %v3979_v30 = vpop.permute.xlu1 %3978  ;;  %v3888_v62 = vadd.f32 %v3856_v11, %v3696_v19  ;;  %2195 = vmatprep.mubr.f32.mxu1 %v13253_v45  ;;  %v13334_v11 = vld [vmem:[#allocation108_spill] sm:$0xff] }
 0x285   : > { %v4048_v33 = vmul.f32 %v3979_v30, %v1708_v41  ;;  %v3214_v6 = vpop.permute.xlu0 %3213  ;;  %v9465_v41 = vpop.f32.mrb[142].mxu1 }
 0x286   : > { %7228 = vset.pattern.permute.xlu1 %v13191_v59  ;;  %v9470_v19 = vpop.f32.mrb[143].mxu1 }
 0x287   : > { %v9444_v16 = vadd.f32 %v4048_v33, %v3888_v62  ;;  %3438 = vperm.xlu1 %7228, %v9389_v54   ;;  %7236 = vset.pattern.permute.xlu0 %v13191_v59  ;;  %v13332_v59 = vld [vmem:[#allocation109_spill] sm:$0xff]  ;;  %13335 = vst [vmem:[#allocation87_spill] sm:$0xff] %v9470_v19 }
 0x288   : > { %3442 = vperm.xlu0 %7236, %v9442_v3   ;;  %v1441_v47 = vadd.f32 %v13332_v59, %v8589_v13  ;;  %6657 = vmatmul.mubr.msk.f32.gmra.mrb[180].mxu1 %vm916_vm0, %v9032_v29  ;;  %v9474_v29 = vpop.f32.mrb[144].mxu1 }
 0x289   : > { %v3189_v22 = vpop.permute.xlu1 %3188  ;;  %2201 = vmatprep.mubr.f32.mxu1 %v13253_v45  ;;  %v9479_v33 = vpop.f32.mrb[145].mxu1 }
 0x28a   : > { %v3278_v35 = vmul.f32 %v3189_v22, %v1182_v2  ;;  %v3607_v46 = vpop.permute.xlu0 %3606  ;;  %v3854_v30 = vmul.f32 %v3779_v12, %v1441_v47  ;;  %13336 = vst [vmem:[#allocation89_spill] sm:$0xff] %v9479_v33  ;;  %v1212_v2 = vadd.f32 %v13337_v43, %v8546_v40  ;;  %v9484_v12 = vpop.f32.mrb[146].mxu1  ;;  %v13368_v33 = vld [vmem:[#allocation71_spill] sm:$0xff] }
 0x28b   : > { %7230 = vset.pattern.permute.xlu1 %v13180_v57 }
 0x28c   : > { %v3502_v18 = vadd.f32 %v3470_v28, %v3278_v35  ;;  %3822 = vperm.xlu1 %7230, %v9389_v54   ;;  %7238 = vset.pattern.permute.xlu0 %v13180_v57  ;;  %v1696_v57 = vadd.f32 %v13334_v11, %v8605_v5  ;;  %v13338_v35 = vld [vmem:[#allocation31_spill] sm:$0xff]  ;;  %v3283_v59 = vmul.f32 %v3214_v6, %v1212_v2  ;;  %v13340_v11 = vld [vmem:[#allocation53_spill] sm:$0xff] }
 0x28d   : > { %3826 = vperm.xlu0 %7238, %v9442_v3   ;;  %6658 = vmatmul.mubr.msk.f32.gmra.mrb[182].mxu1 %vm916_vm0, %v9056_v39  ;;  %v1214_v10 = vadd.f32 %v13338_v35, %v8550_v24  ;;  %v13339_v39 = vld [vmem:[#allocation52_spill] sm:$0xff]  ;;  %v13342_v35 = vld [vmem:[#allocation27_spill] sm:$0xff] }
 0x28e   : > { %v3587_v25 = vpop.permute.xlu1 %3586  ;;  %2207 = vmatprep.mubr.f32.mxu1 %v13253_v45 }
 0x28f   : > { %v3662_v52 = vmul.f32 %v3587_v25, %v1439_v53  ;;  %v3991_v55 = vpop.permute.xlu0 %3990 }
 0x290   : > { %7231 = vset.pattern.permute.xlu1 %v13181_v37 }
 0x291   : > { %v3694_v62 = vadd.f32 %v3662_v52, %v3502_v18  ;;  %3258 = vperm.xlu1 %7231, %v9415_v60   ;;  %7239 = vset.pattern.permute.xlu0 %v13188_v61  ;;  %v1469_v18 = vadd.f32 %v13339_v39, %v8573_v44  ;;  %v9514_v39 = vld [vmem:[#allocation2 + $0x18] sm:$0xff] }
 0x292   : > { %4014 = vperm.xlu0 %7239, %v9389_v54   ;;  %6659 = vmatmul.mubr.msk.f32.gmra.mrb[184].mxu1 %vm916_vm0, %v9078_v8  ;;  %v1726_v8 = vadd.f32 %v9063_v1, %v8605_v5 }
 0x293   : > { %v3971_v27 = vpop.permute.xlu1 %3970  ;;  %v3886_v26 = vadd.f32 %v3854_v30, %v3694_v62  ;;  %2213 = vmatprep.mubr.f32.mxu1 %v13253_v45  ;;  %v7591_v30 = vmov 5   ;;  %v3667_v62 = vmul.f32 %v3607_v46, %v1469_v18  ;;  %v13341_v46 = vld [vmem:[#allocation26_spill] sm:$0xff] }
 0x294   : > { %v4046_v22 = vmul.f32 %v3971_v27, %v1696_v57  ;;  %v3204_v28 = vpop.permute.xlu0 %3203  ;;  %v1471_v57 = vadd.f32 %v13340_v11, %v8589_v13  ;;  %v9501_v27 = vld [vmem:[#allocation2] sm:$0xff]  ;;  %v4051_v1 = vmul.f32 %v3991_v55, %v1726_v8  ;;  %v13347_v8 = vld [vmem:[#allocation60_spill] sm:$0xff] }
 0x295   : > { %7233 = vset.pattern.permute.xlu1 %v13184_v51  ;;  %v13343_v18 = vld [vmem:[#allocation6_spill] sm:$0xff] }
 0x296   : > { %v9489_v53 = vadd.f32 %v4046_v22, %v3886_v26  ;;  %3642 = vperm.xlu1 %7233, %v9415_v60   ;;  %4022 = vperm.xlu0 %7239, %v9361_v63   ;;  %v1200_v22 = vadd.f32 %v13341_v46, %v8546_v40  ;;  %v13349_v46 = vld [vmem:[#allocation115_spill] sm:$0xff] }
 0x297   : > { %6660 = vmatmul.mubr.msk.f32.gmra.mrb[186].mxu1 %vm916_vm0, %v9090_v7 }
 0x298   : > { %v3415_v47 = vpop.permute.xlu1 %3414  ;;  %2219 = vmatprep.mubr.f32.mxu1 %v13253_v45 }
 0x299   : > { %v3475_v25 = vmul.f32 %v3415_v47, %v1214_v10  ;;  %v3599_v52 = vpop.permute.xlu0 %3598  ;;  %v1202_v10 = vadd.f32 %v13342_v35, %v8550_v24 }
 0x29a   : > { %7235 = vset.pattern.permute.xlu1 %v13181_v37  ;;  %7241 = vset.pattern.permute.xlu0 %v7591_v30 }
 0x29b   : > { %v3507_v43 = vadd.f32 %v3475_v25, %v3283_v59  ;;  %4094 = vperm.xlu0 %7241, %v9501_v27   ;;  %3248 = vperm.xlu1 %7235, %v9442_v3   ;;  %v13344_v59 = vld [vmem:[#allocation118_spill] sm:$0xff] }
 0x29c   : > { %6661 = vmatmul.mubr.msk.f32.gmra.mrb[188].mxu1 %vm916_vm0, %v13343_v18  ;;  %v1457_v47 = vadd.f32 %v13344_v59, %v8573_v44  ;;  %v13350_v18 = vld [vmem:[#allocation61_spill] sm:$0xff]  ;;  %v13351_v59 = vld [vmem:[#allocation32_spill] sm:$0xff] }
 0x29d   : > { %v3799_v6 = vpop.permute.xlu1 %3798  ;;  %v3699_v2 = vadd.f32 %v3667_v62, %v3507_v43  ;;  %2225 = vmatprep.mubr.f32.mxu1 %v13253_v45 }
 0x29e   : > { %v3859_v37 = vmul.f32 %v3799_v6, %v1471_v57  ;;  %v3983_v26 = vpop.permute.xlu0 %3982  ;;  %v3281_v57 = vmul.f32 %v3204_v28, %v1200_v22  ;;  %v9526_v6 = vld [vmem:[#allocation2 + $0x28] sm:$0xff]  ;;  %v9536_v28 = vpop.f32.mrb[147].mxu1  ;;  %v1714_v22 = vadd.f32 %v13349_v46, %v8605_v5 }
 0x29f   : > { %4106 = vperm.xlu0 %7241, %v9514_v39   ;;  %7237 = vset.pattern.permute.xlu1 %v13184_v51  ;;  %v13346_v51 = vld [vmem:[#allocation7_spill] sm:$0xff]  ;;  %13348 = vst [vmem:[#allocation23_spill] sm:$0xff] %v9536_v28  ;;  %v9540_v35 = vpop.f32.mrb[148].mxu1  ;;  %v9588_v28 = vld [vmem:[#allocation2 + $0x78] sm:$0xff] }
 0x2a0   : > { %v3891_v7 = vadd.f32 %v3859_v37, %v3699_v2  ;;  %3634 = vperm.xlu1 %7237, %v9442_v3   ;;  %v1459_v55 = vadd.f32 %v13346_v51, %v8589_v13  ;;  %6662 = vmatmul.mubr.msk.f32.gmra.mrb[190].mxu1 %vm916_vm0, %v13347_v8  ;;  %v3665_v2 = vmul.f32 %v3599_v52, %v1457_v47  ;;  %v9553_v8 = vld [vmem:[#allocation2 + $0x48] sm:$0xff] }
 0x2a1   : > { %2231 = vmatprep.mubr.f32.mxu1 %v13253_v45  ;;  %v1218_v47 = vadd.f32 %v13351_v59, %v8546_v40  ;;  %v13356_v59 = vld [vmem:[#allocation120_spill] sm:$0xff] }
 0x2a2   : > { %v3407_v25 = vpop.permute.xlu1 %3406  ;;  %v9524_v11 = vadd.f32 %v4051_v1, %v3891_v7  ;;  %v9542_v1 = vld [vmem:[#allocation2 + $0x38] sm:$0xff] }
 0x2a3   : > { %v3473_v62 = vmul.f32 %v3407_v25, %v1202_v10  ;;  %v3419_v43 = vpop.permute.xlu0 %3418  ;;  %4114 = vperm.xlu0 %7241, %v9526_v6   ;;  %v13352_v25 = vld [vmem:[#allocation33_spill] sm:$0xff] }
 0x2a4   : > { %13345 = vst [vmem:[#allocation22_spill] sm:$0xff] %v9524_v11  ;;  %7240 = vset.pattern.permute.xlu1 %v13188_v61  ;;  %6663 = vmatmul.mubr.msk.f32.gmra.mrb[192].mxu1 %vm916_vm0, %v13350_v18  ;;  %v13354_v18 = vld [vmem:[#allocation54_spill] sm:$0xff] }
 0x2a5   : > { %v3505_v37 = vadd.f32 %v3473_v62, %v3281_v57  ;;  %4018 = vperm.xlu1 %7240, %v9442_v3   ;;  %v1220_v57 = vadd.f32 %v13352_v25, %v8550_v24  ;;  %2237 = vmatprep.mubr.f32.mxu1 %v13253_v45  ;;  %v4049_v62 = vmul.f32 %v3983_v26, %v1714_v22  ;;  %v9563_v22 = vld [vmem:[#allocation2 + $0x8] sm:$0xff]  ;;  %v9574_v25 = vld [vmem:[#allocation2 + $0x10] sm:$0xff] }
 0x2a6   : > { %v1475_v26 = vadd.f32 %v13354_v18, %v8573_v44  ;;  %v13358_v18 = vld [vmem:[#allocation10_spill] sm:$0xff] }
 0x2a7   : > { %v3791_v61 = vpop.permute.xlu1 %3790  ;;  %v3697_v10 = vadd.f32 %v3665_v2, %v3505_v37  ;;  %4122 = vperm.xlu0 %7241, %v9542_v1   ;;  %v3476_v37 = vmul.f32 %v3419_v43, %v1220_v57 }
 0x2a8   : > { %v3857_v7 = vmul.f32 %v3791_v61, %v1459_v55  ;;  %v3803_v52 = vpop.permute.xlu0 %3802  ;;  %6664 = vmatmul.mubr.msk.f32.gmra.mrb[194].mxu1 %vm916_vm0, %v9156_v21  ;;  %v13355_v21 = vld [vmem:[#allocation55_spill] sm:$0xff] }
 0x2a9   : > { %4026 = vperm.xlu1 %7240, %v9415_v60   ;;  %2243 = vmatprep.mubr.f32.mxu1 %v13253_v45  ;;  %v1477_v43 = vadd.f32 %v13355_v21, %v8589_v13 }
 0x2aa   : > { %v3889_v51 = vadd.f32 %v3857_v7, %v3697_v10  ;;  %v9566_v7 = vld [vmem:[#allocation2 + $0x58] sm:$0xff] }
 0x2ab   : > { %4130 = vperm.xlu0 %7241, %v9553_v8  }
 0x2ac   : > { %v3219_v55 = vpop.permute.xlu1 %3218  ;;  %v9558_v2 = vadd.f32 %v4049_v62, %v3889_v51  ;;  %6665 = vmatmul.mubr.msk.f32.gmra.mrb[196].mxu1 %vm916_vm0, %v13356_v59  ;;  %v9577_v62 = vld [vmem:[#allocation2 + $0x68] sm:$0xff]  ;;  %v9585_v59 = vld [vmem:[#allocation2 + $0x20] sm:$0xff] }
 0x2ad   : > { %v3284_v46 = vmul.f32 %v3219_v55, %v1218_v47  ;;  %v3411_v61 = vpop.permute.xlu0 %3410  ;;  %7242 = vset.pattern.permute.xlu1 %v7591_v30  ;;  %2249 = vmatprep.mubr.f32.mxu1 %v13253_v45  ;;  %v13357_v51 = vld [vmem:[#allocation119_spill] sm:$0xff] }
 0x2ae   : > { %13353 = vst [vmem:[#allocation18_spill] sm:$0xff] %v9558_v2  ;;  %4098 = vperm.xlu1 %7242, %v9563_v22   ;;  %v1732_v55 = vadd.f32 %v13357_v51, %v8605_v5  ;;  %v13361_v51 = vld [vmem:[#allocation85_spill] sm:$0xff]  ;;  %v13364_v2 = vld [vmem:[#allocation51_spill] sm:$0xff] }
 0x2af   : > { %v3508_v10 = vadd.f32 %v3476_v37, %v3284_v46  ;;  %4138 = vperm.xlu0 %7241, %v9566_v7   ;;  %v3860_v37 = vmul.f32 %v3803_v52, %v1477_v43  ;;  %v13359_v52 = vld [vmem:[#allocation28_spill] sm:$0xff]  ;;  %v13360_v43 = vld [vmem:[#allocation29_spill] sm:$0xff]  ;;  %v1465_v48 = vadd.f32 %v13364_v2, %v8589_v13 }
 0x2b0   : > { %6666 = vmatmul.mubr.msk.f32.gmra.mrb[198].mxu1 %vm916_vm0, %v13358_v18  ;;  %v9603_v18 = vld [vmem:[#allocation2 + $0x88] sm:$0xff]  ;;  %v826_v2 = vld [vmem:[%s13009_s3 + $0x50] sm:$0xff] }
 0x2b1   : > { %v3611_v30 = vpop.permute.xlu1 %3610  ;;  %2255 = vmatprep.mubr.f32.mxu1 %v13253_v45 }
 0x2b2   : > { %v3668_v47 = vmul.f32 %v3611_v30, %v1475_v26  ;;  %4102 = vperm.xlu1 %7242, %v9574_v25   ;;  %v3795_v57 = vpop.permute.xlu0 %3794 }
 0x2b3   : > { %4146 = vperm.xlu0 %7241, %v9577_v62  }
 0x2b4   : > { %v3700_v46 = vadd.f32 %v3668_v47, %v3508_v10  ;;  %v1206_v10 = vadd.f32 %v13359_v52, %v8546_v40  ;;  %v1208_v47 = vadd.f32 %v13360_v43, %v8550_v24  ;;  %6667 = vmatmul.mubr.msk.f32.gmra.mrb[200].mxu1 %vm916_vm0, %v13361_v51  ;;  %v9611_v51 = vld [vmem:[#allocation2 + $0x40] sm:$0xff] }
 0x2b5   : > { %2261 = vmatprep.mubr.f32.mxu1 %v13253_v45 }
 0x2b6   : > { %v3995_v26 = vpop.permute.xlu1 %3994  ;;  %v3892_v21 = vadd.f32 %v3860_v37, %v3700_v46  ;;  %4110 = vperm.xlu1 %7242, %v9585_v59   ;;  %v9600_v46 = vld [vmem:[#allocation2 + $0x30] sm:$0xff] }
 0x2b7   : > { %v4052_v30 = vmul.f32 %v3995_v26, %v1732_v55  ;;  %4154 = vperm.xlu0 %7241, %v9588_v28   ;;  %v3234_v19 = vpop.permute.xlu0 %3233  ;;  %v3474_v26 = vmul.f32 %v3411_v61, %v1208_v47 }
 0x2b8   : > { %6668 = vmatmul.mubr.msk.f32.gmra.mrb[202].mxu1 %vm916_vm0, %v9240_v38  ;;  %v827_v38 = vld [vmem:[%s13009_s3 + $0x58] sm:$0xff] }
 0x2b9   : > { %v9597_v37 = vadd.f32 %v4052_v30, %v3892_v21  ;;  %v13363_v21 = vld [vmem:[#allocation50_spill] sm:$0xff]  ;;  %2267 = vmatprep.mubr.f32.mxu1 %v13253_v45  ;;  %2298 = vmatprep.subr.mxu0 %v827_v38 }
 0x2ba   : > { %4118 = vperm.xlu1 %7242, %v9600_v46   ;;  %v1463_v30 = vadd.f32 %v13363_v21, %v8573_v44  ;;  %2299 = vmatpush1.msra.mxu0 %v826_v2 }
 0x2bb   : > { %13362 = vst [vmem:[#allocation19_spill] sm:$0xff] %v9597_v37  ;;  %v3209_v55 = vpop.permute.xlu1 %3208  ;;  %4162 = vperm.xlu0 %7241, %v9603_v18  }
 0x2bc   : > { %v3282_v52 = vmul.f32 %v3209_v55, %v1206_v10  ;;  %v3623_v11 = vpop.permute.xlu0 %3622  ;;  %6669 = vmatmul.mubr.msk.f32.gmra.mrb[204].mxu1 %vm916_vm0, %v9264_v49  ;;  %v13365_v55 = vld [vmem:[#allocation9_spill] sm:$0xff]  ;;  %v3858_v49 = vmul.f32 %v3795_v57, %v1465_v48  ;;  %v9645_v57 = vld [vmem:[#allocation2 + $0x60] sm:$0xff] }
 0x2bd   : > { %2273 = vmatprep.mubr.f32.mxu1 %v13253_v45 }
 0x2be   : > { %v3506_v43 = vadd.f32 %v3474_v26, %v3282_v52  ;;  %4126 = vperm.xlu1 %7242, %v9611_v51   ;;  %v1720_v26 = vadd.f32 %v13365_v55, %v8605_v5  ;;  %v9630_v52 = vld [vmem:[#allocation2 + $0x50] sm:$0xff] }
 0x2bf   : > { %4170 = vperm.xlu0 %7241, %v9616_v4  }
 0x2c0   : > { %v3603_v61 = vpop.permute.xlu1 %3602  ;;  %6670 = vmatmul.mubr.msk.f32.gmra.mrb[206].mxu1 %vm916_vm0, %v9279_v34  ;;  %v9652_v34 = vld [vmem:[%s7710_s29 + $0x8] sm:$0xff] }
 0x2c1   : > { %v3666_v10 = vmul.f32 %v3603_v61, %v1463_v30  ;;  %v4007_v47 = vpop.permute.xlu0 %4006  ;;  %v9635_v30 = vld [vmem:[%s7710_s29] sm:$0xff]  ;;  %2279 = vmatprep.mubr.f32.mxu1 %v13253_v45 }
 0x2c2   : > { %4134 = vperm.xlu1 %7242, %v9630_v52   ;;  %6674 = vmatmul.mubr.msk.f32.vlgmr.msra.gmra.mrb[138].mxu0 %vm916_vm0, %v9635_v30  ;;  %v13366_v61 = vld [vmem:[#allocation38_spill] sm:$0xff] }
 0x2c3   : > { %v3698_v21 = vadd.f32 %v3666_v10, %v3506_v43  ;;  %4178 = vperm.xlu0 %7241, %v9132_v14   ;;  %2368 = vmatprep.mubr.f32.mxu0 %v13253_v45  ;;  %v1236_v38 = vadd.f32 %v13366_v61, %v8546_v40  ;;  %v13367_v43 = vld [vmem:[#allocation39_spill] sm:$0xff] }
 0x2c4   : > { %v1238_v10 = vadd.f32 %v13367_v43, %v8550_v24  ;;  %6671 = vmatmul.mubr.msk.f32.gmra.mrb[208].mxu1 %vm916_vm0, %v9300_v15  ;;  %v13371_v15 = vld [vmem:[#allocation65_spill] sm:$0xff] }
 0x2c5   : > { %v3987_v55 = vpop.permute.xlu1 %3986  ;;  %v3890_v2 = vadd.f32 %v3858_v49, %v3698_v21  ;;  %v3287_v61 = vmul.f32 %v3234_v19, %v1236_v38  ;;  %2285 = vmatprep.mubr.f32.mxu1 %v13253_v45  ;;  %v1495_v19 = vadd.f32 %v13371_v15, %v8589_v13  ;;  %v9686_v15 = vld [vmem:[%s7710_s29 + $0x18] sm:$0xff] }
 0x2c6   : > { %v4050_v48 = vmul.f32 %v3987_v55, %v1720_v26  ;;  %4142 = vperm.xlu1 %7242, %v9645_v57   ;;  %v3224_v14 = vpop.permute.xlu0 %3223  ;;  %6675 = vmatmul.mubr.msk.f32.gmra.mrb[140].mxu0 %vm916_vm0, %v9652_v34  ;;  %v13369_v26 = vld [vmem:[#allocation64_spill] sm:$0xff]  ;;  %13372 = vst [vmem:[#allocation25_spill] sm:$0xff] %v9686_v15 }
 0x2c7   : > { %4186 = vperm.xlu0 %7241, %v13368_v33   ;;  %2374 = vmatprep.mubr.f32.mxu0 %v13253_v45  ;;  %v1493_v21 = vadd.f32 %v13369_v26, %v8573_v44  ;;  %v9664_v33 = vld [vmem:[#allocation2 + $0x70] sm:$0xff] }
 0x2c8   : > { %v9656_v49 = vadd.f32 %v4050_v48, %v3890_v2  ;;  %v9669_v2 = vld [vmem:[%s7710_s29 + $0x10] sm:$0xff]  ;;  %6672 = vmatmul.mubr.msk.f32.gmra.mrb[210].mxu1 %vm916_vm0, %v9317_v9 }
 0x2c9   : > { %13370 = vst [vmem:[#allocation24_spill] sm:$0xff] %v9669_v2  ;;  %v3671_v38 = vmul.f32 %v3623_v11, %v1493_v21  ;;  %2291 = vmatprep.mubr.f32.mxu1 %v13253_v45 }
 0x2ca   : > { %v3431_v55 = vpop.permute.xlu1 %3430  ;;  %4150 = vperm.xlu1 %7242, %v9664_v33   ;;  %6676 = vmatmul.mubr.msk.f32.gmra.mrb[142].mxu0 %vm916_vm0, %v9669_v2  ;;  %v9719_v2 = vpop.f32.mrb[74].mxu0 }
 0x2cb   : > { %v3479_v43 = vmul.f32 %v3431_v55, %v1238_v10  ;;  %v3615_v56 = vpop.permute.xlu0 %3614  ;;  %4194 = vperm.xlu0 %7241, %v9328_v23   ;;  %2380 = vmatprep.mubr.f32.mxu0 %v13253_v45  ;;  %v1750_v23 = vadd.f32 %v9248_v36, %v8605_v5  ;;  %v9681_v10 = vld [vmem:[#allocation2 + $0x80] sm:$0xff]  ;;  %13381 = vst [vmem:[#allocation108_spill] sm:$0xff] %v9719_v2 }
 0x2cc   : > { %6673 = vmatmul.mubr.msk.f32.gmra.mrb[212].mxu1 %vm916_vm0, %v9334_v50  ;;  %v13373_v36 = vld [vmem:[#allocation34_spill] sm:$0xff] }
 0x2cd   : > { %v3511_v48 = vadd.f32 %v3479_v43, %v3287_v61  ;;  %v1224_v21 = vadd.f32 %v13373_v36, %v8546_v40  ;;  %v13374_v61 = vld [vmem:[#allocation35_spill] sm:$0xff]  ;;  %2619 = vmatprep.mubr.f32.mxu1 %v13253_v45  ;;  %v9705_v50 = vld [vmem:[%s7710_s29 + $0x20] sm:$0xff] }
 0x2ce   : > { %4158 = vperm.xlu1 %7242, %v9681_v10   ;;  %6677 = vmatmul.mubr.msk.f32.gmra.mrb[144].mxu0 %vm916_vm0, %v9686_v15  ;;  %v1226_v43 = vadd.f32 %v13374_v61, %v8550_v24  ;;  %13377 = vst [vmem:[#allocation21_spill] sm:$0xff] %v9705_v50  ;;  %v9712_v61 = vpop.f32.mrb[149].mxu1 }
 0x2cf   : > { %v3815_v26 = vpop.permute.xlu1 %3814  ;;  %v3703_v55 = vadd.f32 %v3671_v38, %v3511_v48  ;;  %4202 = vperm.xlu0 %7241, %v9292_v20   ;;  %2386 = vmatprep.mubr.f32.mxu0 %v13253_v45  ;;  %v4055_v20 = vmul.f32 %v4007_v47, %v1750_v23  ;;  %v9698_v48 = vld [vmem:[#allocation2 + $0x90] sm:$0xff]  ;;  %v3285_v23 = vmul.f32 %v3224_v14, %v1224_v21  ;;  %v9725_v14 = vld [vmem:[%s7710_s29 + $0x28] sm:$0xff] }
 0x2d0   : > { %v3863_v9 = vmul.f32 %v3815_v26, %v1495_v19  ;;  %v3999_v11 = vpop.permute.xlu0 %3998  ;;  %13375 = vst [vmem:[#allocation20_spill] sm:$0xff] %v9698_v48  ;;  %v13376_v19 = vld [vmem:[#allocation57_spill] sm:$0xff]  ;;  %v1738_v21 = vadd.f32 %v9223_v42, %v8605_v5 }
 0x2d1   : > { %v1481_v26 = vadd.f32 %v13376_v19, %v8573_v44  ;;  %v13379_v19 = vld [vmem:[#allocation59_spill] sm:$0xff] }
 0x2d2   : > { %v3895_v38 = vadd.f32 %v3863_v9, %v3703_v55  ;;  %4166 = vperm.xlu1 %7242, %v9698_v48   ;;  %6678 = vmatmul.mubr.msk.f32.gmra.mrb[146].mxu0 %vm916_vm0, %v9705_v50  ;;  %v1483_v15 = vadd.f32 %v13379_v19, %v8589_v13  ;;  %v13386_v19 = vld [vmem:[#allocation40_spill] sm:$0xff] }
 0x2d3   : > { %4210 = vperm.xlu0 %7241, %v9442_v3   ;;  %2392 = vmatprep.mubr.f32.mxu0 %v13253_v45  ;;  %v9716_v3 = vld [vmem:[#allocation2 + $0xa0] sm:$0xff]  ;;  %v3669_v50 = vmul.f32 %v3615_v56, %v1481_v26  ;;  %v1242_v42 = vadd.f32 %v13386_v19, %v8546_v40 }
 0x2d4   : > { %v3423_v36 = vpop.permute.xlu1 %3422  ;;  %v9710_v47 = vadd.f32 %v4055_v20, %v3895_v38  ;;  %13380 = vst [vmem:[#allocation109_spill] sm:$0xff] %v9716_v3  ;;  %v9722_v20 = vpop.f32.mrb[75].mxu0 }
 0x2d5   : > { %v3477_v55 = vmul.f32 %v3423_v36, %v1226_v43  ;;  %v3435_v9 = vpop.permute.xlu0 %3434  ;;  %13382 = vst [vmem:[#allocation30_spill] sm:$0xff] %v9722_v20  ;;  %v9731_v43 = vpop.f32.mrb[76].mxu0  ;;  %v13387_v20 = vld [vmem:[#allocation41_spill] sm:$0xff] }
 0x2d6   : > { %13378 = vst [vmem:[#allocation107_spill] sm:$0xff] %v9710_v47  ;;  %4174 = vperm.xlu1 %7242, %v9716_v3   ;;  %6679 = vmatmul.mubr.msk.f32.gmra.mrb[148].mxu0 %vm916_vm0, %v9725_v14  ;;  %v9734_v26 = vpop.f32.mrb[77].mxu0  ;;  %v1244_v2 = vadd.f32 %v13387_v20, %v8550_v24  ;;  %v13040_v47 = vmov 6  }
 0x2d7   : > { %v3509_v37 = vadd.f32 %v3477_v55, %v3285_v23  ;;  %4218 = vperm.xlu0 %7241, %v9415_v60   ;;  %2398 = vmatprep.mubr.f32.mxu0 %v13253_v45  ;;  %13383 = vst [vmem:[#allocation31_spill] sm:$0xff] %v9734_v26  ;;  %v9736_v23 = vld [vmem:[#allocation2 + $0xb0] sm:$0xff]  ;;  %v9739_v55 = vpop.f32.mrb[78].mxu0 }
 0x2d8   : > { %13384 = vst [vmem:[#allocation52_spill] sm:$0xff] %v9736_v23  ;;  %13385 = vst [vmem:[#allocation53_spill] sm:$0xff] %v9739_v55  ;;  %v13395_v55 = vld [vmem:[#allocation66_spill] sm:$0xff] }
 0x2d9   : > { %v3807_v38 = vpop.permute.xlu1 %3806  ;;  %v3701_v56 = vadd.f32 %v3669_v50, %v3509_v37  ;;  %v9746_v37 = vpop.f32.mrb[79].mxu0  ;;  %v4053_v50 = vmul.f32 %v3999_v11, %v1738_v21  ;;  %v3480_v21 = vmul.f32 %v3435_v9, %v1244_v2  ;;  %v13399_v2 = vld [vmem:[#allocation68_spill] sm:$0xff] }
 0x2da   : > { %v3861_v60 = vmul.f32 %v3807_v38, %v1483_v15  ;;  %v3819_v36 = vpop.permute.xlu0 %3818  ;;  %4182 = vperm.xlu1 %7242, %v9736_v23   ;;  %13388 = vst [vmem:[#allocation26_spill] sm:$0xff] %v9746_v37  ;;  %v9750_v38 = vld [vmem:[%s7710_s29 + $0x30] sm:$0xff]  ;;  %v9754_v26 = vpop.f32.mrb[80].mxu0  ;;  %v1501_v9 = vadd.f32 %v13399_v2, %v8589_v13 }
 0x2db   : > { %7244 = vset.pattern.permute.xlu0 %v13040_v47  ;;  %13389 = vst [vmem:[#allocation27_spill] sm:$0xff] %v9750_v38  ;;  %6680 = vmatmul.mubr.msk.f32.gmra.mrb[150].mxu0 %vm916_vm0, %v9750_v38  ;;  %13390 = vst [vmem:[#allocation6_spill] sm:$0xff] %v9754_v26  ;;  %v9756_v19 = vpop.f32.mrb[81].mxu0  ;;  %v1499_v38 = vadd.f32 %v13395_v55, %v8573_v44 }
 0x2dc   : > { %v3893_v15 = vadd.f32 %v3861_v60, %v3701_v56  ;;  %4290 = vperm.xlu0 %7244, %v9563_v22   ;;  %13391 = vst [vmem:[#allocation118_spill] sm:$0xff] %v9756_v19  ;;  %2404 = vmatprep.mubr.f32.mxu0 %v13253_v45  ;;  %v9762_v11 = vpop.f32.mrb[82].mxu0  ;;  %v9770_v19 = vld [vmem:[%s7710_s29 + $0x38] sm:$0xff] }
 0x2dd   : > { %13393 = vst [vmem:[#allocation60_spill] sm:$0xff] %v9762_v11  ;;  %v9764_v37 = vpop.f32.mrb[83].mxu0  ;;  %13396 = vst [vmem:[#allocation61_spill] sm:$0xff] %v9770_v19 }
 0x2de   : > { %v3239_v20 = vpop.permute.xlu1 %3238  ;;  %4190 = vperm.xlu1 %7242, %v9221_v32   ;;  %v9760_v47 = vadd.f32 %v4053_v50, %v3893_v15  ;;  %13394 = vst [vmem:[#allocation115_spill] sm:$0xff] %v9764_v37  ;;  %v9774_v32 = vpop.f32.mrb[84].mxu0 }
 0x2df   : > { %v3288_v56 = vmul.f32 %v3239_v20, %v1242_v42  ;;  %v3427_v60 = vpop.permute.xlu0 %3426  ;;  %6681 = vmatmul.mubr.msk.f32.gmra.mrb[152].mxu0 %vm916_vm0, %v9770_v19  ;;  %13397 = vst [vmem:[#allocation32_spill] sm:$0xff] %v9774_v32  ;;  %v9776_v15 = vpop.f32.mrb[85].mxu0  ;;  %v9781_v42 = vld [vmem:[#allocation2 + $0xd0] sm:$0xff] }
 0x2e0   : > { %13392 = vst [vmem:[#allocation7_spill] sm:$0xff] %v9760_v47  ;;  %4302 = vperm.xlu0 %7244, %v9585_v59   ;;  %13398 = vst [vmem:[#allocation33_spill] sm:$0xff] %v9776_v15  ;;  %2410 = vmatprep.mubr.f32.mxu0 %v13253_v45  ;;  %v9784_v55 = vpop.f32.mrb[86].mxu0  ;;  %v1756_v15 = vadd.f32 %v9359_v58, %v8605_v5 }
 0x2e1   : > { %v3512_v50 = vadd.f32 %v3480_v21, %v3288_v56  ;;  %13400 = vst [vmem:[#allocation54_spill] sm:$0xff] %v9781_v42  ;;  %13401 = vst [vmem:[#allocation55_spill] sm:$0xff] %v9784_v55  ;;  %v9786_v37 = vpop.f32.mrb[87].mxu0  ;;  %v9790_v21 = vld [vmem:[%s7710_s29 + $0x40] sm:$0xff] }
 0x2e2   : > { %4198 = vperm.xlu1 %7242, %v9781_v42   ;;  %13402 = vst [vmem:[#allocation120_spill] sm:$0xff] %v9786_v37  ;;  %13403 = vst [vmem:[#allocation119_spill] sm:$0xff] %v9790_v21  ;;  %v9794_v56 = vpop.f32.mrb[88].mxu0  ;;  %v3864_v37 = vmul.f32 %v3819_v36, %v1501_v9  ;;  %v13411_v9 = vld [vmem:[#allocation36_spill] sm:$0xff] }
 0x2e3   : > { %v3627_v20 = vpop.permute.xlu1 %3626  ;;  %6682 = vmatmul.mubr.msk.f32.gmra.mrb[154].mxu0 %vm916_vm0, %v9790_v21  ;;  %13404 = vst [vmem:[#allocation10_spill] sm:$0xff] %v9794_v56  ;;  %v9798_v32 = vpop.f32.mrb[89].mxu0  ;;  %v9808_v56 = vld [vmem:[%s7710_s29 + $0x48] sm:$0xff] }
 0x2e4   : > { %v3672_v26 = vmul.f32 %v3627_v20, %v1499_v38  ;;  %4310 = vperm.xlu0 %7244, %v9600_v46   ;;  %v3811_v2 = vpop.permute.xlu0 %3810  ;;  %13405 = vst [vmem:[#allocation28_spill] sm:$0xff] %v9798_v32  ;;  %2416 = vmatprep.mubr.f32.mxu0 %v13253_v45  ;;  %v9802_v20 = vpop.f32.mrb[90].mxu0  ;;  %13408 = vst [vmem:[#allocation50_spill] sm:$0xff] %v9808_v56 }
 0x2e5   : > { %13406 = vst [vmem:[#allocation29_spill] sm:$0xff] %v9802_v20  ;;  %v9804_v55 = vpop.f32.mrb[91].mxu0 }
 0x2e6   : > { %v3704_v38 = vadd.f32 %v3672_v26, %v3512_v50  ;;  %4206 = vperm.xlu1 %7242, %v9389_v54   ;;  %13407 = vst [vmem:[#allocation85_spill] sm:$0xff] %v9804_v55  ;;  %v9812_v58 = vpop.f32.mrb[92].mxu0 }
 0x2e7   : > { %6683 = vmatmul.mubr.msk.f32.gmra.mrb[156].mxu0 %vm916_vm0, %v9808_v56  ;;  %13409 = vst [vmem:[#allocation51_spill] sm:$0xff] %v9812_v58  ;;  %v9816_v50 = vpop.f32.mrb[93].mxu0 }
 0x2e8   : > { %v4011_v47 = vpop.permute.xlu1 %4010  ;;  %v3896_v21 = vadd.f32 %v3864_v37, %v3704_v38  ;;  %4318 = vperm.xlu0 %7244, %v9611_v51   ;;  %13410 = vst [vmem:[#allocation9_spill] sm:$0xff] %v9816_v50  ;;  %2422 = vmatprep.mubr.f32.mxu0 %v13253_v45  ;;  %v1230_v37 = vadd.f32 %v13411_v9, %v8546_v40  ;;  %v13412_v38 = vld [vmem:[#allocation37_spill] sm:$0xff]  ;;  %v9824_v32 = vpop.f32.mrb[94].mxu0 }
 0x2e9   : > { %v4056_v36 = vmul.f32 %v4011_v47, %v1756_v15  ;;  %v9814_v26 = vpop.permute.xlu0 %3253  ;;  %v1232_v55 = vadd.f32 %v13412_v38, %v8550_v24  ;;  %13413 = vst [vmem:[#allocation38_spill] sm:$0xff] %v9824_v32  ;;  %v9828_v58 = vpop.f32.mrb[95].mxu0  ;;  %v9832_v47 = vld [vmem:[%s7710_s29 + $0x50] sm:$0xff]  ;;  %v13420_v32 = vld [vmem:[#allocation62_spill] sm:$0xff] }
 0x2ea   : > { %4214 = vperm.xlu1 %7242, %v9361_v63   ;;  %13414 = vst [vmem:[#allocation39_spill] sm:$0xff] %v9828_v58  ;;  %13415 = vst [vmem:[#allocation71_spill] sm:$0xff] %v9832_v47  ;;  %v9836_v15 = vpop.f32.mrb[96].mxu0  ;;  %v1487_v20 = vadd.f32 %v13420_v32, %v8573_v44 }
 0x2eb   : > { %v9826_v56 = vadd.f32 %v4056_v36, %v3896_v21  ;;  %6684 = vmatmul.mubr.msk.f32.gmra.mrb[158].mxu0 %vm916_vm0, %v9832_v47  ;;  %13416 = vst [vmem:[#allocation64_spill] sm:$0xff] %v9836_v15  ;;  %v9838_v38 = vpop.f32.mrb[97].mxu0  ;;  %v3478_v63 = vmul.f32 %v3427_v60, %v1232_v55  ;;  %v13418_v36 = vmov 6   ;;  %v13424_v55 = vld [vmem:[#allocation63_spill] sm:$0xff] }
 0x2ec   : > { %4326 = vperm.xlu0 %7244, %v9630_v52   ;;  %13417 = vst [vmem:[#allocation65_spill] sm:$0xff] %v9838_v38  ;;  %2428 = vmatprep.mubr.f32.mxu0 %v13253_v45  ;;  %v9842_v50 = vpop.f32.mrb[98].mxu0  ;;  %v9851_v38 = vld [vmem:[%s7710_s29 + $0x58] sm:$0xff] }
 0x2ed   : > { %v3229_v9 = vpop.permute.xlu1 %3228  ;;  %13419 = vst [vmem:[#allocation34_spill] sm:$0xff] %v9842_v50  ;;  %v9847_v47 = vpop.f32.mrb[99].mxu0  ;;  %13422 = vst [vmem:[#allocation57_spill] sm:$0xff] %v9851_v38 }
 0x2ee   : > { %v3286_v21 = vmul.f32 %v3229_v9, %v1230_v37  ;;  %7243 = vset.pattern.permute.xlu1 %v13418_v36  ;;  %v3639_v58 = vpop.permute.xlu0 %3638  ;;  %13421 = vst [vmem:[#allocation35_spill] sm:$0xff] %v9847_v47  ;;  %v9855_v60 = vpop.f32.mrb[100].mxu0  ;;  %v1489_v37 = vadd.f32 %v13424_v55, %v8589_v13  ;;  %v9873_v55 = vld [vmem:[%s7710_s29 + $0x60] sm:$0xff] }
 0x2ef   : > { %4286 = vperm.xlu1 %7243, %v9501_v27   ;;  %6685 = vmatmul.mubr.msk.f32.gmra.mrb[160].mxu0 %vm916_vm0, %v9851_v38  ;;  %13423 = vst [vmem:[#allocation59_spill] sm:$0xff] %v9855_v60  ;;  %v9859_v9 = vpop.f32.mrb[101].mxu0  ;;  %v1744_v60 = vadd.f32 %v9236_v0, %v8605_v5  ;;  %13428 = vst [vmem:[#allocation68_spill] sm:$0xff] %v9873_v55  ;;  %v13432_v0 = vld [vmem:[#allocation46_spill] sm:$0xff] }
 0x2f0   : > { %v3510_v15 = vadd.f32 %v3478_v63, %v3286_v21  ;;  %4334 = vperm.xlu0 %7244, %v9645_v57   ;;  %13425 = vst [vmem:[#allocation40_spill] sm:$0xff] %v9859_v9  ;;  %2434 = vmatprep.mubr.f32.mxu0 %v13253_v45  ;;  %v9862_v36 = vpop.f32.mrb[102].mxu0  ;;  %v1260_v38 = vadd.f32 %v13432_v0, %v8546_v40 }
 0x2f1   : > { %13426 = vst [vmem:[#allocation41_spill] sm:$0xff] %v9862_v36  ;;  %v9867_v47 = vpop.f32.mrb[103].mxu0 }
 0x2f2   : > { %v3619_v32 = vpop.permute.xlu1 %3618  ;;  %13427 = vst [vmem:[#allocation66_spill] sm:$0xff] %v9867_v47  ;;  %v9877_v9 = vpop.f32.mrb[104].mxu0 }
 0x2f3   : > { %v3670_v63 = vmul.f32 %v3619_v32, %v1487_v20  ;;  %4294 = vperm.xlu1 %7243, %v9574_v25   ;;  %v9865_v21 = vpop.permute.xlu0 %3243  ;;  %6686 = vmatmul.mubr.msk.f32.gmra.mrb[162].mxu0 %vm916_vm0, %v9873_v55  ;;  %13429 = vst [vmem:[#allocation36_spill] sm:$0xff] %v9877_v9  ;;  %v3862_v20 = vmul.f32 %v3811_v2, %v1489_v37  ;;  %v9879_v36 = vpop.f32.mrb[105].mxu0 }
 0x2f4   : > { %4342 = vperm.xlu0 %7244, %v9664_v33   ;;  %13430 = vst [vmem:[#allocation37_spill] sm:$0xff] %v9879_v36  ;;  %2440 = vmatprep.mubr.f32.mxu0 %v13253_v45  ;;  %v9882_v47 = vpop.f32.mrb[106].mxu0  ;;  %v3291_v36 = vmul.f32 %v9814_v26, %v1260_v38  ;;  %v13444_v26 = vld [vmem:[#allocation76_spill] sm:$0xff] }
 0x2f5   : > { %v3702_v32 = vadd.f32 %v3670_v63, %v3510_v15  ;;  %13431 = vst [vmem:[#allocation62_spill] sm:$0xff] %v9882_v47  ;;  %v9887_v11 = vpop.f32.mrb[107].mxu0  ;;  %v9891_v15 = vld [vmem:[%s7710_s29 + $0x68] sm:$0xff]  ;;  %v1519_v38 = vadd.f32 %v13444_v26, %v8589_v13 }
 0x2f6   : > { %13433 = vst [vmem:[#allocation63_spill] sm:$0xff] %v9887_v11  ;;  %13434 = vst [vmem:[#allocation46_spill] sm:$0xff] %v9891_v15  ;;  %v9895_v37 = vpop.f32.mrb[108].mxu0  ;;  %v13436_v63 = vld [vmem:[#allocation47_spill] sm:$0xff] }
 0x2f7   : > { %v4003_v50 = vpop.permute.xlu1 %4002  ;;  %v3894_v19 = vadd.f32 %v3862_v20, %v3702_v32  ;;  %4298 = vperm.xlu1 %7243, %v9514_v39   ;;  %6687 = vmatmul.mubr.msk.f32.gmra.mrb[164].mxu0 %vm916_vm0, %v9891_v15  ;;  %13435 = vst [vmem:[#allocation122_spill] sm:$0xff] %v9895_v37  ;;  %v1262_v0 = vadd.f32 %v13436_v63, %v8550_v24  ;;  %v9899_v20 = vpop.f32.mrb[109].mxu0  ;;  %v9914_v63 = vld [vmem:[%s7710_s29 + $0x70] sm:$0xff] }
 0x2f8   : > { %v4054_v55 = vmul.f32 %v4003_v50, %v1744_v60  ;;  %4350 = vperm.xlu0 %7244, %v9681_v10   ;;  %v3631_v2 = vpop.permute.xlu0 %3630  ;;  %13437 = vst [vmem:[#allocation47_spill] sm:$0xff] %v9899_v20  ;;  %2446 = vmatprep.mubr.f32.mxu0 %v13253_v45  ;;  %v9904_v50 = vpop.f32.mrb[110].mxu0  ;;  %v13439_v60 = vld [vmem:[#allocation75_spill] sm:$0xff]  ;;  %13441 = vst [vmem:[#allocation124_spill] sm:$0xff] %v9914_v63 }
 0x2f9   : > { %13438 = vst [vmem:[#allocation123_spill] sm:$0xff] %v9904_v50  ;;  %v1517_v11 = vadd.f32 %v13439_v60, %v8573_v44  ;;  %v9910_v9 = vpop.f32.mrb[111].mxu0 }
 0x2fa   : > { %v9902_v32 = vadd.f32 %v4054_v55, %v3894_v19  ;;  %13440 = vst [vmem:[#allocation75_spill] sm:$0xff] %v9910_v9  ;;  %v9918_v19 = vpop.f32.mrb[112].mxu0 }
 0x2fb   : > { %4306 = vperm.xlu1 %7243, %v9526_v6   ;;  %6688 = vmatmul.mubr.msk.f32.gmra.mrb[166].mxu0 %vm916_vm0, %v9914_v63  ;;  %13442 = vst [vmem:[#allocation125_spill] sm:$0xff] %v9918_v19  ;;  %v9922_v60 = vpop.f32.mrb[113].mxu0  ;;  %v3675_v50 = vmul.f32 %v3639_v58, %v1517_v11  ;;  %v9971_v63 = vld [vmem:[#allocation2 + $0xc0] sm:$0xff] }
 0x2fc   : > { %v3447_v37 = vpop.permute.xlu1 %3446  ;;  %4358 = vperm.xlu0 %7244, %v9698_v48   ;;  %13443 = vst [vmem:[#allocation126_spill] sm:$0xff] %v9922_v60  ;;  %2452 = vmatprep.mubr.f32.mxu0 %v13253_v45  ;;  %v9927_v9 = vpop.f32.mrb[114].mxu0 }
 0x2fd   : > { %v3483_v55 = vmul.f32 %v3447_v37, %v1262_v0  ;;  %v9920_v20 = vpop.permute.xlu0 %3450  ;;  %13445 = vst [vmem:[#allocation76_spill] sm:$0xff] %v9927_v9  ;;  %v9930_v47 = vpop.f32.mrb[115].mxu0  ;;  %v9934_v37 = vld [vmem:[%s7710_s29 + $0x78] sm:$0xff] }
 0x2fe   : > { %13446 = vst [vmem:[#allocation127_spill] sm:$0xff] %v9930_v47  ;;  %13447 = vst [vmem:[#allocation128_spill] sm:$0xff] %v9934_v37  ;;  %v13451_v47 = vld [vmem:[#allocation43_spill] sm:$0xff] }
 0x2ff   : > { %v3515_v15 = vadd.f32 %v3483_v55, %v3291_v36  ;;  %4314 = vperm.xlu1 %7243, %v9542_v1   ;;  %6689 = vmatmul.mubr.msk.f32.gmra.mrb[168].mxu0 %vm916_vm0, %v9934_v37  ;;  %v13450_v55 = vld [vmem:[#allocation42_spill] sm:$0xff]  ;;  %v1250_v9 = vadd.f32 %v13451_v47, %v8550_v24 }
 0x300   : > { %4366 = vperm.xlu0 %7244, %v9716_v3   ;;  %2458 = vmatprep.mubr.f32.mxu0 %v13253_v45  ;;  %v1248_v26 = vadd.f32 %v13450_v55, %v8546_v40 }
 0x301   : > { %v3831_v0 = vpop.permute.xlu1 %3830  ;;  %v3707_v60 = vadd.f32 %v3675_v50, %v3515_v15  ;;  %v9938_v19 = vpop.f32.mrb[116].mxu0  ;;  %v9954_v15 = vld [vmem:[%s7710_s29 + $0x80] sm:$0xff]  ;;  %v13453_v50 = vld [vmem:[#allocation69_spill] sm:$0xff] }
 0x302   : > { %13448 = vst [vmem:[#allocation129_spill] sm:$0xff] %v9938_v19  ;;  %v3867_v11 = vmul.f32 %v3831_v0, %v1519_v38  ;;  %v9941_v58 = vpop.permute.xlu0 %3834  ;;  %v9943_v36 = vpop.f32.mrb[117].mxu0  ;;  %13452 = vst [vmem:[#allocation42_spill] sm:$0xff] %v9954_v15  ;;  %v1505_v38 = vadd.f32 %v13453_v50, %v8573_v44  ;;  %v3289_v47 = vmul.f32 %v9865_v21, %v1248_v26  ;;  %v13456_v19 = vld [vmem:[#allocation70_spill] sm:$0xff]  ;;  %v9975_v50 = vld [vmem:[%s7710_s29 + $0x88] sm:$0xff] }
 0x303   : > { %13449 = vst [vmem:[#allocation130_spill] sm:$0xff] %v9943_v36  ;;  %4322 = vperm.xlu1 %7243, %v9553_v8   ;;  %6690 = vmatmul.mubr.msk.f32.gmra.mrb[170].mxu0 %vm916_vm0, %v9954_v15  ;;  %v1507_v15 = vadd.f32 %v13456_v19, %v8589_v13  ;;  %13457 = vst [vmem:[#allocation70_spill] sm:$0xff] %v9971_v63 }
 0x304   : > { %v9950_v37 = vadd.f32 %v3867_v11, %v3707_v60  ;;  %4374 = vperm.xlu0 %7244, %v9736_v23   ;;  %2464 = vmatprep.mubr.f32.mxu0 %v13253_v45  ;;  %13458 = vst [vmem:[#allocation131_spill] sm:$0xff] %v9975_v50  ;;  %v9989_v23 = vld [vmem:[%s7710_s29 + $0x90] sm:$0xff] }
 0x305   : > { %13461 = vst [vmem:[#allocation134_spill] sm:$0xff] %v9989_v23 }
 0x306   : > { %v3439_v0 = vpop.permute.xlu1 %3438  ;;  %v9961_v55 = vpop.f32.mrb[118].mxu0 }
 0x307   : > { %13454 = vst [vmem:[#allocation43_spill] sm:$0xff] %v9961_v55  ;;  %v3481_v60 = vmul.f32 %v3439_v0, %v1250_v9  ;;  %v9964_v11 = vpop.permute.xlu0 %3442  ;;  %4330 = vperm.xlu1 %7243, %v9566_v7   ;;  %v9967_v36 = vpop.f32.mrb[119].mxu0  ;;  %6691 = vmatmul.mubr.msk.f32.gmra.mrb[172].mxu0 %vm916_vm0, %v9975_v50  ;;  %v3673_v9 = vmul.f32 %v3631_v2, %v1505_v38  ;;  %v13462_v2 = vld [vmem:[#allocation48_spill] sm:$0xff] }
 0x308   : > { %13455 = vst [vmem:[#allocation69_spill] sm:$0xff] %v9967_v36  ;;  %4382 = vperm.xlu0 %7244, %v9971_v63   ;;  %2470 = vmatprep.mubr.f32.mxu0 %v13253_v45  ;;  %v1266_v38 = vadd.f32 %v13462_v2, %v8546_v40  ;;  %v1774_v50 = vadd.f32 %v9484_v12, %v8605_v5  ;;  %v10037_v12 = vld [vmem:[%s7710_s29 + $0xa0] sm:$0xff] }
 0x309   : > { %v3513_v21 = vadd.f32 %v3481_v60, %v3289_v47  ;;  %v13463_v47 = vld [vmem:[#allocation49_spill] sm:$0xff]  ;;  %13473 = vst [vmem:[#allocation135_spill] sm:$0xff] %v10037_v12 }
 0x30a   : > { %v1268_v60 = vadd.f32 %v13463_v47, %v8550_v24  ;;  %v13468_v47 = vld [vmem:[#allocation77_spill] sm:$0xff] }
 0x30b   : > { %v3823_v26 = vpop.permute.xlu1 %3822  ;;  %v3705_v0 = vadd.f32 %v3673_v9, %v3513_v21  ;;  %4338 = vperm.xlu1 %7243, %v9577_v62   ;;  %v9981_v36 = vpop.f32.mrb[120].mxu0  ;;  %6692 = vmatmul.mubr.msk.f32.gmra.mrb[174].mxu0 %vm916_vm0, %v9989_v23  ;;  %v1762_v9 = vadd.f32 %v9465_v41, %v8605_v5  ;;  %v13464_v21 = vld [vmem:[#allocation67_spill] sm:$0xff]  ;;  %v10006_v23 = vld [vmem:[%s7710_s29 + $0x98] sm:$0xff] }
 0x30c   : > { %13459 = vst [vmem:[#allocation132_spill] sm:$0xff] %v9981_v36  ;;  %v3865_v19 = vmul.f32 %v3823_v26, %v1507_v15  ;;  %4390 = vperm.xlu0 %7244, %v9781_v42   ;;  %v9984_v55 = vpop.permute.xlu0 %3826  ;;  %v9986_v63 = vpop.f32.mrb[121].mxu0  ;;  %2476 = vmatprep.mubr.f32.mxu0 %v13253_v45  ;;  %13466 = vst [vmem:[#allocation49_spill] sm:$0xff] %v10006_v23  ;;  %v3484_v2 = vmul.f32 %v9920_v20, %v1268_v60  ;;  %v13469_v20 = vsub.s32 5, %v13464_v21  ;;  %v13470_v60 = vld [vmem:[#allocation78_spill] sm:$0xff]  ;;  %v13477_v42 = vld [vmem:[#allocation79_spill] sm:$0xff] }
 0x30d   : > { %13460 = vst [vmem:[#allocation133_spill] sm:$0xff] %v9986_v63  ;;  %v1523_v26 = vadd.f32 %v13468_v47, %v8573_v44  ;;  %v1525_v47 = vadd.f32 %v13470_v60, %v8589_v13  ;;  %v13476_v60 = vld [vmem:[#allocation45_spill] sm:$0xff] }
 0x30e   : > { %v3897_v15 = vadd.f32 %v3865_v19, %v3705_v0 }
 0x30f   : > { %4346 = vperm.xlu1 %7243, %v9588_v28   ;;  %6693 = vmatmul.mubr.msk.f32.gmra.mrb[176].mxu0 %vm916_vm0, %v10006_v23  ;;  %v10021_v23 = vld [vmem:[%s13010_s4] sm:$0xff]  ;;  %v3868_v3 = vmul.f32 %v9941_v58, %v1525_v47 }
 0x310   : > { %v3259_v63 = vpop.permute.xlu1 %3258  ;;  %4398 = vperm.xlu0 %7244, %v9389_v54   ;;  %v10003_v36 = vpop.f32.mrb[122].mxu0  ;;  %2482 = vmatprep.mubr.f32.mxu0 %v13253_v45 }
 0x311   : > { %13465 = vst [vmem:[#allocation48_spill] sm:$0xff] %v10003_v36  ;;  %v3292_v0 = vmul.f32 %v3259_v63, %v1266_v38  ;;  %v4015_v19 = vpop.permute.xlu0 %4014  ;;  %v10011_v41 = vpop.f32.mrb[123].mxu0  ;;  %v10026_v63 = vrot.slane %v10021_v23, %v13469_v20 }
 0x312   : > { %13467 = vst [vmem:[#allocation67_spill] sm:$0xff] %v10011_v41  ;;  %v4057_v54 = vmul.f32 %v4015_v19, %v1762_v9  ;;  %v10033_v19 = vld [vmem:[#allocation2 + $0xf0] sm:$0xff] }
 0x313   : > { %v3516_v38 = vadd.f32 %v3484_v2, %v3292_v0  ;;  %4354 = vperm.xlu1 %7243, %v9603_v18   ;;  %13472 = vst [vmem:[#allocation78_spill] sm:$0xff] %v10033_v19  ;;  %6694 = vmatmul.mubr.msk.f32.gmra.mrb[178].mxu0 %vm916_vm0, %v10037_v12 }
 0x314   : > { %v10031_v9 = vadd.f32 %v4057_v54, %v3897_v15  ;;  %4406 = vperm.xlu0 %7244, %v10033_v19   ;;  %2488 = vmatprep.mubr.f32.mxu0 %v13253_v45  ;;  %v13475_v15 = vld [vmem:[#allocation44_spill] sm:$0xff]  ;;  %v1256_v19 = vadd.f32 %v13476_v60, %v8550_v24 }
 0x315   : > { %v3643_v41 = vpop.permute.xlu1 %3642  ;;  %v4023_v20 = vpop.permute.xlu0 %4022  ;;  %v1254_v54 = vadd.f32 %v13475_v15, %v8546_v40  ;;  %v10059_v40 = vld [vmem:[%s7710_s29 + $0xa8] sm:$0xff] }
 0x316   : > { %13471 = vst [vmem:[#allocation77_spill] sm:$0xff] %v10031_v9  ;;  %v3676_v2 = vmul.f32 %v3643_v41, %v1523_v26  ;;  %v4059_v0 = vmul.f32 %v4023_v20, %v1774_v50  ;;  %v10042_v36 = vpop.f32.mrb[124].mxu0  ;;  %v1596_v9 = vadd.f32 %v13477_v42, %v10026_v63  ;;  %v13064_v26 = vmov 7  }
 0x317   : > { %13474 = vst [vmem:[#allocation136_spill] sm:$0xff] %v10042_v36  ;;  %4362 = vperm.xlu1 %7243, %v9616_v4   ;;  %v10051_v12 = vpop.f32.mrb[125].mxu0  ;;  %6695 = vmatmul.mubr.msk.f32.gmra.mrb[180].mxu0 %vm916_vm0, %v10059_v40  ;;  %v13510_v36 = vmov 7  }
 0x318   : > { %13478 = vst [vmem:[#allocation44_spill] sm:$0xff] %v10051_v12  ;;  %v3708_v48 = vadd.f32 %v3676_v2, %v3516_v38  ;;  %v10055_v50 = vadd.f32 %v4059_v0, %v9950_v37  ;;  %7245 = vset.pattern.permute.xlu0 %v13064_v26  ;;  %2494 = vmatprep.mubr.f32.mxu0 %v13253_v45  ;;  %v13479_v37 = vld [vmem:[#allocation82_spill] sm:$0xff]  ;;  %v10070_v2 = vld [vmem:[#allocation2 + $0xa8] sm:$0xff] }
 0x319   : > { %4478 = vperm.xlu0 %7245, %v9501_v27   ;;  %v1614_v41 = vadd.f32 %v13479_v37, %v10026_v63  ;;  %v3482_v38 = vmul.f32 %v9964_v11, %v1256_v19  ;;  %v13480_v27 = vld [vmem:[#allocation73_spill] sm:$0xff]  ;;  %v13483_v19 = vld [vmem:[#allocation74_spill] sm:$0xff] }
 0x31a   : > { %v4095_v24 = vpop.permute.xlu0 %4094  ;;  %v3249_v42 = vpop.permute.xlu1 %3248  ;;  %v10065_v58 = vadd.f32 %v3868_v3, %v3708_v48  ;;  %v1511_v15 = vadd.f32 %v13480_v27, %v8573_v44  ;;  %v10080_v48 = vld [vmem:[%s7710_s29 + $0xb0] sm:$0xff]  ;;  %v13482_v3 = vld [vmem:[#allocation90_spill] sm:$0xff]  ;;  %v10093_v27 = vld [vmem:[#allocation2 + $0xb8] sm:$0xff] }
 0x31b   : > { %v4221_v47 = vmul.f32 %v4095_v24, %v1596_v9  ;;  %v3290_v20 = vmul.f32 %v3249_v42, %v1254_v54  ;;  %4370 = vperm.xlu1 %7243, %v10070_v2   ;;  %v10073_v0 = vpop.f32.mrb[126].mxu0  ;;  %6696 = vmatmul.mubr.msk.f32.gmra.mrb[182].mxu0 %vm916_vm0, %v10080_v48  ;;  %v1513_v54 = vadd.f32 %v13483_v19, %v8589_v13  ;;  %v13484_v24 = vld [vmem:[#allocation88_spill] sm:$0xff] }
 0x31c   : > { %v10077_v60 = vpop.f32.mrb[127].mxu0  ;;  %2500 = vmatprep.mubr.f32.mxu0 %v13253_v45  ;;  %v1626_v42 = vadd.f32 %v13484_v24, %v10026_v63  ;;  %v1768_v13 = vadd.f32 %v9474_v29, %v8605_v5 }
 0x31d   : > { %13481 = vst [vmem:[#allocation45_spill] sm:$0xff] %v10077_v60  ;;  %v10085_v11 = vadd.f32 %v4221_v47, %v13482_v3  ;;  %v3514_v9 = vadd.f32 %v3482_v38, %v3290_v20  ;;  %4490 = vperm.xlu0 %7245, %v9514_v39   ;;  %v10101_v39 = vld [vmem:[%s7710_s29 + $0xb8] sm:$0xff] }
 0x31e   : > { %v4107_v44 = vpop.permute.xlu0 %4106  ;;  %13487 = vst [vmem:[#allocation73_spill] sm:$0xff] %v10101_v39 }
 0x31f   : > { %v4224_v37 = vmul.f32 %v4107_v44, %v1614_v41  ;;  %4378 = vperm.xlu1 %7243, %v10093_v27   ;;  %v3635_v26 = vpop.permute.xlu1 %3634  ;;  %v10096_v47 = vpop.f32.mrb[128].mxu0  ;;  %6697 = vmatmul.mubr.msk.f32.gmra.mrb[184].mxu0 %vm916_vm0, %v10101_v39  ;;  %v13488_v41 = vld [vmem:[#allocation95_spill] sm:$0xff]  ;;  %v13489_v44 = vld [vmem:[#allocation92_spill] sm:$0xff] }
 0x320   : > { %13485 = vst [vmem:[#allocation79_spill] sm:$0xff] %v10096_v47  ;;  %v3674_v38 = vmul.f32 %v3635_v26, %v1511_v15  ;;  %v10098_v20 = vpop.f32.mrb[129].mxu0  ;;  %2506 = vmatprep.mubr.f32.mxu0 %v13253_v45  ;;  %v3866_v26 = vmul.f32 %v9984_v55, %v1513_v54  ;;  %v1638_v24 = vadd.f32 %v13489_v44, %v10026_v63  ;;  %v13491_v55 = vld [vmem:[#allocation113_spill] sm:$0xff] }
 0x321   : > { %13486 = vst [vmem:[#allocation82_spill] sm:$0xff] %v10098_v20  ;;  %v10108_v3 = vadd.f32 %v4224_v37, %v13488_v41  ;;  %4498 = vperm.xlu0 %7245, %v9526_v6   ;;  %v10115_v20 = vld [vmem:[#allocation2 + $0xc8] sm:$0xff]  ;;  %v10121_v6 = vld [vmem:[%s7710_s29 + $0xc0] sm:$0xff]  ;;  %v10190_v47 = vld [vmem:[%s7710_s29 + $0xd8] sm:$0xff] }
 0x322   : > { %v3706_v15 = vadd.f32 %v3674_v38, %v3514_v9  ;;  %v4115_v19 = vpop.permute.xlu0 %4114  ;;  %13490 = vst [vmem:[#allocation90_spill] sm:$0xff] %v10121_v6 }
 0x323   : > { %v4226_v60 = vmul.f32 %v4115_v19, %v1626_v42  ;;  %4386 = vperm.xlu1 %7243, %v10115_v20   ;;  %6698 = vmatmul.mubr.msk.f32.gmra.mrb[186].mxu0 %vm916_vm0, %v10121_v6  ;;  %v1780_v42 = vadd.f32 %v9540_v35, %v8605_v5  ;;  %v10138_v6 = vld [vmem:[#allocation2 + $0xd8] sm:$0xff]  ;;  %v13495_v5 = vld [vmem:[#allocation112_spill] sm:$0xff] }
 0x324   : > { %v4019_v29 = vpop.permute.xlu1 %4018  ;;  %v3898_v12 = vadd.f32 %v3866_v26, %v3706_v15  ;;  %v10118_v37 = vpop.f32.mrb[130].mxu0  ;;  %2512 = vmatprep.mubr.f32.mxu0 %v13253_v45  ;;  %v13493_v26 = vld [vmem:[#allocation94_spill] sm:$0xff]  ;;  %13506 = vst [vmem:[#allocation112_spill] sm:$0xff] %v10190_v47 }
 0x325   : > { %v10126_v9 = vadd.f32 %v4226_v60, %v13491_v55  ;;  %v4058_v54 = vmul.f32 %v4019_v29, %v1768_v13  ;;  %4506 = vperm.xlu0 %7245, %v9542_v1   ;;  %v10131_v38 = vpop.f32.mrb[131].mxu0  ;;  %v1650_v15 = vadd.f32 %v13493_v26, %v10026_v63  ;;  %v10142_v1 = vld [vmem:[%s7710_s29 + $0xc8] sm:$0xff] }
 0x326   : > { %13492 = vst [vmem:[#allocation74_spill] sm:$0xff] %v10131_v38  ;;  %v4123_v41 = vpop.permute.xlu0 %4122  ;;  %13494 = vst [vmem:[#allocation88_spill] sm:$0xff] %v10142_v1 }
 0x327   : > { %v10136_v19 = vadd.f32 %v4058_v54, %v3898_v12  ;;  %v4228_v44 = vmul.f32 %v4123_v41, %v1638_v24  ;;  %4394 = vperm.xlu1 %7243, %v10138_v6   ;;  %6699 = vmatmul.mubr.msk.f32.gmra.mrb[188].mxu0 %vm916_vm0, %v10142_v1  ;;  %v13497_v24 = vld [vmem:[#allocation80_spill] sm:$0xff]  ;;  %v13499_v41 = vld [vmem:[#allocation98_spill] sm:$0xff] }
 0x328   : > { %v4027_v60 = vpop.permute.xlu1 %4026  ;;  %2518 = vmatprep.mubr.f32.mxu0 %v13253_v45  ;;  %v1602_v29 = vadd.f32 %v13497_v24, %v10026_v63  ;;  %v1662_v26 = vadd.f32 %v13499_v41, %v10026_v63 }
 0x329   : > { %v10147_v35 = vadd.f32 %v4228_v44, %v13495_v5  ;;  %v4060_v13 = vmul.f32 %v4027_v60, %v1780_v42  ;;  %4514 = vperm.xlu0 %7245, %v9553_v8   ;;  %v10150_v12 = vpop.f32.mrb[132].mxu0  ;;  %v10162_v42 = vld [vmem:[#allocation2 + $0xe8] sm:$0xff]  ;;  %v10166_v8 = vld [vmem:[%s7710_s29 + $0xd0] sm:$0xff]  ;;  %v13501_v60 = vld [vmem:[#allocation14_spill] sm:$0xff] }
 0x32a   : > { %13496 = vst [vmem:[#allocation95_spill] sm:$0xff] %v10150_v12  ;;  %v4131_v55 = vpop.permute.xlu0 %4130  ;;  %v10155_v54 = vpop.f32.mrb[133].mxu0  ;;  %13500 = vst [vmem:[#allocation113_spill] sm:$0xff] %v10166_v8 }
 0x32b   : > { %13498 = vst [vmem:[#allocation92_spill] sm:$0xff] %v10155_v54  ;;  %v10160_v38 = vadd.f32 %v4060_v13, %v10065_v58  ;;  %v4230_v44 = vmul.f32 %v4131_v55, %v1650_v15  ;;  %4402 = vperm.xlu1 %7243, %v10162_v42   ;;  %6700 = vmatmul.mubr.msk.f32.gmra.mrb[190].mxu0 %vm916_vm0, %v10166_v8  ;;  %v13502_v58 = vld [vmem:[#allocation81_spill] sm:$0xff]  ;;  %v13503_v54 = vld [vmem:[#allocation102_spill] sm:$0xff] }
 0x32c   : > { %2524 = vmatprep.mubr.f32.mxu0 %v13253_v45  ;;  %v1608_v15 = vadd.f32 %v13502_v58, %v10026_v63  ;;  %v1674_v1 = vadd.f32 %v13503_v54, %v10026_v63  ;;  %v10181_v8 = vld [vmem:[#allocation2 + $0xf8] sm:$0xff] }
 0x32d   : > { %v10171_v5 = vadd.f32 %v4230_v44, %v13501_v60  ;;  %4522 = vperm.xlu0 %7245, %v9566_v7   ;;  %v4099_v24 = vpop.permute.xlu1 %4098  ;;  %v13505_v7 = vld [vmem:[#allocation101_spill] sm:$0xff] }
 0x32e   : > { %v4222_v13 = vmul.f32 %v4099_v24, %v1602_v29  ;;  %v4139_v55 = vpop.permute.xlu0 %4138  ;;  %v10177_v41 = vpop.f32.mrb[134].mxu0  ;;  %v13507_v29 = vld [vmem:[#allocation72_spill] sm:$0xff] }
 0x32f   : > { %v4232_v12 = vmul.f32 %v4139_v55, %v1662_v26  ;;  %4410 = vperm.xlu1 %7243, %v10181_v8   ;;  %v10184_v44 = vpop.f32.mrb[135].mxu0  ;;  %6701 = vmatmul.mubr.msk.f32.gmra.mrb[192].mxu0 %vm916_vm0, %v10190_v47  ;;  %v13508_v26 = vld [vmem:[#allocation84_spill] sm:$0xff] }
 0x330   : > { %13504 = vst [vmem:[#allocation94_spill] sm:$0xff] %v10184_v44  ;;  %v10187_v60 = vadd.f32 %v4222_v13, %v13505_v7  ;;  %2530 = vmatprep.mubr.f32.mxu0 %v13253_v45  ;;  %v1620_v58 = vadd.f32 %v13508_v26, %v10026_v63  ;;  %v13509_v7 = vld [vmem:[#allocation105_spill] sm:$0xff] }
 0x331   : > { %v10195_v24 = vadd.f32 %v4232_v12, %v13507_v29  ;;  %4530 = vperm.xlu0 %7245, %v9577_v62   ;;  %v4103_v54 = vpop.permute.xlu1 %4102  ;;  %v1686_v44 = vadd.f32 %v13509_v7, %v10026_v63  ;;  %v13511_v12 = vld [vmem:[#allocation83_spill] sm:$0xff]  ;;  %v10211_v62 = vld [vmem:[%s7710_s29 + $0xe0] sm:$0xff] }
 0x332   : > { %v4223_v55 = vmul.f32 %v4103_v54, %v1608_v15  ;;  %v4147_v13 = vpop.permute.xlu0 %4146  ;;  %13512 = vst [vmem:[#allocation80_spill] sm:$0xff] %v10211_v62 }
 0x333   : > { %v4234_v39 = vmul.f32 %v4147_v13, %v1674_v1  ;;  %7246 = vset.pattern.permute.xlu1 %v13510_v36  ;;  %v10204_v47 = vpop.f32.mrb[136].mxu0  ;;  %6702 = vmatmul.mubr.msk.f32.gmra.mrb[194].mxu0 %vm916_vm0, %v10211_v62  ;;  %v13513_v36 = vld [vmem:[#allocation91_spill] sm:$0xff] }
 0x334   : > { %v10207_v29 = vadd.f32 %v4223_v55, %v13511_v12  ;;  %4482 = vperm.xlu1 %7246, %v9563_v22   ;;  %2536 = vmatprep.mubr.f32.mxu0 %v13253_v45  ;;  %v1632_v54 = vadd.f32 %v13513_v36, %v10026_v63  ;;  %v13514_v22 = vld [vmem:[#allocation110_spill] sm:$0xff]  ;;  %v13515_v12 = vld [vmem:[#allocation111_spill] sm:$0xff] }
 0x335   : > { %v10216_v15 = vadd.f32 %v4234_v39, %v9347_v17  ;;  %4538 = vperm.xlu0 %7245, %v9588_v28   ;;  %v4111_v1 = vpop.permute.xlu1 %4110  ;;  %v1698_v13 = vadd.f32 %v13514_v22, %v10026_v63  ;;  %v10229_v17 = vld [vmem:[%s7710_s29 + $0xe8] sm:$0xff]  ;;  %v13518_v22 = vld [vmem:[#allocation104_spill] sm:$0xff] }
 0x336   : > { %v4225_v26 = vmul.f32 %v4111_v1, %v1620_v58  ;;  %v4155_v55 = vpop.permute.xlu0 %4154 }
 0x337   : > { %v4236_v7 = vmul.f32 %v4155_v55, %v1686_v44  ;;  %6703 = vmatmul.mubr.msk.f32.gmra.mrb[196].mxu0 %vm916_vm0, %v10229_v17  ;;  %v13516_v44 = vld [vmem:[#allocation93_spill] sm:$0xff] }
 0x338   : > { %v10225_v62 = vadd.f32 %v4225_v26, %v13515_v12  ;;  %4486 = vperm.xlu1 %7246, %v9574_v25   ;;  %2542 = vmatprep.mubr.f32.mxu0 %v13253_v45  ;;  %v1644_v58 = vadd.f32 %v13516_v44, %v10026_v63  ;;  %v13517_v25 = vld [vmem:[#allocation58_spill] sm:$0xff] }
 0x339   : > { %v10234_v28 = vadd.f32 %v4236_v7, %v9294_v31  ;;  %4546 = vperm.xlu0 %7245, %v9603_v18   ;;  %v4119_v39 = vpop.permute.xlu1 %4118  ;;  %v1710_v26 = vadd.f32 %v13517_v25, %v10026_v63  ;;  %v10247_v31 = vld [vmem:[%s7710_s29 + $0xf0] sm:$0xff]  ;;  %v13522_v25 = vld [vmem:[#allocation117_spill] sm:$0xff] }
 0x33a   : > { %v4227_v1 = vmul.f32 %v4119_v39, %v1632_v54  ;;  %v4163_v36 = vpop.permute.xlu0 %4162  ;;  %13519 = vst [vmem:[#allocation98_spill] sm:$0xff] %v10247_v31 }
 0x33b   : > { %v4238_v55 = vmul.f32 %v4163_v36, %v1698_v13  ;;  %6704 = vmatmul.mubr.msk.f32.gmra.mrb[198].mxu0 %vm916_vm0, %v10247_v31  ;;  %v13520_v13 = vld [vmem:[#allocation97_spill] sm:$0xff]  ;;  %v13568_v31 = vld [vmem:[#allocation52_spill] sm:$0xff] }
 0x33c   : > { %v10243_v12 = vadd.f32 %v4227_v1, %v13518_v22  ;;  %4494 = vperm.xlu1 %7246, %v9585_v59   ;;  %2548 = vmatprep.mubr.f32.mxu0 %v13253_v45  ;;  %v1656_v7 = vadd.f32 %v13520_v13, %v10026_v63  ;;  %v829_v59 = vld [vmem:[%s13009_s3 + $0x68] sm:$0xff]  ;;  %v13521_v1 = vld [vmem:[#allocation116_spill] sm:$0xff] }
 0x33d   : > { %v10252_v18 = vadd.f32 %v4238_v55, %v9489_v53  ;;  %4554 = vperm.xlu0 %7245, %v9616_v4   ;;  %v4127_v54 = vpop.permute.xlu1 %4126  ;;  %v1722_v36 = vadd.f32 %v13521_v1, %v10026_v63  ;;  %2555 = vmatprep.subr.mxu1 %v829_v59  ;;  %v828_v4 = vld [vmem:[%s13009_s3 + $0x60] sm:$0xff]  ;;  %v13526_v1 = vld [vmem:[#allocation56_spill] sm:$0xff] }
 0x33e   : > { %v4229_v39 = vmul.f32 %v4127_v54, %v1644_v58  ;;  %v4171_v44 = vpop.permute.xlu0 %4170  ;;  %2556 = vmatpush1.msra.mxu1 %v828_v4  ;;  %v13527_v4 = vld [vmem:[#allocation103_spill] sm:$0xff] }
 0x33f   : > { %v4240_v53 = vmul.f32 %v4171_v44, %v1710_v26  ;;  %6706 = vmatmul.mubr.msk.f32.vlgmr.msra.gmra.mrb[214].mxu1 %vm916_vm0, %v9635_v30  ;;  %v13523_v26 = vld [vmem:[#allocation99_spill] sm:$0xff] }
 0x340   : > { %v10267_v55 = vadd.f32 %v4229_v39, %v13522_v25  ;;  %4502 = vperm.xlu1 %7246, %v9600_v46   ;;  %v1668_v54 = vadd.f32 %v13523_v26, %v10026_v63  ;;  %2625 = vmatprep.mubr.f32.mxu1 %v13253_v45  ;;  %v10280_v39 = vld [vmem:[%s7710_s29 + $0xf8] sm:$0xff]  ;;  %v1680_v25 = vadd.f32 %v13527_v4, %v10026_v63 }
 0x341   : > { %v10271_v58 = vadd.f32 %v4240_v53, %v9444_v16  ;;  %4562 = vperm.xlu0 %7245, %v10070_v2   ;;  %v4135_v22 = vpop.permute.xlu1 %4134  ;;  %13524 = vst [vmem:[#allocation14_spill] sm:$0xff] %v10280_v39  ;;  %6705 = vmatmul.mubr.msk.f32.gmra.mrb[200].mxu0 %vm916_vm0, %v10280_v39  ;;  %v13525_v16 = vld [vmem:[#allocation86_spill] sm:$0xff]  ;;  %v13528_v26 = vld [vmem:[#allocation17_spill] sm:$0xff] }
 0x342   : > { %v4231_v13 = vmul.f32 %v4135_v22, %v1656_v7  ;;  %v4179_v44 = vpop.permute.xlu0 %4178  ;;  %v1734_v46 = vadd.f32 %v13525_v16, %v10026_v63  ;;  %2876 = vmatprep.mubr.f32.mxu0 %v13253_v45  ;;  %v13530_v16 = vld [vmem:[#allocation19_spill] sm:$0xff] }
 0x343   : > { %v4242_v59 = vmul.f32 %v4179_v44, %v1722_v36  ;;  %6707 = vmatmul.mubr.msk.f32.gmra.mrb[216].mxu1 %vm916_vm0, %v9652_v34  ;;  %v13529_v44 = vld [vmem:[#allocation121_spill] sm:$0xff] }
 0x344   : > { %v10288_v30 = vadd.f32 %v4231_v13, %v13526_v1  ;;  %4510 = vperm.xlu1 %7246, %v9611_v51   ;;  %2631 = vmatprep.mubr.f32.mxu1 %v13253_v45  ;;  %v1746_v13 = vadd.f32 %v13528_v26, %v10026_v63  ;;  %v13531_v1 = vld [vmem:[#allocation24_spill] sm:$0xff] }
 0x345   : > { %v10292_v7 = vadd.f32 %v4242_v59, %v9656_v49  ;;  %4570 = vperm.xlu0 %7245, %v10093_v27   ;;  %v4143_v53 = vpop.permute.xlu1 %4142 }
 0x346   : > { %v4233_v36 = vmul.f32 %v4143_v53, %v1668_v54  ;;  %v4187_v22 = vpop.permute.xlu0 %4186  ;;  %v13532_v54 = vld [vmem:[#allocation106_spill] sm:$0xff] }
 0x347   : > { %v4244_v51 = vmul.f32 %v4187_v22, %v1734_v46  ;;  %6708 = vmatmul.mubr.msk.f32.gmra.mrb[218].mxu1 %vm916_vm0, %v13531_v1  ;;  %v1692_v53 = vadd.f32 %v13532_v54, %v10026_v63  ;;  %v13533_v46 = vld [vmem:[#allocation13_spill] sm:$0xff]  ;;  %v13534_v22 = vld [vmem:[#allocation11_spill] sm:$0xff] }
 0x348   : > { %v10303_v49 = vadd.f32 %v4233_v36, %v13529_v44  ;;  %4518 = vperm.xlu1 %7246, %v9630_v52   ;;  %2637 = vmatprep.mubr.f32.mxu1 %v13253_v45  ;;  %v1758_v36 = vadd.f32 %v13533_v46, %v10026_v63  ;;  %v13535_v1 = vld [vmem:[#allocation25_spill] sm:$0xff] }
 0x349   : > { %v10307_v59 = vadd.f32 %v4244_v51, %v13530_v16  ;;  %4578 = vperm.xlu0 %7245, %v10115_v20   ;;  %v4151_v34 = vpop.permute.xlu1 %4150 }
 0x34a   : > { %v4235_v4 = vmul.f32 %v4151_v34, %v1680_v25  ;;  %v4195_v26 = vpop.permute.xlu0 %4194  ;;  %v13536_v25 = vld [vmem:[#allocation114_spill] sm:$0xff] }
 0x34b   : > { %v4246_v52 = vmul.f32 %v4195_v26, %v1746_v13  ;;  %6709 = vmatmul.mubr.msk.f32.gmra.mrb[220].mxu1 %vm916_vm0, %v13535_v1  ;;  %v1704_v34 = vadd.f32 %v13536_v25, %v10026_v63  ;;  %v13537_v13 = vld [vmem:[#allocation89_spill] sm:$0xff]  ;;  %v13538_v26 = vld [vmem:[#allocation12_spill] sm:$0xff] }
 0x34c   : > { %v10318_v51 = vadd.f32 %v4235_v4, %v13534_v22  ;;  %4526 = vperm.xlu1 %7246, %v9645_v57   ;;  %2643 = vmatprep.mubr.f32.mxu1 %v13253_v45  ;;  %v1770_v4 = vadd.f32 %v13537_v13, %v10026_v63  ;;  %v13540_v1 = vld [vmem:[#allocation8_spill] sm:$0xff]  ;;  %v10348_v13 = vpop.f32.mrb[137].mxu0 }
 0x34d   : > { %v10322_v44 = vadd.f32 %v4246_v52, %v9902_v32  ;;  %4586 = vperm.xlu0 %7245, %v10138_v6   ;;  %v4159_v16 = vpop.permute.xlu1 %4158  ;;  %v13071_v52 = vsub.s32 6, %v13464_v21  ;;  %v1716_v25 = vadd.f32 %v13540_v1, %v10026_v63  ;;  %13541 = vst [vmem:[#allocation81_spill] sm:$0xff] %v10348_v13 }
 0x34e   : > { %v4237_v54 = vmul.f32 %v4159_v16, %v1692_v53  ;;  %v4203_v46 = vpop.permute.xlu0 %4202  ;;  %v13539_v16 = vld [vmem:[#allocation21_spill] sm:$0xff] }
 0x34f   : > { %v4248_v57 = vmul.f32 %v4203_v46, %v1758_v36  ;;  %6710 = vmatmul.mubr.msk.f32.gmra.mrb[222].mxu1 %vm916_vm0, %v13539_v16 }
 0x350   : > { %v10333_v32 = vadd.f32 %v4237_v54, %v13538_v26  ;;  %4534 = vperm.xlu1 %7246, %v9664_v33   ;;  %2649 = vmatprep.mubr.f32.mxu1 %v13253_v45  ;;  %v1782_v33 = vadd.f32 %v9712_v61, %v10026_v63  ;;  %v10357_v26 = vrot.slane %v10021_v23, %v13071_v52 }
 0x351   : > { %v10338_v22 = vadd.f32 %v4248_v57, %v9826_v56  ;;  %4594 = vperm.xlu0 %7245, %v10162_v42   ;;  %v4167_v53 = vpop.permute.xlu1 %4166  ;;  %v13542_v56 = vld [vmem:[#allocation100_spill] sm:$0xff] }
 0x352   : > { %v4239_v36 = vmul.f32 %v4167_v53, %v1704_v34  ;;  %v4211_v46 = vpop.permute.xlu0 %4210  ;;  %v10359_v34 = vpop.f32.mrb[150].mxu1 }
 0x353   : > { %v4250_v54 = vmul.f32 %v4211_v46, %v1770_v4  ;;  %13543 = vst [vmem:[#allocation102_spill] sm:$0xff] %v10359_v34  ;;  %v10365_v4 = vpop.f32.mrb[151].mxu1  ;;  %6711 = vmatmul.mubr.msk.f32.gmra.mrb[224].mxu1 %vm916_vm0, %v9725_v14  ;;  %v13549_v34 = vld [vmem:[#allocation20_spill] sm:$0xff] }
 0x354   : > { %v10351_v57 = vadd.f32 %v4239_v36, %v13542_v56  ;;  %4542 = vperm.xlu1 %7246, %v9681_v10   ;;  %13544 = vst [vmem:[#allocation101_spill] sm:$0xff] %v10365_v4  ;;  %v13545_v10 = vld [vmem:[#allocation15_spill] sm:$0xff]  ;;  %v10371_v46 = vpop.f32.mrb[152].mxu1  ;;  %2655 = vmatprep.mubr.f32.mxu1 %v13253_v45  ;;  %v1857_v4 = vadd.f32 %v9731_v43, %v10357_v26 }
 0x355   : > { %v10362_v53 = vadd.f32 %v4250_v54, %v10136_v19  ;;  %4602 = vperm.xlu0 %7245, %v10181_v8   ;;  %v4175_v61 = vpop.permute.xlu1 %4174  ;;  %v1728_v16 = vadd.f32 %v13545_v10, %v10026_v63  ;;  %13546 = vst [vmem:[#allocation72_spill] sm:$0xff] %v10371_v46  ;;  %v10374_v19 = vpop.f32.mrb[153].mxu1  ;;  %v13548_v54 = vld [vmem:[#allocation18_spill] sm:$0xff]  ;;  %v13558_v46 = vld [vmem:[#allocation109_spill] sm:$0xff] }
 0x356   : > { %v4241_v1 = vmul.f32 %v4175_v61, %v1716_v25  ;;  %v4219_v36 = vpop.permute.xlu0 %4218  ;;  %13547 = vst [vmem:[#allocation84_spill] sm:$0xff] %v10374_v19  ;;  %v10382_v14 = vpop.f32.mrb[154].mxu1  ;;  %v13072_v61 = vmov 8   ;;  %v10392_v19 = vld [vmem:[#allocation2 + $0x8] sm:$0xff] }
 0x357   : > { %v4252_v56 = vmul.f32 %v4219_v36, %v1782_v33  ;;  %13550 = vst [vmem:[#allocation105_spill] sm:$0xff] %v10382_v14  ;;  %v10388_v33 = vpop.f32.mrb[155].mxu1  ;;  %v13552_v36 = vld [vmem:[#allocation16_spill] sm:$0xff]  ;;  %13553 = vst [vmem:[#allocation91_spill] sm:$0xff] %v10392_v19  ;;  %v13555_v14 = vld [vmem:[#allocation27_spill] sm:$0xff] }
 0x358   : > { %v10377_v52 = vadd.f32 %v4241_v1, %v13548_v54  ;;  %4550 = vperm.xlu1 %7246, %v13549_v34   ;;  %13551 = vst [vmem:[#allocation83_spill] sm:$0xff] %v10388_v33  ;;  %v1740_v1 = vadd.f32 %v13552_v36, %v10026_v63  ;;  %v10395_v43 = vpop.f32.mrb[156].mxu1  ;;  %6712 = vmatmul.mubr.msk.f32.gmra.mrb[226].mxu1 %vm916_vm0, %v13555_v14  ;;  %v13562_v14 = vld [vmem:[#allocation96_spill] sm:$0xff] }
 0x359   : > { %v10385_v25 = vadd.f32 %v4252_v56, %v10160_v38  ;;  %7248 = vset.pattern.permute.xlu0 %v13072_v61  ;;  %v4183_v10 = vpop.permute.xlu1 %4182  ;;  %13554 = vst [vmem:[#allocation110_spill] sm:$0xff] %v10395_v43  ;;  %v10399_v38 = vpop.f32.mrb[157].mxu1  ;;  %v13557_v56 = vld [vmem:[#allocation22_spill] sm:$0xff]  ;;  %2661 = vmatprep.mubr.f32.mxu1 %v13253_v45  ;;  %v1752_v39 = vadd.f32 %v13562_v14, %v10026_v63 }
 0x35a   : > { %v4243_v54 = vmul.f32 %v4183_v10, %v1728_v16  ;;  %4674 = vperm.xlu0 %7248, %v10392_v19   ;;  %13556 = vst [vmem:[#allocation111_spill] sm:$0xff] %v10399_v38  ;;  %v13559_v16 = vld [vmem:[#allocation60_spill] sm:$0xff]  ;;  %v10407_v36 = vpop.f32.mrb[158].mxu1  ;;  %v13579_v19 = vld [vmem:[#allocation70_spill] sm:$0xff] }
 0x35b   : > { %v4291_v34 = vpop.permute.xlu0 %4290  ;;  %v1875_v10 = vadd.f32 %v13559_v16, %v10357_v26  ;;  %13560 = vst [vmem:[#allocation93_spill] sm:$0xff] %v10407_v36  ;;  %v10410_v43 = vpop.f32.mrb[159].mxu1 }
 0x35c   : > { %v10402_v61 = vadd.f32 %v4243_v54, %v13557_v56  ;;  %v4414_v33 = vmul.f32 %v4291_v34, %v1857_v4  ;;  %4558 = vperm.xlu1 %7246, %v13558_v46   ;;  %13561 = vst [vmem:[#allocation58_spill] sm:$0xff] %v10410_v43  ;;  %v10417_v4 = vld [vmem:[#allocation2 + $0x20] sm:$0xff]  ;;  %v10420_v46 = vpop.f32.mrb[160].mxu1  ;;  %v13565_v56 = vld [vmem:[#allocation61_spill] sm:$0xff]  ;;  %v13567_v43 = vld [vmem:[#allocation7_spill] sm:$0xff] }
 0x35d   : > { %v4191_v13 = vpop.permute.xlu1 %4190  ;;  %13563 = vst [vmem:[#allocation104_spill] sm:$0xff] %v10417_v4  ;;  %13564 = vst [vmem:[#allocation97_spill] sm:$0xff] %v10420_v46  ;;  %6713 = vmatmul.mubr.msk.f32.gmra.mrb[228].mxu1 %vm916_vm0, %v13565_v56  ;;  %v10424_v16 = vpop.f32.mrb[161].mxu1  ;;  %v13572_v56 = vld [vmem:[#allocation87_spill] sm:$0xff] }
 0x35e   : > { %v10415_v38 = vadd.f32 %v4414_v33, %v10187_v60  ;;  %v4245_v54 = vmul.f32 %v4191_v13, %v1740_v1  ;;  %4686 = vperm.xlu0 %7248, %v10417_v4   ;;  %13566 = vst [vmem:[#allocation116_spill] sm:$0xff] %v10424_v16  ;;  %v13569_v60 = vld [vmem:[#allocation55_spill] sm:$0xff]  ;;  %v10432_v33 = vpop.f32.mrb[162].mxu1  ;;  %2667 = vmatprep.mubr.f32.mxu1 %v13253_v45 }
 0x35f   : > { %v4303_v34 = vpop.permute.xlu0 %4302  ;;  %v1887_v13 = vadd.f32 %v13569_v60, %v10357_v26  ;;  %13570 = vst [vmem:[#allocation117_spill] sm:$0xff] %v10432_v33  ;;  %v10435_v46 = vpop.f32.mrb[163].mxu1  ;;  %v1764_v4 = vadd.f32 %v13572_v56, %v10026_v63 }
 0x360   : > { %v10427_v36 = vadd.f32 %v4245_v54, %v13567_v43  ;;  %v4417_v14 = vmul.f32 %v4303_v34, %v1875_v10  ;;  %4566 = vperm.xlu1 %7246, %v13568_v31   ;;  %13571 = vst [vmem:[#allocation99_spill] sm:$0xff] %v10435_v46  ;;  %v10442_v10 = vld [vmem:[#allocation2 + $0x30] sm:$0xff]  ;;  %v10445_v31 = vpop.f32.mrb[164].mxu1  ;;  %v13576_v34 = vld [vmem:[#allocation119_spill] sm:$0xff] }
 0x361   : > { %v4199_v1 = vpop.permute.xlu1 %4198  ;;  %13574 = vst [vmem:[#allocation56_spill] sm:$0xff] %v10442_v10  ;;  %13575 = vst [vmem:[#allocation103_spill] sm:$0xff] %v10445_v31  ;;  %6714 = vmatmul.mubr.msk.f32.gmra.mrb[230].mxu1 %vm916_vm0, %v13576_v34  ;;  %v10449_v60 = vpop.f32.mrb[165].mxu1  ;;  %v13578_v46 = vld [vmem:[#allocation107_spill] sm:$0xff] }
 0x362   : > { %v10440_v16 = vadd.f32 %v4417_v14, %v10225_v62  ;;  %v4247_v43 = vmul.f32 %v4199_v1, %v1752_v39  ;;  %4694 = vperm.xlu0 %7248, %v10442_v10   ;;  %13577 = vst [vmem:[#allocation17_spill] sm:$0xff] %v10449_v60  ;;  %v13580_v62 = vld [vmem:[#allocation29_spill] sm:$0xff]  ;;  %v10457_v14 = vpop.f32.mrb[166].mxu1  ;;  %2673 = vmatprep.mubr.f32.mxu1 %v13253_v45  ;;  %v13583_v34 = vld [vmem:[#allocation23_spill] sm:$0xff] }
 0x363   : > { %v4311_v54 = vpop.permute.xlu0 %4310  ;;  %v1899_v39 = vadd.f32 %v13580_v62, %v10357_v26  ;;  %13581 = vst [vmem:[#allocation121_spill] sm:$0xff] %v10457_v14  ;;  %v10460_v31 = vpop.f32.mrb[167].mxu1  ;;  %v1776_v10 = vadd.f32 %v13583_v34, %v10026_v63  ;;  %v13586_v62 = vld [vmem:[#allocation50_spill] sm:$0xff] }
 0x364   : > { %13573 = vst [vmem:[#allocation86_spill] sm:$0xff] %v10440_v16  ;;  %v10452_v33 = vadd.f32 %v4247_v43, %v13578_v46  ;;  %v4419_v56 = vmul.f32 %v4311_v54, %v1887_v13  ;;  %4574 = vperm.xlu1 %7246, %v13579_v19   ;;  %13582 = vst [vmem:[#allocation19_spill] sm:$0xff] %v10460_v31  ;;  %v10467_v13 = vld [vmem:[#allocation2 + $0x40] sm:$0xff]  ;;  %v10470_v43 = vpop.f32.mrb[168].mxu1  ;;  %v13588_v31 = vld [vmem:[#allocation77_spill] sm:$0xff] }
 0x365   : > { %v4207_v1 = vpop.permute.xlu1 %4206  ;;  %13584 = vst [vmem:[#allocation24_spill] sm:$0xff] %v10467_v13  ;;  %13585 = vst [vmem:[#allocation106_spill] sm:$0xff] %v10470_v43  ;;  %6715 = vmatmul.mubr.msk.f32.gmra.mrb[232].mxu1 %vm916_vm0, %v13586_v62  ;;  %v10474_v14 = vpop.f32.mrb[169].mxu1  ;;  %v13589_v34 = vld [vmem:[#allocation54_spill] sm:$0xff] }
 0x366   : > { %v10465_v60 = vadd.f32 %v4419_v56, %v10243_v12  ;;  %v4249_v46 = vmul.f32 %v4207_v1, %v1764_v4  ;;  %4702 = vperm.xlu0 %7248, %v10467_v13   ;;  %13587 = vst [vmem:[#allocation13_spill] sm:$0xff] %v10474_v14  ;;  %v13590_v12 = vld [vmem:[#allocation38_spill] sm:$0xff]  ;;  %v10482_v56 = vpop.f32.mrb[170].mxu1  ;;  %2679 = vmatprep.mubr.f32.mxu1 %v13253_v45  ;;  %v10490_v13 = vld [vmem:[#allocation2 + $0x50] sm:$0xff] }
 0x367   : > { %v4319_v54 = vpop.permute.xlu0 %4318  ;;  %v1911_v4 = vadd.f32 %v13590_v12, %v10357_v26  ;;  %13591 = vst [vmem:[#allocation11_spill] sm:$0xff] %v10482_v56  ;;  %v10485_v43 = vpop.f32.mrb[171].mxu1  ;;  %13594 = vst [vmem:[#allocation89_spill] sm:$0xff] %v10490_v13 }
 0x368   : > { %v10477_v16 = vadd.f32 %v4249_v46, %v13588_v31  ;;  %v4421_v63 = vmul.f32 %v4319_v54, %v1899_v39  ;;  %4582 = vperm.xlu1 %7246, %v13589_v34   ;;  %13592 = vst [vmem:[#allocation25_spill] sm:$0xff] %v10485_v43  ;;  %v10493_v31 = vpop.f32.mrb[172].mxu1  ;;  %v13596_v39 = vld [vmem:[#allocation108_spill] sm:$0xff]  ;;  %v13597_v34 = vld [vmem:[#allocation71_spill] sm:$0xff] }
 0x369   : > { %v4215_v1 = vpop.permute.xlu1 %4214  ;;  %13595 = vst [vmem:[#allocation12_spill] sm:$0xff] %v10493_v31  ;;  %v1851_v46 = vadd.f32 %v13596_v39, %v10357_v26  ;;  %6716 = vmatmul.mubr.msk.f32.gmra.mrb[234].mxu1 %vm916_vm0, %v13597_v34  ;;  %v10499_v12 = vpop.f32.mrb[173].mxu1 }
 0x36a   : > { %v10488_v62 = vadd.f32 %v4421_v63, %v10267_v55  ;;  %v4251_v14 = vmul.f32 %v4215_v1, %v1776_v10  ;;  %4710 = vperm.xlu0 %7248, %v10490_v13   ;;  %13598 = vst [vmem:[#allocation21_spill] sm:$0xff] %v10499_v12  ;;  %v10504_v10 = vld [vmem:[#allocation2 + $0xe0] sm:$0xff]  ;;  %v10509_v31 = vpop.f32.mrb[174].mxu1  ;;  %2685 = vmatprep.mubr.f32.mxu1 %v13253_v45 }
 0x36b   : > { %v4327_v54 = vpop.permute.xlu0 %4326  ;;  %v13599_v63 = vld [vmem:[#allocation34_spill] sm:$0xff]  ;;  %13600 = vst [vmem:[#allocation8_spill] sm:$0xff] %v10509_v31  ;;  %v10512_v39 = vpop.f32.mrb[175].mxu1  ;;  %v13606_v31 = vld [vmem:[#allocation57_spill] sm:$0xff] }
 0x36c   : > { %13593 = vst [vmem:[#allocation114_spill] sm:$0xff] %v10488_v62  ;;  %v10502_v43 = vadd.f32 %v4251_v14, %v10055_v50  ;;  %v4423_v55 = vmul.f32 %v4327_v54, %v1911_v4  ;;  %4590 = vperm.xlu1 %7246, %v10504_v10   ;;  %v1923_v1 = vadd.f32 %v13599_v63, %v10357_v26  ;;  %13601 = vst [vmem:[#allocation100_spill] sm:$0xff] %v10512_v39  ;;  %v10517_v12 = vld [vmem:[#allocation2 + $0x60] sm:$0xff]  ;;  %v10520_v14 = vpop.f32.mrb[176].mxu1  ;;  %v13605_v4 = vld [vmem:[#allocation53_spill] sm:$0xff] }
 0x36d   : > { %13603 = vst [vmem:[#allocation18_spill] sm:$0xff] %v10517_v12  ;;  %13604 = vst [vmem:[#allocation20_spill] sm:$0xff] %v10520_v14  ;;  %v1863_v54 = vadd.f32 %v13605_v4, %v10357_v26  ;;  %6717 = vmatmul.mubr.msk.f32.gmra.mrb[236].mxu1 %vm916_vm0, %v13606_v31  ;;  %v10526_v13 = vpop.f32.mrb[177].mxu1  ;;  %v10542_v31 = vld [vmem:[#allocation2 + $0x70] sm:$0xff]  ;;  %v13614_v4 = vld [vmem:[#allocation6_spill] sm:$0xff] }
 0x36e   : > { %v10515_v34 = vadd.f32 %v4423_v55, %v10288_v30  ;;  %4718 = vperm.xlu0 %7248, %v10517_v12   ;;  %v4287_v50 = vpop.permute.xlu1 %4286  ;;  %13607 = vst [vmem:[#allocation16_spill] sm:$0xff] %v10526_v13  ;;  %v13608_v30 = vld [vmem:[#allocation78_spill] sm:$0xff]  ;;  %v13609_v55 = vld [vmem:[#allocation41_spill] sm:$0xff]  ;;  %v10531_v12 = vpop.f32.mrb[178].mxu1  ;;  %2691 = vmatprep.mubr.f32.mxu1 %v13253_v45  ;;  %13612 = vst [vmem:[#allocation109_spill] sm:$0xff] %v10542_v31 }
 0x36f   : > { %v4413_v63 = vmul.f32 %v4287_v50, %v1851_v46  ;;  %v4335_v56 = vpop.permute.xlu0 %4334  ;;  %13610 = vst [vmem:[#allocation27_spill] sm:$0xff] %v10531_v12  ;;  %v10537_v46 = vpop.f32.mrb[179].mxu1  ;;  %v13615_v62 = vld [vmem:[#allocation68_spill] sm:$0xff] }
 0x370   : > { %13602 = vst [vmem:[#allocation15_spill] sm:$0xff] %v10515_v34  ;;  %v4425_v39 = vmul.f32 %v4335_v56, %v1923_v1  ;;  %4598 = vperm.xlu1 %7246, %v13608_v30   ;;  %v1935_v34 = vadd.f32 %v13609_v55, %v10357_v26  ;;  %13611 = vst [vmem:[#allocation22_spill] sm:$0xff] %v10537_v46  ;;  %v10545_v1 = vpop.f32.mrb[180].mxu1  ;;  %v1869_v55 = vadd.f32 %v13614_v4, %v10357_v26 }
 0x371   : > { %v10535_v14 = vadd.f32 %v4413_v63, %v10085_v11  ;;  %13613 = vst [vmem:[#allocation60_spill] sm:$0xff] %v10545_v1  ;;  %6718 = vmatmul.mubr.msk.f32.gmra.mrb[238].mxu1 %vm916_vm0, %v13615_v62  ;;  %v10551_v11 = vpop.f32.mrb[181].mxu1 }
 0x372   : > { %v10540_v50 = vadd.f32 %v4425_v39, %v10303_v49  ;;  %4726 = vperm.xlu0 %7248, %v10542_v31   ;;  %v4295_v56 = vpop.permute.xlu1 %4294  ;;  %13616 = vst [vmem:[#allocation96_spill] sm:$0xff] %v10551_v11  ;;  %v13617_v49 = vmov 8   ;;  %v13618_v39 = vld [vmem:[#allocation62_spill] sm:$0xff]  ;;  %v10556_v31 = vpop.f32.mrb[182].mxu1  ;;  %2697 = vmatprep.mubr.f32.mxu1 %v13253_v45 }
 0x373   : > { %v4415_v13 = vmul.f32 %v4295_v56, %v1863_v54  ;;  %v4343_v12 = vpop.permute.xlu0 %4342  ;;  %v1947_v46 = vadd.f32 %v13618_v39, %v10357_v26  ;;  %13619 = vst [vmem:[#allocation61_spill] sm:$0xff] %v10556_v31  ;;  %v10562_v54 = vld [vmem:[#allocation2] sm:$0xff]  ;;  %v10565_v62 = vpop.f32.mrb[183].mxu1 }
 0x374   : > { %v4427_v63 = vmul.f32 %v4343_v12, %v1935_v34  ;;  %7247 = vset.pattern.permute.xlu1 %v13617_v49  ;;  %13620 = vst [vmem:[#allocation7_spill] sm:$0xff] %v10565_v62  ;;  %v10570_v34 = vld [vmem:[#allocation2 + $0x80] sm:$0xff]  ;;  %v10573_v4 = vpop.f32.mrb[184].mxu1  ;;  %v13624_v49 = vld [vmem:[#allocation32_spill] sm:$0xff] }
 0x375   : > { %v10560_v1 = vadd.f32 %v4415_v13, %v10207_v29  ;;  %4670 = vperm.xlu1 %7247, %v10562_v54   ;;  %13622 = vst [vmem:[#allocation55_spill] sm:$0xff] %v10570_v34  ;;  %13623 = vst [vmem:[#allocation87_spill] sm:$0xff] %v10573_v4  ;;  %v1881_v29 = vadd.f32 %v13624_v49, %v10357_v26  ;;  %v13625_v11 = vld [vmem:[#allocation46_spill] sm:$0xff]  ;;  %v10579_v31 = vpop.f32.mrb[185].mxu1 }
 0x376   : > { %v10568_v12 = vadd.f32 %v4427_v63, %v10318_v51  ;;  %4734 = vperm.xlu0 %7248, %v10570_v34   ;;  %v4299_v56 = vpop.permute.xlu1 %4298  ;;  %6719 = vmatmul.mubr.msk.f32.gmra.mrb[240].mxu1 %vm916_vm0, %v13625_v11  ;;  %13626 = vst [vmem:[#allocation119_spill] sm:$0xff] %v10579_v31  ;;  %v13627_v51 = vld [vmem:[#allocation123_spill] sm:$0xff]  ;;  %v10589_v34 = vld [vmem:[#allocation2 + $0x10] sm:$0xff] }
 0x377   : > { %v4416_v13 = vmul.f32 %v4299_v56, %v1869_v55  ;;  %v4351_v39 = vpop.permute.xlu0 %4350  ;;  %v1959_v63 = vadd.f32 %v13627_v51, %v10357_v26  ;;  %2703 = vmatprep.mubr.f32.mxu1 %v13253_v45  ;;  %v13634_v31 = vld [vmem:[#allocation124_spill] sm:$0xff] }
 0x378   : > { %13621 = vst [vmem:[#allocation52_spill] sm:$0xff] %v10568_v12  ;;  %v4429_v62 = vmul.f32 %v4351_v39, %v1947_v46  ;;  %v10583_v12 = vpop.f32.mrb[186].mxu1  ;;  %v10597_v46 = vld [vmem:[#allocation2 + $0x90] sm:$0xff]  ;;  %v13633_v39 = vld [vmem:[#allocation10_spill] sm:$0xff] }
 0x379   : > { %13628 = vst [vmem:[#allocation107_spill] sm:$0xff] %v10583_v12  ;;  %v10587_v4 = vadd.f32 %v4416_v13, %v10108_v3  ;;  %4678 = vperm.xlu1 %7247, %v10589_v34   ;;  %v10592_v55 = vpop.f32.mrb[187].mxu1  ;;  %13631 = vst [vmem:[#allocation23_spill] sm:$0xff] %v10597_v46  ;;  %v1893_v3 = vadd.f32 %v13633_v39, %v10357_v26 }
 0x37a   : > { %13629 = vst [vmem:[#allocation70_spill] sm:$0xff] %v10592_v55  ;;  %v10595_v11 = vadd.f32 %v4429_v62, %v10333_v32  ;;  %4742 = vperm.xlu0 %7248, %v10597_v46   ;;  %v4307_v56 = vpop.permute.xlu1 %4306  ;;  %v10600_v49 = vpop.f32.mrb[188].mxu1  ;;  %6720 = vmatmul.mubr.msk.f32.gmra.mrb[242].mxu1 %vm916_vm0, %v13634_v31  ;;  %v13636_v32 = vld [vmem:[#allocation76_spill] sm:$0xff]  ;;  %v10616_v46 = vld [vmem:[#allocation2 + $0x18] sm:$0xff] }
 0x37b   : > { %13632 = vst [vmem:[#allocation50_spill] sm:$0xff] %v10600_v49  ;;  %v4418_v13 = vmul.f32 %v4307_v56, %v1881_v29  ;;  %v4359_v51 = vpop.permute.xlu0 %4358  ;;  %v10606_v12 = vpop.f32.mrb[189].mxu1  ;;  %v1971_v62 = vadd.f32 %v13636_v32, %v10357_v26  ;;  %2709 = vmatprep.mubr.f32.mxu1 %v13253_v45 }
 0x37c   : > { %13630 = vst [vmem:[#allocation29_spill] sm:$0xff] %v10595_v11  ;;  %13635 = vst [vmem:[#allocation77_spill] sm:$0xff] %v10606_v12  ;;  %v4431_v55 = vmul.f32 %v4359_v51, %v1959_v63  ;;  %v10610_v11 = vpop.f32.mrb[190].mxu1  ;;  %v10624_v63 = vld [vmem:[#allocation2 + $0xa0] sm:$0xff]  ;;  %v13642_v51 = vld [vmem:[#allocation51_spill] sm:$0xff] }
 0x37d   : > { %13637 = vst [vmem:[#allocation54_spill] sm:$0xff] %v10610_v11  ;;  %v10614_v49 = vadd.f32 %v4418_v13, %v10126_v9  ;;  %4682 = vperm.xlu1 %7247, %v10616_v46   ;;  %v10619_v29 = vpop.f32.mrb[191].mxu1  ;;  %13640 = vst [vmem:[#allocation71_spill] sm:$0xff] %v10624_v63  ;;  %v1905_v9 = vadd.f32 %v13642_v51, %v10357_v26  ;;  %v13643_v12 = vld [vmem:[#allocation128_spill] sm:$0xff] }
 0x37e   : > { %13638 = vst [vmem:[#allocation38_spill] sm:$0xff] %v10619_v29  ;;  %v10622_v31 = vadd.f32 %v4431_v55, %v10351_v57  ;;  %4750 = vperm.xlu0 %7248, %v10624_v63   ;;  %v4315_v56 = vpop.permute.xlu1 %4314  ;;  %v10627_v39 = vpop.f32.mrb[192].mxu1  ;;  %6721 = vmatmul.mubr.msk.f32.gmra.mrb[244].mxu1 %vm916_vm0, %v13643_v12  ;;  %v13645_v57 = vld [vmem:[#allocation43_spill] sm:$0xff]  ;;  %v13650_v51 = vld [vmem:[#allocation64_spill] sm:$0xff] }
 0x37f   : > { %13641 = vst [vmem:[#allocation34_spill] sm:$0xff] %v10627_v39  ;;  %v4420_v13 = vmul.f32 %v4315_v56, %v1893_v3  ;;  %v4367_v32 = vpop.permute.xlu0 %4366  ;;  %v10633_v11 = vpop.f32.mrb[193].mxu1  ;;  %v1983_v55 = vadd.f32 %v13645_v57, %v10357_v26  ;;  %2715 = vmatprep.mubr.f32.mxu1 %v13253_v45  ;;  %v10643_v63 = vld [vmem:[#allocation2 + $0x28] sm:$0xff] }
 0x380   : > { %13639 = vst [vmem:[#allocation108_spill] sm:$0xff] %v10622_v31  ;;  %13644 = vst [vmem:[#allocation53_spill] sm:$0xff] %v10633_v11  ;;  %v4433_v29 = vmul.f32 %v4367_v32, %v1971_v62  ;;  %v10637_v31 = vpop.f32.mrb[194].mxu1  ;;  %v10651_v62 = vld [vmem:[#allocation2 + $0xb0] sm:$0xff]  ;;  %v1917_v32 = vadd.f32 %v13650_v51, %v10357_v26 }
 0x381   : > { %13646 = vst [vmem:[#allocation57_spill] sm:$0xff] %v10637_v31  ;;  %v10641_v39 = vadd.f32 %v4420_v13, %v10147_v35  ;;  %4690 = vperm.xlu1 %7247, %v10643_v63   ;;  %v10646_v3 = vpop.f32.mrb[195].mxu1  ;;  %13649 = vst [vmem:[#allocation6_spill] sm:$0xff] %v10651_v62  ;;  %v13651_v13 = vld [vmem:[#allocation42_spill] sm:$0xff] }
 0x382   : > { %13647 = vst [vmem:[#allocation78_spill] sm:$0xff] %v10646_v3  ;;  %v10649_v12 = vadd.f32 %v4433_v29, %v10377_v52  ;;  %4758 = vperm.xlu0 %7248, %v10651_v62   ;;  %v4323_v56 = vpop.permute.xlu1 %4322  ;;  %6722 = vmatmul.mubr.msk.f32.gmra.mrb[246].mxu1 %vm916_vm0, %v13651_v13  ;;  %v10658_v11 = vpop.f32.mrb[196].mxu1  ;;  %v13653_v3 = vld [vmem:[#allocation48_spill] sm:$0xff] }
 0x383   : > { %v4422_v57 = vmul.f32 %v4323_v56, %v1905_v9  ;;  %v4375_v35 = vpop.permute.xlu0 %4374  ;;  %13652 = vst [vmem:[#allocation68_spill] sm:$0xff] %v10658_v11  ;;  %v1995_v52 = vadd.f32 %v13653_v3, %v10357_v26  ;;  %v10662_v29 = vpop.f32.mrb[197].mxu1  ;;  %2721 = vmatprep.mubr.f32.mxu1 %v13253_v45  ;;  %v13655_v56 = vld [vmem:[#allocation59_spill] sm:$0xff] }
 0x384   : > { %13648 = vst [vmem:[#allocation41_spill] sm:$0xff] %v10649_v12  ;;  %v4435_v31 = vmul.f32 %v4375_v35, %v1983_v55  ;;  %13654 = vst [vmem:[#allocation62_spill] sm:$0xff] %v10662_v29  ;;  %v10668_v12 = vld [vmem:[#allocation2 + $0x38] sm:$0xff]  ;;  %v1929_v3 = vadd.f32 %v13655_v56, %v10357_v26  ;;  %v10677_v13 = vpop.f32.mrb[198].mxu1  ;;  %v13657_v29 = vld [vmem:[#allocation131_spill] sm:$0xff] }
 0x385   : > { %v10666_v62 = vadd.f32 %v4422_v57, %v10171_v5  ;;  %4698 = vperm.xlu1 %7247, %v10668_v12   ;;  %13656 = vst [vmem:[#allocation32_spill] sm:$0xff] %v10677_v13  ;;  %v2007_v57 = vadd.f32 %v10073_v0, %v10357_v26  ;;  %v10683_v11 = vpop.f32.mrb[199].mxu1  ;;  %v13659_v0 = vld [vmem:[#allocation36_spill] sm:$0xff] }
 0x386   : > { %v10672_v9 = vadd.f32 %v4435_v31, %v10402_v61  ;;  %4766 = vperm.xlu0 %7248, %v13579_v19   ;;  %v4331_v55 = vpop.permute.xlu1 %4330  ;;  %6723 = vmatmul.mubr.msk.f32.gmra.mrb[248].mxu1 %vm916_vm0, %v13657_v29  ;;  %13658 = vst [vmem:[#allocation46_spill] sm:$0xff] %v10683_v11  ;;  %v10689_v61 = vld [vmem:[#allocation2 + $0x48] sm:$0xff]  ;;  %v1941_v29 = vadd.f32 %v13659_v0, %v10357_v26  ;;  %v13665_v11 = vld [vmem:[#allocation49_spill] sm:$0xff] }
 0x387   : > { %v4424_v51 = vmul.f32 %v4331_v55, %v1917_v32  ;;  %v4383_v35 = vpop.permute.xlu0 %4382  ;;  %2727 = vmatprep.mubr.f32.mxu1 %v13253_v45  ;;  %v10695_v32 = vld [vmem:[#allocation2 + $0xd0] sm:$0xff] }
 0x388   : > { %v4437_v5 = vmul.f32 %v4383_v35, %v1995_v52  ;;  %v10700_v35 = vpop.f32.mrb[200].mxu1 }
 0x389   : > { %v10687_v19 = vadd.f32 %v4424_v51, %v10195_v24  ;;  %4706 = vperm.xlu1 %7247, %v10689_v61   ;;  %13660 = vst [vmem:[#allocation123_spill] sm:$0xff] %v10700_v35  ;;  %v13661_v24 = vld [vmem:[#allocation134_spill] sm:$0xff] }
 0x38a   : > { %v10693_v31 = vadd.f32 %v4437_v5, %v10427_v36  ;;  %4774 = vperm.xlu0 %7248, %v10695_v32   ;;  %v4339_v52 = vpop.permute.xlu1 %4338  ;;  %6724 = vmatmul.mubr.msk.f32.gmra.mrb[250].mxu1 %vm916_vm0, %v13661_v24  ;;  %v2019_v36 = vadd.f32 %v10118_v37, %v10357_v26  ;;  %v10706_v5 = vpop.f32.mrb[201].mxu1  ;;  %v13663_v37 = vld [vmem:[#allocation122_spill] sm:$0xff] }
 0x38b   : > { %v4426_v55 = vmul.f32 %v4339_v52, %v1929_v3  ;;  %v4391_v56 = vpop.permute.xlu0 %4390  ;;  %13662 = vst [vmem:[#allocation10_spill] sm:$0xff] %v10706_v5  ;;  %2733 = vmatprep.mubr.f32.mxu1 %v13253_v45  ;;  %v10713_v3 = vld [vmem:[#allocation2 + $0x58] sm:$0xff]  ;;  %v1953_v0 = vadd.f32 %v13663_v37, %v10357_v26  ;;  %v10722_v5 = vpop.f32.mrb[202].mxu1 }
 0x38c   : > { %v4439_v51 = vmul.f32 %v4391_v56, %v2007_v57  ;;  %13664 = vst [vmem:[#allocation124_spill] sm:$0xff] %v10722_v5  ;;  %v10728_v35 = vpop.f32.mrb[203].mxu1  ;;  %v10760_v5 = vld [vmem:[#allocation2 + $0x78] sm:$0xff] }
 0x38d   : > { %v10711_v13 = vadd.f32 %v4426_v55, %v10216_v15  ;;  %4714 = vperm.xlu1 %7247, %v10713_v3   ;;  %v2031_v55 = vadd.f32 %v10177_v41, %v10357_v26  ;;  %13666 = vst [vmem:[#allocation76_spill] sm:$0xff] %v10728_v35 }
 0x38e   : > { %v10717_v52 = vadd.f32 %v4439_v51, %v10452_v33  ;;  %4782 = vperm.xlu0 %7248, %v10504_v10   ;;  %v4347_v57 = vpop.permute.xlu1 %4346  ;;  %6725 = vmatmul.mubr.msk.f32.gmra.mrb[252].mxu1 %vm916_vm0, %v13665_v11  ;;  %v13667_v33 = vsub.s32 7, %v13464_v21 }
 0x38f   : > { %v4428_v56 = vmul.f32 %v4347_v57, %v1941_v29  ;;  %v4399_v24 = vpop.permute.xlu0 %4398  ;;  %2739 = vmatprep.mubr.f32.mxu1 %v13253_v45  ;;  %v10739_v57 = vld [vmem:[#allocation2 + $0x68] sm:$0xff] }
 0x390   : > { %v4441_v15 = vmul.f32 %v4399_v24, %v2019_v36  ;;  %v10734_v51 = vrot.slane %v10021_v23, %v13667_v33  ;;  %v13668_v36 = vld [vmem:[#allocation125_spill] sm:$0xff]  ;;  %v10748_v23 = vpop.f32.mrb[204].mxu1  ;;  %v13670_v33 = vld [vmem:[#allocation135_spill] sm:$0xff] }
 0x391   : > { %v10737_v29 = vadd.f32 %v4428_v56, %v10234_v28  ;;  %4722 = vperm.xlu1 %7247, %v10739_v57   ;;  %v1965_v37 = vadd.f32 %v13668_v36, %v10357_v26  ;;  %13669 = vst [vmem:[#allocation51_spill] sm:$0xff] %v10748_v23  ;;  %v10752_v56 = vpop.f32.mrb[205].mxu1 }
 0x392   : > { %v10743_v11 = vadd.f32 %v4441_v15, %v10477_v16  ;;  %4790 = vperm.xlu0 %7248, %v13608_v30   ;;  %v4355_v41 = vpop.permute.xlu1 %4354  ;;  %6726 = vmatmul.mubr.msk.f32.gmra.mrb[254].mxu1 %vm916_vm0, %v13670_v33  ;;  %13671 = vst [vmem:[#allocation128_spill] sm:$0xff] %v10752_v56  ;;  %v13672_v16 = vld [vmem:[#allocation30_spill] sm:$0xff]  ;;  %v13677_v56 = vld [vmem:[#allocation132_spill] sm:$0xff] }
 0x393   : > { %v4430_v24 = vmul.f32 %v4355_v41, %v1953_v0  ;;  %v4407_v35 = vpop.permute.xlu0 %4406  ;;  %2745 = vmatprep.mubr.f32.mxu1 %v13253_v45  ;;  %v1853_v15 = vadd.f32 %v13672_v16, %v10734_v51  ;;  %v13097_v41 = vmov 9   ;;  %v10770_v16 = vpop.f32.mrb[206].mxu1 }
 0x394   : > { %v4443_v28 = vmul.f32 %v4407_v35, %v2031_v55  ;;  %v13673_v55 = vld [vmem:[#allocation129_spill] sm:$0xff]  ;;  %13674 = vst [vmem:[#allocation43_spill] sm:$0xff] %v10770_v16 }
 0x395   : > { %v10758_v30 = vadd.f32 %v4430_v24, %v10252_v18  ;;  %4730 = vperm.xlu1 %7247, %v10760_v5   ;;  %v1977_v36 = vadd.f32 %v13673_v55, %v10357_v26  ;;  %v10774_v24 = vpop.f32.mrb[207].mxu1 }
 0x396   : > { %v10764_v0 = vadd.f32 %v4443_v28, %v10502_v43  ;;  %7249 = vset.pattern.permute.xlu0 %v13097_v41  ;;  %v4363_v35 = vpop.permute.xlu1 %4362  ;;  %6727 = vmatmul.mubr.msk.f32.gmra.mrb[0].mxu1 %vm916_vm0, %v10059_v40  ;;  %13675 = vst [vmem:[#allocation64_spill] sm:$0xff] %v10774_v24  ;;  %v13676_v43 = vld [vmem:[#allocation118_spill] sm:$0xff]  ;;  %v1989_v40 = vadd.f32 %v13677_v56, %v10357_v26 }
 0x397   : > { %v4432_v33 = vmul.f32 %v4363_v35, %v1965_v37  ;;  %4862 = vperm.xlu0 %7249, %v10562_v54   ;;  %2751 = vmatprep.mubr.f32.mxu1 %v13253_v45  ;;  %v1871_v28 = vadd.f32 %v13676_v43, %v10734_v51  ;;  %v10782_v37 = vld [vmem:[#allocation2 + $0x88] sm:$0xff]  ;;  %v10791_v16 = vpop.f32.mrb[208].mxu1 }
 0x398   : > { %v4479_v18 = vpop.permute.xlu0 %4478  ;;  %13678 = vst [vmem:[#allocation42_spill] sm:$0xff] %v10791_v16 }
 0x399   : > { %v10780_v41 = vadd.f32 %v4432_v33, %v10271_v58  ;;  %v4605_v55 = vmul.f32 %v4479_v18, %v1853_v15  ;;  %4738 = vperm.xlu1 %7247, %v10782_v37   ;;  %v10795_v15 = vpop.f32.mrb[209].mxu1  ;;  %v13680_v33 = vld [vmem:[#allocation33_spill] sm:$0xff] }
 0x39a   : > { %v4371_v35 = vpop.permute.xlu1 %4370  ;;  %6728 = vmatmul.mubr.msk.f32.gmra.mrb[2].mxu1 %vm916_vm0, %v10080_v48  ;;  %13679 = vst [vmem:[#allocation48_spill] sm:$0xff] %v10795_v15  ;;  %v1883_v18 = vadd.f32 %v13680_v33, %v10734_v51  ;;  %v13684_v33 = vld [vmem:[#allocation73_spill] sm:$0xff] }
 0x39b   : > { %v10788_v23 = vadd.f32 %v4605_v55, %v10535_v14  ;;  %v4434_v24 = vmul.f32 %v4371_v35, %v1977_v36  ;;  %4874 = vperm.xlu0 %7249, %v10616_v46   ;;  %2757 = vmatprep.mubr.f32.mxu1 %v13253_v45  ;;  %v10803_v36 = vld [vmem:[#allocation2 + $0x98] sm:$0xff]  ;;  %v13682_v55 = vld [vmem:[#allocation136_spill] sm:$0xff]  ;;  %v10812_v16 = vpop.f32.mrb[210].mxu1 }
 0x39c   : > { %v4491_v58 = vpop.permute.xlu0 %4490  ;;  %13681 = vst [vmem:[#allocation59_spill] sm:$0xff] %v10803_v36  ;;  %v2001_v48 = vadd.f32 %v13682_v55, %v10357_v26  ;;  %13683 = vst [vmem:[#allocation131_spill] sm:$0xff] %v10812_v16  ;;  %v13687_v16 = vld [vmem:[#allocation90_spill] sm:$0xff] }
 0x39d   : > { %v10801_v56 = vadd.f32 %v4434_v24, %v10292_v7  ;;  %v4608_v14 = vmul.f32 %v4491_v58, %v1871_v28  ;;  %4746 = vperm.xlu1 %7247, %v10803_v36   ;;  %v13685_v24 = vld [vmem:[#allocation28_spill] sm:$0xff] }
 0x39e   : > { %v4379_v43 = vpop.permute.xlu1 %4378  ;;  %6729 = vmatmul.mubr.msk.f32.gmra.mrb[4].mxu1 %vm916_vm0, %v13684_v33  ;;  %v1895_v28 = vadd.f32 %v13685_v24, %v10734_v51 }
 0x39f   : > { %v10809_v35 = vadd.f32 %v4608_v14, %v10587_v4  ;;  %v4436_v15 = vmul.f32 %v4379_v43, %v1989_v40  ;;  %4882 = vperm.xlu0 %7249, %v10643_v63   ;;  %2763 = vmatprep.mubr.f32.mxu1 %v13253_v45  ;;  %v13686_v40 = vld [vmem:[#allocation79_spill] sm:$0xff] }
 0x3a0   : > { %v4499_v7 = vpop.permute.xlu0 %4498  ;;  %v2013_v14 = vadd.f32 %v13686_v40, %v10357_v26 }
 0x3a1   : > { %v10820_v58 = vadd.f32 %v4436_v15, %v10307_v59  ;;  %v4610_v55 = vmul.f32 %v4499_v7, %v1883_v18  ;;  %4754 = vperm.xlu1 %7247, %v10070_v2   ;;  %v13688_v59 = vld [vmem:[#allocation9_spill] sm:$0xff] }
 0x3a2   : > { %v4387_v4 = vpop.permute.xlu1 %4386  ;;  %6730 = vmatmul.mubr.msk.f32.gmra.mrb[6].mxu1 %vm916_vm0, %v13687_v16  ;;  %v1907_v15 = vadd.f32 %v13688_v59, %v10734_v51  ;;  %v2037_v59 = vadd.f32 %v10204_v47, %v10357_v26 }
 0x3a3   : > { %v10826_v43 = vadd.f32 %v4610_v55, %v10614_v49  ;;  %v4438_v33 = vmul.f32 %v4387_v4, %v2001_v48  ;;  %4890 = vperm.xlu0 %7249, %v10668_v12   ;;  %2769 = vmatprep.mubr.f32.mxu1 %v13253_v45  ;;  %v13689_v48 = vld [vmem:[#allocation95_spill] sm:$0xff]  ;;  %v13690_v4 = vld [vmem:[#allocation88_spill] sm:$0xff] }
 0x3a4   : > { %v4507_v24 = vpop.permute.xlu0 %4506  ;;  %v2025_v7 = vadd.f32 %v13689_v48, %v10357_v26  ;;  %v13694_v26 = vld [vmem:[#allocation112_spill] sm:$0xff] }
 0x3a5   : > { %v10835_v2 = vadd.f32 %v4438_v33, %v10322_v44  ;;  %v4612_v18 = vmul.f32 %v4507_v24, %v1895_v28  ;;  %4762 = vperm.xlu1 %7247, %v10093_v27   ;;  %v13691_v44 = vld [vmem:[#allocation65_spill] sm:$0xff] }
 0x3a6   : > { %v4395_v49 = vpop.permute.xlu1 %4394  ;;  %6731 = vmatmul.mubr.msk.f32.gmra.mrb[8].mxu1 %vm916_vm0, %v13690_v4  ;;  %v1919_v28 = vadd.f32 %v13691_v44, %v10734_v51 }
 0x3a7   : > { %v10841_v55 = vadd.f32 %v4612_v18, %v10641_v39  ;;  %v4440_v16 = vmul.f32 %v4395_v49, %v2013_v14  ;;  %4898 = vperm.xlu0 %7249, %v10689_v61   ;;  %2775 = vmatprep.mubr.f32.mxu1 %v13253_v45  ;;  %v13692_v18 = vld [vmem:[#allocation113_spill] sm:$0xff] }
 0x3a8   : > { %v4515_v40 = vpop.permute.xlu0 %4514 }
 0x3a9   : > { %v10850_v27 = vadd.f32 %v4440_v16, %v10338_v22  ;;  %v4614_v33 = vmul.f32 %v4515_v40, %v1907_v15  ;;  %4770 = vperm.xlu1 %7247, %v10115_v20   ;;  %v13693_v22 = vld [vmem:[#allocation40_spill] sm:$0xff]  ;;  %v13695_v16 = vld [vmem:[#allocation31_spill] sm:$0xff] }
 0x3aa   : > { %v4403_v39 = vpop.permute.xlu1 %4402  ;;  %6732 = vmatmul.mubr.msk.f32.gmra.mrb[10].mxu1 %vm916_vm0, %v13692_v18  ;;  %v1931_v15 = vadd.f32 %v13693_v22, %v10734_v51  ;;  %v1859_v4 = vadd.f32 %v13695_v16, %v10734_v51  ;;  %v13700_v18 = vld [vmem:[#allocation26_spill] sm:$0xff]  ;;  %v13702_v16 = vld [vmem:[#allocation115_spill] sm:$0xff] }
 0x3ab   : > { %v10854_v14 = vadd.f32 %v4614_v33, %v10666_v62  ;;  %v4442_v24 = vmul.f32 %v4403_v39, %v2025_v7  ;;  %4906 = vperm.xlu0 %7249, %v10713_v3   ;;  %2781 = vmatprep.mubr.f32.mxu1 %v13253_v45 }
 0x3ac   : > { %v4523_v49 = vpop.permute.xlu0 %4522 }
 0x3ad   : > { %v10865_v20 = vadd.f32 %v4442_v24, %v10362_v53  ;;  %v4616_v62 = vmul.f32 %v4523_v49, %v1919_v28  ;;  %4778 = vperm.xlu1 %7247, %v10138_v6   ;;  %v13696_v53 = vld [vmem:[#allocation37_spill] sm:$0xff]  ;;  %v10883_v28 = vpop.f32.mrb[211].mxu1  ;;  %v13698_v24 = vld [vmem:[#allocation80_spill] sm:$0xff] }
 0x3ae   : > { %v4411_v48 = vpop.permute.xlu1 %4410  ;;  %6733 = vmatmul.mubr.msk.f32.gmra.mrb[12].mxu1 %vm916_vm0, %v13694_v26  ;;  %v1943_v44 = vadd.f32 %v13696_v53, %v10734_v51  ;;  %13697 = vst [vmem:[#allocation36_spill] sm:$0xff] %v10883_v28  ;;  %v13726_v28 = vld [vmem:[#allocation24_spill] sm:$0xff] }
 0x3af   : > { %v10869_v7 = vadd.f32 %v4616_v62, %v10687_v19  ;;  %v4444_v47 = vmul.f32 %v4411_v48, %v2037_v59  ;;  %4914 = vperm.xlu0 %7249, %v10739_v57   ;;  %2787 = vmatprep.mubr.f32.mxu1 %v13253_v45  ;;  %v10891_v59 = vpop.f32.mrb[212].mxu1  ;;  %v831_v62 = vld [vmem:[%s13009_s3 + $0x78] sm:$0xff] }
 0x3b0   : > { %v4531_v40 = vpop.permute.xlu0 %4530  ;;  %13699 = vst [vmem:[#allocation134_spill] sm:$0xff] %v10891_v59  ;;  %2812 = vmatprep.subr.mxu0 %v831_v62 }
 0x3b1   : > { %v10880_v6 = vadd.f32 %v4444_v47, %v10385_v25  ;;  %v4618_v19 = vmul.f32 %v4531_v40, %v1931_v15  ;;  %4786 = vperm.xlu1 %7247, %v10162_v42   ;;  %v1865_v25 = vadd.f32 %v13700_v18, %v10734_v51  ;;  %v13701_v42 = vld [vmem:[#allocation47_spill] sm:$0xff] }
 0x3b2   : > { %6734 = vmatmul.mubr.msk.f32.gmra.mrb[14].mxu1 %vm916_vm0, %v13698_v24  ;;  %v1955_v15 = vadd.f32 %v13701_v42, %v10734_v51  ;;  %v13705_v24 = vld [vmem:[#allocation91_spill] sm:$0xff] }
 0x3b3   : > { %v10886_v33 = vadd.f32 %v4618_v19, %v10711_v13  ;;  %4922 = vperm.xlu0 %7249, %v10760_v5   ;;  %v4483_v39 = vpop.permute.xlu1 %4482  ;;  %2793 = vmatprep.mubr.f32.mxu1 %v13253_v45  ;;  %v13704_v19 = vmov 9  }
 0x3b4   : > { %v4606_v49 = vmul.f32 %v4483_v39, %v1859_v4  ;;  %v4539_v22 = vpop.permute.xlu0 %4538  ;;  %v1877_v4 = vadd.f32 %v13702_v16, %v10734_v51 }
 0x3b5   : > { %v4620_v13 = vmul.f32 %v4539_v22, %v1943_v44  ;;  %4794 = vperm.xlu1 %7247, %v10181_v8   ;;  %v830_v8 = vld [vmem:[%s13009_s3 + $0x70] sm:$0xff] }
 0x3b6   : > { %v10903_v48 = vadd.f32 %v4606_v49, %v10415_v38  ;;  %6735 = vmatmul.mubr.msk.f32.gmra.mrb[16].mxu1 %vm916_vm0, %v10229_v17  ;;  %2813 = vmatpush1.msra.mxu0 %v830_v8  ;;  %v7407_v17 = vld [vmem:[%s7710_s29] sm:$0xff]  ;;  %v13707_v22 = vld [vmem:[#allocation120_spill] sm:$0xff] }
 0x3b7   : > { %v10906_v47 = vadd.f32 %v4620_v13, %v10737_v29  ;;  %4930 = vperm.xlu0 %7249, %v10782_v37   ;;  %v4487_v26 = vpop.permute.xlu1 %4486  ;;  %2799 = vmatprep.mubr.f32.mxu1 %v13253_v45  ;;  %v13703_v29 = vld [vmem:[#allocation126_spill] sm:$0xff]  ;;  %v1889_v42 = vadd.f32 %v13707_v22, %v10734_v51 }
 0x3b8   : > { %v4607_v40 = vmul.f32 %v4487_v26, %v1865_v25  ;;  %v4547_v38 = vpop.permute.xlu0 %4546  ;;  %v1967_v53 = vadd.f32 %v13703_v29, %v10734_v51  ;;  %6738 = vmatmul.mubr.msk.f32.vlgmr.msra.gmra.mrb[202].mxu0 %vm916_vm0, %v7407_v17  ;;  %v13706_v49 = vld [vmem:[#allocation98_spill] sm:$0xff] }
 0x3b9   : > { %v4622_v44 = vmul.f32 %v4547_v38, %v1955_v15  ;;  %7250 = vset.pattern.permute.xlu1 %v13704_v19  ;;  %2882 = vmatprep.mubr.f32.mxu0 %v13253_v45  ;;  %v13709_v8 = vld [vmem:[#allocation86_spill] sm:$0xff] }
 0x3ba   : > { %v10923_v39 = vadd.f32 %v4607_v40, %v10560_v1  ;;  %4866 = vperm.xlu1 %7250, %v13705_v24   ;;  %6736 = vmatmul.mubr.msk.f32.gmra.mrb[18].mxu1 %vm916_vm0, %v13706_v49  ;;  %v13708_v1 = vld [vmem:[#allocation130_spill] sm:$0xff]  ;;  %v10948_v40 = vld [vmem:[#allocation2 + $0xa8] sm:$0xff] }
 0x3bb   : > { %v10928_v18 = vadd.f32 %v4622_v44, %v10758_v30  ;;  %4938 = vperm.xlu0 %7249, %v10803_v36   ;;  %v4495_v25 = vpop.permute.xlu1 %4494  ;;  %2805 = vmatprep.mubr.f32.mxu1 %v13253_v45  ;;  %v1979_v62 = vadd.f32 %v13708_v1, %v10734_v51  ;;  %v7408_v30 = vld [vmem:[%s7710_s29 + $0x8] sm:$0xff]  ;;  %13710 = vst [vmem:[#allocation122_spill] sm:$0xff] %v10948_v40  ;;  %v13711_v29 = vld [vmem:[#allocation14_spill] sm:$0xff]  ;;  %v7420_v36 = vld [vmem:[%s7710_s29 + $0x38] sm:$0xff] }
 0x3bc   : > { %v4609_v15 = vmul.f32 %v4495_v25, %v1877_v4  ;;  %v4555_v13 = vpop.permute.xlu0 %4554  ;;  %6739 = vmatmul.mubr.msk.f32.gmra.mrb[204].mxu0 %vm916_vm0, %v7408_v30  ;;  %v13713_v25 = vld [vmem:[#allocation133_spill] sm:$0xff] }
 0x3bd   : > { %v4624_v26 = vmul.f32 %v4555_v13, %v1967_v53  ;;  %2888 = vmatprep.mubr.f32.mxu0 %v13253_v45  ;;  %v13712_v53 = vld [vmem:[#allocation85_spill] sm:$0xff]  ;;  %v1991_v49 = vadd.f32 %v13713_v25, %v10734_v51  ;;  %v13714_v13 = vld [vmem:[#allocation104_spill] sm:$0xff] }
 0x3be   : > { %v10941_v16 = vadd.f32 %v4609_v15, %v13709_v8  ;;  %4870 = vperm.xlu1 %7250, %v10589_v34   ;;  %6737 = vmatmul.mubr.msk.f32.gmra.mrb[20].mxu1 %vm916_vm0, %v13711_v29  ;;  %v1901_v44 = vadd.f32 %v13712_v53, %v10734_v51  ;;  %v13720_v25 = vld [vmem:[#allocation56_spill] sm:$0xff] }
 0x3bf   : > { %v10946_v4 = vadd.f32 %v4624_v26, %v10780_v41  ;;  %4946 = vperm.xlu0 %7249, %v10948_v40   ;;  %v4503_v38 = vpop.permute.xlu1 %4502  ;;  %v7410_v41 = vld [vmem:[%s7710_s29 + $0x10] sm:$0xff]  ;;  %v13739_v40 = vsub.s32 0, %v13464_v21 }
 0x3c0   : > { %v4611_v19 = vmul.f32 %v4503_v38, %v1889_v42  ;;  %v4563_v17 = vpop.permute.xlu0 %4562  ;;  %6740 = vmatmul.mubr.msk.f32.gmra.mrb[206].mxu0 %vm916_vm0, %v7410_v41  ;;  %v10967_v42 = vld [vmem:[#allocation2 + $0xb8] sm:$0xff] }
 0x3c1   : > { %v4626_v22 = vmul.f32 %v4563_v17, %v1979_v62  ;;  %2894 = vmatprep.mubr.f32.mxu0 %v13253_v45  ;;  %13716 = vst [vmem:[#allocation125_spill] sm:$0xff] %v10967_v42  ;;  %v13717_v62 = vld [vmem:[#allocation39_spill] sm:$0xff] }
 0x3c2   : > { %v10960_v15 = vadd.f32 %v4611_v19, %v10465_v60  ;;  %4878 = vperm.xlu1 %7250, %v13714_v13   ;;  %v1913_v30 = vadd.f32 %v13717_v62, %v10734_v51  ;;  %v13718_v60 = vld [vmem:[#allocation44_spill] sm:$0xff]  ;;  %v7412_v19 = vld [vmem:[%s7710_s29 + $0x18] sm:$0xff] }
 0x3c3   : > { %v10965_v1 = vadd.f32 %v4626_v22, %v10801_v56  ;;  %4954 = vperm.xlu0 %7249, %v10967_v42   ;;  %v4511_v26 = vpop.permute.xlu1 %4510  ;;  %v2003_v29 = vadd.f32 %v13718_v60, %v10734_v51  ;;  %v13719_v56 = vld [vmem:[#allocation114_spill] sm:$0xff] }
 0x3c4   : > { %v4613_v8 = vmul.f32 %v4511_v26, %v1901_v44  ;;  %v4571_v38 = vpop.permute.xlu0 %4570  ;;  %6741 = vmatmul.mubr.msk.f32.gmra.mrb[208].mxu0 %vm916_vm0, %v7412_v19  ;;  %v10984_v44 = vld [vmem:[#allocation2 + $0xc8] sm:$0xff] }
 0x3c5   : > { %13715 = vst [vmem:[#allocation49_spill] sm:$0xff] %v10965_v1  ;;  %v4628_v53 = vmul.f32 %v4571_v38, %v1991_v49  ;;  %2900 = vmatprep.mubr.f32.mxu0 %v13253_v45  ;;  %13722 = vst [vmem:[#allocation30_spill] sm:$0xff] %v10984_v44  ;;  %v13723_v49 = vld [vmem:[#allocation35_spill] sm:$0xff] }
 0x3c6   : > { %v10977_v17 = vadd.f32 %v4613_v8, %v13719_v56  ;;  %4886 = vperm.xlu1 %7250, %v13720_v25   ;;  %v1925_v26 = vadd.f32 %v13723_v49, %v10734_v51  ;;  %v13724_v8 = vld [vmem:[#allocation82_spill] sm:$0xff] }
 0x3c7   : > { %v10982_v22 = vadd.f32 %v4628_v53, %v10820_v58  ;;  %4962 = vperm.xlu0 %7249, %v10984_v44   ;;  %v4519_v41 = vpop.permute.xlu1 %4518  ;;  %v2015_v60 = vadd.f32 %v13724_v8, %v10734_v51  ;;  %v7414_v56 = vld [vmem:[%s7710_s29 + $0x20] sm:$0xff]  ;;  %v13725_v58 = vld [vmem:[#allocation15_spill] sm:$0xff] }
 0x3c8   : > { %v4615_v62 = vmul.f32 %v4519_v41, %v1913_v30  ;;  %v4579_v38 = vpop.permute.xlu0 %4578  ;;  %6742 = vmatmul.mubr.msk.f32.gmra.mrb[210].mxu0 %vm916_vm0, %v7414_v56  ;;  %v11001_v30 = vld [vmem:[#allocation2 + $0xd8] sm:$0xff]  ;;  %v7416_v44 = vld [vmem:[%s7710_s29 + $0x28] sm:$0xff] }
 0x3c9   : > { %13721 = vst [vmem:[#allocation135_spill] sm:$0xff] %v10982_v22  ;;  %v4630_v19 = vmul.f32 %v4579_v38, %v2003_v29  ;;  %2906 = vmatprep.mubr.f32.mxu0 %v13253_v45  ;;  %13728 = vst [vmem:[#allocation118_spill] sm:$0xff] %v11001_v30  ;;  %v13729_v29 = vld [vmem:[#allocation66_spill] sm:$0xff] }
 0x3ca   : > { %v10994_v53 = vadd.f32 %v4615_v62, %v13725_v58  ;;  %4894 = vperm.xlu1 %7250, %v13726_v28   ;;  %v1937_v49 = vadd.f32 %v13729_v29, %v10734_v51  ;;  %v13730_v62 = vld [vmem:[#allocation92_spill] sm:$0xff] }
 0x3cb   : > { %v10999_v59 = vadd.f32 %v4630_v19, %v10835_v2  ;;  %4970 = vperm.xlu0 %7249, %v11001_v30   ;;  %v4527_v41 = vpop.permute.xlu1 %4526  ;;  %v2027_v56 = vadd.f32 %v13730_v62, %v10734_v51  ;;  %v13731_v19 = vld [vmem:[#allocation89_spill] sm:$0xff] }
 0x3cc   : > { %v4617_v38 = vmul.f32 %v4527_v41, %v1925_v26  ;;  %v4587_v8 = vpop.permute.xlu0 %4586  ;;  %6743 = vmatmul.mubr.msk.f32.gmra.mrb[212].mxu0 %vm916_vm0, %v7416_v44  ;;  %v11018_v26 = vld [vmem:[#allocation2 + $0xe8] sm:$0xff]  ;;  %v13735_v62 = vld [vmem:[#allocation81_spill] sm:$0xff] }
 0x3cd   : > { %13727 = vst [vmem:[#allocation129_spill] sm:$0xff] %v10999_v59  ;;  %v4632_v58 = vmul.f32 %v4587_v8, %v2015_v60  ;;  %2912 = vmatprep.mubr.f32.mxu0 %v13253_v45  ;;  %13733 = vst [vmem:[#allocation33_spill] sm:$0xff] %v11018_v26  ;;  %v11024_v60 = vld [vmem:[%s13010_s4 + $0x8] sm:$0xff]  ;;  %v13738_v59 = vld [vmem:[#allocation18_spill] sm:$0xff] }
 0x3ce   : > { %v11011_v2 = vadd.f32 %v4617_v38, %v10540_v50  ;;  %4902 = vperm.xlu1 %7250, %v13731_v19   ;;  %v13734_v50 = vld [vmem:[#allocation63_spill] sm:$0xff] }
 0x3cf   : > { %v11016_v30 = vadd.f32 %v4632_v58, %v10850_v27  ;;  %4978 = vperm.xlu0 %7249, %v11018_v26   ;;  %v4535_v41 = vpop.permute.xlu1 %4534  ;;  %v1949_v44 = vadd.f32 %v13734_v50, %v10734_v51  ;;  %v2039_v27 = vadd.f32 %v13735_v62, %v10734_v51  ;;  %v11030_v58 = vpop.f32.mrb[213].mxu1  ;;  %v13737_v26 = vld [vmem:[#allocation52_spill] sm:$0xff]  ;;  %v11049_v50 = vld [vmem:[#allocation2 + $0xf8] sm:$0xff] }
 0x3d0   : > { %v4619_v29 = vmul.f32 %v4535_v41, %v1937_v49  ;;  %v4595_v38 = vpop.permute.xlu0 %4594  ;;  %13736 = vst [vmem:[#allocation136_spill] sm:$0xff] %v11030_v58  ;;  %v11041_v49 = vrot.slane %v11024_v60, %v13739_v40  ;;  %13742 = vst [vmem:[#allocation79_spill] sm:$0xff] %v11049_v50 }
 0x3d1   : > { %13732 = vst [vmem:[#allocation132_spill] sm:$0xff] %v11016_v30  ;;  %v4634_v8 = vmul.f32 %v4595_v38, %v2027_v56  ;;  %v7418_v30 = vld [vmem:[%s7710_s29 + $0x30] sm:$0xff]  ;;  %v11043_v56 = vpop.f32.mrb[138].mxu0 }
 0x3d2   : > { %6744 = vmatmul.mubr.msk.f32.gmra.mrb[214].mxu0 %vm916_vm0, %v7418_v30  ;;  %v11035_v42 = vadd.f32 %v4619_v29, %v13737_v26  ;;  %4910 = vperm.xlu1 %7250, %v13738_v59   ;;  %13740 = vst [vmem:[#allocation73_spill] sm:$0xff] %v11043_v56  ;;  %v11052_v26 = vpop.f32.mrb[139].mxu0  ;;  %v13744_v29 = vld [vmem:[#allocation75_spill] sm:$0xff] }
 0x3d3   : > { %2918 = vmatprep.mubr.f32.mxu0 %v13253_v45  ;;  %v11047_v41 = vadd.f32 %v4634_v8, %v10865_v20  ;;  %4986 = vperm.xlu0 %7249, %v11049_v50   ;;  %v4543_v30 = vpop.permute.xlu1 %4542  ;;  %13743 = vst [vmem:[#allocation90_spill] sm:$0xff] %v11052_v26  ;;  %v1961_v38 = vadd.f32 %v13744_v29, %v10734_v51  ;;  %v11056_v58 = vpop.f32.mrb[140].mxu0  ;;  %v13747_v20 = vld [vmem:[#allocation29_spill] sm:$0xff]  ;;  %v13748_v50 = vld [vmem:[#allocation72_spill] sm:$0xff] }
 0x3d4   : > { %v4621_v62 = vmul.f32 %v4543_v30, %v1949_v44  ;;  %v4603_v40 = vpop.permute.xlu0 %4602  ;;  %13745 = vst [vmem:[#allocation9_spill] sm:$0xff] %v11056_v58  ;;  %v11058_v22 = vpop.f32.mrb[141].mxu0  ;;  %v2114_v26 = vadd.f32 %v13748_v50, %v11041_v49  ;;  %v7421_v58 = vld [vmem:[%s7710_s29 + $0x40] sm:$0xff] }
 0x3d5   : > { %13741 = vst [vmem:[#allocation28_spill] sm:$0xff] %v11047_v41  ;;  %v4636_v56 = vmul.f32 %v4603_v40, %v2039_v27  ;;  %13746 = vst [vmem:[#allocation95_spill] sm:$0xff] %v11058_v22  ;;  %v13749_v41 = vld [vmem:[#allocation109_spill] sm:$0xff]  ;;  %v11068_v29 = vpop.f32.mrb[142].mxu0  ;;  %v13111_v27 = vmov 10  }
 0x3d6   : > { %6745 = vmatmul.mubr.msk.f32.gmra.mrb[216].mxu0 %vm916_vm0, %v7420_v36  ;;  %v11063_v8 = vadd.f32 %v4621_v62, %v13747_v20  ;;  %4918 = vperm.xlu1 %7250, %v13749_v41   ;;  %13750 = vst [vmem:[#allocation88_spill] sm:$0xff] %v11068_v29  ;;  %v11075_v30 = vpop.f32.mrb[143].mxu0  ;;  %v13753_v62 = vld [vmem:[#allocation127_spill] sm:$0xff] }
 0x3d7   : > { %2924 = vmatprep.mubr.f32.mxu0 %v13253_v45  ;;  %v11072_v44 = vadd.f32 %v4636_v56, %v10880_v6  ;;  %7252 = vset.pattern.permute.xlu0 %v13111_v27  ;;  %v4551_v36 = vpop.permute.xlu1 %4550  ;;  %13752 = vst [vmem:[#allocation113_spill] sm:$0xff] %v11075_v30  ;;  %v1973_v40 = vadd.f32 %v13753_v62, %v10734_v51  ;;  %v11080_v50 = vpop.f32.mrb[144].mxu0  ;;  %v13756_v6 = vld [vmem:[#allocation108_spill] sm:$0xff]  ;;  %v13757_v30 = vld [vmem:[#allocation55_spill] sm:$0xff]  ;;  %v13758_v62 = vld [vmem:[#allocation93_spill] sm:$0xff] }
 0x3d8   : > { %v4623_v20 = vmul.f32 %v4551_v36, %v1961_v38  ;;  %5058 = vperm.xlu0 %7252, %v13705_v24   ;;  %13754 = vst [vmem:[#allocation40_spill] sm:$0xff] %v11080_v50  ;;  %v11082_v29 = vpop.f32.mrb[145].mxu0  ;;  %v2132_v38 = vadd.f32 %v13758_v62, %v11041_v49  ;;  %v7422_v62 = vld [vmem:[%s7710_s29 + $0x48] sm:$0xff] }
 0x3d9   : > { %13751 = vst [vmem:[#allocation65_spill] sm:$0xff] %v11072_v44  ;;  %v4675_v22 = vpop.permute.xlu0 %4674  ;;  %13755 = vst [vmem:[#allocation112_spill] sm:$0xff] %v11082_v29  ;;  %v11092_v36 = vpop.f32.mrb[146].mxu0  ;;  %v13761_v29 = vld [vmem:[#allocation69_spill] sm:$0xff] }
 0x3da   : > { %6746 = vmatmul.mubr.msk.f32.gmra.mrb[218].mxu0 %vm916_vm0, %v7421_v58  ;;  %v11087_v56 = vadd.f32 %v4623_v20, %v13756_v6  ;;  %v4798_v27 = vmul.f32 %v4675_v22, %v2114_v26  ;;  %4926 = vperm.xlu1 %7250, %v13757_v30   ;;  %13759 = vst [vmem:[#allocation31_spill] sm:$0xff] %v11092_v36  ;;  %v11094_v50 = vpop.f32.mrb[147].mxu0 }
 0x3db   : > { %v4559_v24 = vpop.permute.xlu1 %4558  ;;  %13760 = vst [vmem:[#allocation37_spill] sm:$0xff] %v11094_v50  ;;  %2930 = vmatprep.mubr.f32.mxu0 %v13253_v45  ;;  %v1985_v58 = vadd.f32 %v13761_v29, %v10734_v51  ;;  %v11103_v22 = vpop.f32.mrb[148].mxu0  ;;  %v13764_v50 = vld [vmem:[#allocation41_spill] sm:$0xff]  ;;  %v13765_v29 = vld [vmem:[#allocation23_spill] sm:$0xff] }
 0x3dc   : > { %v11100_v44 = vadd.f32 %v4798_v27, %v10903_v48  ;;  %v4625_v20 = vmul.f32 %v4559_v24, %v1973_v40  ;;  %5070 = vperm.xlu0 %7252, %v13714_v13   ;;  %13762 = vst [vmem:[#allocation80_spill] sm:$0xff] %v11103_v22  ;;  %v11105_v6 = vpop.f32.mrb[149].mxu0  ;;  %v13766_v48 = vld [vmem:[#allocation117_spill] sm:$0xff] }
 0x3dd   : > { %v4687_v26 = vpop.permute.xlu0 %4686  ;;  %13763 = vst [vmem:[#allocation26_spill] sm:$0xff] %v11105_v6  ;;  %v2144_v27 = vadd.f32 %v13766_v48, %v11041_v49  ;;  %v11115_v40 = vpop.f32.mrb[150].mxu0  ;;  %v13769_v6 = vld [vmem:[#allocation67_spill] sm:$0xff]  ;;  %v7423_v48 = vld [vmem:[%s7710_s29 + $0x50] sm:$0xff] }
 0x3de   : > { %6747 = vmatmul.mubr.msk.f32.gmra.mrb[220].mxu0 %vm916_vm0, %v7422_v62  ;;  %v11110_v36 = vadd.f32 %v4625_v20, %v13764_v50  ;;  %v4801_v1 = vmul.f32 %v4687_v26, %v2132_v38  ;;  %4934 = vperm.xlu1 %7250, %v13765_v29   ;;  %13767 = vst [vmem:[#allocation47_spill] sm:$0xff] %v11115_v40  ;;  %v11117_v24 = vpop.f32.mrb[151].mxu0 }
 0x3df   : > { %v4567_v13 = vpop.permute.xlu1 %4566  ;;  %13768 = vst [vmem:[#allocation115_spill] sm:$0xff] %v11117_v24  ;;  %2936 = vmatprep.mubr.f32.mxu0 %v13253_v45  ;;  %v1997_v62 = vadd.f32 %v13769_v6, %v10734_v51  ;;  %v11126_v38 = vpop.f32.mrb[152].mxu0  ;;  %v13772_v6 = vld [vmem:[#allocation71_spill] sm:$0xff] }
 0x3e0   : > { %v11123_v22 = vadd.f32 %v4801_v1, %v10941_v16  ;;  %v4627_v50 = vmul.f32 %v4567_v13, %v1985_v58  ;;  %5078 = vperm.xlu0 %7252, %v13720_v25   ;;  %13770 = vst [vmem:[#allocation126_spill] sm:$0xff] %v11126_v38  ;;  %v11128_v26 = vpop.f32.mrb[153].mxu0  ;;  %v13773_v16 = vld [vmem:[#allocation121_spill] sm:$0xff] }
 0x3e1   : > { %v4695_v20 = vpop.permute.xlu0 %4694  ;;  %13771 = vst [vmem:[#allocation91_spill] sm:$0xff] %v11128_v26  ;;  %v2156_v1 = vadd.f32 %v13773_v16, %v11041_v49  ;;  %v11138_v58 = vpop.f32.mrb[154].mxu0  ;;  %v13776_v26 = vld [vmem:[#allocation45_spill] sm:$0xff] }
 0x3e2   : > { %6748 = vmatmul.mubr.msk.f32.gmra.mrb[222].mxu0 %vm916_vm0, %v7423_v48  ;;  %v11133_v24 = vadd.f32 %v4627_v50, %v10672_v9  ;;  %v4803_v40 = vmul.f32 %v4695_v20, %v2144_v27  ;;  %4942 = vperm.xlu1 %7250, %v13772_v6   ;;  %13774 = vst [vmem:[#allocation98_spill] sm:$0xff] %v11138_v58  ;;  %v11140_v13 = vpop.f32.mrb[155].mxu0  ;;  %v7424_v16 = vld [vmem:[%s7710_s29 + $0x58] sm:$0xff] }
 0x3e3   : > { %v4575_v25 = vpop.permute.xlu1 %4574  ;;  %13775 = vst [vmem:[#allocation120_spill] sm:$0xff] %v11140_v13  ;;  %2942 = vmatprep.mubr.f32.mxu0 %v13253_v45  ;;  %v2009_v48 = vadd.f32 %v13776_v26, %v10734_v51  ;;  %v11149_v27 = vpop.f32.mrb[156].mxu0  ;;  %v13779_v26 = vld [vmem:[#allocation6_spill] sm:$0xff] }
 0x3e4   : > { %v11146_v38 = vadd.f32 %v4803_v40, %v10960_v15  ;;  %v4629_v9 = vmul.f32 %v4575_v25, %v1997_v62  ;;  %5086 = vperm.xlu0 %7252, %v13726_v28   ;;  %13777 = vst [vmem:[#allocation130_spill] sm:$0xff] %v11149_v27  ;;  %v11151_v20 = vpop.f32.mrb[157].mxu0  ;;  %v13780_v15 = vld [vmem:[#allocation11_spill] sm:$0xff] }
 0x3e5   : > { %v4703_v50 = vpop.permute.xlu0 %4702  ;;  %13778 = vst [vmem:[#allocation86_spill] sm:$0xff] %v11151_v20  ;;  %v2168_v40 = vadd.f32 %v13780_v15, %v11041_v49  ;;  %v11161_v62 = vpop.f32.mrb[158].mxu0  ;;  %v13783_v20 = vld [vmem:[#allocation74_spill] sm:$0xff] }
 0x3e6   : > { %6749 = vmatmul.mubr.msk.f32.gmra.mrb[224].mxu0 %vm916_vm0, %v7424_v16  ;;  %v11156_v13 = vadd.f32 %v4629_v9, %v10693_v31  ;;  %v4805_v58 = vmul.f32 %v4703_v50, %v2156_v1  ;;  %4950 = vperm.xlu1 %7250, %v13779_v26   ;;  %13781 = vst [vmem:[#allocation14_spill] sm:$0xff] %v11161_v62  ;;  %v11163_v25 = vpop.f32.mrb[159].mxu0  ;;  %v7425_v15 = vld [vmem:[%s7710_s29 + $0x60] sm:$0xff] }
 0x3e7   : > { %v4583_v28 = vpop.permute.xlu1 %4582  ;;  %13782 = vst [vmem:[#allocation85_spill] sm:$0xff] %v11163_v25  ;;  %2948 = vmatprep.mubr.f32.mxu0 %v13253_v45  ;;  %v2021_v16 = vadd.f32 %v13783_v20, %v10734_v51  ;;  %v11172_v1 = vpop.f32.mrb[160].mxu0  ;;  %v11181_v20 = vld [vmem:[#allocation2 + $0xc0] sm:$0xff] }
 0x3e8   : > { %v11169_v27 = vadd.f32 %v4805_v58, %v10977_v17  ;;  %v4631_v31 = vmul.f32 %v4583_v28, %v2009_v48  ;;  %5094 = vperm.xlu0 %7252, %v13731_v19   ;;  %13784 = vst [vmem:[#allocation133_spill] sm:$0xff] %v11172_v1  ;;  %v11174_v50 = vpop.f32.mrb[161].mxu0  ;;  %v13786_v17 = vld [vmem:[#allocation8_spill] sm:$0xff]  ;;  %v7427_v1 = vld [vmem:[%s7710_s29 + $0x68] sm:$0xff] }
 0x3e9   : > { %v4711_v9 = vpop.permute.xlu0 %4710  ;;  %13785 = vst [vmem:[#allocation104_spill] sm:$0xff] %v11174_v50  ;;  %v2180_v19 = vadd.f32 %v13786_v17, %v11041_v49  ;;  %v11186_v58 = vpop.f32.mrb[162].mxu0 }
 0x3ea   : > { %6750 = vmatmul.mubr.msk.f32.gmra.mrb[226].mxu0 %vm916_vm0, %v7425_v15  ;;  %v11179_v25 = vadd.f32 %v4631_v31, %v10717_v52  ;;  %v4807_v62 = vmul.f32 %v4711_v9, %v2168_v40  ;;  %4958 = vperm.xlu1 %7250, %v11181_v20   ;;  %13787 = vst [vmem:[#allocation39_spill] sm:$0xff] %v11186_v58  ;;  %v11188_v28 = vpop.f32.mrb[163].mxu0  ;;  %v13789_v15 = vld [vmem:[#allocation94_spill] sm:$0xff] }
 0x3eb   : > { %v4591_v48 = vpop.permute.xlu1 %4590  ;;  %13788 = vst [vmem:[#allocation44_spill] sm:$0xff] %v11188_v28  ;;  %2954 = vmatprep.mubr.f32.mxu0 %v13253_v45  ;;  %v2033_v52 = vadd.f32 %v13789_v15, %v10734_v51  ;;  %v11197_v9 = vpop.f32.mrb[164].mxu0  ;;  %v13792_v51 = vld [vmem:[#allocation27_spill] sm:$0xff] }
 0x3ec   : > { %v11194_v31 = vadd.f32 %v4807_v62, %v10994_v53  ;;  %v4633_v40 = vmul.f32 %v4591_v48, %v2021_v16  ;;  %5102 = vperm.xlu0 %7252, %v13738_v59   ;;  %13790 = vst [vmem:[#allocation114_spill] sm:$0xff] %v11197_v9  ;;  %v11199_v17 = vpop.f32.mrb[165].mxu0  ;;  %v2192_v53 = vadd.f32 %v13792_v51, %v11041_v49  ;;  %v7428_v51 = vld [vmem:[%s7710_s29 + $0x70] sm:$0xff]  ;;  %v7431_v9 = vld [vmem:[%s7710_s29 + $0x80] sm:$0xff] }
 0x3ed   : > { %v4719_v50 = vpop.permute.xlu0 %4718  ;;  %13791 = vst [vmem:[#allocation56_spill] sm:$0xff] %v11199_v17  ;;  %v11209_v62 = vpop.f32.mrb[166].mxu0  ;;  %v11249_v17 = vld [vmem:[#allocation2 + $0xf0] sm:$0xff] }
 0x3ee   : > { %6751 = vmatmul.mubr.msk.f32.gmra.mrb[228].mxu0 %vm916_vm0, %v7427_v1  ;;  %v11204_v28 = vadd.f32 %v4633_v40, %v10743_v11  ;;  %v4809_v58 = vmul.f32 %v4719_v50, %v2180_v19  ;;  %4966 = vperm.xlu1 %7250, %v10695_v32   ;;  %v11211_v16 = vpop.f32.mrb[167].mxu0  ;;  %v13795_v50 = vld [vmem:[#allocation102_spill] sm:$0xff] }
 0x3ef   : > { %v4599_v59 = vpop.permute.xlu1 %4598  ;;  %13793 = vst [vmem:[#allocation35_spill] sm:$0xff] %v11211_v16  ;;  %2960 = vmatprep.mubr.f32.mxu0 %v13253_v45  ;;  %v11218_v11 = vpop.f32.mrb[168].mxu0  ;;  %v2108_v19 = vadd.f32 %v13795_v50, %v11041_v49 }
 0x3f0   : > { %v11215_v48 = vadd.f32 %v4809_v58, %v11011_v2  ;;  %v4635_v1 = vmul.f32 %v4599_v59, %v2033_v52  ;;  %5110 = vperm.xlu0 %7252, %v13749_v41   ;;  %13794 = vst [vmem:[#allocation82_spill] sm:$0xff] %v11218_v11  ;;  %v11222_v40 = vpop.f32.mrb[169].mxu0  ;;  %v13797_v41 = vld [vmem:[#allocation61_spill] sm:$0xff] }
 0x3f1   : > { %v4727_v15 = vpop.permute.xlu0 %4726  ;;  %13796 = vst [vmem:[#allocation15_spill] sm:$0xff] %v11222_v40  ;;  %v2204_v58 = vadd.f32 %v13797_v41, %v11041_v49  ;;  %v11232_v52 = vpop.f32.mrb[170].mxu0  ;;  %v7429_v40 = vld [vmem:[%s7710_s29 + $0x78] sm:$0xff] }
 0x3f2   : > { %6752 = vmatmul.mubr.msk.f32.gmra.mrb[230].mxu0 %vm916_vm0, %v7428_v51  ;;  %v11227_v16 = vadd.f32 %v4635_v1, %v10764_v0  ;;  %v4811_v2 = vmul.f32 %v4727_v15, %v2192_v53  ;;  %4974 = vperm.xlu1 %7250, %v10504_v10   ;;  %v11234_v59 = vpop.f32.mrb[171].mxu0  ;;  %v13800_v53 = vld [vmem:[#allocation105_spill] sm:$0xff] }
 0x3f3   : > { %13798 = vst [vmem:[#allocation24_spill] sm:$0xff] %v11234_v59  ;;  %2966 = vmatprep.mubr.f32.mxu0 %v13253_v45  ;;  %v11241_v0 = vpop.f32.mrb[172].mxu0  ;;  %v2120_v10 = vadd.f32 %v13800_v53, %v11041_v49 }
 0x3f4   : > { %v11238_v50 = vadd.f32 %v4811_v2, %v11035_v42  ;;  %5118 = vperm.xlu0 %7252, %v13757_v30   ;;  %v4671_v51 = vpop.permute.xlu1 %4670  ;;  %13799 = vst [vmem:[#allocation66_spill] sm:$0xff] %v11241_v0  ;;  %v11245_v41 = vpop.f32.mrb[173].mxu0  ;;  %v13802_v42 = vld [vmem:[#allocation107_spill] sm:$0xff] }
 0x3f5   : > { %v4797_v1 = vmul.f32 %v4671_v51, %v2108_v19  ;;  %v4735_v15 = vpop.permute.xlu0 %4734  ;;  %13801 = vst [vmem:[#allocation92_spill] sm:$0xff] %v11245_v41  ;;  %v2216_v30 = vadd.f32 %v13802_v42, %v11041_v49  ;;  %v11254_v2 = vpop.f32.mrb[174].mxu0 }
 0x3f6   : > { %6753 = vmatmul.mubr.msk.f32.gmra.mrb[232].mxu0 %vm916_vm0, %v7429_v40  ;;  %v4813_v59 = vmul.f32 %v4735_v15, %v2204_v58  ;;  %4982 = vperm.xlu1 %7250, %v11249_v17   ;;  %v11260_v51 = vpop.f32.mrb[175].mxu0  ;;  %v13805_v15 = vld [vmem:[#allocation110_spill] sm:$0xff] }
 0x3f7   : > { %2972 = vmatprep.mubr.f32.mxu0 %v13253_v45  ;;  %v11258_v19 = vadd.f32 %v4797_v1, %v10788_v23  ;;  %13803 = vst [vmem:[#allocation89_spill] sm:$0xff] %v11260_v51  ;;  %v11266_v53 = vpop.f32.mrb[176].mxu0  ;;  %v2126_v42 = vadd.f32 %v13805_v15, %v11041_v49  ;;  %v13807_v1 = vmov 10  }
 0x3f8   : > { %v11263_v40 = vadd.f32 %v4813_v59, %v11063_v8  ;;  %5126 = vperm.xlu0 %7252, %v13765_v29   ;;  %v4679_v58 = vpop.permute.xlu1 %4678  ;;  %13804 = vst [vmem:[#allocation63_spill] sm:$0xff] %v11266_v53  ;;  %v11270_v11 = vpop.f32.mrb[177].mxu0  ;;  %v13808_v8 = vld [vmem:[#allocation54_spill] sm:$0xff] }
 0x3f9   : > { %v4799_v41 = vmul.f32 %v4679_v58, %v2120_v10  ;;  %v4743_v0 = vpop.permute.xlu0 %4742  ;;  %13806 = vst [vmem:[#allocation81_spill] sm:$0xff] %v11270_v11  ;;  %v2228_v29 = vadd.f32 %v13808_v8, %v11041_v49  ;;  %v11277_v59 = vpop.f32.mrb[178].mxu0  ;;  %v13811_v58 = vld [vmem:[#allocation97_spill] sm:$0xff] }
 0x3fa   : > { %6754 = vmatmul.mubr.msk.f32.gmra.mrb[234].mxu0 %vm916_vm0, %v7431_v9  ;;  %v4815_v23 = vmul.f32 %v4743_v0, %v2216_v30  ;;  %7251 = vset.pattern.permute.xlu1 %v13807_v1  ;;  %v11284_v10 = vpop.f32.mrb[179].mxu0  ;;  %v2138_v1 = vadd.f32 %v13811_v58, %v11041_v49  ;;  %v13816_v58 = vld [vmem:[#allocation103_spill] sm:$0xff] }
 0x3fb   : > { %2978 = vmatprep.mubr.f32.mxu0 %v13253_v45  ;;  %v11281_v15 = vadd.f32 %v4799_v41, %v10923_v39  ;;  %5054 = vperm.xlu1 %7251, %v10562_v54   ;;  %13809 = vst [vmem:[#allocation52_spill] sm:$0xff] %v11284_v10  ;;  %v11290_v30 = vpop.f32.mrb[180].mxu0  ;;  %v7432_v39 = vld [vmem:[%s7710_s29 + $0x88] sm:$0xff] }
 0x3fc   : > { %v11287_v9 = vadd.f32 %v4815_v23, %v11087_v56  ;;  %5134 = vperm.xlu0 %7252, %v13772_v6   ;;  %v4683_v0 = vpop.permute.xlu1 %4682  ;;  %13810 = vst [vmem:[#allocation18_spill] sm:$0xff] %v11290_v30  ;;  %v11294_v11 = vpop.f32.mrb[181].mxu0  ;;  %v13813_v56 = vld [vmem:[#allocation57_spill] sm:$0xff]  ;;  %v11495_v30 = vld [vmem:[#allocation2 + $0x48] sm:$0xff] }
 0x3fd   : > { %v4800_v8 = vmul.f32 %v4683_v0, %v2126_v42  ;;  %v4751_v51 = vpop.permute.xlu0 %4750  ;;  %13812 = vst [vmem:[#allocation75_spill] sm:$0xff] %v11294_v11  ;;  %v2240_v41 = vadd.f32 %v13813_v56, %v11041_v49  ;;  %v11300_v23 = vpop.f32.mrb[182].mxu0  ;;  %13851 = vst [vmem:[#allocation6_spill] sm:$0xff] %v11495_v30 }
 0x3fe   : > { %6755 = vmatmul.mubr.msk.f32.gmra.mrb[236].mxu0 %vm916_vm0, %v7432_v39  ;;  %v4817_v54 = vmul.f32 %v4751_v51, %v2228_v29  ;;  %v11307_v42 = vpop.f32.mrb[183].mxu0  ;;  %v2150_v39 = vadd.f32 %v13816_v58, %v11041_v49  ;;  %v13821_v58 = vld [vmem:[#allocation106_spill] sm:$0xff] }
 0x3ff   : > { %2984 = vmatprep.mubr.f32.mxu0 %v13253_v45  ;;  %v11304_v6 = vadd.f32 %v4800_v8, %v10809_v35  ;;  %5062 = vperm.xlu1 %7251, %v10589_v34   ;;  %13814 = vst [vmem:[#allocation29_spill] sm:$0xff] %v11307_v42  ;;  %v11313_v29 = vpop.f32.mrb[184].mxu0  ;;  %v7433_v35 = vld [vmem:[%s7710_s29 + $0x90] sm:$0xff] }
 0x400   : > { %v11310_v0 = vadd.f32 %v4817_v54, %v11110_v36  ;;  %5142 = vperm.xlu0 %7252, %v13779_v26   ;;  %v4691_v51 = vpop.permute.xlu1 %4690  ;;  %13815 = vst [vmem:[#allocation72_spill] sm:$0xff] %v11313_v29  ;;  %v11317_v11 = vpop.f32.mrb[185].mxu0  ;;  %v13818_v36 = vld [vmem:[#allocation32_spill] sm:$0xff] }
 0x401   : > { %v4802_v56 = vmul.f32 %v4691_v51, %v2138_v1  ;;  %v4759_v10 = vpop.permute.xlu0 %4758  ;;  %13817 = vst [vmem:[#allocation109_spill] sm:$0xff] %v11317_v11  ;;  %v2252_v8 = vadd.f32 %v13818_v36, %v11041_v49  ;;  %v11323_v54 = vpop.f32.mrb[186].mxu0 }
 0x402   : > { %6756 = vmatmul.mubr.msk.f32.gmra.mrb[238].mxu0 %vm916_vm0, %v7433_v35  ;;  %v4819_v34 = vmul.f32 %v4759_v10, %v2240_v41  ;;  %v11330_v1 = vpop.f32.mrb[187].mxu0  ;;  %v2162_v35 = vadd.f32 %v13821_v58, %v11041_v49  ;;  %v13826_v58 = vld [vmem:[#allocation12_spill] sm:$0xff] }
 0x403   : > { %2990 = vmatprep.mubr.f32.mxu0 %v13253_v45  ;;  %v11327_v26 = vadd.f32 %v4802_v56, %v10826_v43  ;;  %5066 = vperm.xlu1 %7251, %v10616_v46   ;;  %13819 = vst [vmem:[#allocation127_spill] sm:$0xff] %v11330_v1  ;;  %v11336_v41 = vpop.f32.mrb[188].mxu0  ;;  %v7434_v43 = vld [vmem:[%s7710_s29 + $0x98] sm:$0xff] }
 0x404   : > { %v11333_v51 = vadd.f32 %v4819_v34, %v11133_v24  ;;  %5150 = vperm.xlu0 %7252, %v11181_v20   ;;  %v4699_v10 = vpop.permute.xlu1 %4698  ;;  %13820 = vst [vmem:[#allocation108_spill] sm:$0xff] %v11336_v41  ;;  %v11340_v11 = vpop.f32.mrb[189].mxu0  ;;  %v13823_v24 = vld [vmem:[#allocation124_spill] sm:$0xff] }
 0x405   : > { %v4804_v36 = vmul.f32 %v4699_v10, %v2150_v39  ;;  %v4767_v42 = vpop.permute.xlu0 %4766  ;;  %13822 = vst [vmem:[#allocation55_spill] sm:$0xff] %v11340_v11  ;;  %v2264_v56 = vadd.f32 %v13823_v24, %v11041_v49  ;;  %v11346_v34 = vpop.f32.mrb[190].mxu0 }
 0x406   : > { %6757 = vmatmul.mubr.msk.f32.gmra.mrb[240].mxu0 %vm916_vm0, %v7434_v43  ;;  %v4821_v46 = vmul.f32 %v4767_v42, %v2252_v8  ;;  %v11353_v39 = vpop.f32.mrb[191].mxu0  ;;  %v2174_v43 = vadd.f32 %v13826_v58, %v11041_v49  ;;  %v11381_v58 = vld [vmem:[#allocation2 + $0xe0] sm:$0xff] }
 0x407   : > { %2996 = vmatprep.mubr.f32.mxu0 %v13253_v45  ;;  %v11350_v1 = vadd.f32 %v4804_v36, %v10841_v55  ;;  %5074 = vperm.xlu1 %7251, %v10643_v63   ;;  %13824 = vst [vmem:[#allocation93_spill] sm:$0xff] %v11353_v39  ;;  %v11359_v8 = vpop.f32.mrb[192].mxu0  ;;  %v7435_v55 = vld [vmem:[%s7710_s29 + $0xa0] sm:$0xff]  ;;  %v13828_v36 = vld [vmem:[#allocation43_spill] sm:$0xff] }
 0x408   : > { %v11356_v10 = vadd.f32 %v4821_v46, %v11156_v13  ;;  %5158 = vperm.xlu0 %7252, %v10695_v32   ;;  %v4707_v42 = vpop.permute.xlu1 %4706  ;;  %13825 = vst [vmem:[#allocation69_spill] sm:$0xff] %v11359_v8  ;;  %v11363_v41 = vpop.f32.mrb[193].mxu0  ;;  %v2276_v13 = vadd.f32 %v13828_v36, %v11041_v49  ;;  %v11444_v8 = vld [vmem:[#allocation2 + $0x18] sm:$0xff] }
 0x409   : > { %v4806_v24 = vmul.f32 %v4707_v42, %v2162_v35  ;;  %v4775_v11 = vpop.permute.xlu0 %4774  ;;  %13827 = vst [vmem:[#allocation41_spill] sm:$0xff] %v11363_v41  ;;  %v11369_v46 = vpop.f32.mrb[194].mxu0  ;;  %v13834_v41 = vsub.s32 1, %v13464_v21 }
 0x40a   : > { %6758 = vmatmul.mubr.msk.f32.gmra.mrb[242].mxu0 %vm916_vm0, %v7435_v55  ;;  %v4823_v63 = vmul.f32 %v4775_v11, %v2264_v56  ;;  %v11376_v35 = vpop.f32.mrb[195].mxu0  ;;  %v13831_v55 = vld [vmem:[#allocation20_spill] sm:$0xff] }
 0x40b   : > { %3002 = vmatprep.mubr.f32.mxu0 %v13253_v45  ;;  %v11373_v32 = vadd.f32 %v4806_v24, %v10854_v14  ;;  %5082 = vperm.xlu1 %7251, %v10668_v12   ;;  %13829 = vst [vmem:[#allocation23_spill] sm:$0xff] %v11376_v35  ;;  %v11384_v56 = vpop.f32.mrb[196].mxu0  ;;  %v2186_v36 = vadd.f32 %v13831_v55, %v11041_v49  ;;  %v7437_v12 = vld [vmem:[%s7710_s29 + $0xa8] sm:$0xff] }
 0x40c   : > { %v11379_v42 = vadd.f32 %v4823_v63, %v11179_v25  ;;  %5166 = vperm.xlu0 %7252, %v11381_v58   ;;  %v4715_v11 = vpop.permute.xlu1 %4714  ;;  %13830 = vst [vmem:[#allocation117_spill] sm:$0xff] %v11384_v56  ;;  %v11388_v24 = vpop.f32.mrb[197].mxu0  ;;  %v13833_v63 = vld [vmem:[#allocation131_spill] sm:$0xff]  ;;  %v11398_v56 = vrot.slane %v11024_v60, %v13834_v41  ;;  %v7438_v41 = vld [vmem:[%s7710_s29 + $0xb0] sm:$0xff] }
 0x40d   : > { %v4808_v39 = vmul.f32 %v4715_v11, %v2174_v43  ;;  %v4783_v14 = vpop.permute.xlu0 %4782  ;;  %13832 = vst [vmem:[#allocation67_spill] sm:$0xff] %v11388_v24  ;;  %v2288_v35 = vadd.f32 %v13833_v63, %v11041_v49 }
 0x40e   : > { %6759 = vmatmul.mubr.msk.f32.gmra.mrb[244].mxu0 %vm916_vm0, %v7437_v12  ;;  %v4825_v25 = vmul.f32 %v4783_v14, %v2276_v13  ;;  %v11404_v11 = vpop.f32.mrb[198].mxu0  ;;  %v13835_v14 = vld [vmem:[#allocation60_spill] sm:$0xff] }
 0x40f   : > { %3008 = vmatprep.mubr.f32.mxu0 %v13253_v45  ;;  %v11401_v43 = vadd.f32 %v4808_v39, %v10869_v7  ;;  %5090 = vperm.xlu1 %7251, %v10689_v61   ;;  %v2198_v12 = vadd.f32 %v13835_v14, %v11041_v49  ;;  %v13836_v61 = vld [vmem:[#allocation101_spill] sm:$0xff]  ;;  %v13837_v14 = vld [vmem:[#allocation87_spill] sm:$0xff] }
 0x410   : > { %v11407_v55 = vadd.f32 %v4825_v25, %v11204_v28  ;;  %5174 = vperm.xlu0 %7252, %v11249_v17   ;;  %v4723_v13 = vpop.permute.xlu1 %4722  ;;  %v2110_v39 = vadd.f32 %v13836_v61, %v11398_v56 }
 0x411   : > { %v4810_v63 = vmul.f32 %v4723_v13, %v2186_v36  ;;  %v4791_v24 = vpop.permute.xlu0 %4790  ;;  %v13112_v36 = vmov 11  }
 0x412   : > { %6760 = vmatmul.mubr.msk.f32.gmra.mrb[246].mxu0 %vm916_vm0, %v7438_v41  ;;  %v4827_v7 = vmul.f32 %v4791_v24, %v2288_v35  ;;  %v2210_v35 = vadd.f32 %v13837_v14, %v11041_v49  ;;  %v11427_v41 = vld [vmem:[#allocation2] sm:$0xff] }
 0x413   : > { %3014 = vmatprep.mubr.f32.mxu0 %v13253_v45  ;;  %v11418_v28 = vadd.f32 %v4810_v63, %v10886_v33  ;;  %5098 = vperm.xlu1 %7251, %v10713_v3   ;;  %v7440_v33 = vld [vmem:[%s7710_s29 + $0xb8] sm:$0xff] }
 0x414   : > { %v11422_v25 = vadd.f32 %v4827_v7, %v11227_v16  ;;  %7253 = vset.pattern.permute.xlu0 %v13112_v36  ;;  %v4731_v13 = vpop.permute.xlu1 %4730  ;;  %v13838_v16 = vld [vmem:[#allocation111_spill] sm:$0xff] }
 0x415   : > { %v4812_v24 = vmul.f32 %v4731_v13, %v2198_v12  ;;  %5246 = vperm.xlu0 %7253, %v11427_v41   ;;  %v2128_v63 = vadd.f32 %v13838_v16, %v11398_v56  ;;  %v13839_v13 = vld [vmem:[#allocation50_spill] sm:$0xff] }
 0x416   : > { %6761 = vmatmul.mubr.msk.f32.gmra.mrb[248].mxu0 %vm916_vm0, %v7440_v33  ;;  %v4863_v3 = vpop.permute.xlu0 %4862  ;;  %v2222_v14 = vadd.f32 %v13839_v13, %v11041_v49  ;;  %v7442_v16 = vld [vmem:[%s7710_s29 + $0xc0] sm:$0xff] }
 0x417   : > { %3020 = vmatprep.mubr.f32.mxu0 %v13253_v45  ;;  %v11436_v7 = vadd.f32 %v4812_v24, %v10906_v47  ;;  %v4989_v61 = vmul.f32 %v4863_v3, %v2110_v39  ;;  %5106 = vperm.xlu1 %7251, %v10739_v57   ;;  %v13840_v57 = vld [vmem:[#allocation116_spill] sm:$0xff]  ;;  %v13841_v3 = vld [vmem:[#allocation34_spill] sm:$0xff] }
 0x418   : > { %v4739_v12 = vpop.permute.xlu1 %4738  ;;  %v2140_v39 = vadd.f32 %v13840_v57, %v11398_v56  ;;  %v7444_v57 = vld [vmem:[%s7710_s29 + $0xc8] sm:$0xff] }
 0x419   : > { %v11442_v36 = vadd.f32 %v4989_v61, %v11258_v19  ;;  %v4814_v33 = vmul.f32 %v4739_v12, %v2210_v35  ;;  %5258 = vperm.xlu0 %7253, %v11444_v8   ;;  %v2234_v61 = vadd.f32 %v13841_v3, %v11041_v49 }
 0x41a   : > { %6762 = vmatmul.mubr.msk.f32.gmra.mrb[250].mxu0 %vm916_vm0, %v7442_v16  ;;  %v4875_v47 = vpop.permute.xlu0 %4874  ;;  %v11461_v16 = vld [vmem:[#allocation2 + $0x28] sm:$0xff] }
 0x41b   : > { %3026 = vmatprep.mubr.f32.mxu0 %v13253_v45  ;;  %v11453_v24 = vadd.f32 %v4814_v33, %v10928_v18  ;;  %v4992_v19 = vmul.f32 %v4875_v47, %v2128_v63  ;;  %5114 = vperm.xlu1 %7251, %v10760_v5   ;;  %13842 = vst [vmem:[#allocation71_spill] sm:$0xff] %v11461_v16  ;;  %v13843_v5 = vld [vmem:[#allocation17_spill] sm:$0xff]  ;;  %v13844_v47 = vld [vmem:[#allocation68_spill] sm:$0xff] }
 0x41c   : > { %v4747_v35 = vpop.permute.xlu1 %4746  ;;  %v2152_v63 = vadd.f32 %v13843_v5, %v11398_v56  ;;  %v7446_v5 = vld [vmem:[%s7710_s29 + $0xd0] sm:$0xff] }
 0x41d   : > { %v11459_v12 = vadd.f32 %v4992_v19, %v11304_v6  ;;  %v4816_v13 = vmul.f32 %v4747_v35, %v2222_v14  ;;  %5266 = vperm.xlu0 %7253, %v11461_v16   ;;  %v2246_v19 = vadd.f32 %v13844_v47, %v11041_v49 }
 0x41e   : > { %6763 = vmatmul.mubr.msk.f32.gmra.mrb[252].mxu0 %vm916_vm0, %v7444_v57  ;;  %v4883_v18 = vpop.permute.xlu0 %4882  ;;  %v11478_v57 = vld [vmem:[#allocation2 + $0x38] sm:$0xff] }
 0x41f   : > { %3032 = vmatprep.mubr.f32.mxu0 %v13253_v45  ;;  %v11470_v33 = vadd.f32 %v4816_v13, %v10946_v4  ;;  %v4994_v6 = vmul.f32 %v4883_v18, %v2140_v39  ;;  %5122 = vperm.xlu1 %7251, %v10782_v37   ;;  %13845 = vst [vmem:[#allocation121_spill] sm:$0xff] %v11478_v57  ;;  %v13846_v37 = vld [vmem:[#allocation13_spill] sm:$0xff] }
 0x420   : > { %v4755_v14 = vpop.permute.xlu1 %4754  ;;  %v2164_v39 = vadd.f32 %v13846_v37, %v11398_v56  ;;  %v13847_v13 = vld [vmem:[#allocation49_spill] sm:$0xff] }
 0x421   : > { %v11476_v35 = vadd.f32 %v4994_v6, %v11327_v26  ;;  %v4818_v3 = vmul.f32 %v4755_v14, %v2234_v61  ;;  %5274 = vperm.xlu0 %7253, %v11478_v57   ;;  %v13848_v6 = vld [vmem:[#allocation59_spill] sm:$0xff]  ;;  %v7448_v37 = vld [vmem:[%s7710_s29 + $0xd8] sm:$0xff] }
 0x422   : > { %6764 = vmatmul.mubr.msk.f32.gmra.mrb[254].mxu0 %vm916_vm0, %v7446_v5  ;;  %v4891_v4 = vpop.permute.xlu0 %4890  ;;  %v13849_v14 = vld [vmem:[#allocation123_spill] sm:$0xff] }
 0x423   : > { %3038 = vmatprep.mubr.f32.mxu0 %v13253_v45  ;;  %v11487_v18 = vadd.f32 %v4818_v3, %v13847_v13  ;;  %v4996_v26 = vmul.f32 %v4891_v4, %v2152_v63  ;;  %5130 = vperm.xlu1 %7251, %v13848_v6   ;;  %v2258_v47 = vadd.f32 %v13849_v14, %v11041_v49  ;;  %v13852_v63 = vld [vmem:[#allocation21_spill] sm:$0xff]  ;;  %v13853_v13 = vld [vmem:[#allocation135_spill] sm:$0xff] }
 0x424   : > { %v4763_v61 = vpop.permute.xlu1 %4762  ;;  %v2176_v4 = vadd.f32 %v13852_v63, %v11398_v56  ;;  %v7450_v63 = vld [vmem:[%s7710_s29 + $0xe0] sm:$0xff] }
 0x425   : > { %v11493_v29 = vadd.f32 %v4996_v26, %v11350_v1  ;;  %v4820_v5 = vmul.f32 %v4763_v61, %v2246_v19  ;;  %5282 = vperm.xlu0 %7253, %v11495_v30   ;;  %v13854_v26 = vld [vmem:[#allocation122_spill] sm:$0xff]  ;;  %v13855_v61 = vld [vmem:[#allocation51_spill] sm:$0xff]  ;;  %v11512_v30 = vld [vmem:[#allocation2 + $0x58] sm:$0xff] }
 0x426   : > { %6765 = vmatmul.mubr.msk.f32.gmra.mrb[0].mxu0 %vm916_vm0, %v7448_v37  ;;  %v4899_v3 = vpop.permute.xlu0 %4898  ;;  %v2270_v14 = vadd.f32 %v13855_v61, %v11041_v49  ;;  %13857 = vst [vmem:[#allocation74_spill] sm:$0xff] %v11512_v30 }
 0x427   : > { %13850 = vst [vmem:[#allocation45_spill] sm:$0xff] %v11493_v29  ;;  %3044 = vmatprep.mubr.f32.mxu0 %v13253_v45  ;;  %v11504_v6 = vadd.f32 %v4820_v5, %v13853_v13  ;;  %v4998_v1 = vmul.f32 %v4899_v3, %v2164_v39  ;;  %5138 = vperm.xlu1 %7251, %v13854_v26   ;;  %v13858_v39 = vld [vmem:[#allocation16_spill] sm:$0xff]  ;;  %v13859_v13 = vld [vmem:[#allocation129_spill] sm:$0xff] }
 0x428   : > { %v4771_v19 = vpop.permute.xlu1 %4770  ;;  %v2188_v3 = vadd.f32 %v13858_v39, %v11398_v56  ;;  %v7452_v39 = vld [vmem:[%s7710_s29 + $0xe8] sm:$0xff] }
 0x429   : > { %v11510_v53 = vadd.f32 %v4998_v1, %v11373_v32  ;;  %v4822_v37 = vmul.f32 %v4771_v19, %v2258_v47  ;;  %5290 = vperm.xlu0 %7253, %v11512_v30   ;;  %v13860_v1 = vld [vmem:[#allocation125_spill] sm:$0xff]  ;;  %v13861_v19 = vld [vmem:[#allocation42_spill] sm:$0xff] }
 0x42a   : > { %6766 = vmatmul.mubr.msk.f32.gmra.mrb[2].mxu0 %vm916_vm0, %v7450_v63  ;;  %v4907_v5 = vpop.permute.xlu0 %4906  ;;  %v2282_v57 = vadd.f32 %v13861_v19, %v11041_v49 }
 0x42b   : > { %13856 = vst [vmem:[#allocation11_spill] sm:$0xff] %v11510_v53  ;;  %3050 = vmatprep.mubr.f32.mxu0 %v13253_v45  ;;  %v11521_v61 = vadd.f32 %v4822_v37, %v13859_v13  ;;  %v5000_v32 = vmul.f32 %v4907_v5, %v2176_v4  ;;  %5146 = vperm.xlu1 %7251, %v13860_v1   ;;  %v11529_v53 = vld [vmem:[#allocation2 + $0x68] sm:$0xff]  ;;  %v13864_v4 = vld [vmem:[#allocation96_spill] sm:$0xff] }
 0x42c   : > { %v4779_v47 = vpop.permute.xlu1 %4778  ;;  %13863 = vst [vmem:[#allocation94_spill] sm:$0xff] %v11529_v53  ;;  %v2200_v5 = vadd.f32 %v13864_v4, %v11398_v56  ;;  %v13865_v13 = vld [vmem:[#allocation132_spill] sm:$0xff] }
 0x42d   : > { %v11527_v30 = vadd.f32 %v5000_v32, %v11401_v43  ;;  %v4824_v63 = vmul.f32 %v4779_v47, %v2270_v14  ;;  %5298 = vperm.xlu0 %7253, %v11529_v53   ;;  %v13866_v32 = vld [vmem:[#allocation30_spill] sm:$0xff]  ;;  %v7454_v4 = vld [vmem:[%s7710_s29 + $0xf0] sm:$0xff] }
 0x42e   : > { %6767 = vmatmul.mubr.msk.f32.gmra.mrb[4].mxu0 %vm916_vm0, %v7452_v39  ;;  %v4915_v37 = vpop.permute.xlu0 %4914  ;;  %v13869_v39 = vld [vmem:[#allocation134_spill] sm:$0xff] }
 0x42f   : > { %13862 = vst [vmem:[#allocation8_spill] sm:$0xff] %v11527_v30  ;;  %3056 = vmatprep.mubr.f32.mxu0 %v13253_v45  ;;  %v11538_v19 = vadd.f32 %v4824_v63, %v13865_v13  ;;  %v5002_v43 = vmul.f32 %v4915_v37, %v2188_v3  ;;  %5154 = vperm.xlu1 %7251, %v13866_v32   ;;  %v11544_v30 = vld [vmem:[#allocation2 + $0x78] sm:$0xff]  ;;  %v13870_v3 = vld [vmem:[#allocation119_spill] sm:$0xff] }
 0x430   : > { %v4787_v14 = vpop.permute.xlu1 %4786  ;;  %13868 = vst [vmem:[#allocation102_spill] sm:$0xff] %v11544_v30  ;;  %v2294_v16 = vadd.f32 %v13869_v39, %v11041_v49  ;;  %v2212_v37 = vadd.f32 %v13870_v3, %v11398_v56  ;;  %v11561_v39 = vld [vmem:[#allocation2 + $0x88] sm:$0xff] }
 0x431   : > { %v11542_v47 = vadd.f32 %v5002_v43, %v11418_v28  ;;  %v4826_v53 = vmul.f32 %v4787_v14, %v2282_v57  ;;  %5306 = vperm.xlu0 %7253, %v11544_v30   ;;  %v13871_v28 = vld [vmem:[#allocation28_spill] sm:$0xff]  ;;  %v13872_v43 = vld [vmem:[#allocation118_spill] sm:$0xff]  ;;  %13874 = vst [vmem:[#allocation105_spill] sm:$0xff] %v11561_v39 }
 0x432   : > { %6768 = vmatmul.mubr.msk.f32.gmra.mrb[6].mxu0 %vm916_vm0, %v7454_v4  ;;  %v4923_v63 = vpop.permute.xlu0 %4922  ;;  %v7456_v4 = vld [vmem:[%s7710_s29 + $0xf8] sm:$0xff]  ;;  %s7511_s29 = scalar_lea.vmem %s7510_s11, 4096 }
 0x433   : > { %13867 = vst [vmem:[#allocation27_spill] sm:$0xff] %v11542_v47  ;;  %3062 = vmatprep.mubr.f32.mxu0 %v13253_v45  ;;  %v11555_v13 = vadd.f32 %v4826_v53, %v13871_v28  ;;  %v5004_v57 = vmul.f32 %v4923_v63, %v2200_v5  ;;  %5162 = vperm.xlu1 %7251, %v13872_v43   ;;  %v13875_v45 = vld [vmem:[#allocation84_spill] sm:$0xff]  ;;  %v13876_v5 = vld [vmem:[#allocation77_spill] sm:$0xff]  ;;  %p7513_p2 = scmp.lt.s32.totalorder %s7511_s29, %s7505_s21 }
 0x434   : > { %v4795_v14 = vpop.permute.xlu1 %4794  ;;  %v2116_v3 = vadd.f32 %v13875_v45, %v11398_v56  ;;  %v2224_v63 = vadd.f32 %v13876_v5, %v11398_v56  ;;  %v13877_v28 = vld [vmem:[#allocation65_spill] sm:$0xff]  ;;  %v13883_v5 = vld [vmem:[#allocation83_spill] sm:$0xff] }
 0x435   : > { %v11559_v30 = vadd.f32 %v5004_v57, %v11436_v7  ;;  %v4828_v49 = vmul.f32 %v4795_v14, %v2294_v16  ;;  %5314 = vperm.xlu0 %7253, %v11561_v39   ;;  %v13878_v57 = vld [vmem:[#allocation33_spill] sm:$0xff]  ;;  %v11574_v16 = vpop.f32.mrb[199].mxu0  ;;  %p7514_p3 = por %p7513_p2, %p7512_p1 }
 0x436   : > { %6769 = vmatmul.mubr.msk.f32.gmra.mrb[8].mxu0 %vm916_vm0, %v7456_v4  ;;  %v4931_v53 = vpop.permute.xlu0 %4930  ;;  %13879 = vst [vmem:[#allocation107_spill] sm:$0xff] %v11574_v16  ;;  %v11579_v39 = vld [vmem:[#allocation2 + $0x98] sm:$0xff]  ;;  %v11582_v45 = vpop.f32.mrb[200].mxu0  ;;  %v13885_v16 = vld [vmem:[#allocation79_spill] sm:$0xff] }
 0x437   : > { %13873 = vst [vmem:[#allocation61_spill] sm:$0xff] %v11559_v30  ;;  %v11571_v47 = vadd.f32 %v4828_v49, %v13877_v28  ;;  %v5006_v7 = vmul.f32 %v4931_v53, %v2212_v37  ;;  %5170 = vperm.xlu1 %7251, %v13878_v57   ;;  %13881 = vst [vmem:[#allocation54_spill] sm:$0xff] %v11579_v39  ;;  %v2122_v30 = vadd.f32 %v13883_v5, %v11398_v56  ;;  %v13884_v37 = vld [vmem:[#allocation53_spill] sm:$0xff]  ;;  %p7515_p5 = pnand %p7514_p3, %p7508_p0 }
 0x438   : > { %13882 = vst [vmem:[#allocation97_spill] sm:$0xff] %v11582_v45  ;;  %v2236_v53 = vadd.f32 %v13884_v37, %v11398_v56 }
 0x439   : > { %v11577_v14 = vadd.f32 %v5006_v7, %v11453_v24  ;;  %5322 = vperm.xlu0 %7253, %v11579_v39   ;;  %v4867_v4 = vpop.permute.xlu1 %4866  ;;  %v13886_v39 = vld [vmem:[#allocation58_spill] sm:$0xff] }
 0x43a   : > { %v4990_v49 = vmul.f32 %v4867_v4, %v2116_v3  ;;  %v4939_v28 = vpop.permute.xlu0 %4938  ;;  %v2134_v5 = vadd.f32 %v13886_v39, %v11398_v56 }
 0x43b   : > { %13880 = vst [vmem:[#allocation110_spill] sm:$0xff] %v11577_v14  ;;  %v5008_v29 = vmul.f32 %v4939_v28, %v2224_v63  ;;  %5178 = vperm.xlu1 %7251, %v13885_v16   ;;  %v13887_v14 = vld [vmem:[#allocation62_spill] sm:$0xff]  ;;  %v13888_v28 = vmov 11  }
 0x43c   : > { %v11590_v24 = vadd.f32 %v4990_v49, %v11100_v44  ;;  %v2248_v37 = vadd.f32 %v13887_v14, %v11398_v56  ;;  %v11604_v49 = vld [vmem:[#allocation2 + $0x8] sm:$0xff] }
 0x43d   : > { %v11593_v7 = vadd.f32 %v5008_v29, %v11470_v33  ;;  %5330 = vperm.xlu0 %7253, %v13854_v26   ;;  %v4871_v45 = vpop.permute.xlu1 %4870  ;;  %13889 = vst [vmem:[#allocation57_spill] sm:$0xff] %v11604_v49  ;;  %v13890_v33 = vld [vmem:[#allocation99_spill] sm:$0xff] }
 0x43e   : > { %v4991_v3 = vmul.f32 %v4871_v45, %v2122_v30  ;;  %v4947_v4 = vpop.permute.xlu0 %4946  ;;  %v2146_v26 = vadd.f32 %v13890_v33, %v11398_v56  ;;  %v13891_v45 = vld [vmem:[#allocation10_spill] sm:$0xff] }
 0x43f   : > { %v5010_v63 = vmul.f32 %v4947_v4, %v2236_v53  ;;  %7254 = vset.pattern.permute.xlu1 %v13888_v28  ;;  %v2260_v53 = vadd.f32 %v13891_v45, %v11398_v56  ;;  %v11618_v4 = vld [vmem:[#allocation2 + $0x10] sm:$0xff] }
 0x440   : > { %v11602_v44 = vadd.f32 %v4991_v3, %v11281_v15  ;;  %5250 = vperm.xlu1 %7254, %v11604_v49  }
 0x441   : > { %v11608_v29 = vadd.f32 %v5010_v63, %v11487_v18  ;;  %5338 = vperm.xlu0 %7253, %v13860_v1   ;;  %v4879_v30 = vpop.permute.xlu1 %4878 }
 0x442   : > { %v4993_v39 = vmul.f32 %v4879_v30, %v2134_v5  ;;  %v4955_v14 = vpop.permute.xlu0 %4954  ;;  %v13892_v5 = vld [vmem:[#allocation19_spill] sm:$0xff] }
 0x443   : > { %v5012_v15 = vmul.f32 %v4955_v14, %v2248_v37  ;;  %v2158_v63 = vadd.f32 %v13892_v5, %v11398_v56  ;;  %v13893_v37 = vld [vmem:[#allocation128_spill] sm:$0xff]  ;;  %v11632_v14 = vld [vmem:[#allocation2 + $0x20] sm:$0xff] }
 0x444   : > { %v11616_v3 = vadd.f32 %v4993_v39, %v11123_v22  ;;  %5254 = vperm.xlu1 %7254, %v11618_v4   ;;  %v2272_v33 = vadd.f32 %v13893_v37, %v11398_v56  ;;  %13894 = vst [vmem:[#allocation103_spill] sm:$0xff] %v11632_v14 }
 0x445   : > { %v11622_v18 = vadd.f32 %v5012_v15, %v11504_v6  ;;  %5346 = vperm.xlu0 %7253, %v13866_v32   ;;  %v4887_v1 = vpop.permute.xlu1 %4886 }
 0x446   : > { %v4995_v28 = vmul.f32 %v4887_v1, %v2146_v26  ;;  %v4963_v30 = vpop.permute.xlu0 %4962  ;;  %v13895_v26 = vld [vmem:[#allocation25_spill] sm:$0xff] }
 0x447   : > { %v5014_v22 = vmul.f32 %v4963_v30, %v2260_v53  ;;  %v2170_v45 = vadd.f32 %v13895_v26, %v11398_v56  ;;  %v13896_v53 = vld [vmem:[#allocation48_spill] sm:$0xff] }
 0x448   : > { %v11630_v39 = vadd.f32 %v4995_v28, %v11146_v38  ;;  %5262 = vperm.xlu1 %7254, %v11632_v14   ;;  %v2284_v5 = vadd.f32 %v13896_v53, %v11398_v56  ;;  %v11646_v30 = vld [vmem:[#allocation2 + $0x30] sm:$0xff]  ;;  %v11662_v53 = vld [vmem:[#allocation2 + $0x40] sm:$0xff] }
 0x449   : > { %v11636_v6 = vadd.f32 %v5014_v22, %v11521_v61  ;;  %5354 = vperm.xlu0 %7253, %v13872_v43   ;;  %v4895_v32 = vpop.permute.xlu1 %4894  ;;  %13897 = vst [vmem:[#allocation32_spill] sm:$0xff] %v11646_v30  ;;  %13901 = vst [vmem:[#allocation124_spill] sm:$0xff] %v11662_v53 }
 0x44a   : > { %v4997_v15 = vmul.f32 %v4895_v32, %v2158_v63  ;;  %v4971_v1 = vpop.permute.xlu0 %4970  ;;  %v13898_v63 = vld [vmem:[#allocation100_spill] sm:$0xff] }
 0x44b   : > { %v5016_v38 = vmul.f32 %v4971_v1, %v2272_v33  ;;  %v2182_v37 = vadd.f32 %v13898_v63, %v11398_v56  ;;  %v13899_v33 = vld [vmem:[#allocation136_spill] sm:$0xff] }
 0x44c   : > { %v11644_v28 = vadd.f32 %v4997_v15, %v11169_v27  ;;  %5270 = vperm.xlu1 %7254, %v11646_v30   ;;  %v2296_v27 = vadd.f32 %v13899_v33, %v11398_v56  ;;  %v11657_v15 = vpop.f32.mrb[201].mxu0 }
 0x44d   : > { %v11650_v61 = vadd.f32 %v5016_v38, %v11538_v19  ;;  %5362 = vperm.xlu0 %7253, %v13878_v57   ;;  %v4903_v43 = vpop.permute.xlu1 %4902  ;;  %13900 = vst [vmem:[#allocation106_spill] sm:$0xff] %v11657_v15  ;;  %v13902_v19 = vsub.s32 2, %v13464_v21 }
 0x44e   : > { %v4999_v22 = vmul.f32 %v4903_v43, %v2170_v45  ;;  %v4979_v32 = vpop.permute.xlu0 %4978  ;;  %v11670_v45 = vpop.f32.mrb[214].mxu1 }
 0x44f   : > { %v5018_v26 = vmul.f32 %v4979_v32, %v2284_v5  ;;  %v11668_v57 = vrot.slane %v11024_v60, %v13902_v19  ;;  %13903 = vst [vmem:[#allocation12_spill] sm:$0xff] %v11670_v45  ;;  %v11676_v43 = vpop.f32.mrb[215].mxu1 }
 0x450   : > { %v11660_v1 = vadd.f32 %v4999_v22, %v11194_v31  ;;  %5278 = vperm.xlu1 %7254, %v11662_v53   ;;  %13904 = vst [vmem:[#allocation43_spill] sm:$0xff] %v11676_v43  ;;  %v13905_v31 = vld [vmem:[#allocation22_spill] sm:$0xff]  ;;  %v11680_v33 = vpop.f32.mrb[216].mxu1 }
 0x451   : > { %v11673_v5 = vadd.f32 %v5018_v26, %v11555_v13  ;;  %5370 = vperm.xlu0 %7253, %v13885_v16   ;;  %v4911_v38 = vpop.permute.xlu1 %4910  ;;  %v2194_v63 = vadd.f32 %v13905_v31, %v11398_v56  ;;  %13906 = vst [vmem:[#allocation20_spill] sm:$0xff] %v11680_v33  ;;  %v11682_v60 = vpop.f32.mrb[217].mxu1  ;;  %v13908_v13 = vld [vmem:[#allocation9_spill] sm:$0xff]  ;;  %v11689_v16 = vld [vmem:[#allocation2 + $0x50] sm:$0xff] }
 0x452   : > { %v5001_v22 = vmul.f32 %v4911_v38, %v2182_v37  ;;  %v4987_v32 = vpop.permute.xlu0 %4986  ;;  %13907 = vst [vmem:[#allocation131_spill] sm:$0xff] %v11682_v60  ;;  %v2371_v26 = vadd.f32 %v13908_v13, %v11668_v57  ;;  %13909 = vst [vmem:[#allocation60_spill] sm:$0xff] %v11689_v16  ;;  %v11692_v43 = vpop.f32.mrb[218].mxu1  ;;  %v13129_v38 = vmov 12  }
 0x453   : > { %v5020_v15 = vmul.f32 %v4987_v32, %v2296_v27  ;;  %13910 = vst [vmem:[#allocation101_spill] sm:$0xff] %v11692_v43  ;;  %v11698_v31 = vpop.f32.mrb[219].mxu1  ;;  %v11710_v43 = vld [vmem:[#allocation2 + $0x60] sm:$0xff] }
 0x454   : > { %v11685_v19 = vadd.f32 %v5001_v22, %v11215_v48  ;;  %5286 = vperm.xlu1 %7254, %v11689_v16   ;;  %13911 = vst [vmem:[#allocation87_spill] sm:$0xff] %v11698_v31  ;;  %v13912_v48 = vld [vmem:[#allocation7_spill] sm:$0xff]  ;;  %v11703_v13 = vpop.f32.mrb[220].mxu1 }
 0x455   : > { %v11695_v37 = vadd.f32 %v5020_v15, %v11571_v47  ;;  %7256 = vset.pattern.permute.xlu0 %v13129_v38  ;;  %v4919_v27 = vpop.permute.xlu1 %4918  ;;  %v2206_v22 = vadd.f32 %v13912_v48, %v11398_v56  ;;  %13913 = vst [vmem:[#allocation111_spill] sm:$0xff] %v11703_v13  ;;  %v11705_v45 = vpop.f32.mrb[221].mxu1  ;;  %v13915_v38 = vld [vmem:[#allocation31_spill] sm:$0xff]  ;;  %v13918_v13 = vld [vmem:[#allocation70_spill] sm:$0xff] }
 0x456   : > { %v5003_v32 = vmul.f32 %v4919_v27, %v2194_v63  ;;  %5442 = vperm.xlu0 %7256, %v11604_v49   ;;  %13914 = vst [vmem:[#allocation50_spill] sm:$0xff] %v11705_v45  ;;  %v2389_v31 = vadd.f32 %v13915_v38, %v11668_v57  ;;  %v11715_v48 = vpop.f32.mrb[222].mxu1  ;;  %v2218_v33 = vadd.f32 %v13918_v13, %v11398_v56  ;;  %v11732_v49 = vld [vmem:[#allocation2 + $0x70] sm:$0xff]  ;;  %v13921_v13 = vld [vmem:[#allocation47_spill] sm:$0xff] }
 0x457   : > { %v5059_v60 = vpop.permute.xlu0 %5058  ;;  %13916 = vst [vmem:[#allocation116_spill] sm:$0xff] %v11715_v48  ;;  %v11717_v27 = vpop.f32.mrb[223].mxu1 }
 0x458   : > { %v11708_v47 = vadd.f32 %v5003_v32, %v11238_v50  ;;  %v5182_v15 = vmul.f32 %v5059_v60, %v2371_v26  ;;  %5294 = vperm.xlu1 %7254, %v11710_v43   ;;  %13917 = vst [vmem:[#allocation34_spill] sm:$0xff] %v11717_v27  ;;  %v11725_v60 = vpop.f32.mrb[224].mxu1  ;;  %v13924_v27 = vld [vmem:[#allocation38_spill] sm:$0xff] }
 0x459   : > { %v4927_v63 = vpop.permute.xlu1 %4926  ;;  %13919 = vst [vmem:[#allocation17_spill] sm:$0xff] %v11725_v60  ;;  %v11727_v32 = vpop.f32.mrb[225].mxu1  ;;  %v2230_v60 = vadd.f32 %v13924_v27, %v11398_v56  ;;  %v13927_v27 = vld [vmem:[#allocation98_spill] sm:$0xff] }
 0x45a   : > { %v11722_v45 = vadd.f32 %v5182_v15, %v11590_v24  ;;  %v5005_v50 = vmul.f32 %v4927_v63, %v2206_v22  ;;  %5454 = vperm.xlu0 %7256, %v11632_v14   ;;  %13920 = vst [vmem:[#allocation68_spill] sm:$0xff] %v11727_v32  ;;  %v2401_v24 = vadd.f32 %v13921_v13, %v11668_v57  ;;  %v11737_v15 = vpop.f32.mrb[226].mxu1  ;;  %v11754_v14 = vld [vmem:[#allocation2 + $0x80] sm:$0xff] }
 0x45b   : > { %v5071_v26 = vpop.permute.xlu0 %5070  ;;  %13922 = vst [vmem:[#allocation13_spill] sm:$0xff] %v11737_v15  ;;  %v11739_v63 = vpop.f32.mrb[227].mxu1 }
 0x45c   : > { %v11730_v38 = vadd.f32 %v5005_v50, %v11263_v40  ;;  %v5185_v48 = vmul.f32 %v5071_v26, %v2389_v31  ;;  %5302 = vperm.xlu1 %7254, %v11732_v49   ;;  %13923 = vst [vmem:[#allocation49_spill] sm:$0xff] %v11739_v63  ;;  %v11747_v31 = vpop.f32.mrb[228].mxu1  ;;  %v13930_v63 = vld [vmem:[#allocation78_spill] sm:$0xff] }
 0x45d   : > { %v4935_v22 = vpop.permute.xlu1 %4934  ;;  %13925 = vst [vmem:[#allocation59_spill] sm:$0xff] %v11747_v31  ;;  %v11749_v26 = vpop.f32.mrb[229].mxu1  ;;  %v2242_v31 = vadd.f32 %v13930_v63, %v11398_v56  ;;  %v13933_v63 = vld [vmem:[#allocation14_spill] sm:$0xff] }
 0x45e   : > { %v11744_v32 = vadd.f32 %v5185_v48, %v11616_v3  ;;  %v5007_v40 = vmul.f32 %v4935_v22, %v2218_v33  ;;  %5462 = vperm.xlu0 %7256, %v11646_v30   ;;  %13926 = vst [vmem:[#allocation123_spill] sm:$0xff] %v11749_v26  ;;  %v2413_v3 = vadd.f32 %v13927_v27, %v11668_v57  ;;  %v11759_v48 = vpop.f32.mrb[230].mxu1  ;;  %v11776_v30 = vld [vmem:[#allocation2 + $0x90] sm:$0xff] }
 0x45f   : > { %v5079_v50 = vpop.permute.xlu0 %5078  ;;  %13928 = vst [vmem:[#allocation21_spill] sm:$0xff] %v11759_v48  ;;  %v11761_v22 = vpop.f32.mrb[231].mxu1 }
 0x460   : > { %v11752_v13 = vadd.f32 %v5007_v40, %v11287_v9  ;;  %v5187_v15 = vmul.f32 %v5079_v50, %v2401_v24  ;;  %5310 = vperm.xlu1 %7254, %v11754_v14   ;;  %13929 = vst [vmem:[#allocation135_spill] sm:$0xff] %v11761_v22  ;;  %v11769_v24 = vpop.f32.mrb[232].mxu1  ;;  %v13936_v22 = vld [vmem:[#allocation46_spill] sm:$0xff] }
 0x461   : > { %v4943_v33 = vpop.permute.xlu1 %4942  ;;  %13931 = vst [vmem:[#allocation122_spill] sm:$0xff] %v11769_v24  ;;  %v11771_v50 = vpop.f32.mrb[233].mxu1  ;;  %v2254_v24 = vadd.f32 %v13936_v22, %v11398_v56  ;;  %v13939_v22 = vld [vmem:[#allocation39_spill] sm:$0xff] }
 0x462   : > { %v11766_v26 = vadd.f32 %v5187_v15, %v11630_v39  ;;  %v5009_v9 = vmul.f32 %v4943_v33, %v2230_v60  ;;  %5470 = vperm.xlu0 %7256, %v11662_v53   ;;  %13932 = vst [vmem:[#allocation51_spill] sm:$0xff] %v11771_v50  ;;  %v2425_v39 = vadd.f32 %v13933_v63, %v11668_v57  ;;  %v11781_v15 = vpop.f32.mrb[234].mxu1  ;;  %v11798_v53 = vld [vmem:[#allocation2 + $0xa0] sm:$0xff] }
 0x463   : > { %v5087_v40 = vpop.permute.xlu0 %5086  ;;  %13934 = vst [vmem:[#allocation16_spill] sm:$0xff] %v11781_v15  ;;  %v11783_v33 = vpop.f32.mrb[235].mxu1 }
 0x464   : > { %v11774_v27 = vadd.f32 %v5009_v9, %v11310_v0  ;;  %v5189_v48 = vmul.f32 %v5087_v40, %v2413_v3  ;;  %5318 = vperm.xlu1 %7254, %v11776_v30   ;;  %13935 = vst [vmem:[#allocation129_spill] sm:$0xff] %v11783_v33  ;;  %v11791_v3 = vpop.f32.mrb[236].mxu1  ;;  %v13942_v33 = vld [vmem:[#allocation76_spill] sm:$0xff] }
 0x465   : > { %v4951_v60 = vpop.permute.xlu1 %4950  ;;  %13937 = vst [vmem:[#allocation125_spill] sm:$0xff] %v11791_v3  ;;  %v11793_v40 = vpop.f32.mrb[237].mxu1  ;;  %v2266_v3 = vadd.f32 %v13942_v33, %v11398_v56 }
 0x466   : > { %v11788_v50 = vadd.f32 %v5189_v48, %v11644_v28  ;;  %v5011_v0 = vmul.f32 %v4951_v60, %v2242_v31  ;;  %5478 = vperm.xlu0 %7256, %v11689_v16   ;;  %13938 = vst [vmem:[#allocation42_spill] sm:$0xff] %v11793_v40  ;;  %v2437_v28 = vadd.f32 %v13939_v22, %v11668_v57  ;;  %v11803_v48 = vpop.f32.mrb[238].mxu1  ;;  %v11820_v16 = vld [vmem:[#allocation2 + $0xb0] sm:$0xff] }
 0x467   : > { %v5095_v9 = vpop.permute.xlu0 %5094  ;;  %13940 = vst [vmem:[#allocation96_spill] sm:$0xff] %v11803_v48  ;;  %v11805_v60 = vpop.f32.mrb[239].mxu1 }
 0x468   : > { %v11796_v63 = vadd.f32 %v5011_v0, %v11333_v51  ;;  %v5191_v15 = vmul.f32 %v5095_v9, %v2425_v39  ;;  %5326 = vperm.xlu1 %7254, %v11798_v53   ;;  %13941 = vst [vmem:[#allocation132_spill] sm:$0xff] %v11805_v60  ;;  %v11813_v39 = vpop.f32.mrb[240].mxu1 }
 0x469   : > { %v4959_v31 = vpop.permute.xlu1 %4958  ;;  %13943 = vst [vmem:[#allocation30_spill] sm:$0xff] %v11813_v39  ;;  %v11815_v9 = vpop.f32.mrb[241].mxu1 }
 0x46a   : > { %v11810_v40 = vadd.f32 %v5191_v15, %v11660_v1  ;;  %v5013_v51 = vmul.f32 %v4959_v31, %v2254_v24  ;;  %5486 = vperm.xlu0 %7256, %v11710_v43   ;;  %13944 = vst [vmem:[#allocation134_spill] sm:$0xff] %v11815_v9  ;;  %v2449_v1 = vadd.f32 %v11209_v62, %v11668_v57  ;;  %v11825_v15 = vpop.f32.mrb[242].mxu1  ;;  %v13946_v31 = vld [vmem:[#allocation64_spill] sm:$0xff] }
 0x46b   : > { %v5103_v0 = vpop.permute.xlu0 %5102  ;;  %v11827_v33 = vpop.f32.mrb[243].mxu1  ;;  %v2278_v60 = vadd.f32 %v13946_v31, %v11398_v56  ;;  %v2461_v31 = vadd.f32 %v11232_v52, %v11668_v57 }
 0x46c   : > { %v11818_v22 = vadd.f32 %v5013_v51, %v11356_v10  ;;  %v5193_v48 = vmul.f32 %v5103_v0, %v2437_v28  ;;  %5334 = vperm.xlu1 %7254, %v11820_v16   ;;  %13945 = vst [vmem:[#allocation119_spill] sm:$0xff] %v11827_v33  ;;  %v11835_v28 = vpop.f32.mrb[244].mxu1 }
 0x46d   : > { %v4967_v24 = vpop.permute.xlu1 %4966  ;;  %13947 = vst [vmem:[#allocation28_spill] sm:$0xff] %v11835_v28  ;;  %v11837_v0 = vpop.f32.mrb[245].mxu1 }
 0x46e   : > { %v11832_v9 = vadd.f32 %v5193_v48, %v11685_v19  ;;  %v5015_v10 = vmul.f32 %v4967_v24, %v2266_v3  ;;  %5494 = vperm.xlu0 %7256, %v11732_v49   ;;  %13948 = vst [vmem:[#allocation118_spill] sm:$0xff] %v11837_v0  ;;  %v11845_v33 = vpop.f32.mrb[246].mxu1  ;;  %v13951_v48 = vld [vmem:[#allocation36_spill] sm:$0xff] }
 0x46f   : > { %v5111_v51 = vpop.permute.xlu0 %5110  ;;  %13949 = vst [vmem:[#allocation84_spill] sm:$0xff] %v11845_v33  ;;  %v11847_v3 = vpop.f32.mrb[247].mxu1  ;;  %v2290_v24 = vadd.f32 %v13951_v48, %v11398_v56  ;;  %v11862_v33 = vld [vmem:[#allocation2 + $0xd0] sm:$0xff]  ;;  %v2473_v56 = vadd.f32 %v11254_v2, %v11668_v57 }
 0x470   : > { %v11840_v62 = vadd.f32 %v5015_v10, %v11379_v42  ;;  %v5195_v39 = vmul.f32 %v5111_v51, %v2449_v1  ;;  %5342 = vperm.xlu1 %7254, %v11181_v20   ;;  %13950 = vst [vmem:[#allocation77_spill] sm:$0xff] %v11847_v3  ;;  %v11855_v42 = vpop.f32.mrb[248].mxu1  ;;  %13954 = vst [vmem:[#allocation83_spill] sm:$0xff] %v11862_v33 }
 0x471   : > { %v4975_v19 = vpop.permute.xlu1 %4974  ;;  %13952 = vst [vmem:[#allocation65_spill] sm:$0xff] %v11855_v42  ;;  %v11857_v10 = vpop.f32.mrb[249].mxu1 }
 0x472   : > { %v11852_v28 = vadd.f32 %v5195_v39, %v11708_v47  ;;  %v5017_v0 = vmul.f32 %v4975_v19, %v2278_v60  ;;  %5502 = vperm.xlu0 %7256, %v11754_v14   ;;  %13953 = vst [vmem:[#allocation33_spill] sm:$0xff] %v11857_v10  ;;  %v11867_v47 = vpop.f32.mrb[250].mxu1 }
 0x473   : > { %v5119_v1 = vpop.permute.xlu0 %5118  ;;  %v11869_v39 = vpop.f32.mrb[251].mxu1 }
 0x474   : > { %v11860_v52 = vadd.f32 %v5017_v0, %v11407_v55  ;;  %v5197_v51 = vmul.f32 %v5119_v1, %v2461_v31  ;;  %5350 = vperm.xlu1 %7254, %v11862_v33   ;;  %13955 = vst [vmem:[#allocation53_spill] sm:$0xff] %v11869_v39  ;;  %v11875_v55 = vpop.f32.mrb[252].mxu1  ;;  %v13957_v0 = vld [vmem:[#allocation73_spill] sm:$0xff] }
 0x475   : > { %v4983_v60 = vpop.permute.xlu1 %4982  ;;  %13956 = vst [vmem:[#allocation79_spill] sm:$0xff] %v11875_v55  ;;  %v2365_v31 = vadd.f32 %v13957_v0, %v11668_v57  ;;  %v11879_v3 = vpop.f32.mrb[253].mxu1 }
 0x476   : > { %v11872_v19 = vadd.f32 %v5197_v51, %v11730_v38  ;;  %v5019_v48 = vmul.f32 %v4983_v60, %v2290_v24  ;;  %5510 = vperm.xlu0 %7256, %v11776_v30   ;;  %13958 = vst [vmem:[#allocation58_spill] sm:$0xff] %v11879_v3  ;;  %v2485_v38 = vadd.f32 %v11277_v59, %v11668_v57  ;;  %v11887_v24 = vpop.f32.mrb[254].mxu1 }
 0x477   : > { %v5127_v1 = vpop.permute.xlu0 %5126  ;;  %v11889_v51 = vpop.f32.mrb[255].mxu1 }
 0x478   : > { %v11882_v2 = vadd.f32 %v5019_v48, %v11422_v25  ;;  %v5199_v10 = vmul.f32 %v5127_v1, %v2473_v56  ;;  %5358 = vperm.xlu1 %7254, %v11381_v58   ;;  %13959 = vst [vmem:[#allocation62_spill] sm:$0xff] %v11889_v51  ;;  %v11895_v39 = vpop.f32.mrb[0].mxu1  ;;  %v13961_v25 = vld [vmem:[#allocation88_spill] sm:$0xff]  ;;  %v2497_v51 = vadd.f32 %v11300_v23, %v11668_v57 }
 0x479   : > { %13960 = vst [vmem:[#allocation99_spill] sm:$0xff] %v11895_v39  ;;  %v2377_v56 = vadd.f32 %v13961_v25, %v11668_v57  ;;  %v11899_v3 = vpop.f32.mrb[1].mxu1 }
 0x47a   : > { %v11892_v60 = vadd.f32 %v5199_v10, %v11752_v13  ;;  %5518 = vperm.xlu0 %7256, %v11798_v53   ;;  %v5055_v0 = vpop.permute.xlu1 %5054  ;;  %13962 = vst [vmem:[#allocation10_spill] sm:$0xff] %v11899_v3  ;;  %v11904_v13 = vpop.f32.mrb[2].mxu1 }
 0x47b   : > { %v5181_v48 = vmul.f32 %v5055_v0, %v2365_v31  ;;  %v5135_v1 = vpop.permute.xlu0 %5134  ;;  %13963 = vst [vmem:[#allocation19_spill] sm:$0xff] %v11904_v13  ;;  %v11909_v55 = vpop.f32.mrb[3].mxu1 }
 0x47c   : > { %v5201_v59 = vmul.f32 %v5135_v1, %v2485_v38  ;;  %5366 = vperm.xlu1 %7254, %v11249_v17   ;;  %13964 = vst [vmem:[#allocation128_spill] sm:$0xff] %v11909_v55  ;;  %v11915_v0 = vpop.f32.mrb[4].mxu1  ;;  %v13966_v38 = vld [vmem:[#allocation40_spill] sm:$0xff] }
 0x47d   : > { %v11907_v10 = vadd.f32 %v5181_v48, %v11442_v36  ;;  %13965 = vst [vmem:[#allocation25_spill] sm:$0xff] %v11915_v0  ;;  %v2383_v25 = vadd.f32 %v13966_v38, %v11668_v57  ;;  %v11919_v3 = vpop.f32.mrb[5].mxu1  ;;  %v13968_v36 = vmov 12   ;;  %v2509_v48 = vadd.f32 %v11323_v54, %v11668_v57  ;;  %v13972_v38 = vld [vmem:[#allocation80_spill] sm:$0xff] }
 0x47e   : > { %v11912_v39 = vadd.f32 %v5201_v59, %v11774_v27  ;;  %5526 = vperm.xlu0 %7256, %v11820_v16   ;;  %v5063_v31 = vpop.permute.xlu1 %5062  ;;  %13967 = vst [vmem:[#allocation48_spill] sm:$0xff] %v11919_v3  ;;  %v11924_v27 = vpop.f32.mrb[6].mxu1  ;;  %v2395_v54 = vadd.f32 %v13972_v38, %v11668_v57 }
 0x47f   : > { %v5183_v1 = vmul.f32 %v5063_v31, %v2377_v56  ;;  %v5143_v23 = vpop.permute.xlu0 %5142  ;;  %13969 = vst [vmem:[#allocation100_spill] sm:$0xff] %v11924_v27  ;;  %v11930_v55 = vpop.f32.mrb[7].mxu1  ;;  %v13997_v27 = vld [vmem:[#allocation6_spill] sm:$0xff] }
 0x480   : > { %v5203_v42 = vmul.f32 %v5143_v23, %v2497_v51  ;;  %7255 = vset.pattern.permute.xlu1 %v13968_v36  ;;  %13970 = vst [vmem:[#allocation136_spill] sm:$0xff] %v11930_v55  ;;  %v11936_v31 = vpop.f32.mrb[8].mxu1 }
 0x481   : > { %v11927_v59 = vadd.f32 %v5183_v1, %v11602_v44  ;;  %5438 = vperm.xlu1 %7255, %v11427_v41   ;;  %13971 = vst [vmem:[#allocation22_spill] sm:$0xff] %v11936_v31  ;;  %v11940_v3 = vpop.f32.mrb[9].mxu1  ;;  %v2521_v1 = vadd.f32 %v11346_v34, %v11668_v57 }
 0x482   : > { %v11933_v56 = vadd.f32 %v5203_v42, %v11796_v63  ;;  %5534 = vperm.xlu0 %7256, %v11181_v20   ;;  %v5067_v51 = vpop.permute.xlu1 %5066  ;;  %13973 = vst [vmem:[#allocation9_spill] sm:$0xff] %v11940_v3  ;;  %v11944_v55 = vpop.f32.mrb[10].mxu1 }
 0x483   : > { %v5184_v23 = vmul.f32 %v5067_v51, %v2383_v25  ;;  %v5151_v36 = vpop.permute.xlu0 %5150  ;;  %13974 = vst [vmem:[#allocation7_spill] sm:$0xff] %v11944_v55  ;;  %v11950_v20 = vpop.f32.mrb[11].mxu1  ;;  %v13992_v55 = vld [vmem:[#allocation121_spill] sm:$0xff] }
 0x484   : > { %v5205_v44 = vmul.f32 %v5151_v36, %v2509_v48  ;;  %13975 = vst [vmem:[#allocation31_spill] sm:$0xff] %v11950_v20  ;;  %v11956_v51 = vpop.f32.mrb[12].mxu1  ;;  %v13977_v48 = vld [vmem:[#allocation126_spill] sm:$0xff] }
 0x485   : > { %v11947_v63 = vadd.f32 %v5184_v23, %v11459_v12  ;;  %5446 = vperm.xlu1 %7255, %v11618_v4   ;;  %13976 = vst [vmem:[#allocation70_spill] sm:$0xff] %v11956_v51  ;;  %v2407_v34 = vadd.f32 %v13977_v48, %v11668_v57  ;;  %v11960_v3 = vpop.f32.mrb[13].mxu1  ;;  %v2533_v23 = vadd.f32 %v11369_v46, %v11668_v57 }
 0x486   : > { %v11953_v42 = vadd.f32 %v5205_v44, %v11818_v22  ;;  %5542 = vperm.xlu0 %7256, %v11862_v33   ;;  %v5075_v25 = vpop.permute.xlu1 %5074  ;;  %13978 = vst [vmem:[#allocation47_spill] sm:$0xff] %v11960_v3  ;;  %v11964_v20 = vpop.f32.mrb[14].mxu1 }
 0x487   : > { %v5186_v38 = vmul.f32 %v5075_v25, %v2395_v54  ;;  %v5159_v36 = vpop.permute.xlu0 %5158  ;;  %13979 = vst [vmem:[#allocation38_spill] sm:$0xff] %v11964_v20  ;;  %v11968_v44 = vpop.f32.mrb[15].mxu1 }
 0x488   : > { %v5207_v12 = vmul.f32 %v5159_v36, %v2521_v1  ;;  %13980 = vst [vmem:[#allocation98_spill] sm:$0xff] %v11968_v44  ;;  %v13982_v1 = vld [vmem:[#allocation130_spill] sm:$0xff]  ;;  %v13985_v44 = vld [vmem:[#allocation45_spill] sm:$0xff] }
 0x489   : > { %v5218_v22 = vadd.f32 %v5186_v38, %v11476_v35  ;;  %5450 = vperm.xlu1 %7255, %v11444_v8   ;;  %v11974_v25 = vpop.f32.mrb[16].mxu1  ;;  %v2419_v48 = vadd.f32 %v13982_v1, %v11668_v57  ;;  %v2545_v38 = vadd.f32 %v11404_v11, %v11668_v57 }
 0x48a   : > { %v11971_v51 = vadd.f32 %v5207_v12, %v11840_v62  ;;  %5550 = vperm.xlu0 %7256, %v11381_v58   ;;  %v5083_v54 = vpop.permute.xlu1 %5082  ;;  %13981 = vst [vmem:[#allocation78_spill] sm:$0xff] %v11974_v25  ;;  %v11978_v3 = vpop.f32.mrb[17].mxu1  ;;  %v11985_v62 = vld [vmem:[%s13010_s4 + $0x8] sm:$0xff]  ;;  %v13984_v58 = vsub.s32 3, %v13464_v21 }
 0x48b   : > { %v5188_v46 = vmul.f32 %v5083_v54, %v2407_v34  ;;  %v5167_v36 = vpop.permute.xlu0 %5166  ;;  %13983 = vst [vmem:[#allocation14_spill] sm:$0xff] %v11978_v3  ;;  %v13986_v34 = vld [vmem:[#allocation71_spill] sm:$0xff] }
 0x48c   : > { %v5209_v35 = vmul.f32 %v5167_v36, %v2533_v23  ;;  %v11990_v12 = vrot.slane %v11985_v62, %v13984_v58  ;;  %v13989_v36 = vld [vmem:[#allocation133_spill] sm:$0xff]  ;;  %v13990_v58 = vld [vmem:[#allocation90_spill] sm:$0xff] }
 0x48d   : > { %v5220_v1 = vadd.f32 %v5188_v46, %v13985_v44  ;;  %5458 = vperm.xlu1 %7255, %v13986_v34   ;;  %v11998_v23 = vpop.f32.mrb[18].mxu1  ;;  %v2431_v3 = vadd.f32 %v13989_v36, %v11668_v57  ;;  %v13991_v44 = vld [vmem:[#allocation11_spill] sm:$0xff] }
 0x48e   : > { %v11995_v54 = vadd.f32 %v5209_v35, %v11860_v52  ;;  %5558 = vperm.xlu0 %7256, %v11249_v17   ;;  %v5091_v11 = vpop.permute.xlu1 %5090  ;;  %13988 = vst [vmem:[#allocation39_spill] sm:$0xff] %v11998_v23  ;;  %v2367_v20 = vadd.f32 %v13990_v58, %v11990_v12  ;;  %v13140_v17 = vmov 13   ;;  %v13994_v23 = vld [vmem:[#allocation114_spill] sm:$0xff] }
 0x48f   : > { %v5190_v25 = vmul.f32 %v5091_v11, %v2419_v48  ;;  %v5175_v31 = vpop.permute.xlu0 %5174  ;;  %v2443_v36 = vadd.f32 %v13994_v23, %v11668_v57 }
 0x490   : > { %13987 = vst [vmem:[#allocation46_spill] sm:$0xff] %v11995_v54  ;;  %v5211_v0 = vmul.f32 %v5175_v31, %v2545_v38  ;;  %v13995_v38 = vld [vmem:[#allocation112_spill] sm:$0xff] }
 0x491   : > { %v5222_v46 = vadd.f32 %v5190_v25, %v13991_v44  ;;  %5466 = vperm.xlu1 %7255, %v13992_v55   ;;  %v2385_v11 = vadd.f32 %v13995_v38, %v11990_v12  ;;  %v13996_v25 = vld [vmem:[#allocation8_spill] sm:$0xff]  ;;  %v14001_v38 = vld [vmem:[#allocation27_spill] sm:$0xff] }
 0x492   : > { %v12007_v52 = vadd.f32 %v5211_v0, %v11882_v2  ;;  %7257 = vset.pattern.permute.xlu0 %v13140_v17  ;;  %v5099_v35 = vpop.permute.xlu1 %5098  ;;  %v13998_v0 = vld [vmem:[#allocation82_spill] sm:$0xff] }
 0x493   : > { %v5192_v48 = vmul.f32 %v5099_v35, %v2431_v3  ;;  %5630 = vperm.xlu0 %7257, %v11427_v41   ;;  %v2455_v17 = vadd.f32 %v13998_v0, %v11668_v57  ;;  %v14000_v3 = vld [vmem:[#allocation26_spill] sm:$0xff] }
 0x494   : > { %13993 = vst [vmem:[#allocation76_spill] sm:$0xff] %v12007_v52  ;;  %v5247_v31 = vpop.permute.xlu0 %5246  ;;  %v2397_v35 = vadd.f32 %v14000_v3, %v11990_v12 }
 0x495   : > { %v5224_v58 = vadd.f32 %v5192_v48, %v13996_v25  ;;  %v5373_v44 = vmul.f32 %v5247_v31, %v2367_v20  ;;  %5474 = vperm.xlu1 %7255, %v13997_v27   ;;  %v14002_v20 = vld [vmem:[#allocation74_spill] sm:$0xff] }
 0x496   : > { %v5107_v2 = vpop.permute.xlu1 %5106  ;;  %v14003_v25 = vld [vmem:[#allocation66_spill] sm:$0xff] }
 0x497   : > { %v12020_v52 = vadd.f32 %v5373_v44, %v11907_v10  ;;  %v5194_v23 = vmul.f32 %v5107_v2, %v2443_v36  ;;  %5642 = vperm.xlu0 %7257, %v11444_v8   ;;  %v2467_v33 = vadd.f32 %v14003_v25, %v11668_v57  ;;  %v14005_v36 = vld [vmem:[#allocation91_spill] sm:$0xff]  ;;  %v14006_v2 = vld [vmem:[#allocation61_spill] sm:$0xff] }
 0x498   : > { %v5259_v41 = vpop.permute.xlu0 %5258  ;;  %v2409_v44 = vadd.f32 %v14005_v36, %v11990_v12 }
 0x499   : > { %13999 = vst [vmem:[#allocation64_spill] sm:$0xff] %v12020_v52  ;;  %v5226_v13 = vadd.f32 %v5194_v23, %v14001_v38  ;;  %v5376_v48 = vmul.f32 %v5259_v41, %v2385_v11  ;;  %5482 = vperm.xlu1 %7255, %v14002_v20   ;;  %v14007_v11 = vld [vmem:[#allocation94_spill] sm:$0xff]  ;;  %v14008_v38 = vld [vmem:[#allocation63_spill] sm:$0xff] }
 0x49a   : > { %v5115_v31 = vpop.permute.xlu1 %5114  ;;  %v2479_v52 = vadd.f32 %v14008_v38, %v11668_v57 }
 0x49b   : > { %v12030_v0 = vadd.f32 %v5376_v48, %v11947_v63  ;;  %v5196_v10 = vmul.f32 %v5115_v31, %v2455_v17  ;;  %5650 = vperm.xlu0 %7257, %v13986_v34   ;;  %v14009_v34 = vld [vmem:[#allocation86_spill] sm:$0xff] }
 0x49c   : > { %v5267_v8 = vpop.permute.xlu0 %5266  ;;  %v2421_v48 = vadd.f32 %v14009_v34, %v11990_v12  ;;  %v14010_v31 = vld [vmem:[#allocation110_spill] sm:$0xff] }
 0x49d   : > { %14004 = vst [vmem:[#allocation36_spill] sm:$0xff] %v12030_v0  ;;  %v5228_v3 = vadd.f32 %v5196_v10, %v14006_v2  ;;  %v5378_v23 = vmul.f32 %v5267_v8, %v2397_v35  ;;  %5490 = vperm.xlu1 %7255, %v14007_v11   ;;  %v14011_v10 = vld [vmem:[#allocation102_spill] sm:$0xff] }
 0x49e   : > { %v5123_v41 = vpop.permute.xlu1 %5122  ;;  %v14012_v8 = vld [vmem:[#allocation18_spill] sm:$0xff] }
 0x49f   : > { %v12039_v25 = vadd.f32 %v5378_v23, %v5218_v22  ;;  %v5198_v63 = vmul.f32 %v5123_v41, %v2467_v33  ;;  %5658 = vperm.xlu0 %7257, %v13992_v55   ;;  %v2491_v2 = vadd.f32 %v14012_v8, %v11668_v57  ;;  %v14013_v55 = vld [vmem:[#allocation104_spill] sm:$0xff] }
 0x4a0   : > { %v5275_v17 = vpop.permute.xlu0 %5274  ;;  %v2433_v23 = vadd.f32 %v14013_v55, %v11990_v12 }
 0x4a1   : > { %v5230_v36 = vadd.f32 %v5198_v63, %v14010_v31  ;;  %v5380_v0 = vmul.f32 %v5275_v17, %v2409_v44  ;;  %5498 = vperm.xlu1 %7255, %v14011_v10   ;;  %v14014_v63 = vld [vmem:[#allocation105_spill] sm:$0xff]  ;;  %v14015_v17 = vld [vmem:[#allocation72_spill] sm:$0xff] }
 0x4a2   : > { %v5131_v35 = vpop.permute.xlu1 %5130  ;;  %v2503_v34 = vadd.f32 %v14015_v17, %v11668_v57 }
 0x4a3   : > { %v12048_v54 = vadd.f32 %v5380_v0, %v5220_v1  ;;  %v5200_v22 = vmul.f32 %v5131_v35, %v2479_v52  ;;  %5666 = vperm.xlu0 %7257, %v13997_v27   ;;  %v14016_v27 = vld [vmem:[#allocation56_spill] sm:$0xff] }
 0x4a4   : > { %v5283_v33 = vpop.permute.xlu0 %5282  ;;  %v2445_v0 = vadd.f32 %v14016_v27, %v11990_v12  ;;  %v14021_v27 = vld [vmem:[#allocation92_spill] sm:$0xff] }
 0x4a5   : > { %v5232_v41 = vadd.f32 %v5200_v22, %v11593_v7  ;;  %v5382_v38 = vmul.f32 %v5283_v33, %v2421_v48  ;;  %5506 = vperm.xlu1 %7255, %v14014_v63   ;;  %v14017_v7 = vld [vmem:[#allocation54_spill] sm:$0xff]  ;;  %v14018_v22 = vld [vmem:[#allocation108_spill] sm:$0xff] }
 0x4a6   : > { %v5139_v44 = vpop.permute.xlu1 %5138  ;;  %v2515_v33 = vadd.f32 %v14018_v22, %v11668_v57 }
 0x4a7   : > { %v12057_v31 = vadd.f32 %v5382_v38, %v5222_v46  ;;  %v5202_v1 = vmul.f32 %v5139_v44, %v2491_v2  ;;  %5674 = vperm.xlu0 %7257, %v14002_v20   ;;  %v14019_v20 = vld [vmem:[#allocation15_spill] sm:$0xff] }
 0x4a8   : > { %v5291_v52 = vpop.permute.xlu0 %5290  ;;  %v2457_v38 = vadd.f32 %v14019_v20, %v11990_v12  ;;  %v14023_v20 = vld [vmem:[#allocation81_spill] sm:$0xff] }
 0x4a9   : > { %v5234_v35 = vadd.f32 %v5202_v1, %v11608_v29  ;;  %v5384_v8 = vmul.f32 %v5291_v52, %v2433_v23  ;;  %5514 = vperm.xlu1 %7255, %v14017_v7   ;;  %v12072_v29 = vld [vmem:[#allocation2 + $0xa8] sm:$0xff]  ;;  %v14020_v1 = vld [vmem:[#allocation69_spill] sm:$0xff] }
 0x4aa   : > { %v5147_v48 = vpop.permute.xlu1 %5146  ;;  %v2527_v52 = vadd.f32 %v14020_v1, %v11668_v57 }
 0x4ab   : > { %v12066_v55 = vadd.f32 %v5384_v8, %v5224_v58  ;;  %v5204_v46 = vmul.f32 %v5147_v48, %v2503_v34  ;;  %5682 = vperm.xlu0 %7257, %v14007_v11   ;;  %v2469_v8 = vadd.f32 %v14021_v27, %v11990_v12  ;;  %v12083_v48 = vld [vmem:[#allocation2 + $0xb8] sm:$0xff]  ;;  %v14025_v27 = vld [vmem:[#allocation75_spill] sm:$0xff] }
 0x4ac   : > { %v5299_v2 = vpop.permute.xlu0 %5298 }
 0x4ad   : > { %v5236_v44 = vadd.f32 %v5204_v46, %v11622_v18  ;;  %v5386_v17 = vmul.f32 %v5299_v2, %v2445_v0  ;;  %5522 = vperm.xlu1 %7255, %v12072_v29   ;;  %v14022_v46 = vld [vmem:[#allocation117_spill] sm:$0xff] }
 0x4ae   : > { %v5155_v23 = vpop.permute.xlu1 %5154  ;;  %v2539_v2 = vadd.f32 %v14022_v46, %v11668_v57 }
 0x4af   : > { %v12077_v58 = vadd.f32 %v5386_v17, %v5226_v13  ;;  %v5206_v34 = vmul.f32 %v5155_v23, %v2515_v33  ;;  %5690 = vperm.xlu0 %7257, %v14011_v10   ;;  %v2481_v17 = vadd.f32 %v14023_v20, %v11990_v12  ;;  %v12094_v23 = vld [vmem:[#allocation2 + $0xc8] sm:$0xff] }
 0x4b0   : > { %v5307_v11 = vpop.permute.xlu0 %5306 }
 0x4b1   : > { %v5238_v18 = vadd.f32 %v5206_v34, %v11636_v6  ;;  %v5388_v0 = vmul.f32 %v5307_v11, %v2457_v38  ;;  %5530 = vperm.xlu1 %7255, %v12083_v48  }
 0x4b2   : > { %v5163_v22 = vpop.permute.xlu1 %5162 }
 0x4b3   : > { %v12088_v13 = vadd.f32 %v5388_v0, %v5228_v3  ;;  %v5208_v33 = vmul.f32 %v5163_v22, %v2527_v52  ;;  %5698 = vperm.xlu0 %7257, %v14014_v63   ;;  %v14024_v3 = vld [vmem:[#allocation97_spill] sm:$0xff]  ;;  %v2493_v0 = vadd.f32 %v14025_v27, %v11990_v12 }
 0x4b4   : > { %v5315_v10 = vpop.permute.xlu0 %5314  ;;  %v2551_v63 = vadd.f32 %v14024_v3, %v11668_v57  ;;  %v12105_v22 = vld [vmem:[#allocation2 + $0xd8] sm:$0xff] }
 0x4b5   : > { %v5240_v6 = vadd.f32 %v5208_v33, %v11650_v61  ;;  %v5390_v38 = vmul.f32 %v5315_v10, %v2469_v8  ;;  %5538 = vperm.xlu1 %7255, %v12094_v23   ;;  %14026 = vst [vmem:[#allocation73_spill] sm:$0xff] %v12105_v22  ;;  %v14028_v10 = vld [vmem:[#allocation109_spill] sm:$0xff] }
 0x4b6   : > { %v5171_v1 = vpop.permute.xlu1 %5170  ;;  %v2505_v20 = vadd.f32 %v14028_v10, %v11990_v12  ;;  %v14034_v10 = vld [vmem:[#allocation37_spill] sm:$0xff] }
 0x4b7   : > { %v12097_v34 = vadd.f32 %v5390_v38, %v5230_v36  ;;  %v5210_v11 = vmul.f32 %v5171_v1, %v2539_v2  ;;  %5706 = vperm.xlu0 %7257, %v14017_v7   ;;  %v14027_v7 = vld [vmem:[#allocation95_spill] sm:$0xff] }
 0x4b8   : > { %v5323_v52 = vpop.permute.xlu0 %5322  ;;  %v2373_v57 = vadd.f32 %v14027_v7, %v11990_v12  ;;  %v12118_v38 = vld [vmem:[#allocation2 + $0xe8] sm:$0xff] }
 0x4b9   : > { %v5242_v61 = vadd.f32 %v5210_v11, %v11673_v5  ;;  %v5392_v8 = vmul.f32 %v5323_v52, %v2481_v17  ;;  %5546 = vperm.xlu1 %7255, %v12105_v22  }
 0x4ba   : > { %v5179_v46 = vpop.permute.xlu1 %5178 }
 0x4bb   : > { %v12108_v36 = vadd.f32 %v5392_v8, %v5232_v41  ;;  %v5212_v2 = vmul.f32 %v5179_v46, %v2551_v63  ;;  %5714 = vperm.xlu0 %7257, %v12072_v29   ;;  %v12121_v41 = vpop.f32.mrb[19].mxu1  ;;  %v14031_v63 = vld [vmem:[#allocation113_spill] sm:$0xff] }
 0x4bc   : > { %v5331_v33 = vpop.permute.xlu0 %5330  ;;  %14029 = vst [vmem:[#allocation88_spill] sm:$0xff] %v12121_v41  ;;  %v12126_v3 = vpop.f32.mrb[20].mxu1  ;;  %v2379_v52 = vadd.f32 %v14031_v63, %v11990_v12  ;;  %v14035_v63 = vld [vmem:[#allocation41_spill] sm:$0xff] }
 0x4bd   : > { %v12116_v5 = vadd.f32 %v5212_v2, %v11695_v37  ;;  %v5394_v17 = vmul.f32 %v5331_v33, %v2493_v0  ;;  %5554 = vperm.xlu1 %7255, %v12118_v38   ;;  %14030 = vst [vmem:[#allocation40_spill] sm:$0xff] %v12126_v3  ;;  %v14032_v0 = vld [vmem:[#allocation55_spill] sm:$0xff]  ;;  %v12132_v2 = vld [vmem:[#allocation2 + $0xf8] sm:$0xff] }
 0x4be   : > { %v2517_v8 = vadd.f32 %v14032_v0, %v11990_v12  ;;  %14033 = vst [vmem:[#allocation80_spill] sm:$0xff] %v12132_v2  ;;  %v14036_v0 = vmov 13  }
 0x4bf   : > { %v12123_v1 = vadd.f32 %v5394_v17, %v5234_v35  ;;  %5722 = vperm.xlu0 %7257, %v12083_v48   ;;  %v5251_v11 = vpop.permute.xlu1 %5250 }
 0x4c0   : > { %v5374_v27 = vmul.f32 %v5251_v11, %v2373_v57  ;;  %v5339_v37 = vpop.permute.xlu0 %5338  ;;  %v2391_v57 = vadd.f32 %v14034_v10, %v11990_v12 }
 0x4c1   : > { %v5396_v46 = vmul.f32 %v5339_v37, %v2505_v20  ;;  %5562 = vperm.xlu1 %7255, %v12132_v2   ;;  %v2529_v20 = vadd.f32 %v14035_v63, %v11990_v12  ;;  %v14039_v63 = vld [vmem:[#allocation67_spill] sm:$0xff] }
 0x4c2   : > { %v12136_v35 = vadd.f32 %v5374_v27, %v11722_v45  ;;  %v14037_v45 = vld [vmem:[#allocation57_spill] sm:$0xff] }
 0x4c3   : > { %v12138_v7 = vadd.f32 %v5396_v46, %v5236_v44  ;;  %5730 = vperm.xlu0 %7257, %v12094_v23   ;;  %v5255_v33 = vpop.permute.xlu1 %5254  ;;  %v14038_v46 = vld [vmem:[#allocation115_spill] sm:$0xff] }
 0x4c4   : > { %v5375_v17 = vmul.f32 %v5255_v33, %v2379_v52  ;;  %v5347_v11 = vpop.permute.xlu0 %5346  ;;  %v2403_v52 = vadd.f32 %v14038_v46, %v11990_v12 }
 0x4c5   : > { %v5398_v37 = vmul.f32 %v5347_v11, %v2517_v8  ;;  %7258 = vset.pattern.permute.xlu1 %v14036_v0  ;;  %v2541_v8 = vadd.f32 %v14039_v63, %v11990_v12  ;;  %v12166_v63 = vpop.f32.mrb[21].mxu1 }
 0x4c6   : > { %v12147_v41 = vadd.f32 %v5375_v17, %v11927_v59  ;;  %5634 = vperm.xlu1 %7258, %v14037_v45   ;;  %v14040_v17 = vld [vmem:[#allocation120_spill] sm:$0xff]  ;;  %14042 = vst [vmem:[#allocation126_spill] sm:$0xff] %v12166_v63 }
 0x4c7   : > { %v12150_v44 = vadd.f32 %v5398_v37, %v5238_v18  ;;  %5738 = vperm.xlu0 %7257, %v12105_v22   ;;  %v5263_v27 = vpop.permute.xlu1 %5262  ;;  %v2415_v37 = vadd.f32 %v14040_v17, %v11990_v12 }
 0x4c8   : > { %v5377_v33 = vmul.f32 %v5263_v27, %v2391_v57  ;;  %v5355_v10 = vpop.permute.xlu0 %5354  ;;  %v14041_v27 = vld [vmem:[#allocation106_spill] sm:$0xff] }
 0x4c9   : > { %v5400_v11 = vmul.f32 %v5355_v10, %v2529_v20  ;;  %v2553_v3 = vadd.f32 %v14041_v27, %v11990_v12 }
 0x4ca   : > { %v5409_v0 = vadd.f32 %v5377_v33, %v11744_v32  ;;  %5638 = vperm.xlu1 %7258, %v11618_v4   ;;  %v14043_v4 = vld [vmem:[#allocation103_spill] sm:$0xff]  ;;  %v12177_v33 = vpop.f32.mrb[202].mxu0 }
 0x4cb   : > { %v12159_v59 = vadd.f32 %v5400_v11, %v5240_v6  ;;  %5746 = vperm.xlu0 %7257, %v12118_v38   ;;  %v5271_v18 = vpop.permute.xlu1 %5270  ;;  %v14044_v6 = vsub.s32 4, %v13464_v21  ;;  %14045 = vst [vmem:[#allocation130_spill] sm:$0xff] %v12177_v33  ;;  %v14047_v11 = vld [vmem:[#allocation85_spill] sm:$0xff]  ;;  %v14051_v33 = vld [vmem:[#allocation32_spill] sm:$0xff] }
 0x4cc   : > { %v5379_v22 = vmul.f32 %v5271_v18, %v2403_v52  ;;  %v5363_v46 = vpop.permute.xlu0 %5362 }
 0x4cd   : > { %v5402_v57 = vmul.f32 %v5363_v46, %v2541_v8  ;;  %v12175_v20 = vrot.slane %v11985_v62, %v14044_v6  ;;  %v12182_v8 = vpop.f32.mrb[203].mxu0 }
 0x4ce   : > { %v12169_v32 = vadd.f32 %v5379_v22, %v11766_v26  ;;  %5646 = vperm.xlu1 %7258, %v14043_v4   ;;  %14046 = vst [vmem:[#allocation45_spill] sm:$0xff] %v12182_v8  ;;  %v2427_v26 = vadd.f32 %v14047_v11, %v11990_v12  ;;  %v12186_v17 = vpop.f32.mrb[204].mxu0  ;;  %v14054_v11 = vld [vmem:[#allocation44_spill] sm:$0xff] }
 0x4cf   : > { %v12179_v52 = vadd.f32 %v5402_v57, %v5242_v61  ;;  %5754 = vperm.xlu0 %7257, %v12132_v2   ;;  %v5279_v10 = vpop.permute.xlu1 %5278  ;;  %14048 = vst [vmem:[#allocation71_spill] sm:$0xff] %v12186_v17  ;;  %v12188_v27 = vpop.f32.mrb[205].mxu0  ;;  %v14050_v61 = vld [vmem:[#allocation20_spill] sm:$0xff] }
 0x4d0   : > { %v5381_v22 = vmul.f32 %v5279_v10, %v2415_v37  ;;  %v5371_v18 = vpop.permute.xlu0 %5370  ;;  %14049 = vst [vmem:[#allocation133_spill] sm:$0xff] %v12188_v27  ;;  %v2628_v57 = vadd.f32 %v14050_v61, %v12175_v20  ;;  %v12196_v63 = vpop.f32.mrb[206].mxu0  ;;  %v13145_v37 = vmov 14  }
 0x4d1   : > { %v5404_v46 = vmul.f32 %v5371_v18, %v2553_v3  ;;  %14052 = vst [vmem:[#allocation90_spill] sm:$0xff] %v12196_v63  ;;  %v12202_v3 = vpop.f32.mrb[207].mxu0  ;;  %v14057_v63 = vld [vmem:[#allocation124_spill] sm:$0xff] }
 0x4d2   : > { %v12191_v6 = vadd.f32 %v5381_v22, %v11788_v50  ;;  %5654 = vperm.xlu1 %7258, %v14051_v33   ;;  %14053 = vst [vmem:[#allocation11_spill] sm:$0xff] %v12202_v3  ;;  %v2439_v50 = vadd.f32 %v14054_v11, %v11990_v12  ;;  %v12207_v18 = vpop.f32.mrb[208].mxu0 }
 0x4d3   : > { %v12199_v8 = vadd.f32 %v5404_v46, %v12116_v5  ;;  %7260 = vset.pattern.permute.xlu0 %v13145_v37  ;;  %v5287_v10 = vpop.permute.xlu1 %5286  ;;  %14055 = vst [vmem:[#allocation121_spill] sm:$0xff] %v12207_v18  ;;  %v12209_v27 = vpop.f32.mrb[209].mxu0  ;;  %v14058_v37 = vld [vmem:[#allocation116_spill] sm:$0xff] }
 0x4d4   : > { %v5383_v22 = vmul.f32 %v5287_v10, %v2427_v26  ;;  %5826 = vperm.xlu0 %7260, %v14037_v45   ;;  %14056 = vst [vmem:[#allocation114_spill] sm:$0xff] %v12209_v27  ;;  %v2646_v3 = vadd.f32 %v14058_v37, %v12175_v20  ;;  %v12217_v17 = vpop.f32.mrb[210].mxu0  ;;  %v14061_v45 = vld [vmem:[#allocation35_spill] sm:$0xff] }
 0x4d5   : > { %v5443_v61 = vpop.permute.xlu0 %5442  ;;  %14059 = vst [vmem:[#allocation112_spill] sm:$0xff] %v12217_v17  ;;  %v12219_v26 = vpop.f32.mrb[211].mxu0  ;;  %v2451_v10 = vadd.f32 %v14061_v45, %v11990_v12  ;;  %v14064_v17 = vld [vmem:[#allocation60_spill] sm:$0xff] }
 0x4d6   : > { %v12212_v5 = vadd.f32 %v5383_v22, %v11810_v40  ;;  %v5566_v46 = vmul.f32 %v5443_v61, %v2628_v57  ;;  %5662 = vperm.xlu1 %7258, %v14057_v63   ;;  %14060 = vst [vmem:[#allocation8_spill] sm:$0xff] %v12219_v26  ;;  %v12227_v40 = vpop.f32.mrb[212].mxu0  ;;  %v14065_v26 = vld [vmem:[#allocation13_spill] sm:$0xff] }
 0x4d7   : > { %v5295_v11 = vpop.permute.xlu1 %5294  ;;  %14062 = vst [vmem:[#allocation6_spill] sm:$0xff] %v12227_v40  ;;  %v12229_v22 = vpop.f32.mrb[213].mxu0  ;;  %v2658_v45 = vadd.f32 %v14065_v26, %v12175_v20 }
 0x4d8   : > { %v12224_v18 = vadd.f32 %v5566_v46, %v12136_v35  ;;  %v5385_v27 = vmul.f32 %v5295_v11, %v2439_v50  ;;  %5838 = vperm.xlu0 %7260, %v14043_v4   ;;  %14063 = vst [vmem:[#allocation82_spill] sm:$0xff] %v12229_v22  ;;  %v12237_v2 = vpop.f32.mrb[214].mxu0  ;;  %v14067_v4 = vld [vmem:[#allocation24_spill] sm:$0xff] }
 0x4d9   : > { %v5455_v57 = vpop.permute.xlu0 %5454  ;;  %v12239_v50 = vpop.f32.mrb[215].mxu0  ;;  %v2463_v46 = vadd.f32 %v14067_v4, %v11990_v12 }
 0x4da   : > { %v12232_v37 = vadd.f32 %v5385_v27, %v11832_v9  ;;  %v5569_v61 = vmul.f32 %v5455_v57, %v2646_v3  ;;  %5670 = vperm.xlu1 %7258, %v14064_v17   ;;  %14066 = vst [vmem:[#allocation26_spill] sm:$0xff] %v12239_v50  ;;  %v12246_v9 = vpop.f32.mrb[216].mxu0  ;;  %v14070_v50 = vld [vmem:[#allocation21_spill] sm:$0xff] }
 0x4db   : > { %v5303_v35 = vpop.permute.xlu1 %5302  ;;  %14068 = vst [vmem:[#allocation27_spill] sm:$0xff] %v12246_v9  ;;  %v12248_v3 = vpop.f32.mrb[217].mxu0  ;;  %v2670_v40 = vadd.f32 %v14070_v50, %v12175_v20 }
 0x4dc   : > { %v12243_v11 = vadd.f32 %v5569_v61, %v5409_v0  ;;  %v5387_v22 = vmul.f32 %v5303_v35, %v2451_v10  ;;  %5846 = vperm.xlu0 %7260, %v14051_v33   ;;  %14069 = vst [vmem:[#allocation74_spill] sm:$0xff] %v12248_v3  ;;  %v12256_v4 = vpop.f32.mrb[218].mxu0  ;;  %v14072_v33 = vld [vmem:[#allocation89_spill] sm:$0xff] }
 0x4dd   : > { %v5463_v27 = vpop.permute.xlu0 %5462  ;;  %v12258_v10 = vpop.f32.mrb[219].mxu0  ;;  %v2475_v61 = vadd.f32 %v14072_v33, %v11990_v12 }
 0x4de   : > { %v12251_v26 = vadd.f32 %v5387_v22, %v11852_v28  ;;  %v5571_v57 = vmul.f32 %v5463_v27, %v2658_v45  ;;  %5678 = vperm.xlu1 %7258, %v11710_v43   ;;  %14071 = vst [vmem:[#allocation66_spill] sm:$0xff] %v12258_v10  ;;  %v12266_v28 = vpop.f32.mrb[220].mxu0  ;;  %v14075_v10 = vld [vmem:[#allocation16_spill] sm:$0xff] }
 0x4df   : > { %v5311_v0 = vpop.permute.xlu1 %5310  ;;  %14073 = vst [vmem:[#allocation91_spill] sm:$0xff] %v12266_v28  ;;  %v12268_v45 = vpop.f32.mrb[221].mxu0  ;;  %v2682_v33 = vadd.f32 %v14075_v10, %v12175_v20 }
 0x4e0   : > { %v12263_v35 = vadd.f32 %v5571_v57, %v12169_v32  ;;  %v5389_v3 = vmul.f32 %v5311_v0, %v2463_v46  ;;  %5854 = vperm.xlu0 %7260, %v14057_v63   ;;  %14074 = vst [vmem:[#allocation61_spill] sm:$0xff] %v12268_v45  ;;  %v12276_v9 = vpop.f32.mrb[222].mxu0  ;;  %v14077_v63 = vld [vmem:[#allocation52_spill] sm:$0xff] }
 0x4e1   : > { %v5471_v22 = vpop.permute.xlu0 %5470  ;;  %v12278_v46 = vpop.f32.mrb[223].mxu0  ;;  %v2487_v57 = vadd.f32 %v14077_v63, %v11990_v12 }
 0x4e2   : > { %v12271_v50 = vadd.f32 %v5389_v3, %v11872_v19  ;;  %v5573_v27 = vmul.f32 %v5471_v22, %v2670_v40  ;;  %5686 = vperm.xlu1 %7258, %v11732_v49   ;;  %14076 = vst [vmem:[#allocation94_spill] sm:$0xff] %v12278_v46  ;;  %v12286_v19 = vpop.f32.mrb[224].mxu0  ;;  %v14080_v46 = vld [vmem:[#allocation96_spill] sm:$0xff] }
 0x4e3   : > { %v5319_v32 = vpop.permute.xlu1 %5318  ;;  %14078 = vst [vmem:[#allocation63_spill] sm:$0xff] %v12286_v19  ;;  %v12288_v3 = vpop.f32.mrb[225].mxu0  ;;  %v2694_v63 = vadd.f32 %v14080_v46, %v12175_v20  ;;  %v12415_v19 = vld [vmem:[#allocation2 + $0xe0] sm:$0xff] }
 0x4e4   : > { %v12283_v0 = vadd.f32 %v5573_v27, %v12191_v6  ;;  %v5391_v45 = vmul.f32 %v5319_v32, %v2475_v61  ;;  %5862 = vperm.xlu0 %7260, %v14064_v17   ;;  %14079 = vst [vmem:[#allocation86_spill] sm:$0xff] %v12288_v3  ;;  %v12296_v28 = vpop.f32.mrb[226].mxu0  ;;  %v14082_v17 = vld [vmem:[#allocation29_spill] sm:$0xff]  ;;  %14113 = vst [vmem:[#allocation41_spill] sm:$0xff] %v12415_v19 }
 0x4e5   : > { %v5479_v40 = vpop.permute.xlu0 %5478  ;;  %v12298_v61 = vpop.f32.mrb[227].mxu0  ;;  %v2499_v27 = vadd.f32 %v14082_v17, %v11990_v12  ;;  %v2706_v17 = vadd.f32 %v11825_v15, %v12175_v20 }
 0x4e6   : > { %v12291_v10 = vadd.f32 %v5391_v45, %v11892_v60  ;;  %v5575_v22 = vmul.f32 %v5479_v40, %v2682_v33  ;;  %5694 = vperm.xlu1 %7258, %v11754_v14   ;;  %14081 = vst [vmem:[#allocation110_spill] sm:$0xff] %v12298_v61  ;;  %v12306_v60 = vpop.f32.mrb[228].mxu0 }
 0x4e7   : > { %v5327_v6 = vpop.permute.xlu1 %5326  ;;  %14083 = vst [vmem:[#allocation102_spill] sm:$0xff] %v12306_v60  ;;  %v12308_v33 = vpop.f32.mrb[229].mxu0 }
 0x4e8   : > { %v12303_v32 = vadd.f32 %v5575_v22, %v12212_v5  ;;  %v5393_v3 = vmul.f32 %v5327_v6, %v2487_v57  ;;  %5870 = vperm.xlu0 %7260, %v11710_v43   ;;  %14084 = vst [vmem:[#allocation18_spill] sm:$0xff] %v12308_v33  ;;  %v12316_v61 = vpop.f32.mrb[230].mxu0  ;;  %v14086_v43 = vld [vmem:[#allocation127_spill] sm:$0xff] }
 0x4e9   : > { %v5487_v45 = vpop.permute.xlu0 %5486  ;;  %v12318_v57 = vpop.f32.mrb[231].mxu0  ;;  %v2511_v22 = vadd.f32 %v14086_v43, %v11990_v12 }
 0x4ea   : > { %v12311_v46 = vadd.f32 %v5393_v3, %v11912_v39  ;;  %v5577_v40 = vmul.f32 %v5487_v45, %v2694_v63  ;;  %5702 = vperm.xlu1 %7258, %v11776_v30   ;;  %14085 = vst [vmem:[#allocation104_spill] sm:$0xff] %v12318_v57  ;;  %v12326_v39 = vpop.f32.mrb[232].mxu0  ;;  %v14089_v57 = vld [vmem:[#allocation84_spill] sm:$0xff] }
 0x4eb   : > { %v5335_v5 = vpop.permute.xlu1 %5334  ;;  %14087 = vst [vmem:[#allocation105_spill] sm:$0xff] %v12326_v39  ;;  %v12328_v63 = vpop.f32.mrb[233].mxu0  ;;  %v2718_v43 = vadd.f32 %v14089_v57, %v12175_v20  ;;  %v14105_v39 = vld [vmem:[#allocation83_spill] sm:$0xff] }
 0x4ec   : > { %v12323_v6 = vadd.f32 %v5577_v40, %v12232_v37  ;;  %v5395_v33 = vmul.f32 %v5335_v5, %v2499_v27  ;;  %5878 = vperm.xlu0 %7260, %v11732_v49   ;;  %14088 = vst [vmem:[#allocation72_spill] sm:$0xff] %v12328_v63  ;;  %v12336_v60 = vpop.f32.mrb[234].mxu0  ;;  %v14091_v49 = vld [vmem:[#allocation93_spill] sm:$0xff] }
 0x4ed   : > { %v5495_v3 = vpop.permute.xlu0 %5494  ;;  %v12338_v27 = vpop.f32.mrb[235].mxu0  ;;  %v2523_v40 = vadd.f32 %v14091_v49, %v11990_v12  ;;  %v2730_v49 = vadd.f32 %v11867_v47, %v12175_v20 }
 0x4ee   : > { %v12331_v15 = vadd.f32 %v5395_v33, %v11933_v56  ;;  %v5579_v45 = vmul.f32 %v5495_v3, %v2706_v17  ;;  %5710 = vperm.xlu1 %7258, %v11798_v53   ;;  %14090 = vst [vmem:[#allocation56_spill] sm:$0xff] %v12338_v27  ;;  %v12346_v56 = vpop.f32.mrb[236].mxu0 }
 0x4ef   : > { %v5343_v37 = vpop.permute.xlu1 %5342  ;;  %14092 = vst [vmem:[#allocation54_spill] sm:$0xff] %v12346_v56  ;;  %v12348_v17 = vpop.f32.mrb[237].mxu0  ;;  %v12373_v56 = vld [vmem:[#allocation2 + $0xc0] sm:$0xff] }
 0x4f0   : > { %v12343_v5 = vadd.f32 %v5579_v45, %v12251_v26  ;;  %v5397_v63 = vmul.f32 %v5343_v37, %v2511_v22  ;;  %5886 = vperm.xlu0 %7260, %v11754_v14   ;;  %14093 = vst [vmem:[#allocation108_spill] sm:$0xff] %v12348_v17  ;;  %v12356_v27 = vpop.f32.mrb[238].mxu0  ;;  %v14095_v14 = vld [vmem:[#allocation23_spill] sm:$0xff]  ;;  %14098 = vst [vmem:[#allocation117_spill] sm:$0xff] %v12373_v56 }
 0x4f1   : > { %v5503_v33 = vpop.permute.xlu0 %5502  ;;  %v12358_v22 = vpop.f32.mrb[239].mxu0  ;;  %v2535_v45 = vadd.f32 %v14095_v14, %v11990_v12 }
 0x4f2   : > { %v12351_v57 = vadd.f32 %v5397_v63, %v11953_v42  ;;  %v5581_v3 = vmul.f32 %v5503_v33, %v2718_v43  ;;  %5718 = vperm.xlu1 %7258, %v11820_v16   ;;  %14094 = vst [vmem:[#allocation15_spill] sm:$0xff] %v12358_v22  ;;  %v12366_v42 = vpop.f32.mrb[240].mxu0 }
 0x4f3   : > { %v5351_v26 = vpop.permute.xlu1 %5350  ;;  %14096 = vst [vmem:[#allocation69_spill] sm:$0xff] %v12366_v42  ;;  %v12368_v43 = vpop.f32.mrb[241].mxu0 }
 0x4f4   : > { %v12363_v37 = vadd.f32 %v5581_v3, %v12271_v50  ;;  %v5399_v17 = vmul.f32 %v5351_v26, %v2523_v40  ;;  %5894 = vperm.xlu0 %7260, %v11776_v30   ;;  %14097 = vst [vmem:[#allocation92_spill] sm:$0xff] %v12368_v43  ;;  %v2742_v50 = vadd.f32 %v11887_v24, %v12175_v20  ;;  %v12378_v3 = vpop.f32.mrb[242].mxu0  ;;  %v14101_v26 = vld [vmem:[#allocation107_spill] sm:$0xff]  ;;  %v14104_v24 = vld [vmem:[#allocation46_spill] sm:$0xff] }
 0x4f5   : > { %v5511_v63 = vpop.permute.xlu0 %5510  ;;  %14099 = vst [vmem:[#allocation81_spill] sm:$0xff] %v12378_v3  ;;  %v12380_v30 = vpop.f32.mrb[243].mxu0  ;;  %v2547_v14 = vadd.f32 %v14101_v26, %v11990_v12  ;;  %v14128_v3 = vmov 14  }
 0x4f6   : > { %v12371_v47 = vadd.f32 %v5399_v17, %v11971_v51  ;;  %v5583_v33 = vmul.f32 %v5511_v63, %v2730_v49  ;;  %5726 = vperm.xlu1 %7258, %v12373_v56   ;;  %14100 = vst [vmem:[#allocation97_spill] sm:$0xff] %v12380_v30  ;;  %v12388_v17 = vpop.f32.mrb[244].mxu0  ;;  %v14106_v30 = vld [vmem:[#allocation19_spill] sm:$0xff] }
 0x4f7   : > { %v5359_v40 = vpop.permute.xlu1 %5358  ;;  %14102 = vst [vmem:[#allocation75_spill] sm:$0xff] %v12388_v17  ;;  %v12390_v63 = vpop.f32.mrb[245].mxu0  ;;  %v2754_v12 = vadd.f32 %v14106_v30, %v12175_v20  ;;  %v14112_v30 = vld [vmem:[#allocation76_spill] sm:$0xff] }
 0x4f8   : > { %v12385_v22 = vadd.f32 %v5583_v33, %v12291_v10  ;;  %v5401_v51 = vmul.f32 %v5359_v40, %v2535_v45  ;;  %5902 = vperm.xlu0 %7260, %v11798_v53   ;;  %14103 = vst [vmem:[#allocation95_spill] sm:$0xff] %v12390_v63  ;;  %v12398_v26 = vpop.f32.mrb[246].mxu0 }
 0x4f9   : > { %v5519_v49 = vpop.permute.xlu0 %5518  ;;  %14107 = vst [vmem:[#allocation109_spill] sm:$0xff] %v12398_v26  ;;  %v12400_v45 = vpop.f32.mrb[247].mxu0 }
 0x4fa   : > { %v12393_v43 = vadd.f32 %v5401_v51, %v14104_v24  ;;  %v5585_v42 = vmul.f32 %v5519_v49, %v2742_v50  ;;  %5734 = vperm.xlu1 %7258, %v14105_v39   ;;  %14108 = vst [vmem:[#allocation113_spill] sm:$0xff] %v12400_v45  ;;  %v12406_v40 = vpop.f32.mrb[248].mxu0  ;;  %v14110_v50 = vld [vmem:[#allocation12_spill] sm:$0xff] }
 0x4fb   : > { %v5367_v10 = vpop.permute.xlu1 %5366  ;;  %14109 = vst [vmem:[#allocation55_spill] sm:$0xff] %v12406_v40  ;;  %v2622_v51 = vadd.f32 %v14110_v50, %v12175_v20  ;;  %v12410_v24 = vpop.f32.mrb[249].mxu0  ;;  %v12434_v40 = vld [vmem:[#allocation2 + $0xf0] sm:$0xff] }
 0x4fc   : > { %v12403_v53 = vadd.f32 %v5585_v42, %v12311_v46  ;;  %v5403_v33 = vmul.f32 %v5367_v10, %v2547_v14  ;;  %5910 = vperm.xlu0 %7260, %v11820_v16   ;;  %14111 = vst [vmem:[#allocation37_spill] sm:$0xff] %v12410_v24  ;;  %v14114_v46 = vld [vmem:[#allocation100_spill] sm:$0xff]  ;;  %v12420_v16 = vpop.f32.mrb[250].mxu0  ;;  %14120 = vst [vmem:[#allocation106_spill] sm:$0xff] %v12434_v40 }
 0x4fd   : > { %v5527_v49 = vpop.permute.xlu0 %5526  ;;  %v2766_v42 = vadd.f32 %v14114_v46, %v12175_v20  ;;  %14115 = vst [vmem:[#allocation57_spill] sm:$0xff] %v12420_v16  ;;  %v12422_v14 = vpop.f32.mrb[251].mxu0  ;;  %v14123_v16 = vld [vmem:[#allocation64_spill] sm:$0xff] }
 0x4fe   : > { %v12413_v63 = vadd.f32 %v5403_v33, %v14112_v30  ;;  %v5587_v17 = vmul.f32 %v5527_v49, %v2754_v12  ;;  %5742 = vperm.xlu1 %7258, %v12415_v19   ;;  %14116 = vst [vmem:[#allocation115_spill] sm:$0xff] %v12422_v14  ;;  %v12428_v33 = vpop.f32.mrb[252].mxu0  ;;  %v14118_v12 = vld [vmem:[#allocation101_spill] sm:$0xff] }
 0x4ff   : > { %14117 = vst [vmem:[#allocation67_spill] sm:$0xff] %v12428_v33  ;;  %v2634_v49 = vadd.f32 %v14118_v12, %v12175_v20  ;;  %v12432_v24 = vpop.f32.mrb[253].mxu0 }
 0x500   : > { %v12425_v10 = vadd.f32 %v5587_v17, %v12331_v15  ;;  %5918 = vperm.xlu0 %7260, %v12373_v56   ;;  %v5439_v50 = vpop.permute.xlu1 %5438  ;;  %14119 = vst [vmem:[#allocation120_spill] sm:$0xff] %v12432_v24  ;;  %v14121_v15 = vld [vmem:[#allocation7_spill] sm:$0xff]  ;;  %v12439_v14 = vpop.f32.mrb[254].mxu0 }
 0x501   : > { %v5565_v30 = vmul.f32 %v5439_v50, %v2622_v51  ;;  %v5535_v45 = vpop.permute.xlu0 %5534  ;;  %v2778_v17 = vadd.f32 %v14121_v15, %v12175_v20  ;;  %14122 = vst [vmem:[#allocation103_spill] sm:$0xff] %v12439_v14  ;;  %v12442_v33 = vpop.f32.mrb[255].mxu0 }
 0x502   : > { %v5589_v46 = vmul.f32 %v5535_v45, %v2766_v42  ;;  %5750 = vperm.xlu1 %7258, %v12434_v40   ;;  %14124 = vst [vmem:[#allocation85_spill] sm:$0xff] %v12442_v33  ;;  %v12448_v45 = vpop.f32.mrb[0].mxu0  ;;  %v14126_v42 = vld [vmem:[#allocation111_spill] sm:$0xff] }
 0x503   : > { %v5597_v56 = vadd.f32 %v5565_v30, %v14123_v16  ;;  %14125 = vst [vmem:[#allocation20_spill] sm:$0xff] %v12448_v45  ;;  %v2640_v50 = vadd.f32 %v14126_v42, %v12175_v20  ;;  %v12452_v15 = vpop.f32.mrb[1].mxu0  ;;  %v14129_v16 = vld [vmem:[#allocation38_spill] sm:$0xff] }
 0x504   : > { %v12445_v12 = vadd.f32 %v5589_v46, %v12351_v57  ;;  %5926 = vperm.xlu0 %7260, %v14105_v39   ;;  %v5447_v51 = vpop.permute.xlu1 %5446  ;;  %14127 = vst [vmem:[#allocation32_spill] sm:$0xff] %v12452_v15  ;;  %v2790_v30 = vadd.f32 %v14129_v16, %v12175_v20  ;;  %v12457_v57 = vpop.f32.mrb[2].mxu0  ;;  %v7481_v46 = vld [vmem:[#allocation2] sm:$0xff] }
 0x505   : > { %v5567_v24 = vmul.f32 %v5447_v51, %v2634_v49  ;;  %v5543_v26 = vpop.permute.xlu0 %5542  ;;  %14130 = vst [vmem:[#allocation44_spill] sm:$0xff] %v12457_v57  ;;  %v12462_v33 = vpop.f32.mrb[3].mxu0  ;;  %v14139_v57 = vld [vmem:[#allocation36_spill] sm:$0xff] }
 0x506   : > { %v5591_v14 = vmul.f32 %v5543_v26, %v2778_v17  ;;  %7259 = vset.pattern.permute.xlu1 %v14128_v3  ;;  %14131 = vst [vmem:[#allocation124_spill] sm:$0xff] %v12462_v33  ;;  %v12468_v17 = vpop.f32.mrb[4].mxu0  ;;  %v14134_v3 = vld [vmem:[#allocation17_spill] sm:$0xff] }
 0x507   : > { %v12460_v39 = vadd.f32 %v5567_v24, %v12147_v41  ;;  %5822 = vperm.xlu1 %7259, %v7481_v46   ;;  %14133 = vst [vmem:[#allocation35_spill] sm:$0xff] %v12468_v17  ;;  %v2652_v51 = vadd.f32 %v14134_v3, %v12175_v20  ;;  %v12472_v15 = vpop.f32.mrb[5].mxu0  ;;  %v14136_v24 = vld [vmem:[#allocation39_spill] sm:$0xff] }
 0x508   : > { %v12465_v49 = vadd.f32 %v5591_v14, %v12371_v47  ;;  %5934 = vperm.xlu0 %7260, %v12415_v19   ;;  %v5451_v26 = vpop.permute.xlu1 %5450  ;;  %14135 = vst [vmem:[#allocation60_spill] sm:$0xff] %v12472_v15  ;;  %v2802_v45 = vadd.f32 %v14136_v24, %v12175_v20  ;;  %v12476_v33 = vpop.f32.mrb[6].mxu0  ;;  %v14138_v47 = vsub.s32 5, %v13464_v21  ;;  %v12484_v19 = vld [vmem:[#allocation2 + $0x10] sm:$0xff] }
 0x509   : > { %v5568_v42 = vmul.f32 %v5451_v26, %v2640_v50  ;;  %v5551_v16 = vpop.permute.xlu0 %5550  ;;  %14137 = vst [vmem:[#allocation13_spill] sm:$0xff] %v12476_v33  ;;  %v14141_v26 = vld [vmem:[#allocation59_spill] sm:$0xff] }
 0x50a   : > { %14132 = vst [vmem:[#allocation116_spill] sm:$0xff] %v12465_v49  ;;  %v5593_v41 = vmul.f32 %v5551_v16, %v2790_v30  ;;  %v12481_v14 = vrot.slane %v11985_v62, %v14138_v47  ;;  %v2664_v3 = vadd.f32 %v14141_v26, %v12175_v20  ;;  %v14142_v62 = vld [vmem:[#allocation43_spill] sm:$0xff]  ;;  %v7485_v49 = vld [vmem:[#allocation2 + $0x38] sm:$0xff] }
 0x50b   : > { %v5600_v17 = vadd.f32 %v5568_v42, %v14139_v57  ;;  %5830 = vperm.xlu1 %7259, %v12484_v19   ;;  %v7483_v42 = vld [vmem:[#allocation2 + $0x18] sm:$0xff] }
 0x50c   : > { %v12488_v50 = vadd.f32 %v5593_v41, %v12393_v43  ;;  %5942 = vperm.xlu0 %7260, %v12434_v40   ;;  %v5459_v30 = vpop.permute.xlu1 %5458  ;;  %v2624_v47 = vadd.f32 %v14142_v62, %v12481_v14  ;;  %v13151_v43 = vmov 15   ;;  %v14144_v40 = vld [vmem:[#allocation122_spill] sm:$0xff]  ;;  %v7484_v62 = vld [vmem:[#allocation2 + $0x28] sm:$0xff] }
 0x50d   : > { %v5570_v16 = vmul.f32 %v5459_v30, %v2652_v51  ;;  %v5559_v24 = vpop.permute.xlu0 %5558  ;;  %v2676_v26 = vadd.f32 %v14144_v40, %v12175_v20  ;;  %v14145_v30 = vld [vmem:[#allocation50_spill] sm:$0xff] }
 0x50e   : > { %14140 = vst [vmem:[#allocation24_spill] sm:$0xff] %v12488_v50  ;;  %v5595_v15 = vmul.f32 %v5559_v24, %v2802_v45  ;;  %v2642_v24 = vadd.f32 %v14145_v30, %v12481_v14 }
 0x50f   : > { %v5602_v57 = vadd.f32 %v5570_v16, %v12039_v25  ;;  %5834 = vperm.xlu1 %7259, %v7483_v42  }
 0x510   : > { %v12497_v33 = vadd.f32 %v5595_v15, %v12413_v63  ;;  %7261 = vset.pattern.permute.xlu0 %v13151_v43  ;;  %v5467_v41 = vpop.permute.xlu1 %5466  ;;  %v14146_v15 = vld [vmem:[#allocation125_spill] sm:$0xff] }
 0x511   : > { %v5572_v51 = vmul.f32 %v5467_v41, %v2664_v3  ;;  %6014 = vperm.xlu0 %7261, %v7481_v46   ;;  %v14147_v46 = vld [vmem:[#allocation68_spill] sm:$0xff] }
 0x512   : > { %14143 = vst [vmem:[#allocation21_spill] sm:$0xff] %v12497_v33  ;;  %v5631_v45 = vpop.permute.xlu0 %5630  ;;  %v2688_v33 = vadd.f32 %v14146_v15, %v12175_v20  ;;  %v2654_v3 = vadd.f32 %v14147_v46, %v12481_v14  ;;  %v7486_v46 = vld [vmem:[#allocation2 + $0x48] sm:$0xff] }
 0x513   : > { %v5604_v25 = vadd.f32 %v5572_v51, %v12048_v54  ;;  %v5757_v16 = vmul.f32 %v5631_v45, %v2624_v47  ;;  %5842 = vperm.xlu1 %7259, %v7484_v62   ;;  %v14148_v47 = vld [vmem:[#allocation30_spill] sm:$0xff] }
 0x514   : > { %v5475_v63 = vpop.permute.xlu1 %5474  ;;  %v2700_v51 = vadd.f32 %v14148_v47, %v12175_v20 }
 0x515   : > { %v12507_v43 = vadd.f32 %v5757_v16, %v5597_v56  ;;  %v5574_v50 = vmul.f32 %v5475_v63, %v2676_v26  ;;  %6026 = vperm.xlu0 %7261, %v7483_v42   ;;  %v14149_v42 = vld [vmem:[#allocation123_spill] sm:$0xff] }
 0x516   : > { %v5643_v40 = vpop.permute.xlu0 %5642  ;;  %v2666_v26 = vadd.f32 %v14149_v42, %v12481_v14  ;;  %v7487_v42 = vld [vmem:[#allocation2 + $0x58] sm:$0xff] }
 0x517   : > { %v5606_v41 = vadd.f32 %v5574_v50, %v12057_v31  ;;  %v5760_v30 = vmul.f32 %v5643_v40, %v2642_v24  ;;  %5850 = vperm.xlu1 %7259, %v7485_v49   ;;  %v14150_v50 = vld [vmem:[#allocation28_spill] sm:$0xff] }
 0x518   : > { %v5483_v54 = vpop.permute.xlu1 %5482  ;;  %v2712_v24 = vadd.f32 %v14150_v50, %v12175_v20 }
 0x519   : > { %v12514_v45 = vadd.f32 %v5760_v30, %v5600_v17  ;;  %v5576_v15 = vmul.f32 %v5483_v54, %v2688_v33  ;;  %6034 = vperm.xlu0 %7261, %v7484_v62   ;;  %v14151_v33 = vld [vmem:[#allocation51_spill] sm:$0xff] }
 0x51a   : > { %v5651_v56 = vpop.permute.xlu0 %5650  ;;  %v2678_v62 = vadd.f32 %v14151_v33, %v12481_v14  ;;  %v7488_v33 = vld [vmem:[#allocation2 + $0x68] sm:$0xff] }
 0x51b   : > { %v5608_v16 = vadd.f32 %v5576_v15, %v12066_v55  ;;  %v5762_v63 = vmul.f32 %v5651_v56, %v2654_v3  ;;  %5858 = vperm.xlu1 %7259, %v7486_v46   ;;  %v14152_v3 = vld [vmem:[#allocation65_spill] sm:$0xff] }
 0x51c   : > { %v5491_v31 = vpop.permute.xlu1 %5490  ;;  %v2724_v15 = vadd.f32 %v14152_v3, %v12175_v20 }
 0x51d   : > { %v12521_v40 = vadd.f32 %v5762_v63, %v5602_v57  ;;  %v5578_v47 = vmul.f32 %v5491_v31, %v2700_v51  ;;  %6042 = vperm.xlu0 %7261, %v7485_v49   ;;  %v14153_v49 = vld [vmem:[#allocation42_spill] sm:$0xff] }
 0x51e   : > { %v5659_v17 = vpop.permute.xlu0 %5658  ;;  %v2690_v51 = vadd.f32 %v14153_v49, %v12481_v14  ;;  %v7489_v49 = vld [vmem:[#allocation2 + $0x78] sm:$0xff] }
 0x51f   : > { %v5610_v30 = vadd.f32 %v5578_v47, %v12077_v58  ;;  %v5764_v54 = vmul.f32 %v5659_v17, %v2666_v26  ;;  %5866 = vperm.xlu1 %7259, %v7487_v42   ;;  %v14154_v26 = vld [vmem:[#allocation79_spill] sm:$0xff] }
 0x520   : > { %v5499_v55 = vpop.permute.xlu1 %5498  ;;  %v2736_v47 = vadd.f32 %v14154_v26, %v12175_v20 }
 0x521   : > { %v12528_v56 = vadd.f32 %v5764_v54, %v5604_v25  ;;  %v5580_v50 = vmul.f32 %v5499_v55, %v2712_v24  ;;  %6050 = vperm.xlu0 %7261, %v7486_v46   ;;  %v14155_v46 = vld [vmem:[#allocation134_spill] sm:$0xff] }
 0x522   : > { %v5667_v57 = vpop.permute.xlu0 %5666  ;;  %v2702_v24 = vadd.f32 %v14155_v46, %v12481_v14  ;;  %v7490_v46 = vld [vmem:[#allocation2 + $0x88] sm:$0xff] }
 0x523   : > { %v5612_v63 = vadd.f32 %v5580_v50, %v12088_v13  ;;  %v5766_v31 = vmul.f32 %v5667_v57, %v2678_v62  ;;  %5874 = vperm.xlu1 %7259, %v7488_v33   ;;  %v14156_v62 = vld [vmem:[#allocation99_spill] sm:$0xff] }
 0x524   : > { %v5507_v58 = vpop.permute.xlu1 %5506  ;;  %v2748_v50 = vadd.f32 %v14156_v62, %v12175_v20 }
 0x525   : > { %v12535_v17 = vadd.f32 %v5766_v31, %v5606_v41  ;;  %v5582_v3 = vmul.f32 %v5507_v58, %v2724_v15  ;;  %6058 = vperm.xlu0 %7261, %v7487_v42   ;;  %v14157_v42 = vld [vmem:[#allocation118_spill] sm:$0xff] }
 0x526   : > { %v5675_v25 = vpop.permute.xlu0 %5674  ;;  %v2714_v15 = vadd.f32 %v14157_v42, %v12481_v14  ;;  %v7491_v42 = vld [vmem:[#allocation2 + $0x98] sm:$0xff] }
 0x527   : > { %v5614_v54 = vadd.f32 %v5582_v3, %v12097_v34  ;;  %v5768_v55 = vmul.f32 %v5675_v25, %v2690_v51  ;;  %5882 = vperm.xlu1 %7259, %v7489_v49   ;;  %v14158_v51 = vld [vmem:[#allocation25_spill] sm:$0xff] }
 0x528   : > { %v5515_v13 = vpop.permute.xlu1 %5514  ;;  %v2760_v3 = vadd.f32 %v14158_v51, %v12175_v20 }
 0x529   : > { %v12542_v57 = vadd.f32 %v5768_v55, %v5608_v16  ;;  %v5584_v26 = vmul.f32 %v5515_v13, %v2736_v47  ;;  %6066 = vperm.xlu0 %7261, %v7488_v33   ;;  %v14159_v33 = vld [vmem:[#allocation33_spill] sm:$0xff] }
 0x52a   : > { %v5683_v41 = vpop.permute.xlu0 %5682  ;;  %v2726_v47 = vadd.f32 %v14159_v33, %v12481_v14 }
 0x52b   : > { %v5616_v31 = vadd.f32 %v5584_v26, %v12108_v36  ;;  %v5770_v58 = vmul.f32 %v5683_v41, %v2702_v24  ;;  %5890 = vperm.xlu1 %7259, %v7490_v46   ;;  %v14160_v24 = vld [vmem:[#allocation22_spill] sm:$0xff] }
 0x52c   : > { %v5523_v34 = vpop.permute.xlu1 %5522  ;;  %v2772_v26 = vadd.f32 %v14160_v24, %v12175_v20 }
 0x52d   : > { %v12549_v25 = vadd.f32 %v5770_v58, %v5610_v30  ;;  %v5586_v62 = vmul.f32 %v5523_v34, %v2748_v50  ;;  %6074 = vperm.xlu0 %7261, %v7489_v49   ;;  %v14161_v49 = vld [vmem:[#allocation58_spill] sm:$0xff] }
 0x52e   : > { %v5691_v16 = vpop.permute.xlu0 %5690  ;;  %v2738_v50 = vadd.f32 %v14161_v49, %v12481_v14 }
 0x52f   : > { %v5618_v55 = vadd.f32 %v5586_v62, %v12123_v1  ;;  %v5772_v13 = vmul.f32 %v5691_v16, %v2714_v15  ;;  %5898 = vperm.xlu1 %7259, %v7491_v42   ;;  %v14162_v15 = vld [vmem:[#allocation70_spill] sm:$0xff] }
 0x530   : > { %v5531_v36 = vpop.permute.xlu1 %5530  ;;  %v2784_v62 = vadd.f32 %v14162_v15, %v12175_v20 }
 0x531   : > { %v12556_v41 = vadd.f32 %v5772_v13, %v5612_v63  ;;  %v5588_v51 = vmul.f32 %v5531_v36, %v2760_v3  ;;  %6082 = vperm.xlu0 %7261, %v7490_v46   ;;  %v14163_v46 = vld [vmem:[#allocation10_spill] sm:$0xff] }
 0x532   : > { %v5699_v30 = vpop.permute.xlu0 %5698  ;;  %v2750_v3 = vadd.f32 %v14163_v46, %v12481_v14 }
 0x533   : > { %v5620_v58 = vadd.f32 %v5588_v51, %v12138_v7  ;;  %v5774_v34 = vmul.f32 %v5699_v30, %v2726_v47  ;;  %5906 = vperm.xlu1 %7259, %v12072_v29   ;;  %v14164_v47 = vld [vmem:[#allocation78_spill] sm:$0xff] }
 0x534   : > { %v5539_v1 = vpop.permute.xlu1 %5538  ;;  %v2796_v24 = vadd.f32 %v14164_v47, %v12175_v20 }
 0x535   : > { %v12564_v16 = vadd.f32 %v5774_v34, %v5614_v54  ;;  %v5590_v33 = vmul.f32 %v5539_v1, %v2772_v26  ;;  %6090 = vperm.xlu0 %7261, %v7491_v42   ;;  %v14165_v42 = vld [vmem:[#allocation48_spill] sm:$0xff] }
 0x536   : > { %v5707_v63 = vpop.permute.xlu0 %5706  ;;  %v2762_v26 = vadd.f32 %v14165_v42, %v12481_v14 }
 0x537   : > { %v5622_v13 = vadd.f32 %v5590_v33, %v12150_v44  ;;  %v5776_v36 = vmul.f32 %v5707_v63, %v2738_v50  ;;  %5914 = vperm.xlu1 %7259, %v12083_v48  }
 0x538   : > { %v5547_v7 = vpop.permute.xlu1 %5546 }
 0x539   : > { %v12572_v51 = vadd.f32 %v5776_v36, %v5616_v31  ;;  %v5592_v30 = vmul.f32 %v5547_v7, %v2784_v62  ;;  %6098 = vperm.xlu0 %7261, %v12072_v29   ;;  %v14166_v31 = vld [vmem:[#allocation40_spill] sm:$0xff]  ;;  %v14167_v29 = vld [vmem:[#allocation9_spill] sm:$0xff] }
 0x53a   : > { %v5715_v54 = vpop.permute.xlu0 %5714  ;;  %v2808_v15 = vadd.f32 %v14166_v31, %v12175_v20  ;;  %v2774_v33 = vadd.f32 %v14167_v29, %v12481_v14  ;;  %v14170_v20 = vld [vmem:[#allocation47_spill] sm:$0xff]  ;;  %v14172_v31 = vld [vmem:[#allocation14_spill] sm:$0xff] }
 0x53b   : > { %v5624_v49 = vadd.f32 %v5592_v30, %v12159_v59  ;;  %v5778_v34 = vmul.f32 %v5715_v54, %v2750_v3  ;;  %5922 = vperm.xlu1 %7259, %v12094_v23   ;;  %v14168_v59 = vld [vmem:[#allocation73_spill] sm:$0xff] }
 0x53c   : > { %v5555_v44 = vpop.permute.xlu1 %5554 }
 0x53d   : > { %v12579_v50 = vadd.f32 %v5778_v34, %v5618_v55  ;;  %v5594_v1 = vmul.f32 %v5555_v44, %v2796_v24  ;;  %6106 = vperm.xlu0 %7261, %v12083_v48   ;;  %v14169_v48 = vld [vmem:[#allocation131_spill] sm:$0xff]  ;;  %v2786_v24 = vadd.f32 %v14170_v20, %v12481_v14 }
 0x53e   : > { %v5723_v62 = vpop.permute.xlu0 %5722  ;;  %v2630_v7 = vadd.f32 %v14169_v48, %v12481_v14 }
 0x53f   : > { %v5626_v63 = vadd.f32 %v5594_v1, %v12179_v52  ;;  %v5780_v46 = vmul.f32 %v5723_v62, %v2762_v26  ;;  %5930 = vperm.xlu1 %7259, %v14168_v59   ;;  %v12597_v52 = vpop.f32.mrb[7].mxu0  ;;  %v14171_v26 = vld [vmem:[#allocation87_spill] sm:$0xff]  ;;  %v14173_v62 = vld [vmem:[#allocation80_spill] sm:$0xff] }
 0x540   : > { %v5563_v3 = vpop.permute.xlu1 %5562  ;;  %v2636_v34 = vadd.f32 %v14171_v26, %v12481_v14 }
 0x541   : > { %v12588_v36 = vadd.f32 %v5780_v46, %v5620_v58  ;;  %v5596_v55 = vmul.f32 %v5563_v3, %v2808_v15  ;;  %6114 = vperm.xlu0 %7261, %v12094_v23   ;;  %v12602_v23 = vpop.f32.mrb[8].mxu0  ;;  %v14174_v46 = vld [vmem:[#allocation34_spill] sm:$0xff] }
 0x542   : > { %v5731_v47 = vpop.permute.xlu0 %5730 }
 0x543   : > { %v5628_v30 = vadd.f32 %v5596_v55, %v12199_v8  ;;  %v5782_v54 = vmul.f32 %v5731_v47, %v2774_v33  ;;  %5938 = vperm.xlu1 %7259, %v12118_v38   ;;  %v2798_v8 = vadd.f32 %v14172_v31, %v12481_v14  ;;  %v14176_v47 = vld [vmem:[#allocation126_spill] sm:$0xff] }
 0x544   : > { %v2810_v20 = vadd.f32 %v14176_v47, %v12481_v14 }
 0x545   : > { %v12599_v42 = vadd.f32 %v5782_v54, %v5622_v13  ;;  %6122 = vperm.xlu0 %7261, %v14168_v59   ;;  %v5635_v58 = vpop.permute.xlu1 %5634  ;;  %v2648_v59 = vadd.f32 %v14174_v46, %v12481_v14  ;;  %v14177_v54 = vsub.s32 6, %v13464_v21 }
 0x546   : > { %v5758_v44 = vmul.f32 %v5635_v58, %v2630_v7  ;;  %v5739_v1 = vpop.permute.xlu0 %5738  ;;  %v14175_v7 = vmov 15  }
 0x547   : > { %v5784_v15 = vmul.f32 %v5739_v1, %v2786_v24  ;;  %5946 = vperm.xlu1 %7259, %v14173_v62   ;;  %v12618_v24 = vpop.f32.mrb[9].mxu0 }
 0x548   : > { %v5790_v29 = vadd.f32 %v5758_v44, %v12224_v18 }
 0x549   : > { %v12610_v13 = vadd.f32 %v5784_v15, %v5624_v49  ;;  %6130 = vperm.xlu0 %7261, %v12118_v38   ;;  %v5639_v33 = vpop.permute.xlu1 %5638  ;;  %v7492_v49 = vld [vmem:[#allocation2 + $0x8] sm:$0xff] }
 0x54a   : > { %v5759_v3 = vmul.f32 %v5639_v33, %v2636_v34  ;;  %v5747_v55 = vpop.permute.xlu0 %5746  ;;  %v12626_v38 = vld [vmem:[%s13010_s4 + $0x8] sm:$0xff] }
 0x54b   : > { %v5786_v48 = vmul.f32 %v5747_v55, %v2798_v8  ;;  %7262 = vset.pattern.permute.xlu1 %v14175_v7  ;;  %v12631_v58 = vrot.slane %v12626_v38, %v14177_v54  ;;  %v14179_v33 = vld [vmem:[#allocation71_spill] sm:$0xff] }
 0x54c   : > { %v12621_v18 = vadd.f32 %v5759_v3, %v12460_v39  ;;  %6018 = vperm.xlu1 %7262, %v7492_v49   ;;  %v14178_v39 = vld [vmem:[#allocation49_spill] sm:$0xff]  ;;  %v14180_v55 = vld [vmem:[#allocation135_spill] sm:$0xff]  ;;  %v7494_v49 = vld [vmem:[#allocation2 + $0x20] sm:$0xff] }
 0x54d   : > { %v12633_v26 = vadd.f32 %v5786_v48, %v5626_v63  ;;  %6138 = vperm.xlu0 %7261, %v14173_v62   ;;  %v5647_v34 = vpop.permute.xlu1 %5646  ;;  %v2660_v44 = vadd.f32 %v14178_v39, %v12481_v14  ;;  %v2885_v46 = vadd.f32 %v14179_v33, %v12631_v58  ;;  %v2672_v62 = vadd.f32 %v14180_v55, %v12481_v14 }
 0x54e   : > { %v5761_v1 = vmul.f32 %v5647_v34, %v2648_v59  ;;  %v5755_v31 = vpop.permute.xlu0 %5754  ;;  %v14182_v34 = vld [vmem:[#allocation129_spill] sm:$0xff] }
 0x54f   : > { %v5788_v8 = vmul.f32 %v5755_v31, %v2810_v20 }
 0x550   : > { %v5793_v15 = vadd.f32 %v5761_v1, %v12243_v11  ;;  %6022 = vperm.xlu1 %7262, %v12484_v19   ;;  %v14181_v11 = vld [vmem:[#allocation112_spill] sm:$0xff]  ;;  %v2684_v19 = vadd.f32 %v14182_v34, %v12481_v14 }
 0x551   : > { %v12642_v3 = vadd.f32 %v5788_v8, %v5628_v30  ;;  %v5655_v63 = vpop.permute.xlu1 %5654  ;;  %v2903_v20 = vadd.f32 %v14181_v11, %v12631_v58  ;;  %v7495_v8 = vld [vmem:[#allocation2 + $0x30] sm:$0xff]  ;;  %v14184_v11 = vld [vmem:[#allocation119_spill] sm:$0xff] }
 0x552   : > { %v5763_v48 = vmul.f32 %v5655_v63, %v2660_v44 }
 0x553   : > { %v5827_v7 = vpop.permute.xlu0 %5826 }
 0x554   : > { %v5795_v47 = vadd.f32 %v5763_v48, %v12263_v35  ;;  %v5950_v59 = vmul.f32 %v5827_v7, %v2885_v46  ;;  %6030 = vperm.xlu1 %7262, %v7494_v49   ;;  %v2915_v35 = vadd.f32 %v12237_v2, %v12631_v58  ;;  %v14183_v46 = vld [vmem:[#allocation132_spill] sm:$0xff]  ;;  %v2708_v2 = vadd.f32 %v14184_v11, %v12481_v14 }
 0x555   : > { %v5663_v54 = vpop.permute.xlu1 %5662  ;;  %v2696_v63 = vadd.f32 %v14183_v46, %v12481_v14  ;;  %v7499_v11 = vld [vmem:[#allocation2 + $0x70] sm:$0xff] }
 0x556   : > { %v12651_v30 = vadd.f32 %v5950_v59, %v5790_v29  ;;  %v5765_v39 = vmul.f32 %v5663_v54, %v2672_v62  ;;  %v7496_v59 = vld [vmem:[#allocation2 + $0x40] sm:$0xff] }
 0x557   : > { %v5839_v1 = vpop.permute.xlu0 %5838 }
 0x558   : > { %v5797_v31 = vadd.f32 %v5765_v39, %v12283_v0  ;;  %v5953_v44 = vmul.f32 %v5839_v1, %v2903_v20  ;;  %6038 = vperm.xlu1 %7262, %v7495_v8   ;;  %v2927_v0 = vadd.f32 %v12256_v4, %v12631_v58  ;;  %v7497_v39 = vld [vmem:[#allocation2 + $0x50] sm:$0xff] }
 0x559   : > { %v5671_v33 = vpop.permute.xlu1 %5670 }
 0x55a   : > { %v12658_v55 = vadd.f32 %v5953_v44, %v5793_v15  ;;  %v5767_v48 = vmul.f32 %v5671_v33, %v2684_v19  ;;  %v14185_v44 = vld [vmem:[#allocation77_spill] sm:$0xff] }
 0x55b   : > { %v5847_v7 = vpop.permute.xlu0 %5846  ;;  %v2720_v4 = vadd.f32 %v14185_v44, %v12481_v14 }
 0x55c   : > { %v5799_v29 = vadd.f32 %v5767_v48, %v12303_v32  ;;  %v5955_v62 = vmul.f32 %v5847_v7, %v2915_v35  ;;  %6046 = vperm.xlu1 %7262, %v7496_v59   ;;  %v2939_v32 = vadd.f32 %v12276_v9, %v12631_v58  ;;  %v14186_v7 = vld [vmem:[#allocation53_spill] sm:$0xff] }
 0x55d   : > { %v5679_v49 = vpop.permute.xlu1 %5678  ;;  %v2732_v9 = vadd.f32 %v14186_v7, %v12481_v14  ;;  %v14189_v7 = vld [vmem:[#allocation136_spill] sm:$0xff] }
 0x55e   : > { %v12665_v20 = vadd.f32 %v5955_v62, %v5795_v47  ;;  %v5769_v54 = vmul.f32 %v5679_v49, %v2696_v63  ;;  %v7498_v63 = vld [vmem:[#allocation2 + $0x60] sm:$0xff] }
 0x55f   : > { %v5855_v34 = vpop.permute.xlu0 %5854 }
 0x560   : > { %v5801_v15 = vadd.f32 %v5769_v54, %v12323_v6  ;;  %v5957_v19 = vmul.f32 %v5855_v34, %v2927_v0  ;;  %6054 = vperm.xlu1 %7262, %v7497_v39   ;;  %v2951_v6 = vadd.f32 %v12296_v28, %v12631_v58  ;;  %v14187_v54 = vld [vmem:[#allocation62_spill] sm:$0xff] }
 0x561   : > { %v5687_v1 = vpop.permute.xlu1 %5686  ;;  %v2744_v28 = vadd.f32 %v14187_v54, %v12481_v14  ;;  %v14191_v54 = vld [vmem:[#allocation31_spill] sm:$0xff] }
 0x562   : > { %v12672_v8 = vadd.f32 %v5957_v19, %v5797_v31  ;;  %v5771_v35 = vmul.f32 %v5687_v1, %v2708_v2  ;;  %v7500_v1 = vld [vmem:[#allocation2 + $0x80] sm:$0xff] }
 0x563   : > { %v5863_v33 = vpop.permute.xlu0 %5862 }
 0x564   : > { %v5803_v47 = vadd.f32 %v5771_v35, %v12343_v5  ;;  %v5959_v46 = vmul.f32 %v5863_v33, %v2939_v32  ;;  %6062 = vperm.xlu1 %7262, %v7498_v63   ;;  %v2963_v5 = vadd.f32 %v12316_v61, %v12631_v58 }
 0x565   : > { %v5695_v48 = vpop.permute.xlu1 %5694 }
 0x566   : > { %v12679_v62 = vadd.f32 %v5959_v46, %v5799_v29  ;;  %v5773_v59 = vmul.f32 %v5695_v48, %v2720_v4  ;;  %v14188_v4 = vld [vmem:[#allocation128_spill] sm:$0xff] }
 0x567   : > { %v5871_v0 = vpop.permute.xlu0 %5870  ;;  %v2756_v61 = vadd.f32 %v14188_v4, %v12481_v14  ;;  %v14193_v4 = vld [vmem:[#allocation98_spill] sm:$0xff] }
 0x568   : > { %v5805_v31 = vadd.f32 %v5773_v59, %v12363_v37  ;;  %v5961_v49 = vmul.f32 %v5871_v0, %v2951_v6  ;;  %6070 = vperm.xlu1 %7262, %v7499_v11   ;;  %v2975_v37 = vadd.f32 %v12336_v60, %v12631_v58  ;;  %v7501_v6 = vld [vmem:[#allocation2 + $0x90] sm:$0xff]  ;;  %v2768_v60 = vadd.f32 %v14189_v7, %v12481_v14  ;;  %v7502_v11 = vld [vmem:[#allocation2 + $0xa0] sm:$0xff] }
 0x569   : > { %v5703_v2 = vpop.permute.xlu1 %5702 }
 0x56a   : > { %v12686_v34 = vadd.f32 %v5961_v49, %v5801_v15  ;;  %v5775_v19 = vmul.f32 %v5703_v2, %v2732_v9 }
 0x56b   : > { %v5879_v39 = vpop.permute.xlu0 %5878 }
 0x56c   : > { %v5807_v29 = vadd.f32 %v5775_v19, %v12385_v22  ;;  %v5963_v32 = vmul.f32 %v5879_v39, %v2963_v5  ;;  %6078 = vperm.xlu1 %7262, %v7500_v1   ;;  %v2987_v22 = vadd.f32 %v12356_v27, %v12631_v58  ;;  %v2780_v27 = vadd.f32 %v14191_v54, %v12481_v14  ;;  %v7503_v1 = vld [vmem:[#allocation2 + $0xb0] sm:$0xff] }
 0x56d   : > { %v5711_v44 = vpop.permute.xlu1 %5710  ;;  %v7504_v54 = vld [vmem:[#allocation2 + $0xd0] sm:$0xff] }
 0x56e   : > { %v12693_v35 = vadd.f32 %v5963_v32, %v5803_v47  ;;  %v5777_v33 = vmul.f32 %v5711_v44, %v2744_v28 }
 0x56f   : > { %v5887_v46 = vpop.permute.xlu0 %5886 }
 0x570   : > { %v5809_v15 = vadd.f32 %v5777_v33, %v12403_v53  ;;  %v5965_v63 = vmul.f32 %v5887_v46, %v2975_v37  ;;  %6086 = vperm.xlu1 %7262, %v7501_v6   ;;  %v14190_v53 = vld [vmem:[#allocation81_spill] sm:$0xff] }
 0x571   : > { %v5719_v48 = vpop.permute.xlu1 %5718  ;;  %v2999_v5 = vadd.f32 %v14190_v53, %v12631_v58 }
 0x572   : > { %v12700_v9 = vadd.f32 %v5965_v63, %v5805_v31  ;;  %v5779_v59 = vmul.f32 %v5719_v48, %v2756_v61  ;;  %v2792_v61 = vadd.f32 %v14193_v4, %v12481_v14  ;;  %v14195_v48 = vld [vmem:[#allocation117_spill] sm:$0xff] }
 0x573   : > { %v5895_v0 = vpop.permute.xlu0 %5894 }
 0x574   : > { %v5811_v47 = vadd.f32 %v5779_v59, %v12425_v10  ;;  %v5967_v49 = vmul.f32 %v5895_v0, %v2987_v22  ;;  %6094 = vperm.xlu1 %7262, %v7502_v11   ;;  %v14192_v10 = vld [vmem:[#allocation109_spill] sm:$0xff]  ;;  %v14197_v59 = vld [vmem:[#allocation88_spill] sm:$0xff] }
 0x575   : > { %v5727_v2 = vpop.permute.xlu1 %5726  ;;  %v3011_v37 = vadd.f32 %v14192_v10, %v12631_v58  ;;  %v2804_v0 = vadd.f32 %v14197_v59, %v12481_v14  ;;  %v14200_v10 = vld [vmem:[#allocation130_spill] sm:$0xff] }
 0x576   : > { %v12707_v28 = vadd.f32 %v5967_v49, %v5807_v29  ;;  %v5781_v19 = vmul.f32 %v5727_v2, %v2768_v60  ;;  %v14194_v29 = vld [vmem:[#allocation116_spill] sm:$0xff]  ;;  %v14205_v59 = vld [vmem:[#allocation106_spill] sm:$0xff] }
 0x577   : > { %v5903_v39 = vpop.permute.xlu0 %5902 }
 0x578   : > { %v5813_v31 = vadd.f32 %v5781_v19, %v12445_v12  ;;  %v5969_v32 = vmul.f32 %v5903_v39, %v2999_v5  ;;  %6102 = vperm.xlu1 %7262, %v7503_v1   ;;  %v14196_v12 = vld [vmem:[#allocation57_spill] sm:$0xff] }
 0x579   : > { %v5735_v44 = vpop.permute.xlu1 %5734  ;;  %v3023_v7 = vadd.f32 %v14196_v12, %v12631_v58 }
 0x57a   : > { %v12714_v33 = vadd.f32 %v5969_v32, %v5809_v15  ;;  %v5783_v46 = vmul.f32 %v5735_v44, %v2780_v27  ;;  %v14198_v15 = vld [vmem:[#allocation24_spill] sm:$0xff]  ;;  %v14199_v27 = vld [vmem:[#allocation103_spill] sm:$0xff] }
 0x57b   : > { %v5911_v63 = vpop.permute.xlu0 %5910  ;;  %v3035_v19 = vadd.f32 %v14199_v27, %v12631_v58  ;;  %v14208_v27 = vld [vmem:[#allocation121_spill] sm:$0xff] }
 0x57c   : > { %v5815_v6 = vadd.f32 %v5783_v46, %v14194_v29  ;;  %v5971_v22 = vmul.f32 %v5911_v63, %v3011_v37  ;;  %6110 = vperm.xlu1 %7262, %v14195_v48   ;;  %v2879_v37 = vadd.f32 %v14200_v10, %v12631_v58  ;;  %v14203_v46 = vld [vmem:[#allocation44_spill] sm:$0xff]  ;;  %v14204_v48 = vld [vmem:[#allocation90_spill] sm:$0xff] }
 0x57d   : > { %v5743_v60 = vpop.permute.xlu1 %5742  ;;  %v3047_v63 = vadd.f32 %v14203_v46, %v12631_v58  ;;  %v14211_v46 = vld [vmem:[#allocation114_spill] sm:$0xff] }
 0x57e   : > { %v12722_v49 = vadd.f32 %v5971_v22, %v5811_v47  ;;  %v5785_v11 = vmul.f32 %v5743_v60, %v2792_v61  ;;  %v14201_v47 = vld [vmem:[#allocation21_spill] sm:$0xff] }
 0x57f   : > { %v5919_v53 = vpop.permute.xlu0 %5918  ;;  %v14202_v61 = vld [vmem:[#allocation41_spill] sm:$0xff] }
 0x580   : > { %v5817_v5 = vadd.f32 %v5785_v11, %v14198_v15  ;;  %v5973_v2 = vmul.f32 %v5919_v53, %v3023_v7  ;;  %6118 = vperm.xlu1 %7262, %v7504_v54  }
 0x581   : > { %v5751_v39 = vpop.permute.xlu1 %5750 }
 0x582   : > { %v12727_v32 = vadd.f32 %v5973_v2, %v5813_v31  ;;  %v5787_v1 = vmul.f32 %v5751_v39, %v2804_v0  ;;  %v2891_v31 = vadd.f32 %v14204_v48, %v12631_v58  ;;  %v14206_v0 = vld [vmem:[#allocation13_spill] sm:$0xff] }
 0x583   : > { %v5927_v14 = vpop.permute.xlu0 %5926  ;;  %v3059_v11 = vadd.f32 %v14206_v0, %v12631_v58 }
 0x584   : > { %v5819_v44 = vadd.f32 %v5787_v1, %v14201_v47  ;;  %v5975_v4 = vmul.f32 %v5927_v14, %v3035_v19  ;;  %6126 = vperm.xlu1 %7262, %v14202_v61   ;;  %v2897_v19 = vadd.f32 %v14208_v27, %v12631_v58  ;;  %v14214_v27 = vld [vmem:[#allocation91_spill] sm:$0xff] }
 0x586   : > { %v12735_v29 = vadd.f32 %v5975_v4, %v5815_v6  ;;  %v5823_v22 = vpop.permute.xlu1 %5822  ;;  %v14207_v6 = vsub.s32 7, %v13464_v21  ;;  %v14210_v21 = vld [vmem:[#allocation6_spill] sm:$0xff] }
 0x587   : > { %v5949_v12 = vmul.f32 %v5823_v22, %v2879_v37  ;;  %v5935_v7 = vpop.permute.xlu0 %5934  ;;  %v2909_v4 = vadd.f32 %v14210_v21, %v12631_v58  ;;  %v14216_v21 = vld [vmem:[#allocation63_spill] sm:$0xff] }
 0x588   : > { %v5977_v60 = vmul.f32 %v5935_v7, %v3047_v63  ;;  %6134 = vperm.xlu1 %7262, %v14205_v59   ;;  %v12748_v54 = vrot.slane %v12626_v38, %v14207_v6  ;;  %v14213_v59 = vld [vmem:[#allocation82_spill] sm:$0xff] }
 0x589   : > { %v5981_v53 = vadd.f32 %v5949_v12, %v12507_v43 }
 0x58a   : > { %v12743_v15 = vadd.f32 %v5977_v60, %v5817_v5  ;;  %v5831_v2 = vpop.permute.xlu1 %5830  ;;  %v14209_v5 = vld [vmem:[#allocation45_spill] sm:$0xff]  ;;  %v2899_v63 = vadd.f32 %v14211_v46, %v12748_v54  ;;  %v2911_v0 = vadd.f32 %v14213_v59, %v12748_v54  ;;  %v14219_v59 = vld [vmem:[#allocation86_spill] sm:$0xff] }
 0x58b   : > { %v5951_v39 = vmul.f32 %v5831_v2, %v2891_v31  ;;  %v5943_v1 = vpop.permute.xlu0 %5942  ;;  %v2881_v47 = vadd.f32 %v14209_v5, %v12748_v54  ;;  %v14217_v46 = vld [vmem:[#allocation61_spill] sm:$0xff] }
 0x58c   : > { %v5979_v10 = vmul.f32 %v5943_v1, %v3059_v11 }
 0x58d   : > { %v12753_v37 = vadd.f32 %v5951_v39, %v12621_v18  ;;  %v14212_v18 = vld [vmem:[#allocation27_spill] sm:$0xff] }
 0x58e   : > { %v12755_v14 = vadd.f32 %v5979_v10, %v5819_v44  ;;  %v5835_v43 = vpop.permute.xlu1 %5834  ;;  %v2921_v44 = vadd.f32 %v14212_v18, %v12631_v58  ;;  %v14215_v10 = vld [vmem:[#allocation74_spill] sm:$0xff] }
 0x58f   : > { %v5952_v38 = vmul.f32 %v5835_v43, %v2897_v19  ;;  %v2933_v19 = vadd.f32 %v14214_v27, %v12631_v58  ;;  %v14218_v18 = vld [vmem:[#allocation102_spill] sm:$0xff]  ;;  %v14220_v27 = vld [vmem:[#allocation105_spill] sm:$0xff] }
 0x590   : > { %v6015_v61 = vpop.permute.xlu0 %6014 }
 0x591   : > { %v5984_v22 = vadd.f32 %v5952_v38, %v12514_v45  ;;  %v6141_v48 = vmul.f32 %v6015_v61, %v2881_v47 }
 0x592   : > { %v5843_v31 = vpop.permute.xlu1 %5842 }
 0x593   : > { %v12766_v12 = vadd.f32 %v6141_v48, %v5981_v53  ;;  %v5954_v7 = vmul.f32 %v5843_v31, %v2909_v4  ;;  %v2923_v53 = vadd.f32 %v14215_v10, %v12748_v54  ;;  %v2945_v4 = vadd.f32 %v14216_v21, %v12631_v58  ;;  %v14221_v10 = vld [vmem:[#allocation18_spill] sm:$0xff] }
 0x594   : > { %v6027_v60 = vpop.permute.xlu0 %6026  ;;  %v14222_v21 = vld [vmem:[#allocation54_spill] sm:$0xff] }
 0x595   : > { %v5986_v11 = vadd.f32 %v5954_v7, %v12521_v40  ;;  %v6144_v2 = vmul.f32 %v6027_v60, %v2899_v63  ;;  %v2935_v63 = vadd.f32 %v14217_v46, %v12748_v54  ;;  %v14223_v46 = vld [vmem:[#allocation72_spill] sm:$0xff] }
 0x596   : > { %v5851_v6 = vpop.permute.xlu1 %5850 }
 0x597   : > { %v12773_v45 = vadd.f32 %v6144_v2, %v5984_v22  ;;  %v5956_v39 = vmul.f32 %v5851_v6, %v2921_v44  ;;  %v2957_v44 = vadd.f32 %v14218_v18, %v12631_v58  ;;  %v14224_v18 = vld [vmem:[#allocation69_spill] sm:$0xff] }
 0x598   : > { %v6035_v1 = vpop.permute.xlu0 %6034 }
 0x599   : > { %v5988_v43 = vadd.f32 %v5956_v39, %v12528_v56  ;;  %v6146_v5 = vmul.f32 %v6035_v1, %v2911_v0  ;;  %v2947_v0 = vadd.f32 %v14219_v59, %v12748_v54  ;;  %v14225_v59 = vld [vmem:[#allocation108_spill] sm:$0xff] }
 0x59a   : > { %v5859_v47 = vpop.permute.xlu1 %5858 }
 0x59b   : > { %v12780_v40 = vadd.f32 %v6146_v5, %v5986_v11  ;;  %v5958_v38 = vmul.f32 %v5859_v47, %v2933_v19  ;;  %v2969_v19 = vadd.f32 %v14220_v27, %v12631_v58  ;;  %v14226_v27 = vld [vmem:[#allocation75_spill] sm:$0xff] }
 0x59c   : > { %v6043_v61 = vpop.permute.xlu0 %6042 }
 0x59d   : > { %v5990_v22 = vadd.f32 %v5958_v38, %v12535_v17  ;;  %v6148_v48 = vmul.f32 %v6043_v61, %v2923_v53  ;;  %v2959_v53 = vadd.f32 %v14221_v10, %v12748_v54  ;;  %v14227_v10 = vld [vmem:[#allocation92_spill] sm:$0xff] }
 0x59e   : > { %v5867_v31 = vpop.permute.xlu1 %5866 }
 0x59f   : > { %v12787_v56 = vadd.f32 %v6148_v48, %v5988_v43  ;;  %v5960_v7 = vmul.f32 %v5867_v31, %v2945_v4  ;;  %v2981_v4 = vadd.f32 %v14222_v21, %v12631_v58  ;;  %v14228_v21 = vld [vmem:[#allocation55_spill] sm:$0xff] }
 0x5a0   : > { %v6051_v60 = vpop.permute.xlu0 %6050 }
 0x5a1   : > { %v5992_v11 = vadd.f32 %v5960_v7, %v12542_v57  ;;  %v6150_v2 = vmul.f32 %v6051_v60, %v2935_v63  ;;  %v2971_v63 = vadd.f32 %v14223_v46, %v12748_v54  ;;  %v14229_v46 = vld [vmem:[#allocation95_spill] sm:$0xff] }
 0x5a2   : > { %v5875_v6 = vpop.permute.xlu1 %5874 }
 0x5a3   : > { %v12794_v17 = vadd.f32 %v6150_v2, %v5990_v22  ;;  %v5962_v39 = vmul.f32 %v5875_v6, %v2957_v44  ;;  %v2993_v44 = vadd.f32 %v14224_v18, %v12631_v58  ;;  %v14230_v18 = vld [vmem:[#allocation67_spill] sm:$0xff] }
 0x5a4   : > { %v6059_v1 = vpop.permute.xlu0 %6058 }
 0x5a5   : > { %v5994_v43 = vadd.f32 %v5962_v39, %v12549_v25  ;;  %v6152_v5 = vmul.f32 %v6059_v1, %v2947_v0  ;;  %v2983_v0 = vadd.f32 %v14225_v59, %v12748_v54  ;;  %v14231_v59 = vld [vmem:[#allocation37_spill] sm:$0xff] }
 0x5a6   : > { %v5883_v47 = vpop.permute.xlu1 %5882 }
 0x5a7   : > { %v12801_v57 = vadd.f32 %v6152_v5, %v5992_v11  ;;  %v5964_v38 = vmul.f32 %v5883_v47, %v2969_v19  ;;  %v3005_v19 = vadd.f32 %v14226_v27, %v12631_v58  ;;  %v14232_v27 = vld [vmem:[#allocation20_spill] sm:$0xff] }
 0x5a8   : > { %v6067_v61 = vpop.permute.xlu0 %6066 }
 0x5a9   : > { %v5996_v22 = vadd.f32 %v5964_v38, %v12556_v41  ;;  %v6154_v48 = vmul.f32 %v6067_v61, %v2959_v53  ;;  %v2995_v53 = vadd.f32 %v14227_v10, %v12748_v54  ;;  %v14233_v10 = vld [vmem:[#allocation120_spill] sm:$0xff] }
 0x5aa   : > { %v5891_v31 = vpop.permute.xlu1 %5890 }
 0x5ab   : > { %v12808_v25 = vadd.f32 %v6154_v48, %v5994_v43  ;;  %v5966_v7 = vmul.f32 %v5891_v31, %v2981_v4  ;;  %v3017_v4 = vadd.f32 %v14228_v21, %v12631_v58  ;;  %v14234_v21 = vld [vmem:[#allocation35_spill] sm:$0xff] }
 0x5ac   : > { %v6075_v60 = vpop.permute.xlu0 %6074 }
 0x5ad   : > { %v5998_v11 = vadd.f32 %v5966_v7, %v12564_v16  ;;  %v6156_v2 = vmul.f32 %v6075_v60, %v2971_v63  ;;  %v3007_v63 = vadd.f32 %v14229_v46, %v12748_v54  ;;  %v14235_v46 = vld [vmem:[#allocation32_spill] sm:$0xff] }
 0x5ae   : > { %v5899_v6 = vpop.permute.xlu1 %5898 }
 0x5af   : > { %v12815_v41 = vadd.f32 %v6156_v2, %v5996_v22  ;;  %v5968_v39 = vmul.f32 %v5899_v6, %v2993_v44  ;;  %v3029_v44 = vadd.f32 %v14230_v18, %v12631_v58 }
 0x5b0   : > { %v6083_v1 = vpop.permute.xlu0 %6082 }
 0x5b1   : > { %v6000_v43 = vadd.f32 %v5968_v39, %v12572_v51  ;;  %v6158_v5 = vmul.f32 %v6083_v1, %v2983_v0  ;;  %v3019_v0 = vadd.f32 %v14231_v59, %v12748_v54 }
 0x5b2   : > { %v5907_v47 = vpop.permute.xlu1 %5906 }
 0x5b3   : > { %v12822_v16 = vadd.f32 %v6158_v5, %v5998_v11  ;;  %v5970_v38 = vmul.f32 %v5907_v47, %v3005_v19  ;;  %v3041_v19 = vadd.f32 %v14232_v27, %v12631_v58 }
 0x5b4   : > { %v6091_v61 = vpop.permute.xlu0 %6090 }
 0x5b5   : > { %v6002_v22 = vadd.f32 %v5970_v38, %v12579_v50  ;;  %v6160_v48 = vmul.f32 %v6091_v61, %v2995_v53  ;;  %v3031_v53 = vadd.f32 %v14233_v10, %v12748_v54 }
 0x5b6   : > { %v5915_v31 = vpop.permute.xlu1 %5914 }
 0x5b7   : > { %v12829_v51 = vadd.f32 %v6160_v48, %v6000_v43  ;;  %v5972_v7 = vmul.f32 %v5915_v31, %v3017_v4  ;;  %v3053_v4 = vadd.f32 %v14234_v21, %v12631_v58 }
 0x5b8   : > { %v6099_v60 = vpop.permute.xlu0 %6098 }
 0x5b9   : > { %v6004_v11 = vadd.f32 %v5972_v7, %v12588_v36  ;;  %v6162_v2 = vmul.f32 %v6099_v60, %v3007_v63  ;;  %v3043_v63 = vadd.f32 %v14235_v46, %v12748_v54  ;;  %v14236_v60 = vld [vmem:[#allocation60_spill] sm:$0xff] }
 0x5ba   : > { %v5923_v6 = vpop.permute.xlu1 %5922  ;;  %v3055_v59 = vadd.f32 %v14236_v60, %v12748_v54  ;;  %v14239_v46 = vld [vmem:[#allocation8_spill] sm:$0xff] }
 0x5bb   : > { %v12836_v50 = vadd.f32 %v6162_v2, %v6002_v22  ;;  %v5974_v39 = vmul.f32 %v5923_v6, %v3029_v44  ;;  %v3065_v44 = vadd.f32 %v12602_v23, %v12631_v58  ;;  %v14237_v23 = vld [vmem:[#allocation133_spill] sm:$0xff] }
 0x5bc   : > { %v6107_v1 = vpop.permute.xlu0 %6106  ;;  %v2887_v58 = vadd.f32 %v14237_v23, %v12748_v54  ;;  %v14243_v23 = vld [vmem:[#allocation110_spill] sm:$0xff] }
 0x5bd   : > { %v6006_v43 = vadd.f32 %v5974_v39, %v12599_v42  ;;  %v6164_v5 = vmul.f32 %v6107_v1, %v3019_v0  ;;  %v3067_v1 = vadd.f32 %v12618_v24, %v12748_v54 }
 0x5be   : > { %v5931_v47 = vpop.permute.xlu1 %5930 }
 0x5bf   : > { %v12843_v36 = vadd.f32 %v6164_v5, %v6004_v11  ;;  %v5976_v38 = vmul.f32 %v5931_v47, %v3041_v19  ;;  %v14238_v47 = vld [vmem:[#allocation11_spill] sm:$0xff] }
 0x5c0   : > { %v6115_v61 = vpop.permute.xlu0 %6114  ;;  %v2893_v21 = vadd.f32 %v14238_v47, %v12748_v54 }
 0x5c1   : > { %v6008_v22 = vadd.f32 %v5976_v38, %v12610_v13  ;;  %v6166_v48 = vmul.f32 %v6115_v61, %v3031_v53 }
 0x5c2   : > { %v5939_v31 = vpop.permute.xlu1 %5938 }
 0x5c3   : > { %v12848_v18 = vadd.f32 %v6166_v48, %v6006_v43  ;;  %v5978_v42 = vmul.f32 %v5939_v31, %v3053_v4 }
 0x5c4   : > { %v6123_v7 = vpop.permute.xlu0 %6122 }
 0x5c5   : > { %v6010_v0 = vadd.f32 %v5978_v42, %v12633_v26  ;;  %v6168_v11 = vmul.f32 %v6123_v7, %v3043_v63  ;;  %v2905_v63 = vadd.f32 %v14239_v46, %v12748_v54  ;;  %v14240_v42 = vld [vmem:[#allocation26_spill] sm:$0xff]  ;;  %v14246_v46 = vld [vmem:[#allocation15_spill] sm:$0xff] }
 0x5c6   : > { %v5947_v2 = vpop.permute.xlu1 %5946 }
 0x5c7   : > { %v12855_v6 = vadd.f32 %v6168_v11, %v6008_v22  ;;  %v5980_v13 = vmul.f32 %v5947_v2, %v3065_v44 }
 0x5c8   : > { %v6131_v27 = vpop.permute.xlu0 %6130 }
 0x5c9   : > { %v6012_v19 = vadd.f32 %v5980_v13, %v12642_v3  ;;  %v6170_v39 = vmul.f32 %v6131_v27, %v3055_v59  ;;  %v14242_v27 = vld [vmem:[#allocation94_spill] sm:$0xff] }
 0x5cb   : > { %v12863_v10 = vadd.f32 %v6170_v39, %v6010_v0  ;;  %v6019_v53 = vpop.permute.xlu1 %6018  ;;  %v14241_v0 = vld [vmem:[#allocation66_spill] sm:$0xff] }
 0x5cc   : > { %v6142_v26 = vmul.f32 %v6019_v53, %v2887_v58  ;;  %v6139_v43 = vpop.permute.xlu0 %6138  ;;  %v2929_v11 = vadd.f32 %v14241_v0, %v12748_v54  ;;  %v2953_v58 = vadd.f32 %v14243_v23, %v12748_v54  ;;  %v14249_v0 = vld [vmem:[#allocation115_spill] sm:$0xff] }
 0x5cd   : > { %v6172_v5 = vmul.f32 %v6139_v43, %v3067_v1  ;;  %v14244_v43 = vld [vmem:[#allocation104_spill] sm:$0xff] }
 0x5ce   : > { %v6174_v3 = vadd.f32 %v6142_v26, %v12651_v30 }
 0x5cf   : > { %v12870_v4 = vadd.f32 %v6172_v5, %v6012_v19  ;;  %v6023_v24 = vpop.permute.xlu1 %6022  ;;  %v2941_v19 = vadd.f32 %v14242_v27, %v12748_v54  ;;  %v2965_v5 = vadd.f32 %v14244_v43, %v12748_v54 }
 0x5d0   : > { %v6843_v38 = vpack.c.bf16 %v6174_v3, %v12766_v12  ;;  %v6143_v61 = vmul.f32 %v6023_v24, %v2893_v21  ;;  %v2917_v12 = vadd.f32 %v14240_v42, %v12748_v54  ;;  %v14245_v3 = vld [vmem:[#allocation56_spill] sm:$0xff] }
 0x5d1   : > { %v2977_v24 = vadd.f32 %v14245_v3, %v12748_v54 }
 0x5d2   : > { %6844 = vst [vmem:[%s12875_s24] sm:$0xff] %v6843_v38   ;;  %v6175_v22 = vadd.f32 %v6143_v61, %v12753_v37 }
 0x5d3   : > { %v6031_v48 = vpop.permute.xlu1 %6030 }
 0x5d4   : > { %v6848_v30 = vpack.c.bf16 %v12773_v45, %v6175_v22  ;;  %v6145_v31 = vmul.f32 %v6031_v48, %v2905_v63  ;;  %v2989_v63 = vadd.f32 %v14246_v46, %v12748_v54 }
 0x5d6   : > { %6920 = vst [vmem:[%s12875_s24 + $0x8] sm:$0xff] %v6848_v30   ;;  %v6177_v44 = vadd.f32 %v6145_v31, %v12658_v55  ;;  %v14247_v30 = vld [vmem:[#allocation97_spill] sm:$0xff] }
 0x5d7   : > { %v6039_v7 = vpop.permute.xlu1 %6038  ;;  %v3001_v31 = vadd.f32 %v14247_v30, %v12748_v54 }
 0x5d8   : > { %v6853_v60 = vpack.c.bf16 %v12780_v40, %v6177_v44  ;;  %v6147_v59 = vmul.f32 %v6039_v7, %v2917_v12  ;;  %v14248_v44 = vld [vmem:[#allocation113_spill] sm:$0xff] }
 0x5d9   : > { %v3013_v7 = vadd.f32 %v14248_v44, %v12748_v54 }
 0x5da   : > { %6921 = vst [vmem:[%s12875_s24 + $0x10] sm:$0xff] %v6853_v60   ;;  %v6179_v37 = vadd.f32 %v6147_v59, %v12665_v20 }
 0x5db   : > { %v6047_v2 = vpop.permute.xlu1 %6046 }
 0x5dc   : > { %v6858_v45 = vpack.c.bf16 %v12787_v56, %v6179_v37  ;;  %v6149_v13 = vmul.f32 %v6047_v2, %v2929_v11  ;;  %v3025_v11 = vadd.f32 %v14249_v0, %v12748_v54 }
 0x5de   : > { %6922 = vst [vmem:[%s12875_s24 + $0x18] sm:$0xff] %v6858_v45   ;;  %v6181_v55 = vadd.f32 %v6149_v13, %v12672_v8  ;;  %v14250_v45 = vld [vmem:[#allocation85_spill] sm:$0xff] }
 0x5df   : > { %v6055_v39 = vpop.permute.xlu1 %6054  ;;  %v3037_v13 = vadd.f32 %v14250_v45, %v12748_v54 }
 0x5e0   : > { %v6863_v40 = vpack.c.bf16 %v12794_v17, %v6181_v55  ;;  %v6151_v1 = vmul.f32 %v6055_v39, %v2941_v19 }
 0x5e2   : > { %6923 = vst [vmem:[%s12875_s24 + $0x20] sm:$0xff] %v6863_v40   ;;  %v6183_v20 = vadd.f32 %v6151_v1, %v12679_v62 }
 0x5e3   : > { %v6063_v53 = vpop.permute.xlu1 %6062 }
 0x5e4   : > { %v6868_v56 = vpack.c.bf16 %v12801_v57, %v6183_v20  ;;  %v6153_v26 = vmul.f32 %v6063_v53, %v2953_v58 }
 0x5e6   : > { %6924 = vst [vmem:[%s12875_s24 + $0x28] sm:$0xff] %v6868_v56   ;;  %v6185_v8 = vadd.f32 %v6153_v26, %v12686_v34 }
 0x5e7   : > { %v6071_v47 = vpop.permute.xlu1 %6070 }
 0x5e8   : > { %v6873_v17 = vpack.c.bf16 %v12808_v25, %v6185_v8  ;;  %v6155_v21 = vmul.f32 %v6071_v47, %v2965_v5 }
 0x5ea   : > { %6925 = vst [vmem:[%s12875_s24 + $0x30] sm:$0xff] %v6873_v17   ;;  %v6187_v62 = vadd.f32 %v6155_v21, %v12693_v35 }
 0x5eb   : > { %v6079_v38 = vpop.permute.xlu1 %6078 }
 0x5ec   : > { %v6878_v57 = vpack.c.bf16 %v12815_v41, %v6187_v62  ;;  %v6157_v61 = vmul.f32 %v6079_v38, %v2977_v24 }
 0x5ee   : > { %6926 = vst [vmem:[%s12875_s24 + $0x38] sm:$0xff] %v6878_v57   ;;  %v6189_v34 = vadd.f32 %v6157_v61, %v12700_v9 }
 0x5ef   : > { %v6087_v22 = vpop.permute.xlu1 %6086 }
 0x5f0   : > { %v6883_v25 = vpack.c.bf16 %v12822_v16, %v6189_v34  ;;  %v6159_v48 = vmul.f32 %v6087_v22, %v2989_v63 }
 0x5f2   : > { %6927 = vst [vmem:[%s12875_s24 + $0x40] sm:$0xff] %v6883_v25   ;;  %v6191_v35 = vadd.f32 %v6159_v48, %v12707_v28 }
 0x5f3   : > { %v6095_v42 = vpop.permute.xlu1 %6094 }
 0x5f4   : > { %v6888_v41 = vpack.c.bf16 %v12829_v51, %v6191_v35  ;;  %v6161_v12 = vmul.f32 %v6095_v42, %v3001_v31 }
 0x5f6   : > { %6928 = vst [vmem:[%s12875_s24 + $0x48] sm:$0xff] %v6888_v41   ;;  %v6193_v9 = vadd.f32 %v6161_v12, %v12714_v33 }
 0x5f7   : > { %v6103_v60 = vpop.permute.xlu1 %6102 }
 0x5f8   : > { %v6893_v16 = vpack.c.bf16 %v12836_v50, %v6193_v9  ;;  %v6163_v59 = vmul.f32 %v6103_v60, %v3013_v7 }
 0x5fa   : > { %6929 = vst [vmem:[%s12875_s24 + $0x50] sm:$0xff] %v6893_v16   ;;  %v6195_v28 = vadd.f32 %v6163_v59, %v12722_v49  ;;  %v14251_v49 = vld [vmem:[#allocation124_spill] sm:$0xff] }
 0x5fb   : > { %v6111_v37 = vpop.permute.xlu1 %6110  ;;  %v3049_v55 = vadd.f32 %v14251_v49, %v12748_v54 }
 0x5fc   : > { %v6898_v51 = vpack.c.bf16 %v12843_v36, %v6195_v28  ;;  %v6165_v2 = vmul.f32 %v6111_v37, %v3025_v11 }
 0x5fe   : > { %6930 = vst [vmem:[%s12875_s24 + $0x58] sm:$0xff] %v6898_v51   ;;  %v6197_v33 = vadd.f32 %v6165_v2, %v12727_v32  ;;  %v3061_v32 = vadd.f32 %v12597_v52, %v12748_v54 }
 0x5ff   : > { %v6119_v50 = vpop.permute.xlu1 %6118 }
 0x600   : > { %v6903_v27 = vpack.c.bf16 %v12848_v18, %v6197_v33  ;;  %v6167_v19 = vmul.f32 %v6119_v50, %v3037_v13 }
 0x602   : > { %6931 = vst [vmem:[%s12875_s24 + $0x60] sm:$0xff] %v6903_v27   ;;  %v6199_v36 = vadd.f32 %v6167_v19, %v12735_v29 }
 0x603   : > { %v6127_v39 = vpop.permute.xlu1 %6126 }
 0x604   : > { %v6908_v40 = vpack.c.bf16 %v12855_v6, %v6199_v36  ;;  %v6169_v1 = vmul.f32 %v6127_v39, %v3049_v55 }
 0x606   : > { %6932 = vst [vmem:[%s12875_s24 + $0x68] sm:$0xff] %v6908_v40   ;;  %v6201_v18 = vadd.f32 %v6169_v1, %v12743_v15 }
 0x607   : > { %v6135_v23 = vpop.permute.xlu1 %6134 }
 0x608   : > { %v6913_v58 = vpack.c.bf16 %v12863_v10, %v6201_v18  ;;  %v6171_v20 = vmul.f32 %v6135_v23, %v3061_v32 }
 0x60a   : > { %6933 = vst [vmem:[%s12875_s24 + $0x70] sm:$0xff] %v6913_v58   ;;  %v6203_v29 = vadd.f32 %v6171_v20, %v12755_v14 }
 0x60c   : > { %v6918_v52 = vpack.c.bf16 %v12870_v4, %v6203_v29 }
 0x60e   : > { %6934 = vst [vmem:[%s12875_s24 + $0x78] sm:$0xff] %v6918_v52  }
 0x60f   : > { %7518 = shalt.err (!%p7515_p5)
}
 0x610   : > { %s7519_s13 = scalar_lea.hbm %s12952_s9, 2048  ;;  %s7523_s16 = scalar_lea.hbm %s13011_s5, 4096 }
 0x611   : > { %p7520_p6 = scmp.ne.s32.totalorder %s12952_s9, %s7519_s13  ;;  %p7524_p10 = scmp.lt.u32.totalorder %s12952_s9, %s13011_s5 }
 0x612   : > { %p7525_p11 = scmp.lt.u32.totalorder %s7523_s16, %s7519_s13  ;;  %p7527_p13 = scmp.lt.u32.totalorder %s7519_s13, %s12952_s9 }
 0x613   : > { %p7521_p7 = pnand %p7520_p6, %p7675_p4 }
 0x614   : > { %p7526_p12 = por %p7525_p11, %p7524_p10 }
 0x615   : > { %p7522_p9 = pneg %p7521_p7 }
 0x616   : > { %p7528_p0 = por %p7527_p13, %p7526_p12 }
 0x618   : > { %p7529_p1 = pnand %p7528_p0, %p7522_p9 }
 0x61a   : > { %7532 = shalt.err (!%p7529_p1)
}
 0x61b   : > { %s7603_s25 = smov 64   ;;  %s7604_s7 = smov 4  }
 0x61c   : > { %7009 = dma.vmem_to_hbm [thread:$0]  (%p7675_p4), %s12954_s27, 2048, %s12952_s9, %s12960_s10, %s7603_s25, %s7603_s25, %s7604_s7  }
 0x61d PF: > { %p7015_p2 = scmp.ge.s32.totalorder %s7583_s23, 2  ;;  %s6394_s8 = sand.u32 1, %s7563_s18  }
 0x61e   : > { %s6395_s21 = scalar_lea.sflag [#allocation4], %s6394_s8 }
 0x61f   : > { %p7012_p3 = pnand %p7015_p2, %p7682_p8 }
 0x621   : > { %7558 = dma.done.wait (!%p7012_p3), %s6395_s21, 2048  }
 0x622   : > { %7560 = vsyncadd (!%p7012_p3), %s6395_s21, 4294965248  ;;  %s18_s23 = sadd.s32 1, %s7583_s23   ;;  %s14252_s18 = smov %s7567_s19 }
 0x623   : > { %p15_p5 = scmp.ge.s32.totalorder %s18_s23, 4   ;;  %s14253_s19 = smov %s7571_s20 }
 0x624   : > { %s14254_s20 = smov %s7688_s6  ;;  %s14255_s21 = smov %s7579_s22 }
 0x625   : > { %s14256_s22 = smov %s14258_s26  ;;  %17 = sbr.rel (!%p15_p5) target bundleno = 4 (0x4), region = 89 }
 0x62c   :  { %6400 = vsyncpa [#allocation4], 1 }
 0x62d   :  { %6402 = vsyncpa [#allocation4 + $0x1], 1 }

</bundles_post_ra>
